<compile_context>
chip_gen: v7x
topology: tpu7x:2x2x1
jax: 0.10.0
libtpu: 0.0.40
codegen_flags: <defaults>
</compile_context>

<pallas_src>
import functools

import jax
import jax.numpy as jnp
from jax.experimental import pallas as pl
from jax.experimental.pallas import tpu as pltpu

_NEG_LARGE = -3.0e38  # finite stand-in for -inf in max-pool padding
_BN_EPS = 1e-5


# ----------------------- strided-VMEM-read capability probe -------------------
def _stride_probe_kernel(x_ref, o_ref):
    o_ref[...] = x_ref[pl.ds(0, 4, stride=2), pl.ds(0, 4, stride=2), :]


@functools.lru_cache(maxsize=1)
def _strided_reads_ok():
    """True if strided ref reads (pl.ds with stride) lower on this backend."""
    try:
        x = jnp.arange(8 * 8 * 128, dtype=jnp.float32).reshape(8, 8, 128)
        y = pl.pallas_call(
            _stride_probe_kernel,
            grid=(1,),
            in_specs=[pl.BlockSpec((8, 8, 128), lambda i: (0, 0, 0))],
            out_specs=pl.BlockSpec((4, 4, 128), lambda i: (0, 0, 0)),
            out_shape=jax.ShapeDtypeStruct((4, 4, 128), jnp.float32),
        )(x)
        return bool(jnp.all(y == x[::2, ::2, :]))
    except Exception:
        return False


# ------------- standalone BN batch stats (fallback path only) -----------------
def _bn_stats_kernel(x_ref, g_ref, b_ref, scale_ref, shift_ref, s_ref, q_ref,
                     *, count, eps):
    bi = pl.program_id(0)

    @pl.when(bi == 0)
    def _init():
        s_ref[...] = jnp.zeros(s_ref.shape, jnp.float32)
        q_ref[...] = jnp.zeros(q_ref.shape, jnp.float32)

    h, w, c = x_ref.shape[1], x_ref.shape[2], x_ref.shape[3]
    x2 = x_ref[0].astype(jnp.float32).reshape(h * w, c)      # (H*W, C)
    s_ref[...] += jnp.sum(x2, axis=0, keepdims=True)
    q_ref[...] += jnp.sum(x2 * x2, axis=0, keepdims=True)

    @pl.when(bi == pl.num_programs(0) - 1)
    def _finalize():
        inv = jnp.float32(1.0 / count)
        mean = s_ref[...] * inv
        var = jnp.maximum(q_ref[...] * inv - mean * mean, 0.0)
        rstd = jax.lax.rsqrt(var + eps)
        sc = g_ref[...] * rstd
        scale_ref[...] = sc
        shift_ref[...] = b_ref[...] - mean * sc


def bn_scale_shift(x, gamma, beta, eps=_BN_EPS):
    """Per-channel (scale, shift) so that relu_bn(x) == relu(x*scale + shift)."""
    n, h, w, c = x.shape
    kern = functools.partial(_bn_stats_kernel, count=float(n * h * w), eps=eps)
    scale, shift = pl.pallas_call(
        kern,
        grid=(n,),
        in_specs=[
            pl.BlockSpec((1, h, w, c), lambda b: (b, 0, 0, 0)),
            pl.BlockSpec((1, c), lambda b: (0, 0)),
            pl.BlockSpec((1, c), lambda b: (0, 0)),
        ],
        out_specs=[
            pl.BlockSpec((1, c), lambda b: (0, 0)),
            pl.BlockSpec((1, c), lambda b: (0, 0)),
        ],
        out_shape=[
            jax.ShapeDtypeStruct((1, c), jnp.float32),
            jax.ShapeDtypeStruct((1, c), jnp.float32),
        ],
        scratch_shapes=[
            pltpu.VMEM((1, c), jnp.float32),
            pltpu.VMEM((1, c), jnp.float32),
        ],
        compiler_params=pltpu.CompilerParams(dimension_semantics=("arbitrary",)),
    )(x, gamma, beta)
    return scale, shift


# --- fused (BN+ReLU) -> conv (+1x1 downsample) -> (+residual) -> (BN stats) ---
def _conv_fused_kernel(*refs, kh, kw, stride, pad, oh, ow, cin, cout, cout_d,
                       prologue, has_residual, dual, stats, count, eps):
    it = iter(refs)
    x_ref = next(it)
    w_ref = next(it)
    wd_ref = next(it) if dual else None
    scale_ref = next(it) if prologue else None
    shift_ref = next(it) if prologue else None
    res_ref = next(it) if has_residual else None
    ng_ref = next(it) if stats else None
    nb_ref = next(it) if stats else None
    o_ref = next(it)
    od_ref = next(it) if dual else None
    nscale_ref = next(it) if stats else None
    nshift_ref = next(it) if stats else None
    xp_ref = next(it)                       # padded-activation scratch (Hp, Wp, Cin) f32
    ntaps = kh * kw
    lhs_ref = next(it) if ntaps > 1 else None  # im2col scratch (oh*ow, ntaps*cin) bf16
    ssum_ref = next(it) if stats else None
    sqsum_ref = next(it) if stats else None

    b = pl.program_id(0)
    if stats:
        @pl.when(b == 0)
        def _init_stats():
            ssum_ref[...] = jnp.zeros(ssum_ref.shape, jnp.float32)
            sqsum_ref[...] = jnp.zeros(sqsum_ref.shape, jnp.float32)

    h, w = x_ref.shape[1], x_ref.shape[2]
    x = x_ref[0].astype(jnp.float32)                           # (H, W, Cin)
    if prologue:  # fused pre-activation BN + ReLU
        sc = scale_ref[...].reshape(1, 1, cin)
        sh = shift_ref[...].reshape(1, 1, cin)
        x = jnp.maximum(x * sc + sh, 0.0)

    # in-kernel zero padding into VMEM scratch (no HBM padded copy)
    if pad > 0:
        xp_ref[...] = jnp.zeros(xp_ref.shape, jnp.float32)
        xp_ref[pad:pad + h, pad:pad + w, :] = x
    else:
        xp_ref[...] = x

    def tap(i, j):  # strided window for kernel tap (i, j): (oh*ow, cin) bf16
        if stride == 1:
            p = xp_ref[pl.ds(i, oh), pl.ds(j, ow), :]
        else:
            p = xp_ref[pl.ds(i, oh, stride=stride), pl.ds(j, ow, stride=stride), :]
        return p.reshape(oh * ow, cin).astype(jnp.bfloat16)

    # im2col -> one big MXU matmul (bf16 inputs, f32 accumulation)
    center = None
    ci, cj = kh // 2, kw // 2
    if ntaps == 1:
        lhs = tap(0, 0)
        center = lhs
    else:
        for i in range(kh):
            for j in range(kw):
                v = tap(i, j)
                if dual and i == ci and j == cj:
                    center = v                 # reuse centre tap for the 1x1 downsample
                t = i * kw + j
                lhs_ref[:, t * cin:(t + 1) * cin] = v
        lhs = lhs_ref[...]

    acc = jnp.dot(lhs, w_ref[...], preferred_element_type=jnp.float32)  # (oh*ow, cout)
    out = acc.reshape(oh, ow, cout)
    if has_residual:  # fused residual-add epilogue
        out = out + res_ref[0].astype(jnp.float32)
    o_ref[0] = out.astype(o_ref.dtype)

    if dual:  # fused 1x1 stride-s downsample = centre-tap matmul
        accd = jnp.dot(center, wd_ref[...], preferred_element_type=jnp.float32)
        od_ref[0] = accd.reshape(oh, ow, cout_d).astype(od_ref.dtype)

    if stats:  # fused batch-norm statistics of THIS kernel's main output
        o2 = out.reshape(oh * ow, cout)
        ssum_ref[...] += jnp.sum(o2, axis=0, keepdims=True)
        sqsum_ref[...] += jnp.sum(o2 * o2, axis=0, keepdims=True)

        @pl.when(b == pl.num_programs(0) - 1)
        def _finalize_stats():
            inv = jnp.float32(1.0 / count)
            mean = ssum_ref[...] * inv
            var = jnp.maximum(sqsum_ref[...] * inv - mean * mean, 0.0)
            rstd = jax.lax.rsqrt(var + eps)
            s = ng_ref[...] * rstd
            nscale_ref[...] = s
            nshift_ref[...] = nb_ref[...] - mean * s


def conv_fused(x, w, scale=None, shift=None, residual=None, *, stride=1, padding=0,
               w_down=None, next_gamma=None, next_beta=None, eps=_BN_EPS):
    """y = conv2d(relu(x*scale+shift) if scale else x, w, stride, padding) (+residual).

    Optional fusions:
      w_down     : also emit the 1x1/stride downsample output (shares the centre tap).
      next_gamma : also emit per-channel (scale, shift) of BN-with-batch-stats over y.
    Returns y [, y_down] [, scale_next, shift_next].
    x: (N,H,W,Cin) NHWC; w: (KH,KW,Cin,Cout). Matches nn.Conv2d(bias=False).
    """
    n, h, wi, cin = x.shape
    kh, kw, wcin, cout = w.shape
    assert wcin == cin

    in_kernel_stride = (stride == 1) or _strided_reads_ok()
    kstride = stride if in_kernel_stride else 1

    hp, wp = h + 2 * padding, wi + 2 * padding
    oh = (hp - kh) // kstride + 1
    ow = (wp - kw) // kstride + 1

    prologue = scale is not None
    has_res = residual is not None
    dual = w_down is not None
    want_stats = next_gamma is not None
    fuse_stats = want_stats and in_kernel_stride  # stats must match final (strided) output

    if has_res:
        assert stride == 1 or in_kernel_stride
        assert residual.shape == (n, oh, ow, cout)
    if dual:
        # 1x1/stride, pad-0 downsample == centre tap of this conv's padded im2col.
        assert kh % 2 == 1 and kw % 2 == 1 and padding == kh // 2 == kw // 2
        assert w_down.shape[:3] == (1, 1, cin)
        cout_d = w_down.shape[3]
        wd2 = w_down.reshape(cin, cout_d).astype(jnp.bfloat16)
    else:
        cout_d = 0
        wd2 = None

    # weights pre-reshaped/cast once: (kh*kw*cin, cout) in bf16 for the MXU
    w2 = w.reshape(kh * kw * cin, cout).astype(jnp.bfloat16)

    kern = functools.partial(
        _conv_fused_kernel, kh=kh, kw=kw, stride=kstride, pad=padding,
        oh=oh, ow=ow, cin=cin, cout=cout, cout_d=cout_d,
        prologue=prologue, has_residual=has_res, dual=dual, stats=fuse_stats,
        count=float(n * oh * ow), eps=eps)

    in_specs = [
        pl.BlockSpec((1, h, wi, cin), lambda b: (b, 0, 0, 0)),
        pl.BlockSpec((kh * kw * cin, cout), lambda b: (0, 0)),
    ]
    args = [x, w2]
    if dual:
        in_specs.append(pl.BlockSpec((cin, cout_d), lambda b: (0, 0)))
        args.append(wd2)
    if prologue:
        in_specs += [pl.BlockSpec((1, cin), lambda b: (0, 0)),
                     pl.BlockSpec((1, cin), lambda b: (0, 0))]
        args += [scale, shift]
    if has_res:
        in_specs.append(pl.BlockSpec((1, oh, ow, cout), lambda b: (b, 0, 0, 0)))
        args.append(residual)
    if fuse_stats:
        in_specs += [pl.BlockSpec((1, cout), lambda b: (0, 0)),
                     pl.BlockSpec((1, cout), lambda b: (0, 0))]
        args += [next_gamma, next_beta]

    out_specs = [pl.BlockSpec((1, oh, ow, cout), lambda b: (b, 0, 0, 0))]
    out_shape = [jax.ShapeDtypeStruct((n, oh, ow, cout), x.dtype)]
    if dual:
        out_specs.append(pl.BlockSpec((1, oh, ow, cout_d), lambda b: (b, 0, 0, 0)))
        out_shape.append(jax.ShapeDtypeStruct((n, oh, ow, cout_d), x.dtype))
    if fuse_stats:
        out_specs += [pl.BlockSpec((1, cout), lambda b: (0, 0)),
                      pl.BlockSpec((1, cout), lambda b: (0, 0))]
        out_shape += [jax.ShapeDtypeStruct((1, cout), jnp.float32),
                      jax.ShapeDtypeStruct((1, cout), jnp.float32)]

    scratch = [pltpu.VMEM((hp, wp, cin), jnp.float32)]
    if kh * kw > 1:
        scratch.append(pltpu.VMEM((oh * ow, kh * kw * cin), jnp.bfloat16))
    if fuse_stats:
        scratch += [pltpu.VMEM((1, cout), jnp.float32),
                    pltpu.VMEM((1, cout), jnp.float32)]

    flops = 2 * n * oh * ow * (kh * kw * cin * cout + (cin * cout_d if dual else 0))
    bytes_accessed = (x.size * x.dtype.itemsize + w2.size * w2.dtype.itemsize
                      + n * oh * ow * (cout + cout_d) * x.dtype.itemsize
                      + (residual.size * residual.dtype.itemsize if has_res else 0))

    # Stats accumulation is a cross-batch reduction -> sequential grid.
    sem = ("arbitrary",) if fuse_stats else ("parallel",)
    results = pl.pallas_call(
        kern,
        grid=(n,),
        in_specs=in_specs,
        out_specs=out_specs,
        out_shape=out_shape,
        scratch_shapes=scratch,
        compiler_params=pltpu.CompilerParams(dimension_semantics=sem),
        cost_estimate=pl.CostEstimate(flops=int(flops), transcendentals=0,
                                      bytes_accessed=int(bytes_accessed)),
    )(*args)
    results = list(results)

    y = results.pop(0)
    y_down = results.pop(0) if dual else None
    nscale = nshift = None
    if fuse_stats:
        nscale, nshift = results.pop(0), results.pop(0)

    if not in_kernel_stride and stride > 1:
        # Fallback only if strided VMEM reads are unavailable on this backend.
        y = y[:, ::stride, ::stride, :]
        if dual:
            y_down = y_down[:, ::stride, ::stride, :]
    if want_stats and not fuse_stats:
        nscale, nshift = bn_scale_shift(y, next_gamma, next_beta, eps)

    out = [y]
    if dual:
        out.append(y_down)
    if want_stats:
        out += [nscale, nshift]
    return out[0] if len(out) == 1 else tuple(out)


# --------------------- max pooling (+ fused BN stats epilogue) ----------------
def _maxpool_kernel(*refs, k, stride, pad, oh, ow, stats, count, eps):
    it = iter(refs)
    x_ref = next(it)
    g_ref = next(it) if stats else None
    b_ref = next(it) if stats else None
    o_ref = next(it)
    sc_ref = next(it) if stats else None
    sh_ref = next(it) if stats else None
    xp_ref = next(it)
    ssum_ref = next(it) if stats else None
    sqsum_ref = next(it) if stats else None

    bi = pl.program_id(0)
    if stats:
        @pl.when(bi == 0)
        def _init():
            ssum_ref[...] = jnp.zeros(ssum_ref.shape, jnp.float32)
            sqsum_ref[...] = jnp.zeros(sqsum_ref.shape, jnp.float32)

    h, w, c = x_ref.shape[1], x_ref.shape[2], x_ref.shape[3]
    x = x_ref[0].astype(jnp.float32)
    if pad > 0:
        xp_ref[...] = jnp.full(xp_ref.shape, _NEG_LARGE, jnp.float32)
        xp_ref[pad:pad + h, pad:pad + w, :] = x
    else:
        xp_ref[...] = x
    out = None
    for i in range(k):
        for j in range(k):
            if stride == 1:
                p = xp_ref[pl.ds(i, oh), pl.ds(j, ow), :]
            else:
                p = xp_ref[pl.ds(i, oh, stride=stride), pl.ds(j, ow, stride=stride), :]
            out = p if out is None else jnp.maximum(out, p)
    o_ref[0] = out.astype(o_ref.dtype)

    if stats:
        o2 = out.reshape(oh * ow, c)
        ssum_ref[...] += jnp.sum(o2, axis=0, keepdims=True)
        sqsum_ref[...] += jnp.sum(o2 * o2, axis=0, keepdims=True)

        @pl.when(bi == pl.num_programs(0) - 1)
        def _fin():
            inv = jnp.float32(1.0 / count)
            mean = ssum_ref[...] * inv
            var = jnp.maximum(sqsum_ref[...] * inv - mean * mean, 0.0)
            rstd = jax.lax.rsqrt(var + eps)
            s = g_ref[...] * rstd
            sc_ref[...] = s
            sh_ref[...] = b_ref[...] - mean * s


def maxpool2d(x, kernel_size, stride, padding, next_gamma=None, next_beta=None,
              eps=_BN_EPS):
    n, h, wi, c = x.shape
    in_kernel_stride = (stride == 1) or _strided_reads_ok()
    kstride = stride if in_kernel_stride else 1
    hp, wp = h + 2 * padding, wi + 2 * padding
    oh = (hp - kernel_size) // kstride + 1
    ow = (wp - kernel_size) // kstride + 1

    want_stats = next_gamma is not None
    fuse_stats = want_stats and in_kernel_stride

    kern = functools.partial(_maxpool_kernel, k=kernel_size, stride=kstride,
                             pad=padding, oh=oh, ow=ow, stats=fuse_stats,
                             count=float(n * oh * ow), eps=eps)

    in_specs = [pl.BlockSpec((1, h, wi, c), lambda b: (b, 0, 0, 0))]
    args = [x]
    if fuse_stats:
        in_specs += [pl.BlockSpec((1, c), lambda b: (0, 0)),
                     pl.BlockSpec((1, c), lambda b: (0, 0))]
        args += [next_gamma, next_beta]

    out_specs = [pl.BlockSpec((1, oh, ow, c), lambda b: (b, 0, 0, 0))]
    out_shape = [jax.ShapeDtypeStruct((n, oh, ow, c), x.dtype)]
    if fuse_stats:
        out_specs += [pl.BlockSpec((1, c), lambda b: (0, 0)),
                      pl.BlockSpec((1, c), lambda b: (0, 0))]
        out_shape += [jax.ShapeDtypeStruct((1, c), jnp.float32),
                      jax.ShapeDtypeStruct((1, c), jnp.float32)]

    scratch = [pltpu.VMEM((hp, wp, c), jnp.float32)]
    if fuse_stats:
        scratch += [pltpu.VMEM((1, c), jnp.float32),
                    pltpu.VMEM((1, c), jnp.float32)]

    sem = ("arbitrary",) if fuse_stats else ("parallel",)
    results = list(pl.pallas_call(
        kern,
        grid=(n,),
        in_specs=in_specs,
        out_specs=out_specs,
        out_shape=out_shape,
        scratch_shapes=scratch,
        compiler_params=pltpu.CompilerParams(dimension_semantics=sem),
    )(*args))

    y = results.pop(0)
    nscale = nshift = None
    if fuse_stats:
        nscale, nshift = results.pop(0), results.pop(0)
    if not in_kernel_stride and stride > 1:
        y = y[:, ::stride, ::stride, :]
    if want_stats and not fuse_stats:
        nscale, nshift = bn_scale_shift(y, next_gamma, next_beta, eps)

    if want_stats:
        return y, nscale, nshift
    return y


# ------------------------------- parameters ----------------------------------
def _conv_init(key, kh, kw, cin, cout):
    fan_in = kh * kw * cin
    return jax.random.normal(key, (kh, kw, cin, cout), jnp.float32) * (2.0 / fan_in) ** 0.5


def init_resnet_v2_params(key, input_channels, num_filters, first_layer_kernel_size,
                          blocks_per_layer_list, block_strides_list, num_chns):
    keys = iter(jax.random.split(key, 128))
    params = {
        "first_conv_w": _conv_init(next(keys), first_layer_kernel_size,
                                   first_layer_kernel_size, input_channels, num_filters)
    }
    inplanes = num_filters
    layers = []
    for num_blocks, stride, planes in zip(blocks_per_layer_list, block_strides_list,
                                          num_chns):
        blocks = []
        for bi in range(num_blocks):
            blk = {
                "bn1_g": jnp.ones((1, inplanes), jnp.float32),
                "bn1_b": jnp.zeros((1, inplanes), jnp.float32),
                "conv1_w": _conv_init(next(keys), 3, 3, inplanes, planes),
                "bn2_g": jnp.ones((1, planes), jnp.float32),
                "bn2_b": jnp.zeros((1, planes), jnp.float32),
                "conv2_w": _conv_init(next(keys), 3, 3, planes, planes),
            }
            if bi == 0:
                # _make_layer always creates a 1x1 downsample for the first block.
                blk["down_w"] = _conv_init(next(keys), 1, 1, inplanes, planes)
            blocks.append(blk)
            inplanes = planes  # block.expansion == 1
        layers.append({"blocks": blocks, "stride": stride})
    params["layers"] = layers
    return params


# -------------------------------- forward ------------------------------------
def basic_block_v2(h, blk, stride, scale1, shift1, next_gamma=None, next_beta=None):
    """Pre-activation BasicBlockV2; (scale1, shift1) is bn1 of this block, already
    computed by whichever kernel produced h.  Returns (out, scale, shift) where
    (scale, shift) is the next block's bn1 (or None, None at the end)."""
    if "down_w" in blk:
        # conv1 (3x3) + the 1x1 downsample + bn2 stats, all in one kernel.
        out, residual, scale2, shift2 = conv_fused(
            h, blk["conv1_w"], scale1, shift1, stride=stride, padding=1,
            w_down=blk["down_w"], next_gamma=blk["bn2_g"], next_beta=blk["bn2_b"])
    else:
        residual = h
        out, scale2, shift2 = conv_fused(
            h, blk["conv1_w"], scale1, shift1, stride=stride, padding=1,
            next_gamma=blk["bn2_g"], next_beta=blk["bn2_b"])
    if next_gamma is not None:
        # conv2 + residual add + next block's bn1 stats, all in one kernel.
        return conv_fused(out, blk["conv2_w"], scale2, shift2, residual=residual,
                          stride=1, padding=1,
                          next_gamma=next_gamma, next_beta=next_beta)
    y = conv_fused(out, blk["conv2_w"], scale2, shift2, residual=residual,
                   stride=1, padding=1)
    return y, None, None


def resnet_v2_forward(x_nchw, params, cfg):
    # TODO(synk): at tiny channel counts (4-16) lanes stay mostly empty; padding
    # channels to 128, row-tiling large images (v7x VMEM budget) and fusing the
    # stem conv with the max-pool are left out at these test shapes.
    x = jnp.transpose(x_nchw, (0, 2, 3, 1))  # NCHW -> NHWC (glue)
    h = conv_fused(x, params["first_conv_w"],
                   stride=cfg["first_layer_conv_stride"],
                   padding=cfg["first_layer_padding"])

    flat = []
    for layer in params["layers"]:
        for bi, blk in enumerate(layer["blocks"]):
            flat.append((blk, layer["stride"] if bi == 0 else 1))

    # max-pool emits (scale, shift) of the first block's bn1 as a fused epilogue.
    h, sc, sh = maxpool2d(h, cfg["first_pool_size"], cfg["first_pool_stride"],
                          cfg["first_pool_padding"],
                          next_gamma=flat[0][0]["bn1_g"],
                          next_beta=flat[0][0]["bn1_b"])
    for idx, (blk, stride) in enumerate(flat):
        nxt = flat[idx + 1][0] if idx + 1 < len(flat) else None
        h, sc, sh = basic_block_v2(
            h, blk, stride, sc, sh,
            next_gamma=None if nxt is None else nxt["bn1_g"],
            next_beta=None if nxt is None else nxt["bn1_b"])
    return jnp.transpose(h, (0, 3, 1, 2))  # NHWC -> NCHW (glue)


# ---------------------------------- main --------------------------------------
if __name__ == "__main__":
    cfg = dict(
        input_channels=4,
        num_filters=8,
        first_layer_kernel_size=7,
        first_layer_conv_stride=2,
        first_layer_padding=3,
        first_pool_size=3,
        first_pool_stride=2,
        first_pool_padding=1,
        blocks_per_layer_list=[1, 1],
        block_strides_list=[1, 2],
        num_chns=[8, 16],
    )

    key = jax.random.PRNGKey(0)
    kx, kp = jax.random.split(key)
    x = jax.random.normal(kx, (2, cfg["input_channels"], 16, 16), jnp.float32)  # NCHW

    params = init_resnet_v2_params(
        kp,
        cfg["input_channels"],
        cfg["num_filters"],
        cfg["first_layer_kernel_size"],
        cfg["blocks_per_layer_list"],
        cfg["block_strides_list"],
        cfg["num_chns"],
    )

    out = resnet_v2_forward(x, params, cfg)
    out = jax.block_until_ready(out)

    # 16x16 -> conv(s2) 8x8 -> pool(s2) 4x4 -> layer1(s1) 4x4 -> layer2(s2) 2x2
    assert out.shape == (2, cfg["num_chns"][-1], 2, 2), out.shape
    assert bool(jnp.all(jnp.isfinite(out)))
    print("KERNEL_OK")
</pallas_src>

<mosaic_0001>
module attributes {stable_mosaic.version = 11 : i64} {
  func.func @_stride_probe_kernel(%arg0: i32, %arg1: memref<8x8x128xf32, #tpu.memory_space<vmem>>, %arg2: memref<4x4x128xf32, #tpu.memory_space<vmem>>) attributes {dimension_semantics = [#tpu.dimension_semantics<arbitrary>], iteration_bounds = array<i64: 1>, scalar_prefetch = 0 : i64, scratch_operands = 0 : i64, tpu.core_type = #tpu.core_type<tc>, window_params = [{pipeline_mode = #tpu.pipeline_mode<synchronous>, transform_indices = @transform_0, window_bounds = array<i64: 8, 8, 128>}, {pipeline_mode = #tpu.pipeline_mode<synchronous>, transform_indices = @transform_1, window_bounds = array<i64: 4, 4, 128>}]} {
    %c0 = arith.constant 0 : index
    %c0_0 = arith.constant 0 : index
    %c0_1 = arith.constant 0 : index
    %0 = tpu.strided_load %arg1[%c0, %c0_0, %c0_1] {strides = array<i32: 2, 2, 1>} : memref<8x8x128xf32, #tpu.memory_space<vmem>>, vector<4x4x128xf32>
    %c0_2 = arith.constant 0 : index
    %c0_3 = arith.constant 0 : index
    %c0_4 = arith.constant 0 : index
    %1 = vector.load %arg2[%c0_2, %c0_3, %c0_4] : memref<4x4x128xf32, #tpu.memory_space<vmem>>, vector<4x4x128xf32>
    tpu.vector_store %arg2[%c0_2, %c0_3, %c0_4], %0 {strides = array<i32>} : memref<4x4x128xf32, #tpu.memory_space<vmem>>, vector<4x4x128xf32>,
    return
  }
  func.func @transform_0(%arg0: i32) -> (i32, i32, i32) {
    %c0_i32 = arith.constant 0 : i32
    %c0_i32_0 = arith.constant 0 : i32
    %c0_i32_1 = arith.constant 0 : i32
    %c0_i32_2 = arith.constant 0 : i32
    return %c0_i32, %c0_i32_0, %c0_i32_1 : i32, i32, i32
  }
  func.func @transform_1(%arg0: i32) -> (i32, i32, i32) {
    %c0_i32 = arith.constant 0 : i32
    %c0_i32_0 = arith.constant 0 : i32
    %c0_i32_1 = arith.constant 0 : i32
    %c0_i32_2 = arith.constant 0 : i32
    return %c0_i32, %c0_i32_0, %c0_i32_1 : i32, i32, i32
  }
}

module attributes {stable_mosaic.version = 11 : i64} {
  func.func @_conv_fused_kernel(%arg0: i32, %arg1: memref<1x16x16x4xf32, #tpu.memory_space<vmem>>, %arg2: memref<196x8xbf16, #tpu.memory_space<vmem>>, %arg3: memref<1x16x16x8xf32, #tpu.memory_space<vmem>>, %arg4: memref<22x22x4xf32, #tpu.memory_space<vmem>>, %arg5: memref<256x196xbf16, #tpu.memory_space<vmem>>) attributes {dimension_semantics = [#tpu.dimension_semantics<parallel>], iteration_bounds = array<i64: 2>, scalar_prefetch = 0 : i64, scratch_operands = 2 : i64, tpu.core_type = #tpu.core_type<tc>, window_params = [{transform_indices = @transform_0, window_bounds = array<i64: 1, 16, 16, 4>}, {pipeline_mode = #tpu.pipeline_mode<synchronous>, transform_indices = @transform_1, window_bounds = array<i64: 196, 8>}, {transform_indices = @transform_2, window_bounds = array<i64: 1, 16, 16, 8>}]} {
    %c0 = arith.constant 0 : index
    %c0_0 = arith.constant 0 : index
    %c0_1 = arith.constant 0 : index
    %c0_2 = arith.constant 0 : index
    %0 = vector.load %arg1[%c0, %c0_0, %c0_1, %c0_2] : memref<1x16x16x4xf32, #tpu.memory_space<vmem>>, vector<1x16x16x4xf32>
    %1 = vector.shape_cast %0 : vector<1x16x16x4xf32> to vector<16x16x4xf32>
    %cst = arith.constant 0.000000e+00 : f32
    %2 = vector.broadcast %cst : f32 to vector<22x22x4xf32>
    %c0_3 = arith.constant 0 : index
    %c0_4 = arith.constant 0 : index
    %c0_5 = arith.constant 0 : index
    %3 = vector.load %arg4[%c0_3, %c0_4, %c0_5] : memref<22x22x4xf32, #tpu.memory_space<vmem>>, vector<22x22x4xf32>
    tpu.vector_store %arg4[%c0_3, %c0_4, %c0_5], %2 {strides = array<i32>} : memref<22x22x4xf32, #tpu.memory_space<vmem>>, vector<22x22x4xf32>,
    %c3 = arith.constant 3 : index
    %c3_6 = arith.constant 3 : index
    %c0_7 = arith.constant 0 : index
    %4 = vector.load %arg4[%c3, %c3_6, %c0_7] : memref<22x22x4xf32, #tpu.memory_space<vmem>>, vector<16x16x4xf32>
    tpu.vector_store %arg4[%c3, %c3_6, %c0_7], %1 {strides = array<i32>} : memref<22x22x4xf32, #tpu.memory_space<vmem>>, vector<16x16x4xf32>,
    %c0_8 = arith.constant 0 : index
    %c0_9 = arith.constant 0 : index
    %c0_10 = arith.constant 0 : index
    %5 = vector.load %arg4[%c0_8, %c0_9, %c0_10] : memref<22x22x4xf32, #tpu.memory_space<vmem>>, vector<16x16x4xf32>
    %6 = vector.shape_cast %5 : vector<16x16x4xf32> to vector<256x4xf32>
    %7 = arith.truncf %6 : vector<256x4xf32> to vector<256x4xbf16>
    %c0_11 = arith.constant 0 : index
    %c0_12 = arith.constant 0 : index
    %8 = vector.load %arg5[%c0_11, %c0_12] : memref<256x196xbf16, #tpu.memory_space<vmem>>, vector<256x4xbf16>
    tpu.vector_store %arg5[%c0_11, %c0_12], %7 {strides = array<i32>} : memref<256x196xbf16, #tpu.memory_space<vmem>>, vector<256x4xbf16>,
    %c0_13 = arith.constant 0 : index
    %c1 = arith.constant 1 : index
    %c0_14 = arith.constant 0 : index
    %9 = vector.load %arg4[%c0_13, %c1, %c0_14] : memref<22x22x4xf32, #tpu.memory_space<vmem>>, vector<16x16x4xf32>
    %10 = vector.shape_cast %9 : vector<16x16x4xf32> to vector<256x4xf32>
    %11 = arith.truncf %10 : vector<256x4xf32> to vector<256x4xbf16>
    %c0_15 = arith.constant 0 : index
    %c4 = arith.constant 4 : index
    %12 = vector.load %arg5[%c0_15, %c4] : memref<256x196xbf16, #tpu.memory_space<vmem>>, vector<256x4xbf16>
    tpu.vector_store %arg5[%c0_15, %c4], %11 {strides = array<i32>} : memref<256x196xbf16, #tpu.memory_space<vmem>>, vector<256x4xbf16>,
    %c0_16 = arith.constant 0 : index
    %c2 = arith.constant 2 : index
    %c0_17 = arith.constant 0 : index
    %13 = vector.load %arg4[%c0_16, %c2, %c0_17] : memref<22x22x4xf32, #tpu.memory_space<vmem>>, vector<16x16x4xf32>
    %14 = vector.shape_cast %13 : vector<16x16x4xf32> to vector<256x4xf32>
    %15 = arith.truncf %14 : vector<256x4xf32> to vector<256x4xbf16>
    %c0_18 = arith.constant 0 : index
    %c8 = arith.constant 8 : index
    %16 = vector.load %arg5[%c0_18, %c8] : memref<256x196xbf16, #tpu.memory_space<vmem>>, vector<256x4xbf16>
    tpu.vector_store %arg5[%c0_18, %c8], %15 {strides = array<i32>} : memref<256x196xbf16, #tpu.memory_space<vmem>>, vector<256x4xbf16>,
    %c0_19 = arith.constant 0 : index
    %c3_20 = arith.constant 3 : index
    %c0_21 = arith.constant 0 : index
    %17 = vector.load %arg4[%c0_19, %c3_20, %c0_21] : memref<22x22x4xf32, #tpu.memory_space<vmem>>, vector<16x16x4xf32>
    %18 = vector.shape_cast %17 : vector<16x16x4xf32> to vector<256x4xf32>
    %19 = arith.truncf %18 : vector<256x4xf32> to vector<256x4xbf16>
    %c0_22 = arith.constant 0 : index
    %c12 = arith.constant 12 : index
    %20 = vector.load %arg5[%c0_22, %c12] : memref<256x196xbf16, #tpu.memory_space<vmem>>, vector<256x4xbf16>
    tpu.vector_store %arg5[%c0_22, %c12], %19 {strides = array<i32>} : memref<256x196xbf16, #tpu.memory_space<vmem>>, vector<256x4xbf16>,
    %c0_23 = arith.constant 0 : index
    %c4_24 = arith.constant 4 : index
    %c0_25 = arith.constant 0 : index
    %21 = vector.load %arg4[%c0_23, %c4_24, %c0_25] : memref<22x22x4xf32, #tpu.memory_space<vmem>>, vector<16x16x4xf32>
    %22 = vector.shape_cast %21 : vector<16x16x4xf32> to vector<256x4xf32>
    %23 = arith.truncf %22 : vector<256x4xf32> to vector<256x4xbf16>
    %c0_26 = arith.constant 0 : index
    %c16 = arith.constant 16 : index
    %24 = vector.load %arg5[%c0_26, %c16] : memref<256x196xbf16, #tpu.memory_space<vmem>>, vector<256x4xbf16>
    tpu.vector_store %arg5[%c0_26, %c16], %23 {strides = array<i32>} : memref<256x196xbf16, #tpu.memory_space<vmem>>, vector<256x4xbf16>,
    %c0_27 = arith.constant 0 : index
    %c5 = arith.constant 5 : index
    %c0_28 = arith.constant 0 : index
    %25 = vector.load %arg4[%c0_27, %c5, %c0_28] : memref<22x22x4xf32, #tpu.memory_space<vmem>>, vector<16x16x4xf32>
    %26 = vector.shape_cast %25 : vector<16x16x4xf32> to vector<256x4xf32>
    %27 = arith.truncf %26 : vector<256x4xf32> to vector<256x4xbf16>
    %c0_29 = arith.constant 0 : index
    %c20 = arith.constant 20 : index
    %28 = vector.load %arg5[%c0_29, %c20] : memref<256x196xbf16, #tpu.memory_space<vmem>>, vector<256x4xbf16>
    tpu.vector_store %arg5[%c0_29, %c20], %27 {strides = array<i32>} : memref<256x196xbf16, #tpu.memory_space<vmem>>, vector<256x4xbf16>,
    %c0_30 = arith.constant 0 : index
    %c6 = arith.constant 6 : index
    %c0_31 = arith.constant 0 : index
    %29 = vector.load %arg4[%c0_30, %c6, %c0_31] : memref<22x22x4xf32, #tpu.memory_space<vmem>>, vector<16x16x4xf32>
    %30 = vector.shape_cast %29 : vector<16x16x4xf32> to vector<256x4xf32>
    %31 = arith.truncf %30 : vector<256x4xf32> to vector<256x4xbf16>
    %c0_32 = arith.constant 0 : index
    %c24 = arith.constant 24 : index
    %32 = vector.load %arg5[%c0_32, %c24] : memref<256x196xbf16, #tpu.memory_space<vmem>>, vector<256x4xbf16>
    tpu.vector_store %arg5[%c0_32, %c24], %31 {strides = array<i32>} : memref<256x196xbf16, #tpu.memory_space<vmem>>, vector<256x4xbf16>,
    %c1_33 = arith.constant 1 : index
    %c0_34 = arith.constant 0 : index
    %c0_35 = arith.constant 0 : index
    %33 = vector.load %arg4[%c1_33, %c0_34, %c0_35] : memref<22x22x4xf32, #tpu.memory_space<vmem>>, vector<16x16x4xf32>
    %34 = vector.shape_cast %33 : vector<16x16x4xf32> to vector<256x4xf32>
    %35 = arith.truncf %34 : vector<256x4xf32> to vector<256x4xbf16>
    %c0_36 = arith.constant 0 : index
    %c28 = arith.constant 28 : index
    %36 = vector.load %arg5[%c0_36, %c28] : memref<256x196xbf16, #tpu.memory_space<vmem>>, vector<256x4xbf16>
    tpu.vector_store %arg5[%c0_36, %c28], %35 {strides = array<i32>} : memref<256x196xbf16, #tpu.memory_space<vmem>>, vector<256x4xbf16>,
    %c1_37 = arith.constant 1 : index
    %c1_38 = arith.constant 1 : index
    %c0_39 = arith.constant 0 : index
    %37 = vector.load %arg4[%c1_37, %c1_38, %c0_39] : memref<22x22x4xf32, #tpu.memory_space<vmem>>, vector<16x16x4xf32>
    %38 = vector.shape_cast %37 : vector<16x16x4xf32> to vector<256x4xf32>
    %39 = arith.truncf %38 : vector<256x4xf32> to vector<256x4xbf16>
    %c0_40 = arith.constant 0 : index
    %c32 = arith.constant 32 : index
    %40 = vector.load %arg5[%c0_40, %c32] : memref<256x196xbf16, #tpu.memory_space<vmem>>, vector<256x4xbf16>
    tpu.vector_store %arg5[%c0_40, %c32], %39 {strides = array<i32>} : memref<256x196xbf16, #tpu.memory_space<vmem>>, vector<256x4xbf16>,
    %c1_41 = arith.constant 1 : index
    %c2_42 = arith.constant 2 : index
    %c0_43 = arith.constant 0 : index
    %41 = vector.load %arg4[%c1_41, %c2_42, %c0_43] : memref<22x22x4xf32, #tpu.memory_space<vmem>>, vector<16x16x4xf32>
    %42 = vector.shape_cast %41 : vector<16x16x4xf32> to vector<256x4xf32>
    %43 = arith.truncf %42 : vector<256x4xf32> to vector<256x4xbf16>
    %c0_44 = arith.constant 0 : index
    %c36 = arith.constant 36 : index
    %44 = vector.load %arg5[%c0_44, %c36] : memref<256x196xbf16, #tpu.memory_space<vmem>>, vector<256x4xbf16>
    tpu.vector_store %arg5[%c0_44, %c36], %43 {strides = array<i32>} : memref<256x196xbf16, #tpu.memory_space<vmem>>, vector<256x4xbf16>,
    %c1_45 = arith.constant 1 : index
    %c3_46 = arith.constant 3 : index
    %c0_47 = arith.constant 0 : index
    %45 = vector.load %arg4[%c1_45, %c3_46, %c0_47] : memref<22x22x4xf32, #tpu.memory_space<vmem>>, vector<16x16x4xf32>
    %46 = vector.shape_cast %45 : vector<16x16x4xf32> to vector<256x4xf32>
    %47 = arith.truncf %46 : vector<256x4xf32> to vector<256x4xbf16>
    %c0_48 = arith.constant 0 : index
    %c40 = arith.constant 40 : index
    %48 = vector.load %arg5[%c0_48, %c40] : memref<256x196xbf16, #tpu.memory_space<vmem>>, vector<256x4xbf16>
    tpu.vector_store %arg5[%c0_48, %c40], %47 {strides = array<i32>} : memref<256x196xbf16, #tpu.memory_space<vmem>>, vector<256x4xbf16>,
    %c1_49 = arith.constant 1 : index
    %c4_50 = arith.constant 4 : index
    %c0_51 = arith.constant 0 : index
    %49 = vector.load %arg4[%c1_49, %c4_50, %c0_51] : memref<22x22x4xf32, #tpu.memory_space<vmem>>, vector<16x16x4xf32>
    %50 = vector.shape_cast %49 : vector<16x16x4xf32> to vector<256x4xf32>
    %51 = arith.truncf %50 : vector<256x4xf32> to vector<256x4xbf16>
    %c0_52 = arith.constant 0 : index
    %c44 = arith.constant 44 : index
    %52 = vector.load %arg5[%c0_52, %c44] : memref<256x196xbf16, #tpu.memory_space<vmem>>, vector<256x4xbf16>
    tpu.vector_store %arg5[%c0_52, %c44], %51 {strides = array<i32>} : memref<256x196xbf16, #tpu.memory_space<vmem>>, vector<256x4xbf16>,
    %c1_53 = arith.constant 1 : index
    %c5_54 = arith.constant 5 : index
    %c0_55 = arith.constant 0 : index
    %53 = vector.load %arg4[%c1_53, %c5_54, %c0_55] : memref<22x22x4xf32, #tpu.memory_space<vmem>>, vector<16x16x4xf32>
    %54 = vector.shape_cast %53 : vector<16x16x4xf32> to vector<256x4xf32>
    %55 = arith.truncf %54 : vector<256x4xf32> to vector<256x4xbf16>
    %c0_56 = arith.constant 0 : index
    %c48 = arith.constant 48 : index
    %56 = vector.load %arg5[%c0_56, %c48] : memref<256x196xbf16, #tpu.memory_space<vmem>>, vector<256x4xbf16>
    tpu.vector_store %arg5[%c0_56, %c48], %55 {strides = array<i32>} : memref<256x196xbf16, #tpu.memory_space<vmem>>, vector<256x4xbf16>,
    %c1_57 = arith.constant 1 : index
    %c6_58 = arith.constant 6 : index
    %c0_59 = arith.constant 0 : index
    %57 = vector.load %arg4[%c1_57, %c6_58, %c0_59] : memref<22x22x4xf32, #tpu.memory_space<vmem>>, vector<16x16x4xf32>
    %58 = vector.shape_cast %57 : vector<16x16x4xf32> to vector<256x4xf32>
    %59 = arith.truncf %58 : vector<256x4xf32> to vector<256x4xbf16>
    %c0_60 = arith.constant 0 : index
    %c52 = arith.constant 52 : index
    %60 = vector.load %arg5[%c0_60, %c52] : memref<256x196xbf16, #tpu.memory_space<vmem>>, vector<256x4xbf16>
    tpu.vector_store %arg5[%c0_60, %c52], %59 {strides = array<i32>} : memref<256x196xbf16, #tpu.memory_space<vmem>>, vector<256x4xbf16>,
    %c2_61 = arith.constant 2 : index
    %c0_62 = arith.constant 0 : index
    %c0_63 = arith.constant 0 : index
    %61 = vector.load %arg4[%c2_61, %c0_62, %c0_63] : memref<22x22x4xf32, #tpu.memory_space<vmem>>, vector<16x16x4xf32>
    %62 = vector.shape_cast %61 : vector<16x16x4xf32> to vector<256x4xf32>
    %63 = arith.truncf %62 : vector<256x4xf32> to vector<256x4xbf16>
    %c0_64 = arith.constant 0 : index
    %c56 = arith.constant 56 : index
    %64 = vector.load %arg5[%c0_64, %c56] : memref<256x196xbf16, #tpu.memory_space<vmem>>, vector<256x4xbf16>
    tpu.vector_store %arg5[%c0_64, %c56], %63 {strides = array<i32>} : memref<256x196xbf16, #tpu.memory_space<vmem>>, vector<256x4xbf16>,
    %c2_65 = arith.constant 2 : index
    %c1_66 = arith.constant 1 : index
    %c0_67 = arith.constant 0 : index
    %65 = vector.load %arg4[%c2_65, %c1_66, %c0_67] : memref<22x22x4xf32, #tpu.memory_space<vmem>>, vector<16x16x4xf32>
    %66 = vector.shape_cast %65 : vector<16x16x4xf32> to vector<256x4xf32>
    %67 = arith.truncf %66 : vector<256x4xf32> to vector<256x4xbf16>
    %c0_68 = arith.constant 0 : index
    %c60 = arith.constant 60 : index
    %68 = vector.load %arg5[%c0_68, %c60] : memref<256x196xbf16, #tpu.memory_space<vmem>>, vector<256x4xbf16>
    tpu.vector_store %arg5[%c0_68, %c60], %67 {strides = array<i32>} : memref<256x196xbf16, #tpu.memory_space<vmem>>, vector<256x4xbf16>,
    %c2_69 = arith.constant 2 : index
    %c2_70 = arith.constant 2 : index
    %c0_71 = arith.constant 0 : index
    %69 = vector.load %arg4[%c2_69, %c2_70, %c0_71] : memref<22x22x4xf32, #tpu.memory_space<vmem>>, vector<16x16x4xf32>
    %70 = vector.shape_cast %69 : vector<16x16x4xf32> to vector<256x4xf32>
    %71 = arith.truncf %70 : vector<256x4xf32> to vector<256x4xbf16>
    %c0_72 = arith.constant 0 : index
    %c64 = arith.constant 64 : index
    %72 = vector.load %arg5[%c0_72, %c64] : memref<256x196xbf16, #tpu.memory_space<vmem>>, vector<256x4xbf16>
    tpu.vector_store %arg5[%c0_72, %c64], %71 {strides = array<i32>} : memref<256x196xbf16, #tpu.memory_space<vmem>>, vector<256x4xbf16>,
    %c2_73 = arith.constant 2 : index
    %c3_74 = arith.constant 3 : index
    %c0_75 = arith.constant 0 : index
    %73 = vector.load %arg4[%c2_73, %c3_74, %c0_75] : memref<22x22x4xf32, #tpu.memory_space<vmem>>, vector<16x16x4xf32>
    %74 = vector.shape_cast %73 : vector<16x16x4xf32> to vector<256x4xf32>
    %75 = arith.truncf %74 : vector<256x4xf32> to vector<256x4xbf16>
    %c0_76 = arith.constant 0 : index
    %c68 = arith.constant 68 : index
    %76 = vector.load %arg5[%c0_76, %c68] : memref<256x196xbf16, #tpu.memory_space<vmem>>, vector<256x4xbf16>
    tpu.vector_store %arg5[%c0_76, %c68], %75 {strides = array<i32>} : memref<256x196xbf16, #tpu.memory_space<vmem>>, vector<256x4xbf16>,
    %c2_77 = arith.constant 2 : index
    %c4_78 = arith.constant 4 : index
    %c0_79 = arith.constant 0 : index
    %77 = vector.load %arg4[%c2_77, %c4_78, %c0_79] : memref<22x22x4xf32, #tpu.memory_space<vmem>>, vector<16x16x4xf32>
    %78 = vector.shape_cast %77 : vector<16x16x4xf32> to vector<256x4xf32>
    %79 = arith.truncf %78 : vector<256x4xf32> to vector<256x4xbf16>
    %c0_80 = arith.constant 0 : index
    %c72 = arith.constant 72 : index
    %80 = vector.load %arg5[%c0_80, %c72] : memref<256x196xbf16, #tpu.memory_space<vmem>>, vector<256x4xbf16>
    tpu.vector_store %arg5[%c0_80, %c72], %79 {strides = array<i32>} : memref<256x196xbf16, #tpu.memory_space<vmem>>, vector<256x4xbf16>,
    %c2_81 = arith.constant 2 : index
    %c5_82 = arith.constant 5 : index
    %c0_83 = arith.constant 0 : index
    %81 = vector.load %arg4[%c2_81, %c5_82, %c0_83] : memref<22x22x4xf32, #tpu.memory_space<vmem>>, vector<16x16x4xf32>
    %82 = vector.shape_cast %81 : vector<16x16x4xf32> to vector<256x4xf32>
    %83 = arith.truncf %82 : vector<256x4xf32> to vector<256x4xbf16>
    %c0_84 = arith.constant 0 : index
    %c76 = arith.constant 76 : index
    %84 = vector.load %arg5[%c0_84, %c76] : memref<256x196xbf16, #tpu.memory_space<vmem>>, vector<256x4xbf16>
    tpu.vector_store %arg5[%c0_84, %c76], %83 {strides = array<i32>} : memref<256x196xbf16, #tpu.memory_space<vmem>>, vector<256x4xbf16>,
    %c2_85 = arith.constant 2 : index
    %c6_86 = arith.constant 6 : index
    %c0_87 = arith.constant 0 : index
    %85 = vector.load %arg4[%c2_85, %c6_86, %c0_87] : memref<22x22x4xf32, #tpu.memory_space<vmem>>, vector<16x16x4xf32>
    %86 = vector.shape_cast %85 : vector<16x16x4xf32> to vector<256x4xf32>
    %87 = arith.truncf %86 : vector<256x4xf32> to vector<256x4xbf16>
    %c0_88 = arith.constant 0 : index
    %c80 = arith.constant 80 : index
    %88 = vector.load %arg5[%c0_88, %c80] : memref<256x196xbf16, #tpu.memory_space<vmem>>, vector<256x4xbf16>
    tpu.vector_store %arg5[%c0_88, %c80], %87 {strides = array<i32>} : memref<256x196xbf16, #tpu.memory_space<vmem>>, vector<256x4xbf16>,
    %c3_89 = arith.constant 3 : index
    %c0_90 = arith.constant 0 : index
    %c0_91 = arith.constant 0 : index
    %89 = vector.load %arg4[%c3_89, %c0_90, %c0_91] : memref<22x22x4xf32, #tpu.memory_space<vmem>>, vector<16x16x4xf32>
    %90 = vector.shape_cast %89 : vector<16x16x4xf32> to vector<256x4xf32>
    %91 = arith.truncf %90 : vector<256x4xf32> to vector<256x4xbf16>
    %c0_92 = arith.constant 0 : index
    %c84 = arith.constant 84 : index
    %92 = vector.load %arg5[%c0_92, %c84] : memref<256x196xbf16, #tpu.memory_space<vmem>>, vector<256x4xbf16>
    tpu.vector_store %arg5[%c0_92, %c84], %91 {strides = array<i32>} : memref<256x196xbf16, #tpu.memory_space<vmem>>, vector<256x4xbf16>,
    %c3_93 = arith.constant 3 : index
    %c1_94 = arith.constant 1 : index
    %c0_95 = arith.constant 0 : index
    %93 = vector.load %arg4[%c3_93, %c1_94, %c0_95] : memref<22x22x4xf32, #tpu.memory_space<vmem>>, vector<16x16x4xf32>
    %94 = vector.shape_cast %93 : vector<16x16x4xf32> to vector<256x4xf32>
    %95 = arith.truncf %94 : vector<256x4xf32> to vector<256x4xbf16>
    %c0_96 = arith.constant 0 : index
    %c88 = arith.constant 88 : index
    %96 = vector.load %arg5[%c0_96, %c88] : memref<256x196xbf16, #tpu.memory_space<vmem>>, vector<256x4xbf16>
    tpu.vector_store %arg5[%c0_96, %c88], %95 {strides = array<i32>} : memref<256x196xbf16, #tpu.memory_space<vmem>>, vector<256x4xbf16>,
    %c3_97 = arith.constant 3 : index
    %c2_98 = arith.constant 2 : index
    %c0_99 = arith.constant 0 : index
    %97 = vector.load %arg4[%c3_97, %c2_98, %c0_99] : memref<22x22x4xf32, #tpu.memory_space<vmem>>, vector<16x16x4xf32>
    %98 = vector.shape_cast %97 : vector<16x16x4xf32> to vector<256x4xf32>
    %99 = arith.truncf %98 : vector<256x4xf32> to vector<256x4xbf16>
    %c0_100 = arith.constant 0 : index
    %c92 = arith.constant 92 : index
    %100 = vector.load %arg5[%c0_100, %c92] : memref<256x196xbf16, #tpu.memory_space<vmem>>, vector<256x4xbf16>
    tpu.vector_store %arg5[%c0_100, %c92], %99 {strides = array<i32>} : memref<256x196xbf16, #tpu.memory_space<vmem>>, vector<256x4xbf16>,
    %c3_101 = arith.constant 3 : index
    %c3_102 = arith.constant 3 : index
    %c0_103 = arith.constant 0 : index
    %101 = vector.load %arg4[%c3_101, %c3_102, %c0_103] : memref<22x22x4xf32, #tpu.memory_space<vmem>>, vector<16x16x4xf32>
    %102 = vector.shape_cast %101 : vector<16x16x4xf32> to vector<256x4xf32>
    %103 = arith.truncf %102 : vector<256x4xf32> to vector<256x4xbf16>
    %c0_104 = arith.constant 0 : index
    %c96 = arith.constant 96 : index
    %104 = vector.load %arg5[%c0_104, %c96] : memref<256x196xbf16, #tpu.memory_space<vmem>>, vector<256x4xbf16>
    tpu.vector_store %arg5[%c0_104, %c96], %103 {strides = array<i32>} : memref<256x196xbf16, #tpu.memory_space<vmem>>, vector<256x4xbf16>,
    %c3_105 = arith.constant 3 : index
    %c4_106 = arith.constant 4 : index
    %c0_107 = arith.constant 0 : index
    %105 = vector.load %arg4[%c3_105, %c4_106, %c0_107] : memref<22x22x4xf32, #tpu.memory_space<vmem>>, vector<16x16x4xf32>
    %106 = vector.shape_cast %105 : vector<16x16x4xf32> to vector<256x4xf32>
    %107 = arith.truncf %106 : vector<256x4xf32> to vector<256x4xbf16>
    %c0_108 = arith.constant 0 : index
    %c100 = arith.constant 100 : index
    %108 = vector.load %arg5[%c0_108, %c100] : memref<256x196xbf16, #tpu.memory_space<vmem>>, vector<256x4xbf16>
    tpu.vector_store %arg5[%c0_108, %c100], %107 {strides = array<i32>} : memref<256x196xbf16, #tpu.memory_space<vmem>>, vector<256x4xbf16>,
    %c3_109 = arith.constant 3 : index
    %c5_110 = arith.constant 5 : index
    %c0_111 = arith.constant 0 : index
    %109 = vector.load %arg4[%c3_109, %c5_110, %c0_111] : memref<22x22x4xf32, #tpu.memory_space<vmem>>, vector<16x16x4xf32>
    %110 = vector.shape_cast %109 : vector<16x16x4xf32> to vector<256x4xf32>
    %111 = arith.truncf %110 : vector<256x4xf32> to vector<256x4xbf16>
    %c0_112 = arith.constant 0 : index
    %c104 = arith.constant 104 : index
    %112 = vector.load %arg5[%c0_112, %c104] : memref<256x196xbf16, #tpu.memory_space<vmem>>, vector<256x4xbf16>
    tpu.vector_store %arg5[%c0_112, %c104], %111 {strides = array<i32>} : memref<256x196xbf16, #tpu.memory_space<vmem>>, vector<256x4xbf16>,
    %c3_113 = arith.constant 3 : index
    %c6_114 = arith.constant 6 : index
    %c0_115 = arith.constant 0 : index
    %113 = vector.load %arg4[%c3_113, %c6_114, %c0_115] : memref<22x22x4xf32, #tpu.memory_space<vmem>>, vector<16x16x4xf32>
    %114 = vector.shape_cast %113 : vector<16x16x4xf32> to vector<256x4xf32>
    %115 = arith.truncf %114 : vector<256x4xf32> to vector<256x4xbf16>
    %c0_116 = arith.constant 0 : index
    %c108 = arith.constant 108 : index
    %116 = vector.load %arg5[%c0_116, %c108] : memref<256x196xbf16, #tpu.memory_space<vmem>>, vector<256x4xbf16>
    tpu.vector_store %arg5[%c0_116, %c108], %115 {strides = array<i32>} : memref<256x196xbf16, #tpu.memory_space<vmem>>, vector<256x4xbf16>,
    %c4_117 = arith.constant 4 : index
    %c0_118 = arith.constant 0 : index
    %c0_119 = arith.constant 0 : index
    %117 = vector.load %arg4[%c4_117, %c0_118, %c0_119] : memref<22x22x4xf32, #tpu.memory_space<vmem>>, vector<16x16x4xf32>
    %118 = vector.shape_cast %117 : vector<16x16x4xf32> to vector<256x4xf32>
    %119 = arith.truncf %118 : vector<256x4xf32> to vector<256x4xbf16>
    %c0_120 = arith.constant 0 : index
    %c112 = arith.constant 112 : index
    %120 = vector.load %arg5[%c0_120, %c112] : memref<256x196xbf16, #tpu.memory_space<vmem>>, vector<256x4xbf16>
    tpu.vector_store %arg5[%c0_120, %c112], %119 {strides = array<i32>} : memref<256x196xbf16, #tpu.memory_space<vmem>>, vector<256x4xbf16>,
    %c4_121 = arith.constant 4 : index
    %c1_122 = arith.constant 1 : index
    %c0_123 = arith.constant 0 : index
    %121 = vector.load %arg4[%c4_121, %c1_122, %c0_123] : memref<22x22x4xf32, #tpu.memory_space<vmem>>, vector<16x16x4xf32>
    %122 = vector.shape_cast %121 : vector<16x16x4xf32> to vector<256x4xf32>
    %123 = arith.truncf %122 : vector<256x4xf32> to vector<256x4xbf16>
    %c0_124 = arith.constant 0 : index
    %c116 = arith.constant 116 : index
    %124 = vector.load %arg5[%c0_124, %c116] : memref<256x196xbf16, #tpu.memory_space<vmem>>, vector<256x4xbf16>
    tpu.vector_store %arg5[%c0_124, %c116], %123 {strides = array<i32>} : memref<256x196xbf16, #tpu.memory_space<vmem>>, vector<256x4xbf16>,
    %c4_125 = arith.constant 4 : index
    %c2_126 = arith.constant 2 : index
    %c0_127 = arith.constant 0 : index
    %125 = vector.load %arg4[%c4_125, %c2_126, %c0_127] : memref<22x22x4xf32, #tpu.memory_space<vmem>>, vector<16x16x4xf32>
    %126 = vector.shape_cast %125 : vector<16x16x4xf32> to vector<256x4xf32>
    %127 = arith.truncf %126 : vector<256x4xf32> to vector<256x4xbf16>
    %c0_128 = arith.constant 0 : index
    %c120 = arith.constant 120 : index
    %128 = vector.load %arg5[%c0_128, %c120] : memref<256x196xbf16, #tpu.memory_space<vmem>>, vector<256x4xbf16>
    tpu.vector_store %arg5[%c0_128, %c120], %127 {strides = array<i32>} : memref<256x196xbf16, #tpu.memory_space<vmem>>, vector<256x4xbf16>,
    %c4_129 = arith.constant 4 : index
    %c3_130 = arith.constant 3 : index
    %c0_131 = arith.constant 0 : index
    %129 = vector.load %arg4[%c4_129, %c3_130, %c0_131] : memref<22x22x4xf32, #tpu.memory_space<vmem>>, vector<16x16x4xf32>
    %130 = vector.shape_cast %129 : vector<16x16x4xf32> to vector<256x4xf32>
    %131 = arith.truncf %130 : vector<256x4xf32> to vector<256x4xbf16>
    %c0_132 = arith.constant 0 : index
    %c124 = arith.constant 124 : index
    %132 = vector.load %arg5[%c0_132, %c124] : memref<256x196xbf16, #tpu.memory_space<vmem>>, vector<256x4xbf16>
    tpu.vector_store %arg5[%c0_132, %c124], %131 {strides = array<i32>} : memref<256x196xbf16, #tpu.memory_space<vmem>>, vector<256x4xbf16>,
    %c4_133 = arith.constant 4 : index
    %c4_134 = arith.constant 4 : index
    %c0_135 = arith.constant 0 : index
    %133 = vector.load %arg4[%c4_133, %c4_134, %c0_135] : memref<22x22x4xf32, #tpu.memory_space<vmem>>, vector<16x16x4xf32>
    %134 = vector.shape_cast %133 : vector<16x16x4xf32> to vector<256x4xf32>
    %135 = arith.truncf %134 : vector<256x4xf32> to vector<256x4xbf16>
    %c0_136 = arith.constant 0 : index
    %c128 = arith.constant 128 : index
    %136 = vector.load %arg5[%c0_136, %c128] : memref<256x196xbf16, #tpu.memory_space<vmem>>, vector<256x4xbf16>
    tpu.vector_store %arg5[%c0_136, %c128], %135 {strides = array<i32>} : memref<256x196xbf16, #tpu.memory_space<vmem>>, vector<256x4xbf16>,
    %c4_137 = arith.constant 4 : index
    %c5_138 = arith.constant 5 : index
    %c0_139 = arith.constant 0 : index
    %137 = vector.load %arg4[%c4_137, %c5_138, %c0_139] : memref<22x22x4xf32, #tpu.memory_space<vmem>>, vector<16x16x4xf32>
    %138 = vector.shape_cast %137 : vector<16x16x4xf32> to vector<256x4xf32>
    %139 = arith.truncf %138 : vector<256x4xf32> to vector<256x4xbf16>
    %c0_140 = arith.constant 0 : index
    %c132 = arith.constant 132 : index
    %140 = vector.load %arg5[%c0_140, %c132] : memref<256x196xbf16, #tpu.memory_space<vmem>>, vector<256x4xbf16>
    tpu.vector_store %arg5[%c0_140, %c132], %139 {strides = array<i32>} : memref<256x196xbf16, #tpu.memory_space<vmem>>, vector<256x4xbf16>,
    %c4_141 = arith.constant 4 : index
    %c6_142 = arith.constant 6 : index
    %c0_143 = arith.constant 0 : index
    %141 = vector.load %arg4[%c4_141, %c6_142, %c0_143] : memref<22x22x4xf32, #tpu.memory_space<vmem>>, vector<16x16x4xf32>
    %142 = vector.shape_cast %141 : vector<16x16x4xf32> to vector<256x4xf32>
    %143 = arith.truncf %142 : vector<256x4xf32> to vector<256x4xbf16>
    %c0_144 = arith.constant 0 : index
    %c136 = arith.constant 136 : index
    %144 = vector.load %arg5[%c0_144, %c136] : memref<256x196xbf16, #tpu.memory_space<vmem>>, vector<256x4xbf16>
    tpu.vector_store %arg5[%c0_144, %c136], %143 {strides = array<i32>} : memref<256x196xbf16, #tpu.memory_space<vmem>>, vector<256x4xbf16>,
    %c5_145 = arith.constant 5 : index
    %c0_146 = arith.constant 0 : index
    %c0_147 = arith.constant 0 : index
    %145 = vector.load %arg4[%c5_145, %c0_146, %c0_147] : memref<22x22x4xf32, #tpu.memory_space<vmem>>, vector<16x16x4xf32>
    %146 = vector.shape_cast %145 : vector<16x16x4xf32> to vector<256x4xf32>
    %147 = arith.truncf %146 : vector<256x4xf32> to vector<256x4xbf16>
    %c0_148 = arith.constant 0 : index
    %c140 = arith.constant 140 : index
    %148 = vector.load %arg5[%c0_148, %c140] : memref<256x196xbf16, #tpu.memory_space<vmem>>, vector<256x4xbf16>
    tpu.vector_store %arg5[%c0_148, %c140], %147 {strides = array<i32>} : memref<256x196xbf16, #tpu.memory_space<vmem>>, vector<256x4xbf16>,
    %c5_149 = arith.constant 5 : index
    %c1_150 = arith.constant 1 : index
    %c0_151 = arith.constant 0 : index
    %149 = vector.load %arg4[%c5_149, %c1_150, %c0_151] : memref<22x22x4xf32, #tpu.memory_space<vmem>>, vector<16x16x4xf32>
    %150 = vector.shape_cast %149 : vector<16x16x4xf32> to vector<256x4xf32>
    %151 = arith.truncf %150 : vector<256x4xf32> to vector<256x4xbf16>
    %c0_152 = arith.constant 0 : index
    %c144 = arith.constant 144 : index
    %152 = vector.load %arg5[%c0_152, %c144] : memref<256x196xbf16, #tpu.memory_space<vmem>>, vector<256x4xbf16>
    tpu.vector_store %arg5[%c0_152, %c144], %151 {strides = array<i32>} : memref<256x196xbf16, #tpu.memory_space<vmem>>, vector<256x4xbf16>,
    %c5_153 = arith.constant 5 : index
    %c2_154 = arith.constant 2 : index
    %c0_155 = arith.constant 0 : index
    %153 = vector.load %arg4[%c5_153, %c2_154, %c0_155] : memref<22x22x4xf32, #tpu.memory_space<vmem>>, vector<16x16x4xf32>
    %154 = vector.shape_cast %153 : vector<16x16x4xf32> to vector<256x4xf32>
    %155 = arith.truncf %154 : vector<256x4xf32> to vector<256x4xbf16>
    %c0_156 = arith.constant 0 : index
    %c148 = arith.constant 148 : index
    %156 = vector.load %arg5[%c0_156, %c148] : memref<256x196xbf16, #tpu.memory_space<vmem>>, vector<256x4xbf16>
    tpu.vector_store %arg5[%c0_156, %c148], %155 {strides = array<i32>} : memref<256x196xbf16, #tpu.memory_space<vmem>>, vector<256x4xbf16>,
    %c5_157 = arith.constant 5 : index
    %c3_158 = arith.constant 3 : index
    %c0_159 = arith.constant 0 : index
    %157 = vector.load %arg4[%c5_157, %c3_158, %c0_159] : memref<22x22x4xf32, #tpu.memory_space<vmem>>, vector<16x16x4xf32>
    %158 = vector.shape_cast %157 : vector<16x16x4xf32> to vector<256x4xf32>
    %159 = arith.truncf %158 : vector<256x4xf32> to vector<256x4xbf16>
    %c0_160 = arith.constant 0 : index
    %c152 = arith.constant 152 : index
    %160 = vector.load %arg5[%c0_160, %c152] : memref<256x196xbf16, #tpu.memory_space<vmem>>, vector<256x4xbf16>
    tpu.vector_store %arg5[%c0_160, %c152], %159 {strides = array<i32>} : memref<256x196xbf16, #tpu.memory_space<vmem>>, vector<256x4xbf16>,
    %c5_161 = arith.constant 5 : index
    %c4_162 = arith.constant 4 : index
    %c0_163 = arith.constant 0 : index
    %161 = vector.load %arg4[%c5_161, %c4_162, %c0_163] : memref<22x22x4xf32, #tpu.memory_space<vmem>>, vector<16x16x4xf32>
    %162 = vector.shape_cast %161 : vector<16x16x4xf32> to vector<256x4xf32>
    %163 = arith.truncf %162 : vector<256x4xf32> to vector<256x4xbf16>
    %c0_164 = arith.constant 0 : index
    %c156 = arith.constant 156 : index
    %164 = vector.load %arg5[%c0_164, %c156] : memref<256x196xbf16, #tpu.memory_space<vmem>>, vector<256x4xbf16>
    tpu.vector_store %arg5[%c0_164, %c156], %163 {strides = array<i32>} : memref<256x196xbf16, #tpu.memory_space<vmem>>, vector<256x4xbf16>,
    %c5_165 = arith.constant 5 : index
    %c5_166 = arith.constant 5 : index
    %c0_167 = arith.constant 0 : index
    %165 = vector.load %arg4[%c5_165, %c5_166, %c0_167] : memref<22x22x4xf32, #tpu.memory_space<vmem>>, vector<16x16x4xf32>
    %166 = vector.shape_cast %165 : vector<16x16x4xf32> to vector<256x4xf32>
    %167 = arith.truncf %166 : vector<256x4xf32> to vector<256x4xbf16>
    %c0_168 = arith.constant 0 : index
    %c160 = arith.constant 160 : index
    %168 = vector.load %arg5[%c0_168, %c160] : memref<256x196xbf16, #tpu.memory_space<vmem>>, vector<256x4xbf16>
    tpu.vector_store %arg5[%c0_168, %c160], %167 {strides = array<i32>} : memref<256x196xbf16, #tpu.memory_space<vmem>>, vector<256x4xbf16>,
    %c5_169 = arith.constant 5 : index
    %c6_170 = arith.constant 6 : index
    %c0_171 = arith.constant 0 : index
    %169 = vector.load %arg4[%c5_169, %c6_170, %c0_171] : memref<22x22x4xf32, #tpu.memory_space<vmem>>, vector<16x16x4xf32>
    %170 = vector.shape_cast %169 : vector<16x16x4xf32> to vector<256x4xf32>
    %171 = arith.truncf %170 : vector<256x4xf32> to vector<256x4xbf16>
    %c0_172 = arith.constant 0 : index
    %c164 = arith.constant 164 : index
    %172 = vector.load %arg5[%c0_172, %c164] : memref<256x196xbf16, #tpu.memory_space<vmem>>, vector<256x4xbf16>
    tpu.vector_store %arg5[%c0_172, %c164], %171 {strides = array<i32>} : memref<256x196xbf16, #tpu.memory_space<vmem>>, vector<256x4xbf16>,
    %c6_173 = arith.constant 6 : index
    %c0_174 = arith.constant 0 : index
    %c0_175 = arith.constant 0 : index
    %173 = vector.load %arg4[%c6_173, %c0_174, %c0_175] : memref<22x22x4xf32, #tpu.memory_space<vmem>>, vector<16x16x4xf32>
    %174 = vector.shape_cast %173 : vector<16x16x4xf32> to vector<256x4xf32>
    %175 = arith.truncf %174 : vector<256x4xf32> to vector<256x4xbf16>
    %c0_176 = arith.constant 0 : index
    %c168 = arith.constant 168 : index
    %176 = vector.load %arg5[%c0_176, %c168] : memref<256x196xbf16, #tpu.memory_space<vmem>>, vector<256x4xbf16>
    tpu.vector_store %arg5[%c0_176, %c168], %175 {strides = array<i32>} : memref<256x196xbf16, #tpu.memory_space<vmem>>, vector<256x4xbf16>,
    %c6_177 = arith.constant 6 : index
    %c1_178 = arith.constant 1 : index
    %c0_179 = arith.constant 0 : index
    %177 = vector.load %arg4[%c6_177, %c1_178, %c0_179] : memref<22x22x4xf32, #tpu.memory_space<vmem>>, vector<16x16x4xf32>
    %178 = vector.shape_cast %177 : vector<16x16x4xf32> to vector<256x4xf32>
    %179 = arith.truncf %178 : vector<256x4xf32> to vector<256x4xbf16>
    %c0_180 = arith.constant 0 : index
    %c172 = arith.constant 172 : index
    %180 = vector.load %arg5[%c0_180, %c172] : memref<256x196xbf16, #tpu.memory_space<vmem>>, vector<256x4xbf16>
    tpu.vector_store %arg5[%c0_180, %c172], %179 {strides = array<i32>} : memref<256x196xbf16, #tpu.memory_space<vmem>>, vector<256x4xbf16>,
    %c6_181 = arith.constant 6 : index
    %c2_182 = arith.constant 2 : index
    %c0_183 = arith.constant 0 : index
    %181 = vector.load %arg4[%c6_181, %c2_182, %c0_183] : memref<22x22x4xf32, #tpu.memory_space<vmem>>, vector<16x16x4xf32>
    %182 = vector.shape_cast %181 : vector<16x16x4xf32> to vector<256x4xf32>
    %183 = arith.truncf %182 : vector<256x4xf32> to vector<256x4xbf16>
    %c0_184 = arith.constant 0 : index
    %c176 = arith.constant 176 : index
    %184 = vector.load %arg5[%c0_184, %c176] : memref<256x196xbf16, #tpu.memory_space<vmem>>, vector<256x4xbf16>
    tpu.vector_store %arg5[%c0_184, %c176], %183 {strides = array<i32>} : memref<256x196xbf16, #tpu.memory_space<vmem>>, vector<256x4xbf16>,
    %c6_185 = arith.constant 6 : index
    %c3_186 = arith.constant 3 : index
    %c0_187 = arith.constant 0 : index
    %185 = vector.load %arg4[%c6_185, %c3_186, %c0_187] : memref<22x22x4xf32, #tpu.memory_space<vmem>>, vector<16x16x4xf32>
    %186 = vector.shape_cast %185 : vector<16x16x4xf32> to vector<256x4xf32>
    %187 = arith.truncf %186 : vector<256x4xf32> to vector<256x4xbf16>
    %c0_188 = arith.constant 0 : index
    %c180 = arith.constant 180 : index
    %188 = vector.load %arg5[%c0_188, %c180] : memref<256x196xbf16, #tpu.memory_space<vmem>>, vector<256x4xbf16>
    tpu.vector_store %arg5[%c0_188, %c180], %187 {strides = array<i32>} : memref<256x196xbf16, #tpu.memory_space<vmem>>, vector<256x4xbf16>,
    %c6_189 = arith.constant 6 : index
    %c4_190 = arith.constant 4 : index
    %c0_191 = arith.constant 0 : index
    %189 = vector.load %arg4[%c6_189, %c4_190, %c0_191] : memref<22x22x4xf32, #tpu.memory_space<vmem>>, vector<16x16x4xf32>
    %190 = vector.shape_cast %189 : vector<16x16x4xf32> to vector<256x4xf32>
    %191 = arith.truncf %190 : vector<256x4xf32> to vector<256x4xbf16>
    %c0_192 = arith.constant 0 : index
    %c184 = arith.constant 184 : index
    %192 = vector.load %arg5[%c0_192, %c184] : memref<256x196xbf16, #tpu.memory_space<vmem>>, vector<256x4xbf16>
    tpu.vector_store %arg5[%c0_192, %c184], %191 {strides = array<i32>} : memref<256x196xbf16, #tpu.memory_space<vmem>>, vector<256x4xbf16>,
    %c6_193 = arith.constant 6 : index
    %c5_194 = arith.constant 5 : index
    %c0_195 = arith.constant 0 : index
    %193 = vector.load %arg4[%c6_193, %c5_194, %c0_195] : memref<22x22x4xf32, #tpu.memory_space<vmem>>, vector<16x16x4xf32>
    %194 = vector.shape_cast %193 : vector<16x16x4xf32> to vector<256x4xf32>
    %195 = arith.truncf %194 : vector<256x4xf32> to vector<256x4xbf16>
    %c0_196 = arith.constant 0 : index
    %c188 = arith.constant 188 : index
    %196 = vector.load %arg5[%c0_196, %c188] : memref<256x196xbf16, #tpu.memory_space<vmem>>, vector<256x4xbf16>
    tpu.vector_store %arg5[%c0_196, %c188], %195 {strides = array<i32>} : memref<256x196xbf16, #tpu.memory_space<vmem>>, vector<256x4xbf16>,
    %c6_197 = arith.constant 6 : index
    %c6_198 = arith.constant 6 : index
    %c0_199 = arith.constant 0 : index
    %197 = vector.load %arg4[%c6_197, %c6_198, %c0_199] : memref<22x22x4xf32, #tpu.memory_space<vmem>>, vector<16x16x4xf32>
    %198 = vector.shape_cast %197 : vector<16x16x4xf32> to vector<256x4xf32>
    %199 = arith.truncf %198 : vector<256x4xf32> to vector<256x4xbf16>
    %c0_200 = arith.constant 0 : index
    %c192 = arith.constant 192 : index
    %200 = vector.load %arg5[%c0_200, %c192] : memref<256x196xbf16, #tpu.memory_space<vmem>>, vector<256x4xbf16>
    tpu.vector_store %arg5[%c0_200, %c192], %199 {strides = array<i32>} : memref<256x196xbf16, #tpu.memory_space<vmem>>, vector<256x4xbf16>,
    %c0_201 = arith.constant 0 : index
    %c0_202 = arith.constant 0 : index
    %201 = vector.load %arg5[%c0_201, %c0_202] : memref<256x196xbf16, #tpu.memory_space<vmem>>, vector<256x196xbf16>
    %c0_203 = arith.constant 0 : index
    %c0_204 = arith.constant 0 : index
    %202 = vector.load %arg2[%c0_203, %c0_204] : memref<196x8xbf16, #tpu.memory_space<vmem>>, vector<196x8xbf16>
    %cst_205 = arith.constant dense<0.000000e+00> : vector<256x8xf32>
    %203 = tpu.matmul %201, %202, %cst_205 {dimension_numbers = #tpu.dot_dimension_numbers<[1], [0], [0], [1], [0, 0, 1, 1], [], []>} : vector<256x196xbf16>, vector<196x8xbf16>, vector<256x8xf32> -> vector<256x8xf32>
    %204 = vector.shape_cast %203 : vector<256x8xf32> to vector<16x16x8xf32>
    %c0_206 = arith.constant 0 : index
    %c0_207 = arith.constant 0 : index
    %c0_208 = arith.constant 0 : index
    %c0_209 = arith.constant 0 : index
    %205 = vector.load %arg3[%c0_206, %c0_207, %c0_208, %c0_209] : memref<1x16x16x8xf32, #tpu.memory_space<vmem>>, vector<1x16x16x8xf32>
    %206 = vector.shape_cast %205 : vector<1x16x16x8xf32> to vector<16x16x8xf32>
    %207 = vector.shape_cast %204 : vector<16x16x8xf32> to vector<1x16x16x8xf32>
    tpu.vector_store %arg3[%c0_206, %c0_207, %c0_208, %c0_209], %207 {strides = array<i32>} : memref<1x16x16x8xf32, #tpu.memory_space<vmem>>, vector<1x16x16x8xf32>,
    return
  }
  func.func @transform_0(%arg0: i32) -> (i32, i32, i32, i32) {
    %c0_i32 = arith.constant 0 : i32
    %c0_i32_0 = arith.constant 0 : i32
    %c0_i32_1 = arith.constant 0 : i32
    %c0_i32_2 = arith.constant 0 : i32
    return %arg0, %c0_i32, %c0_i32_0, %c0_i32_1 : i32, i32, i32, i32
  }
  func.func @transform_1(%arg0: i32) -> (i32, i32) {
    %c0_i32 = arith.constant 0 : i32
    %c0_i32_0 = arith.constant 0 : i32
    %c0_i32_1 = arith.constant 0 : i32
    return %c0_i32, %c0_i32_0 : i32, i32
  }
  func.func @transform_2(%arg0: i32) -> (i32, i32, i32, i32) {
    %c0_i32 = arith.constant 0 : i32
    %c0_i32_0 = arith.constant 0 : i32
    %c0_i32_1 = arith.constant 0 : i32
    %c0_i32_2 = arith.constant 0 : i32
    return %arg0, %c0_i32, %c0_i32_0, %c0_i32_1 : i32, i32, i32, i32
  }
}

</mosaic_0001>

<bundles_post_ra>
// kernel: tpu_custom_call.1
= control target key start
LH: loop header
LB: loop body
LE: loop exit
PB: predicated region body
PF: predicated region fallthrough
CT: control target
= control target key end

     0   :  { %6 = vsyncpa [#allocation3], 0  ;;  %s145_s0 = inlined_call_operand.hbm [shape: f32[8,8,128], index: 0, kind: input, shape index: {}]   ;;  %s146_s1 = inlined_call_operand.hbm [shape: f32[4,4,128], index: 1, kind: output, shape index: {}]  }
   0x1   :  { %7 = vsyncpa [#allocation4], 0  ;;  %s105_s6 = smov [#allocation2]   ;;  %s57_s10 = scalar_lea.hbm %s145_s0, 1024 }
   0x2   :  { %s13_s7 = sshll.u32 %s105_s6, 4  ;;  %p58_p0 = scmp.ne.s32.totalorder %s145_s0, %s57_s10  ;;  %s14_s7 = int_to_ptr.vmem [resolvable:$true] %s13_s7 }
   0x3   :  { %p61_p1 = scmp.lt.u32.totalorder %s57_s10, %s145_s0 }
   0x5   :  { %p63_p2 = pnand %p61_p1, %p58_p0 }
   0x7   :  { %66 = shalt.err (!%p63_p2)
}
   0x8   :  { %s67_s15 = scalar_lea.vmem %s14_s7, 1024  ;;  %p72_p4 = scmp.lt.s32.totalorder %s14_s7, %s14_s7 }
   0x9   :  { %p68_p3 = scmp.ne.s32.totalorder %s14_s7, %s67_s15  ;;  %p73_p5 = scmp.lt.s32.totalorder %s67_s15, %s67_s15 }
   0xb   :  { %p74_p6 = por %p73_p5, %p72_p4 }
   0xd   :  { %p75_p7 = pnand %p74_p6, %p68_p3 }
   0xf   :  { %78 = shalt.err (!%p75_p7)
}
  0x10   :  { %s106_s16 = smov 128   ;;  %s107_s17 = smov 8  }
  0x11   :  { %19 = dma.hbm_to_vmem [thread:$0]  %s145_s0, 1024, %s14_s7, [#allocation3], %s106_s16, %s106_s16, %s107_s17  }
  0x12   :  { %101 = dma.done.wait [#allocation3], 1024  }
  0x13   :  { %102 = vsyncadd [#allocation3], 4294966272  ;;  %s108_s20 = smov [#allocation5]   ;;  %v23_v0 = vld [vmem:[#allocation2] ss:$2 sm:$0xf] }
  0x14   :  { %s39_s21 = sshll.u32 %s108_s20, 4  ;;  %v25_v1 = vld [vmem:[#allocation2 + $0x10] ss:$2 sm:$0xf]  ;;  %30 = vst [vmem:[#allocation5] sm:$0xf] %v23_v0  ;;  %s40_s21 = int_to_ptr.vmem [resolvable:$true] %s39_s21 }
  0x15   :  { %31 = vst [vmem:[#allocation5 + $0x4] sm:$0xf] %v25_v1  ;;  %v27_v2 = vld [vmem:[#allocation2 + $0x20] ss:$2 sm:$0xf]  ;;  %s79_s22 = scalar_lea.vmem %s40_s21, 256  ;;  %p84_p9 = scmp.lt.s32.totalorder %s40_s21, %s40_s21 }
  0x16   :  { %v29_v3 = vld [vmem:[#allocation2 + $0x30] ss:$2 sm:$0xf]  ;;  %32 = vst [vmem:[#allocation5 + $0x8] sm:$0xf] %v27_v2  ;;  %p80_p8 = scmp.ne.s32.totalorder %s40_s21, %s79_s22  ;;  %p85_p10 = scmp.lt.s32.totalorder %s79_s22, %s79_s22 }
  0x17   :  { %33 = vst [vmem:[#allocation5 + $0xc] sm:$0xf] %v29_v3 }
  0x18   :  { %p86_p11 = por %p85_p10, %p84_p9 }
  0x1a   :  { %p87_p12 = pnand %p86_p11, %p80_p8 }
  0x1c   :  { %90 = shalt.err (!%p87_p12)
}
  0x1d   :  { %s91_s24 = scalar_lea.hbm %s146_s1, 256 }
  0x1e   :  { %p92_p13 = scmp.ne.s32.totalorder %s146_s1, %s91_s24  ;;  %p95_p0 = scmp.lt.u32.totalorder %s91_s24, %s146_s1 }
  0x20   :  { %p97_p1 = pnand %p95_p0, %p92_p13 }
  0x22   :  { %100 = shalt.err (!%p97_p1)
}
  0x23   :  { %s109_s29 = smov 64   ;;  %s110_s30 = smov 4  }
  0x24   :  { %45 = dma.vmem_to_hbm [thread:$0]  %s40_s21, 256, %s146_s1, [#allocation4], %s109_s29, %s109_s29, %s110_s30  }
  0x25   :  { %103 = dma.done.wait [#allocation4], 256  }
  0x26   :  { %104 = vsyncadd [#allocation4], 4294967040 }
  0x27   :  { %49 = vsyncpa [#allocation3], 1 }
  0x28   :  { %50 = vsyncpa [#allocation4], 1 }

// kernel: tpu_custom_call.1
= control target key start
LH: loop header
LB: loop body
LE: loop exit
PB: predicated region body
PF: predicated region fallthrough
CT: control target
= control target key end

     0   :  { %s7070_s9 = smov 0   ;;  %s9150_s0 = inlined_call_operand.vmem [shape: f32[2,16,16,4], index: 0, kind: input, shape index: {}]   ;;  %s9151_s1 = inlined_call_operand.vmem [shape: bf16[196,8], index: 1, kind: input, shape index: {}]   ;;  %s9152_s2 = inlined_call_operand.vmem [shape: f32[2,16,16,8], index: 2, kind: output, shape index: {}]  }
   0x1 LB: > { %s6892_s10 = sadd.s32 4294967295, %s7020_s9   ;;  %p6896_p0 = scmp.ge.s32.totalorder %s7020_s9, 1  ;;  %s7020_s9 = sphi %s7070_s9, %s12_s9  }
   0x2   : > { %p112_p1 = scmp.lt.s32.totalorder %s7020_s9, 3 }
   0x4   : > { %p113_p2 = pnand %p6896_p0, %p112_p1 }
   0x5   : > { %vm177_vm0 = vcmask (!%p113_p2), 31744   ;;  %vm180_vm1 = vcmask (!%p113_p2), 29696   ;;  %p7080_p3 = scmp.lt.s32.totalorder (!%p113_p2), %s6892_s10, 1  ;;  %v7022_v0 = vmov (!%p113_p2), 0.0   ;;  %s7023_s16 = smov (!%p113_p2), 4   ;;  %vm454_vm2 = vcmask (!%p113_p2), 64544  }
   0x6   : > { %116 = sbr.rel (%p113_p2) target bundleno = 1885 (0x75d), region = 28  ;;  %178 = vst.msk [vmem:[#allocation2] sm:$0xff] (!%p113_p2), %vm177_vm0, %v7022_v0  ;;  %179 = vst.msk [vmem:[#allocation2 + $0x8] sm:$0xff] (!%p113_p2), %vm177_vm0, %v7022_v0  ;;  %s7024_s17 = smov (!%p113_p2), 8   ;;  %vm583_vm3 = vcmask (!%p113_p2), 97344   ;;  %vm712_vm4 = vcmask (!%p113_p2), 130144  }
   0x7   : > { %181 = vst.msk [vmem:[#allocation2 + $0x10] sm:$0x3f] (!%p113_p2), %vm180_vm1, %v7022_v0  ;;  %184 = vst.msk [vmem:[#allocation2 + $0x28] sm:$0x3f] (!%p113_p2), %vm180_vm1, %v7022_v0  ;;  %s7025_s18 = smov (!%p113_p2), 12   ;;  %s7026_s19 = smov (!%p113_p2), 16  }
   0x8   : > { %182 = vst.msk [vmem:[#allocation2 + $0x18] sm:$0xff] (!%p113_p2), %vm177_vm0, %v7022_v0  ;;  %183 = vst.msk [vmem:[#allocation2 + $0x20] sm:$0xff] (!%p113_p2), %vm177_vm0, %v7022_v0  ;;  %s7027_s20 = smov (!%p113_p2), 20   ;;  %s7028_s21 = smov (!%p113_p2), 24   ;;  %vm841_vm5 = vcmask (!%p113_p2), 162944   ;;  %vm970_vm6 = vcmask (!%p113_p2), 195744  }
   0x9   : > { %185 = vst.msk [vmem:[#allocation2 + $0x30] sm:$0xff] (!%p113_p2), %vm177_vm0, %v7022_v0  ;;  %186 = vst.msk [vmem:[#allocation2 + $0x38] sm:$0xff] (!%p113_p2), %vm177_vm0, %v7022_v0  ;;  %s7029_s22 = smov (!%p113_p2), 28   ;;  %s7030_s23 = smov (!%p113_p2), 32   ;;  %vm1099_vm7 = vcmask (!%p113_p2), 228544   ;;  %vm1229_vm8 = vcmask (!%p113_p2), 261344  }
   0xa   : > { %187 = vst.msk [vmem:[#allocation2 + $0x40] sm:$0x3f] (!%p113_p2), %vm180_vm1, %v7022_v0  ;;  %190 = vst.msk [vmem:[#allocation2 + $0x58] sm:$0x3f] (!%p113_p2), %vm180_vm1, %v7022_v0  ;;  %s7031_s24 = smov (!%p113_p2), 36   ;;  %s7032_s25 = smov (!%p113_p2), 40  }
   0xb   : > { %188 = vst.msk [vmem:[#allocation2 + $0x48] sm:$0xff] (!%p113_p2), %vm177_vm0, %v7022_v0  ;;  %189 = vst.msk [vmem:[#allocation2 + $0x50] sm:$0xff] (!%p113_p2), %vm177_vm0, %v7022_v0  ;;  %s7033_s26 = smov (!%p113_p2), 44   ;;  %vm1358_vm9 = vcmask (!%p113_p2), 294144   ;;  %s7034_s27 = smov (!%p113_p2), 48   ;;  %vm1487_vm10 = vcmask (!%p113_p2), 326944  }
   0xc   : > { %191 = vst.msk [vmem:[#allocation2 + $0x60] sm:$0xff] (!%p113_p2), %vm177_vm0, %v7022_v0  ;;  %192 = vst.msk [vmem:[#allocation2 + $0x68] sm:$0xff] (!%p113_p2), %vm177_vm0, %v7022_v0  ;;  %s7035_s28 = smov (!%p113_p2), 52   ;;  %vm1616_vm11 = vcmask (!%p113_p2), 359744   ;;  %s7036_s29 = smov (!%p113_p2), 56   ;;  %vm1745_vm12 = vcmask (!%p113_p2), 392544  }
   0xd   : > { %193 = vst.msk [vmem:[#allocation2 + $0x70] sm:$0x3f] %vm180_vm1, %v7022_v0  ;;  %196 = vst.msk [vmem:[#allocation2 + $0x88] sm:$0x3f] %vm180_vm1, %v7022_v0  ;;  %s9201_s10 = smov (!%p7080_p3, %s6892_s10), 1  ;;  %v342_v7 = vld [vmem:[#allocation2 + $0x1] sm:$0xff] }
   0xe   : > { %194 = vst.msk [vmem:[#allocation2 + $0x78] sm:$0xff] %vm177_vm0, %v7022_v0  ;;  %195 = vst.msk [vmem:[#allocation2 + $0x80] sm:$0xff] %vm177_vm0, %v7022_v0  ;;  %s6932_s12 = sshll.u32 %s9201_s10, 8  ;;  %v343_v8 = vld [vmem:[#allocation2 + $0x9] sm:$0xff]  ;;  %s7037_s30 = smov 60   ;;  %vm1874_vm13 = vcmask 425344  }
   0xf   : > { %197 = vst.msk [vmem:[#allocation2 + $0x90] sm:$0xff] %vm177_vm0, %v7022_v0  ;;  %198 = vst.msk [vmem:[#allocation2 + $0x98] sm:$0xff] %vm177_vm0, %v7022_v0  ;;  %s7228_s15 = scalar_lea.vmem %s9150_s0, %s6932_s12  ;;  %v374_v10 = vpack.c.bf16 %v343_v8, %v342_v7  ;;  %v344_v12 = vld [vmem:[#allocation2 + $0x19] sm:$0xff]  ;;  %v345_v13 = vld [vmem:[#allocation2 + $0x21] sm:$0xff]  ;;  %s7038_s3 = smov 64   ;;  %vm2003_vm14 = vcmask 458144  }
  0x10   : > { %199 = vst.msk [vmem:[#allocation2 + $0xa0] sm:$0x3f] %vm180_vm1, %v7022_v0  ;;  %202 = vst.msk [vmem:[#allocation2 + $0xb8] sm:$0x3f] %vm180_vm1, %v7022_v0  ;;  %v145_v1 = vld [vmem:[%s7228_s15] sm:$0xff]  ;;  %v146_v2 = vld [vmem:[%s7228_s15 + $0x8] sm:$0xff]  ;;  %v375_v18 = vpack.c.bf16 %v345_v13, %v344_v12 }
  0x11   : > { %200 = vst.msk [vmem:[#allocation2 + $0xa8] sm:$0xff] %vm177_vm0, %v7022_v0  ;;  %201 = vst.msk [vmem:[#allocation2 + $0xb0] sm:$0xff] %vm177_vm0, %v7022_v0  ;;  %v147_v3 = vld [vmem:[%s7228_s15 + $0x10] sm:$0xff]  ;;  %v148_v4 = vld [vmem:[%s7228_s15 + $0x18] sm:$0xff]  ;;  %406 = vrot.lane.b32.xlu0 %v374_v10, %s7023_s16  ;;  %s7039_s4 = smov 68   ;;  %vm9153_vm15 = vcmask 490944  }
  0x12   : > { %203 = vst.msk [vmem:[#allocation2 + $0xc0] sm:$0xff] %vm177_vm0, %v7022_v0  ;;  %204 = vst.msk [vmem:[#allocation2 + $0xc8] sm:$0xff] %vm177_vm0, %v7022_v0  ;;  %v149_v5 = vld [vmem:[%s7228_s15 + $0x20] sm:$0xff]  ;;  %v150_v6 = vld [vmem:[%s7228_s15 + $0x28] sm:$0xff]  ;;  %s7040_s5 = smov 72   ;;  %s7041_s6 = smov 76  }
  0x13   : > { %205 = vst.msk [vmem:[#allocation2 + $0xd0] sm:$0x3f] %vm180_vm1, %v7022_v0  ;;  %208 = vst.msk [vmem:[#allocation2 + $0xe8] sm:$0x3f] %vm180_vm1, %v7022_v0  ;;  %v346_v9 = vld [vmem:[#allocation2 + $0x31] sm:$0xff]  ;;  %v347_v11 = vld [vmem:[#allocation2 + $0x39] sm:$0xff] }
  0x14   : > { %206 = vst.msk [vmem:[#allocation2 + $0xd8] sm:$0xff] %vm177_vm0, %v7022_v0  ;;  %207 = vst.msk [vmem:[#allocation2 + $0xe0] sm:$0xff] %vm177_vm0, %v7022_v0  ;;  %v376_v14 = vpack.c.bf16 %v347_v11, %v346_v9  ;;  %v151_v15 = vld [vmem:[%s7228_s15 + $0x30] sm:$0xff]  ;;  %v152_v16 = vld [vmem:[%s7228_s15 + $0x38] sm:$0xff]  ;;  %s7042_s7 = smov 80   ;;  %s7043_s8 = smov 84  }
  0x15   : > { %209 = vst.msk [vmem:[#allocation2 + $0xf0] sm:$0xff] %vm177_vm0, %v7022_v0  ;;  %210 = vst.msk [vmem:[#allocation2 + $0xf8] sm:$0xff] %vm177_vm0, %v7022_v0  ;;  %v153_v17 = vld [vmem:[%s7228_s15 + $0x40] sm:$0xff]  ;;  %v154_v19 = vld [vmem:[%s7228_s15 + $0x48] sm:$0xff]  ;;  %408 = vrot.lane.b32.xlu0 %v375_v18, %s7023_s16  ;;  %s7044_s11 = smov 88   ;;  %s7045_s13 = smov 92  }
  0x16   : > { %211 = vst.msk [vmem:[#allocation2 + $0x100] sm:$0x3f] %vm180_vm1, %v7022_v0  ;;  %214 = vst.msk [vmem:[#allocation2 + $0x118] sm:$0x3f] %vm180_vm1, %v7022_v0  ;;  %v155_v20 = vld [vmem:[%s7228_s15 + $0x50] sm:$0xff]  ;;  %v156_v21 = vld [vmem:[%s7228_s15 + $0x58] sm:$0xff]  ;;  %410 = vrot.lane.b32.xlu1 %v376_v14, %s7023_s16 }
  0x17   : > { %212 = vst.msk [vmem:[#allocation2 + $0x108] sm:$0xff] %vm177_vm0, %v7022_v0  ;;  %213 = vst.msk [vmem:[#allocation2 + $0x110] sm:$0xff] %vm177_vm0, %v7022_v0  ;;  %v157_v22 = vld [vmem:[%s7228_s15 + $0x60] sm:$0xff]  ;;  %v158_v23 = vld [vmem:[%s7228_s15 + $0x68] sm:$0xff]  ;;  %s7046_s14 = smov 96  }
  0x18   : > { %215 = vst.msk [vmem:[#allocation2 + $0x120] sm:$0xff] %vm177_vm0, %v7022_v0  ;;  %216 = vst.msk [vmem:[#allocation2 + $0x128] sm:$0xff] %vm177_vm0, %v7022_v0  ;;  %v159_v24 = vld [vmem:[%s7228_s15 + $0x70] sm:$0xff]  ;;  %v160_v25 = vld [vmem:[%s7228_s15 + $0x78] sm:$0xff] }
  0x19   : > { %217 = vst.msk [vmem:[#allocation2 + $0x130] sm:$0x3f] %vm180_vm1, %v7022_v0  ;;  %220 = vst.msk [vmem:[#allocation2 + $0x148] sm:$0x3f] %vm180_vm1, %v7022_v0  ;;  %v161_v26 = vld [vmem:[%s7228_s15 + $0x80] sm:$0xff]  ;;  %v162_v27 = vld [vmem:[%s7228_s15 + $0x88] sm:$0xff] }
  0x1a   : > { %218 = vst.msk [vmem:[#allocation2 + $0x138] sm:$0xff] %vm177_vm0, %v7022_v0  ;;  %219 = vst.msk [vmem:[#allocation2 + $0x140] sm:$0xff] %vm177_vm0, %v7022_v0  ;;  %v163_v36 = vld [vmem:[%s7228_s15 + $0x90] sm:$0xff]  ;;  %v164_v37 = vld [vmem:[%s7228_s15 + $0x98] sm:$0xff] }
  0x1b   : > { %221 = vst.msk [vmem:[#allocation2 + $0x150] sm:$0xff] %vm177_vm0, %v7022_v0  ;;  %222 = vst.msk [vmem:[#allocation2 + $0x158] sm:$0xff] %vm177_vm0, %v7022_v0  ;;  %v165_v38 = vld [vmem:[%s7228_s15 + $0xa0] sm:$0xff]  ;;  %v166_v40 = vld [vmem:[%s7228_s15 + $0xa8] sm:$0xff] }
  0x1c   : > { %223 = vst.msk [vmem:[#allocation2 + $0x160] sm:$0x3f] %vm180_vm1, %v7022_v0  ;;  %226 = vst.msk [vmem:[#allocation2 + $0x178] sm:$0x3f] %vm180_vm1, %v7022_v0  ;;  %v167_v41 = vld [vmem:[%s7228_s15 + $0xb0] sm:$0xff]  ;;  %v168_v42 = vld [vmem:[%s7228_s15 + $0xb8] sm:$0xff] }
  0x1d   : > { %224 = vst.msk [vmem:[#allocation2 + $0x168] sm:$0xff] %vm177_vm0, %v7022_v0  ;;  %225 = vst.msk [vmem:[#allocation2 + $0x170] sm:$0xff] %vm177_vm0, %v7022_v0  ;;  %v169_v53 = vld [vmem:[%s7228_s15 + $0xc0] sm:$0xff]  ;;  %v170_v54 = vld [vmem:[%s7228_s15 + $0xc8] sm:$0xff] }
  0x1e   : > { %227 = vst.msk [vmem:[#allocation2 + $0x180] sm:$0xff] %vm177_vm0, %v7022_v0  ;;  %228 = vst.msk [vmem:[#allocation2 + $0x188] sm:$0xff] %vm177_vm0, %v7022_v0  ;;  %v471_v10 = vld [vmem:[#allocation2 + $0x2] sm:$0xff]  ;;  %v472_v11 = vld [vmem:[#allocation2 + $0xa] sm:$0xff] }
  0x1f   : > { %229 = vst.msk [vmem:[#allocation2 + $0x190] sm:$0x3f] %vm180_vm1, %v7022_v0  ;;  %232 = vst.msk [vmem:[#allocation2 + $0x1a8] sm:$0x3f] %vm180_vm1, %v7022_v0  ;;  %v473_v13 = vld [vmem:[#allocation2 + $0x1a] sm:$0xff]  ;;  %v474_v14 = vld [vmem:[#allocation2 + $0x22] sm:$0xff] }
  0x20   : > { %230 = vst.msk [vmem:[#allocation2 + $0x198] sm:$0xff] %vm177_vm0, %v7022_v0  ;;  %231 = vst.msk [vmem:[#allocation2 + $0x1a0] sm:$0xff] %vm177_vm0, %v7022_v0  ;;  %v504_v18 = vpack.c.bf16 %v474_v14, %v473_v13 }
  0x21   : > { %233 = vst.msk [vmem:[#allocation2 + $0x1b0] sm:$0xff] %vm177_vm0, %v7022_v0  ;;  %234 = vst.msk [vmem:[#allocation2 + $0x1b8] sm:$0xff] %vm177_vm0, %v7022_v0 }
  0x22   : > { %235 = vst.msk [vmem:[#allocation2 + $0x1c0] sm:$0x3f] %vm180_vm1, %v7022_v0  ;;  %238 = vst.msk [vmem:[#allocation2 + $0x1d8] sm:$0x3f] %vm180_vm1, %v7022_v0 }
  0x23   : > { %236 = vst.msk [vmem:[#allocation2 + $0x1c8] sm:$0xff] %vm177_vm0, %v7022_v0  ;;  %237 = vst.msk [vmem:[#allocation2 + $0x1d0] sm:$0xff] %vm177_vm0, %v7022_v0 }
  0x24   : > { %239 = vst.msk [vmem:[#allocation2 + $0x1e0] sm:$0xff] %vm177_vm0, %v7022_v0  ;;  %240 = vst.msk [vmem:[#allocation2 + $0x1e8] sm:$0xff] %vm177_vm0, %v7022_v0 }
  0x25   : > { %241 = vst.msk [vmem:[#allocation2 + $0x1f0] sm:$0x3f] %vm180_vm1, %v7022_v0  ;;  %244 = vst.msk [vmem:[#allocation2 + $0x208] sm:$0x3f] %vm180_vm1, %v7022_v0  ;;  %vm9154_vm1 = vcmask 523744  }
  0x26   : > { %242 = vst.msk [vmem:[#allocation2 + $0x1f8] sm:$0xff] %vm177_vm0, %v7022_v0  ;;  %243 = vst.msk [vmem:[#allocation2 + $0x200] sm:$0xff] %vm177_vm0, %v7022_v0 }
  0x27   : > { %246 = vst.msk [vmem:[#allocation2 + $0x4b] sm:$0xff] %vm177_vm0, %v145_v1  ;;  %247 = vst.msk [vmem:[#allocation2 + $0x53] sm:$0xff] %vm177_vm0, %v146_v2 }
  0x28   : > { %248 = vst.msk [vmem:[#allocation2 + $0x63] sm:$0xff] %vm177_vm0, %v147_v3  ;;  %249 = vst.msk [vmem:[#allocation2 + $0x6b] sm:$0xff] %vm177_vm0, %v148_v4 }
  0x29   : > { %250 = vst.msk [vmem:[#allocation2 + $0x7b] sm:$0xff] %vm177_vm0, %v149_v5  ;;  %251 = vst.msk [vmem:[#allocation2 + $0x83] sm:$0xff] %vm177_vm0, %v150_v6 }
  0x2a   : > { %252 = vst.msk [vmem:[#allocation2 + $0x93] sm:$0xff] %vm177_vm0, %v151_v15  ;;  %253 = vst.msk [vmem:[#allocation2 + $0x9b] sm:$0xff] %vm177_vm0, %v152_v16  ;;  %v503_v15 = vpack.c.bf16 %v472_v11, %v471_v10  ;;  %v475_v16 = vld [vmem:[#allocation2 + $0x32] sm:$0xff] }
  0x2b   : > { %254 = vst.msk [vmem:[#allocation2 + $0xab] sm:$0xff] %vm177_vm0, %v153_v17  ;;  %255 = vst.msk [vmem:[#allocation2 + $0xb3] sm:$0xff] %vm177_vm0, %v154_v19  ;;  %v476_v17 = vld [vmem:[#allocation2 + $0x3a] sm:$0xff] }
  0x2c   : > { %256 = vst.msk [vmem:[#allocation2 + $0xc3] sm:$0xff] %vm177_vm0, %v155_v20  ;;  %257 = vst.msk [vmem:[#allocation2 + $0xcb] sm:$0xff] %vm177_vm0, %v156_v21  ;;  %v505_v21 = vpack.c.bf16 %v476_v17, %v475_v16 }
  0x2d   : > { %258 = vst.msk [vmem:[#allocation2 + $0xdb] sm:$0xff] %vm177_vm0, %v157_v22  ;;  %259 = vst.msk [vmem:[#allocation2 + $0xe3] sm:$0xff] %vm177_vm0, %v158_v23 }
  0x2e   : > { %260 = vst.msk [vmem:[#allocation2 + $0xf3] sm:$0xff] %vm177_vm0, %v159_v24  ;;  %v348_v28 = vld [vmem:[#allocation2 + $0x49] sm:$0xff]  ;;  %v349_v29 = vld [vmem:[#allocation2 + $0x51] sm:$0xff]  ;;  %261 = vst.msk [vmem:[#allocation2 + $0xfb] sm:$0xff] %vm177_vm0, %v160_v25 }
  0x2f   : > { %v350_v30 = vld [vmem:[#allocation2 + $0x61] sm:$0xff]  ;;  %262 = vst.msk [vmem:[#allocation2 + $0x10b] sm:$0xff] %vm177_vm0, %v161_v26  ;;  %263 = vst.msk [vmem:[#allocation2 + $0x113] sm:$0xff] %vm177_vm0, %v162_v27  ;;  %v377_v31 = vpack.c.bf16 %v349_v29, %v348_v28  ;;  %v351_v32 = vld [vmem:[#allocation2 + $0x69] sm:$0xff] }
  0x30   : > { %v352_v33 = vld [vmem:[#allocation2 + $0x79] sm:$0xff]  ;;  %v353_v34 = vld [vmem:[#allocation2 + $0x81] sm:$0xff]  ;;  %v378_v35 = vpack.c.bf16 %v351_v32, %v350_v30  ;;  %264 = vst.msk [vmem:[#allocation2 + $0x123] sm:$0xff] %vm177_vm0, %v163_v36  ;;  %265 = vst.msk [vmem:[#allocation2 + $0x12b] sm:$0xff] %vm177_vm0, %v164_v37 }
  0x31   : > { %412 = vrot.lane.b32.xlu1 %v377_v31, %s7023_s16  ;;  %v379_v39 = vpack.c.bf16 %v353_v34, %v352_v33  ;;  %266 = vst.msk [vmem:[#allocation2 + $0x13b] sm:$0xff] %vm177_vm0, %v165_v38  ;;  %v354_v43 = vld [vmem:[#allocation2 + $0x91] sm:$0xff]  ;;  %v355_v44 = vld [vmem:[#allocation2 + $0x99] sm:$0xff]  ;;  %267 = vst.msk [vmem:[#allocation2 + $0x143] sm:$0xff] %vm177_vm0, %v166_v40 }
  0x32   : > { %v356_v45 = vld [vmem:[#allocation2 + $0xa9] sm:$0xff]  ;;  %268 = vst.msk [vmem:[#allocation2 + $0x153] sm:$0xff] %vm177_vm0, %v167_v41  ;;  %269 = vst.msk [vmem:[#allocation2 + $0x15b] sm:$0xff] %vm177_vm0, %v168_v42  ;;  %414 = vrot.lane.b32.xlu0 %v378_v35, %s7023_s16  ;;  %v380_v46 = vpack.c.bf16 %v355_v44, %v354_v43  ;;  %v357_v47 = vld [vmem:[#allocation2 + $0xb1] sm:$0xff] }
  0x33   : > { %v358_v48 = vld [vmem:[#allocation2 + $0xc1] sm:$0xff]  ;;  %v359_v49 = vld [vmem:[#allocation2 + $0xc9] sm:$0xff]  ;;  %v381_v50 = vpack.c.bf16 %v357_v47, %v356_v45  ;;  %270 = vst.msk [vmem:[#allocation2 + $0x16b] sm:$0xff] %vm177_vm0, %v169_v53  ;;  %271 = vst.msk [vmem:[#allocation2 + $0x173] sm:$0xff] %vm177_vm0, %v170_v54 }
  0x34   : > { %v360_v51 = vld [vmem:[#allocation2 + $0xd9] sm:$0xff]  ;;  %v361_v52 = vld [vmem:[#allocation2 + $0xe1] sm:$0xff]  ;;  %v382_v55 = vpack.c.bf16 %v359_v49, %v358_v48  ;;  %v477_v19 = vld [vmem:[#allocation2 + $0x4a] sm:$0xff] }
  0x35   : > { %416 = vrot.lane.b32.xlu1 %v379_v39, %s7023_s16  ;;  %v362_v56 = vld [vmem:[#allocation2 + $0xf1] sm:$0xff]  ;;  %v363_v57 = vld [vmem:[#allocation2 + $0xf9] sm:$0xff]  ;;  %v383_v58 = vpack.c.bf16 %v361_v52, %v360_v51  ;;  %v479_v22 = vld [vmem:[#allocation2 + $0x62] sm:$0xff] }
  0x36   : > { %418 = vrot.lane.b32.xlu0 %v380_v46, %s7023_s16  ;;  %v364_v59 = vld [vmem:[#allocation2 + $0x109] sm:$0xff]  ;;  %v365_v60 = vld [vmem:[#allocation2 + $0x111] sm:$0xff]  ;;  %v384_v61 = vpack.c.bf16 %v363_v57, %v362_v56  ;;  %v481_v25 = vld [vmem:[#allocation2 + $0x7a] sm:$0xff] }
  0x37   : > { %v366_v62 = vld [vmem:[#allocation2 + $0x121] sm:$0xff]  ;;  %v367_v63 = vld [vmem:[#allocation2 + $0x129] sm:$0xff]  ;;  %v385_v0 = vpack.c.bf16 %v365_v60, %v364_v59  ;;  %v478_v20 = vld [vmem:[#allocation2 + $0x52] sm:$0xff] }
  0x38   : > { %v368_v1 = vld [vmem:[#allocation2 + $0x139] sm:$0xff]  ;;  %v369_v2 = vld [vmem:[#allocation2 + $0x141] sm:$0xff]  ;;  %v386_v3 = vpack.c.bf16 %v367_v63, %v366_v62  ;;  %v480_v23 = vld [vmem:[#allocation2 + $0x6a] sm:$0xff]  ;;  %v506_v24 = vpack.c.bf16 %v478_v20, %v477_v19 }
  0x39   : > { %420 = vrot.lane.b32.xlu1 %v381_v50, %s7023_s16  ;;  %v370_v4 = vld [vmem:[#allocation2 + $0x151] sm:$0xff]  ;;  %v371_v5 = vld [vmem:[#allocation2 + $0x159] sm:$0xff]  ;;  %v387_v6 = vpack.c.bf16 %v369_v2, %v368_v1  ;;  %v482_v26 = vld [vmem:[#allocation2 + $0x82] sm:$0xff]  ;;  %v507_v27 = vpack.c.bf16 %v480_v23, %v479_v22 }
  0x3a   : > { %422 = vrot.lane.b32.xlu0 %v382_v55, %s7023_s16  ;;  %v372_v7 = vld [vmem:[#allocation2 + $0x169] sm:$0xff]  ;;  %v373_v8 = vld [vmem:[#allocation2 + $0x171] sm:$0xff]  ;;  %v388_v9 = vpack.c.bf16 %v371_v5, %v370_v4  ;;  %v484_v29 = vld [vmem:[#allocation2 + $0x9a] sm:$0xff]  ;;  %v508_v30 = vpack.c.bf16 %v482_v26, %v481_v25 }
  0x3b   : > { %v389_v12 = vpack.c.bf16 %v373_v8, %v372_v7  ;;  %v483_v28 = vld [vmem:[#allocation2 + $0x92] sm:$0xff]  ;;  %v485_v31 = vld [vmem:[#allocation2 + $0xaa] sm:$0xff]  ;;  %v487_v34 = vld [vmem:[#allocation2 + $0xc2] sm:$0xff] }
  0x3c   : > { %v486_v32 = vld [vmem:[#allocation2 + $0xb2] sm:$0xff]  ;;  %v509_v33 = vpack.c.bf16 %v484_v29, %v483_v28  ;;  %v488_v35 = vld [vmem:[#allocation2 + $0xca] sm:$0xff]  ;;  %v489_v38 = vld [vmem:[#allocation2 + $0xda] sm:$0xff] }
  0x3d   : > { %424 = vrot.lane.b32.xlu1 %v383_v58, %s7023_s16  ;;  %v279_v36 = vld [vmem:[#allocation2 + $0x8] sm:$0xff]  ;;  %v510_v37 = vpack.c.bf16 %v486_v32, %v485_v31  ;;  %v278_v39 = vld [vmem:[#allocation2] sm:$0xff]  ;;  %v283_v42 = vld [vmem:[#allocation2 + $0x38] sm:$0xff]  ;;  %v511_v44 = vpack.c.bf16 %v488_v35, %v487_v34 }
  0x3e   : > { %426 = vrot.lane.b32.xlu0 %v384_v61, %s7023_s16  ;;  %v490_v40 = vld [vmem:[#allocation2 + $0xe2] sm:$0xff]  ;;  %v310_v41 = vpack.c.bf16 %v279_v36, %v278_v39  ;;  %v282_v43 = vld [vmem:[#allocation2 + $0x30] sm:$0xff]  ;;  %v280_v46 = vld [vmem:[#allocation2 + $0x18] sm:$0xff] }
  0x3f   : > { %v7305_v45 = vpack.c.bf16 %v283_v42, %v282_v43  ;;  %v281_v47 = vld [vmem:[#allocation2 + $0x20] sm:$0xff]  ;;  %v491_v48 = vld [vmem:[#allocation2 + $0xf2] sm:$0xff]  ;;  %v512_v51 = vpack.c.bf16 %v490_v40, %v489_v38  ;;  %v493_v52 = vld [vmem:[#allocation2 + $0x10a] sm:$0xff] }
  0x40   : > { %v492_v49 = vld [vmem:[#allocation2 + $0xfa] sm:$0xff]  ;;  %326 = vst.msk [vmem:[#allocation3] sm:$0xff] %vm177_vm0, %v310_v41  ;;  %v7308_v50 = vpack.c.bf16 %v281_v47, %v280_v46  ;;  %v284_v53 = vld [vmem:[#allocation2 + $0x48] sm:$0xff]  ;;  %v285_v54 = vld [vmem:[#allocation2 + $0x50] sm:$0xff] }
  0x41   : > { %428 = vrot.lane.b32.xlu1 %v385_v0, %s7023_s16  ;;  %328 = vst.msk [vmem:[#allocation3 + $0x20] sm:$0xff] %vm177_vm0, %v7305_v45  ;;  %v494_v55 = vld [vmem:[#allocation2 + $0x112] sm:$0xff]  ;;  %v7315_v56 = vpack.c.bf16 %v285_v54, %v284_v53  ;;  %v286_v57 = vld [vmem:[#allocation2 + $0x60] sm:$0xff]  ;;  %v287_v58 = vld [vmem:[#allocation2 + $0x68] sm:$0xff]  ;;  %v513_v59 = vpack.c.bf16 %v492_v49, %v491_v48 }
  0x42   : > { %430 = vrot.lane.b32.xlu0 %v386_v3, %s7023_s16  ;;  %327 = vst.msk [vmem:[#allocation3 + $0x10] sm:$0xff] %vm177_vm0, %v7308_v50  ;;  %v495_v60 = vld [vmem:[#allocation2 + $0x122] sm:$0xff]  ;;  %v496_v61 = vld [vmem:[#allocation2 + $0x12a] sm:$0xff]  ;;  %v7318_v62 = vpack.c.bf16 %v287_v58, %v286_v57  ;;  %v288_v63 = vld [vmem:[#allocation2 + $0x78] sm:$0xff]  ;;  %v514_v2 = vpack.c.bf16 %v494_v55, %v493_v52 }
  0x43   : > { %329 = vst.msk [vmem:[#allocation3 + $0x30] sm:$0xff] %vm177_vm0, %v7315_v56  ;;  %v289_v0 = vld [vmem:[#allocation2 + $0x80] sm:$0xff]  ;;  %v290_v1 = vld [vmem:[#allocation2 + $0x90] sm:$0xff]  ;;  %v291_v4 = vld [vmem:[#allocation2 + $0x98] sm:$0xff] }
  0x44   : > { %330 = vst.msk [vmem:[#allocation3 + $0x40] sm:$0xff] %vm177_vm0, %v7318_v62  ;;  %v7325_v3 = vpack.c.bf16 %v289_v0, %v288_v63  ;;  %v497_v5 = vld [vmem:[#allocation2 + $0x13a] sm:$0xff]  ;;  %v7327_v7 = vpack.c.bf16 %v291_v4, %v290_v1  ;;  %v292_v8 = vld [vmem:[#allocation2 + $0xa8] sm:$0xff]  ;;  %v293_v10 = vld [vmem:[#allocation2 + $0xb0] sm:$0xff] }
  0x45   : > { %432 = vrot.lane.b32.xlu1 %v387_v6, %s7023_s16  ;;  %v498_v6 = vld [vmem:[#allocation2 + $0x142] sm:$0xff]  ;;  %v499_v13 = vld [vmem:[#allocation2 + $0x152] sm:$0xff]  ;;  %v500_v14 = vld [vmem:[#allocation2 + $0x15a] sm:$0xff] }
  0x46   : > { %434 = vrot.lane.b32.xlu0 %v388_v9, %s7023_s16  ;;  %v515_v9 = vpack.c.bf16 %v496_v61, %v495_v60  ;;  %331 = vst.msk [vmem:[#allocation3 + $0x50] sm:$0xff] %vm177_vm0, %v7325_v3  ;;  %v294_v11 = vld [vmem:[#allocation2 + $0xc0] sm:$0xff]  ;;  %332 = vst.msk [vmem:[#allocation3 + $0x60] sm:$0xff] %vm177_vm0, %v7327_v7  ;;  %v516_v17 = vpack.c.bf16 %v498_v6, %v497_v5  ;;  %v296_v19 = vld [vmem:[#allocation2 + $0xd8] sm:$0xff]  ;;  %v517_v25 = vpack.c.bf16 %v500_v14, %v499_v13 }
  0x47   : > { %v297_v20 = vld [vmem:[#allocation2 + $0xe0] sm:$0xff]  ;;  %v298_v23 = vld [vmem:[#allocation2 + $0xf0] sm:$0xff]  ;;  %v300_v29 = vld [vmem:[#allocation2 + $0x108] sm:$0xff] }
  0x48   : > { %v7343_v22 = vpack.c.bf16 %v297_v20, %v296_v19  ;;  %v600_v26 = vld [vmem:[#allocation2 + $0x3] sm:$0xff]  ;;  %v602_v35 = vld [vmem:[#allocation2 + $0x1b] sm:$0xff]  ;;  %v306_v41 = vld [vmem:[#allocation2 + $0x150] sm:$0xff] }
  0x49   : > { %436 = vrot.lane.b32.xlu1 %v389_v12, %s7023_s16  ;;  %v295_v12 = vld [vmem:[#allocation2 + $0xc8] sm:$0xff]  ;;  %v302_v31 = vld [vmem:[#allocation2 + $0x120] sm:$0xff]  ;;  %v304_v38 = vld [vmem:[#allocation2 + $0x138] sm:$0xff] }
  0x4a   : > { %535 = vrot.lane.b32.xlu0 %v503_v15, %s7024_s17  ;;  %v7334_v15 = vpack.c.bf16 %v293_v10, %v292_v8  ;;  %v7336_v16 = vpack.c.bf16 %v295_v12, %v294_v11  ;;  %335 = vst.msk [vmem:[#allocation3 + $0x90] sm:$0xff] %vm177_vm0, %v7343_v22  ;;  %v303_v34 = vld [vmem:[#allocation2 + $0x128] sm:$0xff]  ;;  %v305_v40 = vld [vmem:[#allocation2 + $0x140] sm:$0xff]  ;;  %v307_v42 = vld [vmem:[#allocation2 + $0x158] sm:$0xff] }
  0x4b   : > { %v603_v36 = vld [vmem:[#allocation2 + $0x23] sm:$0xff]  ;;  %v604_v43 = vld [vmem:[#allocation2 + $0x33] sm:$0xff]  ;;  %v7362_v46 = vpack.c.bf16 %v305_v40, %v304_v38  ;;  %v7364_v47 = vpack.c.bf16 %v307_v42, %v306_v41  ;;  %v606_v52 = vld [vmem:[#allocation2 + $0x4b] sm:$0xff] }
  0x4c   : > { %333 = vst.msk [vmem:[#allocation3 + $0x70] sm:$0xff] %vm177_vm0, %v7334_v15  ;;  %334 = vst.msk [vmem:[#allocation3 + $0x80] sm:$0xff] %vm177_vm0, %v7336_v16  ;;  %v633_v48 = vpack.c.bf16 %v603_v36, %v602_v35  ;;  %v308_v49 = vld [vmem:[#allocation2 + $0x168] sm:$0xff]  ;;  %v607_v53 = vld [vmem:[#allocation2 + $0x53] sm:$0xff] }
  0x4d   : > { %537 = vrot.lane.b32.xlu1 %v504_v18, %s7024_s17  ;;  %v501_v18 = vld [vmem:[#allocation2 + $0x16a] sm:$0xff]  ;;  %339 = vst.msk [vmem:[#allocation3 + $0xd0] sm:$0xff] %vm177_vm0, %v7362_v46  ;;  %340 = vst.msk [vmem:[#allocation3 + $0xe0] sm:$0xff] %vm177_vm0, %v7364_v47  ;;  %v610_v60 = vld [vmem:[#allocation2 + $0x7b] sm:$0xff] }
  0x4e   : > { %539 = vrot.lane.b32.xlu0 %v505_v21, %s7024_s17  ;;  %v502_v21 = vld [vmem:[#allocation2 + $0x172] sm:$0xff]  ;;  %v608_v57 = vld [vmem:[#allocation2 + $0x63] sm:$0xff]  ;;  %v613_v1 = vld [vmem:[#allocation2 + $0x9b] sm:$0xff] }
  0x4f   : > { %v518_v32 = vpack.c.bf16 %v502_v21, %v501_v18  ;;  %v609_v58 = vld [vmem:[#allocation2 + $0x6b] sm:$0xff]  ;;  %v611_v61 = vld [vmem:[#allocation2 + $0x83] sm:$0xff]  ;;  %v612_v0 = vld [vmem:[#allocation2 + $0x93] sm:$0xff] }
  0x50   : > { %v636_v63 = vpack.c.bf16 %v609_v58, %v608_v57  ;;  %v614_v4 = vld [vmem:[#allocation2 + $0xab] sm:$0xff]  ;;  %v615_v5 = vld [vmem:[#allocation2 + $0xb3] sm:$0xff]  ;;  %v638_v6 = vpack.c.bf16 %v613_v1, %v612_v0  ;;  %v616_v8 = vld [vmem:[#allocation2 + $0xc3] sm:$0xff] }
  0x51   : > { %541 = vrot.lane.b32.xlu1 %v506_v24, %s7024_s17  ;;  %v299_v24 = vld [vmem:[#allocation2 + $0xf8] sm:$0xff]  ;;  %v639_v10 = vpack.c.bf16 %v615_v5, %v614_v4  ;;  %v619_v12 = vld [vmem:[#allocation2 + $0xe3] sm:$0xff]  ;;  %v622_v18 = vld [vmem:[#allocation2 + $0x10b] sm:$0xff] }
  0x52   : > { %543 = vrot.lane.b32.xlu0 %v507_v27, %s7024_s17  ;;  %v601_v27 = vld [vmem:[#allocation2 + $0xb] sm:$0xff]  ;;  %v7346_v28 = vpack.c.bf16 %v299_v24, %v298_v23  ;;  %v618_v11 = vld [vmem:[#allocation2 + $0xdb] sm:$0xff]  ;;  %v620_v14 = vld [vmem:[#allocation2 + $0xf3] sm:$0xff] }
  0x53   : > { %v632_v39 = vpack.c.bf16 %v601_v27, %v600_v26  ;;  %v641_v19 = vpack.c.bf16 %v619_v12, %v618_v11  ;;  %v623_v20 = vld [vmem:[#allocation2 + $0x113] sm:$0xff]  ;;  %v624_v21 = vld [vmem:[#allocation2 + $0x123] sm:$0xff]  ;;  %v625_v23 = vld [vmem:[#allocation2 + $0x12b] sm:$0xff] }
  0x54   : > { %336 = vst.msk [vmem:[#allocation3 + $0xa0] sm:$0xff] %vm177_vm0, %v7346_v28  ;;  %v627_v26 = vld [vmem:[#allocation2 + $0x143] sm:$0xff]  ;;  %v643_v27 = vpack.c.bf16 %v623_v20, %v622_v18  ;;  %v630_v36 = vld [vmem:[#allocation2 + $0x16b] sm:$0xff]  ;;  %v631_v38 = vld [vmem:[#allocation2 + $0x173] sm:$0xff] }
  0x55   : > { %545 = vrot.lane.b32.xlu1 %v508_v30, %s7024_s17  ;;  %v301_v30 = vld [vmem:[#allocation2 + $0x110] sm:$0xff]  ;;  %v729_v40 = vld [vmem:[#allocation2 + $0x4] sm:$0xff]  ;;  %v647_v42 = vpack.c.bf16 %v631_v38, %v630_v36  ;;  %v747_v12 = vld [vmem:[#allocation2 + $0xdc] sm:$0xff] }
  0x56   : > { %547 = vrot.lane.b32.xlu0 %v509_v33, %s7024_s17  ;;  %v7353_v33 = vpack.c.bf16 %v301_v30, %v300_v29  ;;  %v171_v29 = vld [vmem:[%s7228_s15 + $0xd0] sm:$0xff]  ;;  %v172_v30 = vld [vmem:[%s7228_s15 + $0xd8] sm:$0xff]  ;;  %v737_v58 = vld [vmem:[#allocation2 + $0x64] sm:$0xff] }
  0x57   : > { %272 = vst.msk [vmem:[#allocation2 + $0x183] sm:$0xff] %vm177_vm0, %v171_v29  ;;  %273 = vst.msk [vmem:[#allocation2 + $0x18b] sm:$0xff] %vm177_vm0, %v172_v30  ;;  %v730_v41 = vld [vmem:[#allocation2 + $0xc] sm:$0xff]  ;;  %v741_v1 = vld [vmem:[#allocation2 + $0x94] sm:$0xff] }
  0x58   : > { %337 = vst.msk [vmem:[#allocation3 + $0xb0] sm:$0xff] %vm177_vm0, %v7353_v33  ;;  %v743_v5 = vld [vmem:[#allocation2 + $0xac] sm:$0xff]  ;;  %v750_v18 = vld [vmem:[#allocation2 + $0xfc] sm:$0xff] }
  0x59   : > { %549 = vrot.lane.b32.xlu1 %v510_v37, %s7024_s17  ;;  %v7355_v37 = vpack.c.bf16 %v303_v34, %v302_v31  ;;  %v644_v31 = vpack.c.bf16 %v625_v23, %v624_v21  ;;  %v629_v34 = vld [vmem:[#allocation2 + $0x15b] sm:$0xff]  ;;  %v751_v20 = vld [vmem:[#allocation2 + $0x10c] sm:$0xff] }
  0x5a   : > { %551 = vrot.lane.b32.xlu0 %v511_v44, %s7024_s17  ;;  %v605_v44 = vld [vmem:[#allocation2 + $0x3b] sm:$0xff] }
  0x5b   : > { %338 = vst.msk [vmem:[#allocation3 + $0xc0] sm:$0xff] %vm177_vm0, %v7355_v37  ;;  %v634_v55 = vpack.c.bf16 %v605_v44, %v604_v43  ;;  %v731_v43 = vld [vmem:[#allocation2 + $0x1c] sm:$0xff]  ;;  %v732_v44 = vld [vmem:[#allocation2 + $0x24] sm:$0xff]  ;;  %v752_v21 = vld [vmem:[#allocation2 + $0x114] sm:$0xff] }
  0x5c   : > { %v755_v30 = vld [vmem:[#allocation2 + $0x13c] sm:$0xff] }
  0x5d   : > { %553 = vrot.lane.b32.xlu1 %v512_v51, %s7024_s17  ;;  %v309_v51 = vld [vmem:[#allocation2 + $0x170] sm:$0xff] }
  0x5e   : > { %555 = vrot.lane.b32.xlu0 %v513_v59, %s7024_s17  ;;  %v7371_v54 = vpack.c.bf16 %v309_v51, %v308_v49  ;;  %v635_v59 = vpack.c.bf16 %v607_v53, %v606_v52  ;;  %v733_v49 = vld [vmem:[#allocation2 + $0x34] sm:$0xff]  ;;  %v734_v51 = vld [vmem:[#allocation2 + $0x3c] sm:$0xff]  ;;  %v762_v52 = vpack.c.bf16 %v732_v44, %v731_v43  ;;  %v735_v53 = vld [vmem:[#allocation2 + $0x4c] sm:$0xff] }
  0x5f   : > { %v763_v57 = vpack.c.bf16 %v734_v51, %v733_v49  ;;  %v858_v43 = vld [vmem:[#allocation2 + $0x5] sm:$0xff]  ;;  %v859_v44 = vld [vmem:[#allocation2 + $0xd] sm:$0xff]  ;;  %v860_v51 = vld [vmem:[#allocation2 + $0x1d] sm:$0xff] }
  0x60   : > { %341 = vst.msk [vmem:[#allocation3 + $0xf0] sm:$0xff] %vm177_vm0, %v7371_v54 }
  0x61   : > { %557 = vrot.lane.b32.xlu1 %v514_v2, %s7024_s17  ;;  %v637_v2 = vpack.c.bf16 %v611_v61, %v610_v60  ;;  %v739_v61 = vld [vmem:[#allocation2 + $0x7c] sm:$0xff] }
  0x62   : > { %559 = vrot.lane.b32.xlu0 %v515_v9, %s7024_s17  ;;  %v617_v9 = vld [vmem:[#allocation2 + $0xcb] sm:$0xff] }
  0x63   : > { %v640_v13 = vpack.c.bf16 %v617_v9, %v616_v8  ;;  %v745_v9 = vld [vmem:[#allocation2 + $0xc4] sm:$0xff] }
  0x65   : > { %561 = vrot.lane.b32.xlu1 %v516_v17, %s7024_s17  ;;  %v621_v17 = vld [vmem:[#allocation2 + $0xfb] sm:$0xff] }
  0x66   : > { %563 = vrot.lane.b32.xlu0 %v517_v25, %s7024_s17  ;;  %v642_v24 = vpack.c.bf16 %v621_v17, %v620_v14  ;;  %v626_v25 = vld [vmem:[#allocation2 + $0x13b] sm:$0xff] }
  0x67   : > { %v645_v35 = vpack.c.bf16 %v627_v26, %v626_v25  ;;  %v749_v17 = vld [vmem:[#allocation2 + $0xf4] sm:$0xff]  ;;  %v754_v25 = vld [vmem:[#allocation2 + $0x12c] sm:$0xff] }
  0x68   : > { %v771_v23 = vpack.c.bf16 %v750_v18, %v749_v17  ;;  %v872_v18 = vld [vmem:[#allocation2 + $0xad] sm:$0xff] }
  0x69   : > { %565 = vrot.lane.b32.xlu1 %v518_v32, %s7024_s17  ;;  %v628_v32 = vld [vmem:[#allocation2 + $0x153] sm:$0xff] }
  0x6a   : > { %664 = vrot.lane.b32.xlu0 %v632_v39, %s7025_s18  ;;  %v646_v39 = vpack.c.bf16 %v629_v34, %v628_v32  ;;  %v757_v34 = vld [vmem:[#allocation2 + $0x154] sm:$0xff] }
  0x6d   : > { %666 = vrot.lane.b32.xlu1 %v633_v48, %s7025_s18  ;;  %v761_v48 = vpack.c.bf16 %v730_v41, %v729_v40  ;;  %v760_v40 = vld [vmem:[#allocation2 + $0x174] sm:$0xff] }
  0x6e   : > { %668 = vrot.lane.b32.xlu0 %v634_v55, %s7025_s18  ;;  %v736_v55 = vld [vmem:[#allocation2 + $0x54] sm:$0xff] }
  0x6f   : > { %v764_v60 = vpack.c.bf16 %v736_v55, %v735_v53  ;;  %v890_v55 = vpack.c.bf16 %v859_v44, %v858_v43  ;;  %v883_v43 = vld [vmem:[#allocation2 + $0x12d] sm:$0xff] }
  0x71   : > { %670 = vrot.lane.b32.xlu1 %v635_v59, %s7025_s18  ;;  %v738_v59 = vld [vmem:[#allocation2 + $0x6c] sm:$0xff] }
  0x72   : > { %672 = vrot.lane.b32.xlu0 %v636_v63, %s7025_s18  ;;  %v740_v63 = vld [vmem:[#allocation2 + $0x84] sm:$0xff]  ;;  %v765_v0 = vpack.c.bf16 %v738_v59, %v737_v58 }
  0x73   : > { %v766_v4 = vpack.c.bf16 %v740_v63, %v739_v61  ;;  %v863_v58 = vld [vmem:[#allocation2 + $0x3d] sm:$0xff]  ;;  %v864_v61 = vld [vmem:[#allocation2 + $0x4d] sm:$0xff]  ;;  %v865_v63 = vld [vmem:[#allocation2 + $0x55] sm:$0xff] }
  0x75   : > { %674 = vrot.lane.b32.xlu1 %v637_v2, %s7025_s18  ;;  %v742_v2 = vld [vmem:[#allocation2 + $0x9c] sm:$0xff] }
  0x76   : > { %676 = vrot.lane.b32.xlu0 %v638_v6, %s7025_s18  ;;  %v744_v6 = vld [vmem:[#allocation2 + $0xb4] sm:$0xff]  ;;  %v767_v8 = vpack.c.bf16 %v742_v2, %v741_v1  ;;  %v866_v2 = vld [vmem:[#allocation2 + $0x65] sm:$0xff] }
  0x77   : > { %v768_v11 = vpack.c.bf16 %v744_v6, %v743_v5  ;;  %v893_v6 = vpack.c.bf16 %v865_v63, %v864_v61  ;;  %v889_v61 = vld [vmem:[#allocation2 + $0x175] sm:$0xff] }
  0x79   : > { %678 = vrot.lane.b32.xlu1 %v639_v10, %s7025_s18  ;;  %v746_v10 = vld [vmem:[#allocation2 + $0xcc] sm:$0xff] }
  0x7a   : > { %680 = vrot.lane.b32.xlu0 %v640_v13, %s7025_s18  ;;  %v748_v13 = vld [vmem:[#allocation2 + $0xe4] sm:$0xff]  ;;  %v769_v14 = vpack.c.bf16 %v746_v10, %v745_v9 }
  0x7b   : > { %v869_v9 = vld [vmem:[#allocation2 + $0x85] sm:$0xff] }
  0x7d   : > { %682 = vrot.lane.b32.xlu1 %v641_v19, %s7025_s18  ;;  %v770_v19 = vpack.c.bf16 %v748_v13, %v747_v12  ;;  %v870_v12 = vld [vmem:[#allocation2 + $0x95] sm:$0xff]  ;;  %v871_v13 = vld [vmem:[#allocation2 + $0x9d] sm:$0xff] }
  0x7e   : > { %684 = vrot.lane.b32.xlu0 %v642_v24, %s7025_s18  ;;  %v753_v24 = vld [vmem:[#allocation2 + $0x124] sm:$0xff] }
  0x7f   : > { %v773_v32 = vpack.c.bf16 %v754_v25, %v753_v24  ;;  %v875_v24 = vld [vmem:[#allocation2 + $0xcd] sm:$0xff] }
  0x81   : > { %686 = vrot.lane.b32.xlu1 %v643_v27, %s7025_s18  ;;  %v772_v27 = vpack.c.bf16 %v752_v21, %v751_v20  ;;  %v896_v21 = vpack.c.bf16 %v871_v13, %v870_v12  ;;  %v992_v12 = vld [vmem:[#allocation2 + $0x3e] sm:$0xff] }
  0x82   : > { %688 = vrot.lane.b32.xlu0 %v644_v31, %s7025_s18  ;;  %v756_v31 = vld [vmem:[#allocation2 + $0x144] sm:$0xff] }
  0x83   : > { %v407_v26 = vpop.permute.xlu0 %406  ;;  %v774_v38 = vpack.c.bf16 %v756_v31, %v755_v30 }
  0x84   : > { %455 = vst.msk [vmem:[#allocation3] sm:$0xff] %vm454_vm2, %v407_v26 }
  0x85   : > { %690 = vrot.lane.b32.xlu1 %v645_v35, %s7025_s18  ;;  %v758_v35 = vld [vmem:[#allocation2 + $0x15c] sm:$0xff] }
  0x86   : > { %692 = vrot.lane.b32.xlu0 %v646_v39, %s7025_s18  ;;  %v759_v39 = vld [vmem:[#allocation2 + $0x16c] sm:$0xff] }
  0x87   : > { %v409_v36 = vpop.permute.xlu0 %408  ;;  %v776_v49 = vpack.c.bf16 %v760_v40, %v759_v39  ;;  %v881_v39 = vld [vmem:[#allocation2 + $0x115] sm:$0xff] }
  0x88   : > { %v411_v29 = vpop.permute.xlu1 %410  ;;  %456 = vst.msk [vmem:[#allocation3 + $0x10] sm:$0xff] %vm454_vm2, %v409_v36 }
  0x89   : > { %694 = vrot.lane.b32.xlu1 %v647_v42, %s7025_s18  ;;  %457 = vst.msk [vmem:[#allocation3 + $0x20] sm:$0xff] %vm454_vm2, %v411_v29  ;;  %v775_v42 = vpack.c.bf16 %v758_v35, %v757_v34  ;;  %v877_v29 = vld [vmem:[#allocation2 + $0xe5] sm:$0xff]  ;;  %v879_v34 = vld [vmem:[#allocation2 + $0xfd] sm:$0xff] }
  0x8a   : > { %793 = vrot.lane.b32.xlu0 %v761_v48, %s7026_s19 }
  0x8d   : > { %795 = vrot.lane.b32.xlu1 %v762_v52, %s7026_s19  ;;  %v861_v52 = vld [vmem:[#allocation2 + $0x25] sm:$0xff] }
  0x8e   : > { %797 = vrot.lane.b32.xlu0 %v763_v57, %s7026_s19  ;;  %v862_v57 = vld [vmem:[#allocation2 + $0x35] sm:$0xff] }
  0x8f   : > { %v892_v1 = vpack.c.bf16 %v863_v58, %v862_v57  ;;  %v887_v57 = vld [vmem:[#allocation2 + $0x15d] sm:$0xff] }
  0x91   : > { %799 = vrot.lane.b32.xlu1 %v764_v60, %s7026_s19  ;;  %v891_v60 = vpack.c.bf16 %v861_v52, %v860_v51  ;;  %v885_v51 = vld [vmem:[#allocation2 + $0x145] sm:$0xff] }
  0x92   : > { %801 = vrot.lane.b32.xlu0 %v765_v0, %s7026_s19 }
  0x95   : > { %803 = vrot.lane.b32.xlu1 %v766_v4, %s7026_s19  ;;  %v867_v4 = vld [vmem:[#allocation2 + $0x6d] sm:$0xff] }
  0x96   : > { %805 = vrot.lane.b32.xlu0 %v767_v8, %s7026_s19  ;;  %v868_v8 = vld [vmem:[#allocation2 + $0x7d] sm:$0xff] }
  0x97   : > { %v895_v17 = vpack.c.bf16 %v869_v9, %v868_v8  ;;  %v990_v8 = vld [vmem:[#allocation2 + $0x26] sm:$0xff] }
  0x99   : > { %807 = vrot.lane.b32.xlu1 %v768_v11, %s7026_s19  ;;  %v894_v11 = vpack.c.bf16 %v867_v4, %v866_v2  ;;  %v988_v2 = vld [vmem:[#allocation2 + $0xe] sm:$0xff] }
  0x9a   : > { %809 = vrot.lane.b32.xlu0 %v769_v14, %s7026_s19 }
  0x9d   : > { %811 = vrot.lane.b32.xlu1 %v770_v19, %s7026_s19  ;;  %v873_v19 = vld [vmem:[#allocation2 + $0xb5] sm:$0xff] }
  0x9e   : > { %813 = vrot.lane.b32.xlu0 %v771_v23, %s7026_s19  ;;  %v874_v23 = vld [vmem:[#allocation2 + $0xc5] sm:$0xff]  ;;  %v897_v26 = vpack.c.bf16 %v873_v19, %v872_v18  ;;  %v994_v18 = vld [vmem:[#allocation2 + $0x56] sm:$0xff] }
  0x9f   : > { %v898_v31 = vpack.c.bf16 %v875_v24, %v874_v23  ;;  %v996_v23 = vld [vmem:[#allocation2 + $0x6e] sm:$0xff] }
  0xa1   : > { %815 = vrot.lane.b32.xlu1 %v772_v27, %s7026_s19  ;;  %v876_v27 = vld [vmem:[#allocation2 + $0xdd] sm:$0xff] }
  0xa2   : > { %817 = vrot.lane.b32.xlu0 %v773_v32, %s7026_s19  ;;  %v878_v32 = vld [vmem:[#allocation2 + $0xf5] sm:$0xff]  ;;  %v899_v36 = vpack.c.bf16 %v877_v29, %v876_v27  ;;  %v998_v27 = vld [vmem:[#allocation2 + $0x86] sm:$0xff] }
  0xa3   : > { %v413_v41 = vpop.permute.xlu1 %412 }
  0xa4   : > { %458 = vst.msk [vmem:[#allocation3 + $0x30] sm:$0xff] %vm454_vm2, %v413_v41  ;;  %v415_v48 = vpop.permute.xlu0 %414  ;;  %v900_v41 = vpack.c.bf16 %v879_v34, %v878_v32  ;;  %v1000_v32 = vld [vmem:[#allocation2 + $0x9e] sm:$0xff] }
  0xa5   : > { %819 = vrot.lane.b32.xlu1 %v774_v38, %s7026_s19  ;;  %459 = vst.msk [vmem:[#allocation3 + $0x40] sm:$0xff] %vm454_vm2, %v415_v48  ;;  %v880_v38 = vld [vmem:[#allocation2 + $0x10d] sm:$0xff] }
  0xa6   : > { %821 = vrot.lane.b32.xlu0 %v775_v42, %s7026_s19  ;;  %v882_v42 = vld [vmem:[#allocation2 + $0x125] sm:$0xff]  ;;  %v901_v48 = vpack.c.bf16 %v881_v39, %v880_v38  ;;  %v1002_v38 = vld [vmem:[#allocation2 + $0xb6] sm:$0xff] }
  0xa7   : > { %v417_v53 = vpop.permute.xlu1 %416 }
  0xa8   : > { %460 = vst.msk [vmem:[#allocation3 + $0x50] sm:$0xff] %vm454_vm2, %v417_v53  ;;  %v419_v59 = vpop.permute.xlu0 %418  ;;  %v902_v53 = vpack.c.bf16 %v883_v43, %v882_v42  ;;  %v1004_v42 = vld [vmem:[#allocation2 + $0xce] sm:$0xff] }
  0xa9   : > { %823 = vrot.lane.b32.xlu1 %v776_v49, %s7026_s19  ;;  %461 = vst.msk [vmem:[#allocation3 + $0x60] sm:$0xff] %vm454_vm2, %v419_v59  ;;  %v884_v49 = vld [vmem:[#allocation2 + $0x13d] sm:$0xff] }
  0xaa   : > { %922 = vrot.lane.b32.xlu0 %v890_v55, %s7027_s20  ;;  %v886_v55 = vld [vmem:[#allocation2 + $0x155] sm:$0xff]  ;;  %v903_v59 = vpack.c.bf16 %v885_v51, %v884_v49  ;;  %v1006_v49 = vld [vmem:[#allocation2 + $0xe6] sm:$0xff] }
  0xab   : > { %v421_v0 = vpop.permute.xlu1 %420 }
  0xac   : > { %462 = vst.msk [vmem:[#allocation3 + $0x70] sm:$0xff] %vm454_vm2, %v421_v0  ;;  %v423_v5 = vpop.permute.xlu0 %422  ;;  %v904_v0 = vpack.c.bf16 %v887_v57, %v886_v55  ;;  %v1008_v55 = vld [vmem:[#allocation2 + $0xfe] sm:$0xff] }
  0xad   : > { %924 = vrot.lane.b32.xlu1 %v891_v60, %s7027_s20  ;;  %463 = vst.msk [vmem:[#allocation3 + $0x80] sm:$0xff] %vm454_vm2, %v423_v5  ;;  %v888_v60 = vld [vmem:[#allocation2 + $0x16d] sm:$0xff] }
  0xae   : > { %926 = vrot.lane.b32.xlu0 %v892_v1, %s7027_s20  ;;  %v987_v1 = vld [vmem:[#allocation2 + $0x6] sm:$0xff]  ;;  %v905_v5 = vpack.c.bf16 %v889_v61, %v888_v60  ;;  %v1010_v60 = vld [vmem:[#allocation2 + $0x116] sm:$0xff] }
  0xaf   : > { %v425_v10 = vpop.permute.xlu1 %424 }
  0xb0   : > { %464 = vst.msk [vmem:[#allocation3 + $0x90] sm:$0xff] %vm454_vm2, %v425_v10  ;;  %v427_v14 = vpop.permute.xlu0 %426  ;;  %v1019_v10 = vpack.c.bf16 %v988_v2, %v987_v1  ;;  %v1012_v1 = vld [vmem:[#allocation2 + $0x12e] sm:$0xff] }
  0xb1   : > { %928 = vrot.lane.b32.xlu1 %v893_v6, %s7027_s20  ;;  %465 = vst.msk [vmem:[#allocation3 + $0xa0] sm:$0xff] %vm454_vm2, %v427_v14  ;;  %v989_v6 = vld [vmem:[#allocation2 + $0x1e] sm:$0xff] }
  0xb2   : > { %930 = vrot.lane.b32.xlu0 %v894_v11, %s7027_s20  ;;  %v991_v11 = vld [vmem:[#allocation2 + $0x36] sm:$0xff]  ;;  %v1020_v14 = vpack.c.bf16 %v990_v8, %v989_v6  ;;  %v1014_v6 = vld [vmem:[#allocation2 + $0x146] sm:$0xff] }
  0xb3   : > { %v429_v20 = vpop.permute.xlu1 %428 }
  0xb4   : > { %466 = vst.msk [vmem:[#allocation3 + $0xb0] sm:$0xff] %vm454_vm2, %v429_v20  ;;  %v431_v25 = vpop.permute.xlu0 %430  ;;  %v1021_v20 = vpack.c.bf16 %v992_v12, %v991_v11  ;;  %v1016_v11 = vld [vmem:[#allocation2 + $0x15e] sm:$0xff] }
  0xb5   : > { %932 = vrot.lane.b32.xlu1 %v895_v17, %s7027_s20  ;;  %467 = vst.msk [vmem:[#allocation3 + $0xc0] sm:$0xff] %vm454_vm2, %v431_v25  ;;  %v993_v17 = vld [vmem:[#allocation2 + $0x4e] sm:$0xff] }
  0xb6   : > { %934 = vrot.lane.b32.xlu0 %v896_v21, %s7027_s20  ;;  %v995_v21 = vld [vmem:[#allocation2 + $0x66] sm:$0xff]  ;;  %v1022_v25 = vpack.c.bf16 %v994_v18, %v993_v17  ;;  %v1018_v17 = vld [vmem:[#allocation2 + $0x176] sm:$0xff] }
  0xb7   : > { %v433_v30 = vpop.permute.xlu1 %432 }
  0xb8   : > { %468 = vst.msk [vmem:[#allocation3 + $0xd0] sm:$0xff] %vm454_vm2, %v433_v30  ;;  %v435_v35 = vpop.permute.xlu0 %434  ;;  %v1023_v30 = vpack.c.bf16 %v996_v23, %v995_v21 }
  0xb9   : > { %936 = vrot.lane.b32.xlu1 %v897_v26, %s7027_s20  ;;  %469 = vst.msk [vmem:[#allocation3 + $0xe0] sm:$0xff] %vm454_vm2, %v435_v35  ;;  %v997_v26 = vld [vmem:[#allocation2 + $0x7e] sm:$0xff] }
  0xba   : > { %938 = vrot.lane.b32.xlu0 %v898_v31, %s7027_s20  ;;  %v999_v31 = vld [vmem:[#allocation2 + $0x96] sm:$0xff]  ;;  %v1024_v35 = vpack.c.bf16 %v998_v27, %v997_v26 }
  0xbb   : > { %v437_v40 = vpop.permute.xlu1 %436 }
  0xbc   : > { %470 = vst.msk [vmem:[#allocation3 + $0xf0] sm:$0xff] %vm454_vm2, %v437_v40  ;;  %v536_v44 = vpop.permute.xlu0 %535  ;;  %v1025_v40 = vpack.c.bf16 %v1000_v32, %v999_v31  ;;  %v1246_v31 = vld [vmem:[#allocation2 + $0x19] sm:$0xff]  ;;  %v1247_v32 = vld [vmem:[#allocation2 + $0x21] sm:$0xff] }
  0xbd   : > { %940 = vrot.lane.b32.xlu1 %v899_v36, %s7027_s20  ;;  %584 = vst.msk [vmem:[#allocation3] sm:$0xff] %vm583_vm3, %v536_v44  ;;  %v1001_v36 = vld [vmem:[#allocation2 + $0xae] sm:$0xff] }
  0xbe   : > { %942 = vrot.lane.b32.xlu0 %v900_v41, %s7027_s20  ;;  %v1003_v41 = vld [vmem:[#allocation2 + $0xc6] sm:$0xff]  ;;  %v1026_v44 = vpack.c.bf16 %v1002_v38, %v1001_v36  ;;  %v1278_v38 = vpack.c.bf16 %v1247_v32, %v1246_v31  ;;  %v1375_v31 = vld [vmem:[#allocation2 + $0x1a] sm:$0xff] }
  0xbf   : > { %v538_v52 = vpop.permute.xlu1 %537  ;;  %v1376_v32 = vld [vmem:[#allocation2 + $0x22] sm:$0xff] }
  0xc0   : > { %585 = vst.msk [vmem:[#allocation3 + $0x10] sm:$0xff] %vm583_vm3, %v538_v52  ;;  %v540_v58 = vpop.permute.xlu0 %539  ;;  %v1027_v52 = vpack.c.bf16 %v1004_v42, %v1003_v41  ;;  %v1253_v42 = vld [vmem:[#allocation2 + $0x69] sm:$0xff] }
  0xc1   : > { %944 = vrot.lane.b32.xlu1 %v901_v48, %s7027_s20  ;;  %586 = vst.msk [vmem:[#allocation3 + $0x20] sm:$0xff] %vm583_vm3, %v540_v58  ;;  %v1005_v48 = vld [vmem:[#allocation2 + $0xde] sm:$0xff] }
  0xc2   : > { %946 = vrot.lane.b32.xlu0 %v902_v53, %s7027_s20  ;;  %v1007_v53 = vld [vmem:[#allocation2 + $0xf6] sm:$0xff]  ;;  %v1028_v58 = vpack.c.bf16 %v1006_v49, %v1005_v48  ;;  %v1255_v48 = vld [vmem:[#allocation2 + $0x81] sm:$0xff] }
  0xc3   : > { %v542_v63 = vpop.permute.xlu1 %541 }
  0xc4   : > { %587 = vst.msk [vmem:[#allocation3 + $0x30] sm:$0xff] %vm583_vm3, %v542_v63  ;;  %v544_v4 = vpop.permute.xlu0 %543  ;;  %v1029_v63 = vpack.c.bf16 %v1008_v55, %v1007_v53  ;;  %v1257_v53 = vld [vmem:[#allocation2 + $0x99] sm:$0xff] }
  0xc5   : > { %948 = vrot.lane.b32.xlu1 %v903_v59, %s7027_s20  ;;  %588 = vst.msk [vmem:[#allocation3 + $0x40] sm:$0xff] %vm583_vm3, %v544_v4  ;;  %v1009_v59 = vld [vmem:[#allocation2 + $0x10e] sm:$0xff] }
  0xc6   : > { %950 = vrot.lane.b32.xlu0 %v904_v0, %s7027_s20  ;;  %v1011_v0 = vld [vmem:[#allocation2 + $0x126] sm:$0xff]  ;;  %v1030_v4 = vpack.c.bf16 %v1010_v60, %v1009_v59  ;;  %v1259_v59 = vld [vmem:[#allocation2 + $0xb1] sm:$0xff] }
  0xc7   : > { %v546_v9 = vpop.permute.xlu1 %545 }
  0xc8   : > { %589 = vst.msk [vmem:[#allocation3 + $0x50] sm:$0xff] %vm583_vm3, %v546_v9  ;;  %v548_v13 = vpop.permute.xlu0 %547  ;;  %v1031_v9 = vpack.c.bf16 %v1012_v1, %v1011_v0  ;;  %v1261_v0 = vld [vmem:[#allocation2 + $0xc9] sm:$0xff] }
  0xc9   : > { %952 = vrot.lane.b32.xlu1 %v905_v5, %s7027_s20  ;;  %590 = vst.msk [vmem:[#allocation3 + $0x60] sm:$0xff] %vm583_vm3, %v548_v13  ;;  %v1013_v5 = vld [vmem:[#allocation2 + $0x13e] sm:$0xff] }
  0xca   : > { %1051 = vrot.lane.b32.xlu0 %v1019_v10, %s7028_s21  ;;  %v1015_v10 = vld [vmem:[#allocation2 + $0x156] sm:$0xff]  ;;  %v1032_v13 = vpack.c.bf16 %v1014_v6, %v1013_v5  ;;  %v1263_v5 = vld [vmem:[#allocation2 + $0xe1] sm:$0xff] }
  0xcb   : > { %v550_v19 = vpop.permute.xlu1 %549 }
  0xcc   : > { %591 = vst.msk [vmem:[#allocation3 + $0x70] sm:$0xff] %vm583_vm3, %v550_v19  ;;  %v552_v24 = vpop.permute.xlu0 %551  ;;  %v1033_v19 = vpack.c.bf16 %v1016_v11, %v1015_v10  ;;  %v1265_v10 = vld [vmem:[#allocation2 + $0xf9] sm:$0xff] }
  0xcd   : > { %1053 = vrot.lane.b32.xlu1 %v1020_v14, %s7028_s21  ;;  %592 = vst.msk [vmem:[#allocation3 + $0x80] sm:$0xff] %vm583_vm3, %v552_v24  ;;  %v1017_v14 = vld [vmem:[#allocation2 + $0x16e] sm:$0xff] }
  0xce   : > { %1055 = vrot.lane.b32.xlu0 %v1021_v20, %s7028_s21  ;;  %v1034_v21 = vpack.c.bf16 %v1018_v17, %v1017_v14  ;;  %v1267_v14 = vld [vmem:[#allocation2 + $0x111] sm:$0xff] }
  0xcf   : > { %v554_v29 = vpop.permute.xlu1 %553 }
  0xd0   : > { %593 = vst.msk [vmem:[#allocation3 + $0x90] sm:$0xff] %vm583_vm3, %v554_v29  ;;  %v556_v34 = vpop.permute.xlu0 %555 }
  0xd1   : > { %1057 = vrot.lane.b32.xlu1 %v1022_v25, %s7028_s21  ;;  %594 = vst.msk [vmem:[#allocation3 + $0xa0] sm:$0xff] %vm583_vm3, %v556_v34 }
  0xd2   : > { %1059 = vrot.lane.b32.xlu0 %v1023_v30, %s7028_s21  ;;  %v1148_v30 = vld [vmem:[#allocation2 + $0x188] sm:$0xff] }
  0xd3   : > { %v558_v39 = vpop.permute.xlu1 %557 }
  0xd4   : > { %595 = vst.msk [vmem:[#allocation3 + $0xb0] sm:$0xff] %vm583_vm3, %v558_v39  ;;  %v560_v43 = vpop.permute.xlu0 %559  ;;  %v1251_v39 = vld [vmem:[#allocation2 + $0x51] sm:$0xff] }
  0xd5   : > { %1061 = vrot.lane.b32.xlu1 %v1024_v35, %s7028_s21  ;;  %596 = vst.msk [vmem:[#allocation3 + $0xc0] sm:$0xff] %vm583_vm3, %v560_v43  ;;  %v1249_v35 = vld [vmem:[#allocation2 + $0x39] sm:$0xff] }
  0xd6   : > { %1063 = vrot.lane.b32.xlu0 %v1025_v40, %s7028_s21 }
  0xd7   : > { %v562_v51 = vpop.permute.xlu1 %561 }
  0xd8   : > { %597 = vst.msk [vmem:[#allocation3 + $0xd0] sm:$0xff] %vm583_vm3, %v562_v51  ;;  %v564_v57 = vpop.permute.xlu0 %563 }
  0xd9   : > { %1065 = vrot.lane.b32.xlu1 %v1026_v44, %s7028_s21  ;;  %598 = vst.msk [vmem:[#allocation3 + $0xe0] sm:$0xff] %vm583_vm3, %v564_v57 }
  0xda   : > { %1067 = vrot.lane.b32.xlu0 %v1027_v52, %s7028_s21  ;;  %v1256_v52 = vld [vmem:[#allocation2 + $0x91] sm:$0xff] }
  0xdb   : > { %v566_v61 = vpop.permute.xlu1 %565 }
  0xdc   : > { %599 = vst.msk [vmem:[#allocation3 + $0xf0] sm:$0xff] %vm583_vm3, %v566_v61  ;;  %v665_v2 = vpop.permute.xlu0 %664  ;;  %v1283_v61 = vpack.c.bf16 %v1257_v53, %v1256_v52  ;;  %v1385_v52 = vld [vmem:[#allocation2 + $0x92] sm:$0xff]  ;;  %v1386_v53 = vld [vmem:[#allocation2 + $0x9a] sm:$0xff] }
  0xdd   : > { %1069 = vrot.lane.b32.xlu1 %v1028_v58, %s7028_s21  ;;  %713 = vst.msk [vmem:[#allocation3] sm:$0xff] %vm712_vm4, %v665_v2  ;;  %v1258_v58 = vld [vmem:[#allocation2 + $0xa9] sm:$0xff] }
  0xde   : > { %1071 = vrot.lane.b32.xlu0 %v1029_v63, %s7028_s21  ;;  %v1260_v63 = vld [vmem:[#allocation2 + $0xc1] sm:$0xff]  ;;  %v1284_v2 = vpack.c.bf16 %v1259_v59, %v1258_v58  ;;  %v1387_v58 = vld [vmem:[#allocation2 + $0xaa] sm:$0xff]  ;;  %v1388_v59 = vld [vmem:[#allocation2 + $0xb2] sm:$0xff] }
  0xdf   : > { %v667_v8 = vpop.permute.xlu1 %666 }
  0xe0   : > { %714 = vst.msk [vmem:[#allocation3 + $0x10] sm:$0xff] %vm712_vm4, %v667_v8  ;;  %v669_v12 = vpop.permute.xlu0 %668  ;;  %v1285_v8 = vpack.c.bf16 %v1261_v0, %v1260_v63  ;;  %v1389_v63 = vld [vmem:[#allocation2 + $0xc2] sm:$0xff]  ;;  %v1390_v0 = vld [vmem:[#allocation2 + $0xca] sm:$0xff] }
  0xe1   : > { %1073 = vrot.lane.b32.xlu1 %v1030_v4, %s7028_s21  ;;  %715 = vst.msk [vmem:[#allocation3 + $0x20] sm:$0xff] %vm712_vm4, %v669_v12  ;;  %v1262_v4 = vld [vmem:[#allocation2 + $0xd9] sm:$0xff] }
  0xe2   : > { %1075 = vrot.lane.b32.xlu0 %v1031_v9, %s7028_s21  ;;  %v1264_v9 = vld [vmem:[#allocation2 + $0xf1] sm:$0xff]  ;;  %v1286_v12 = vpack.c.bf16 %v1263_v5, %v1262_v4  ;;  %v1391_v4 = vld [vmem:[#allocation2 + $0xda] sm:$0xff]  ;;  %v1392_v5 = vld [vmem:[#allocation2 + $0xe2] sm:$0xff] }
  0xe3   : > { %v671_v18 = vpop.permute.xlu1 %670 }
  0xe4   : > { %716 = vst.msk [vmem:[#allocation3 + $0x30] sm:$0xff] %vm712_vm4, %v671_v18  ;;  %v673_v20 = vpop.permute.xlu0 %672  ;;  %v1287_v18 = vpack.c.bf16 %v1265_v10, %v1264_v9  ;;  %v1393_v9 = vld [vmem:[#allocation2 + $0xf2] sm:$0xff]  ;;  %v1394_v10 = vld [vmem:[#allocation2 + $0xfa] sm:$0xff] }
  0xe5   : > { %1077 = vrot.lane.b32.xlu1 %v1032_v13, %s7028_s21  ;;  %717 = vst.msk [vmem:[#allocation3 + $0x40] sm:$0xff] %vm712_vm4, %v673_v20  ;;  %v1266_v13 = vld [vmem:[#allocation2 + $0x109] sm:$0xff] }
  0xe6   : > { %1079 = vrot.lane.b32.xlu0 %v1033_v19, %s7028_s21  ;;  %v1268_v19 = vld [vmem:[#allocation2 + $0x121] sm:$0xff]  ;;  %v1269_v20 = vld [vmem:[#allocation2 + $0x129] sm:$0xff] }
  0xe7   : > { %v675_v23 = vpop.permute.xlu1 %674 }
  0xe8   : > { %718 = vst.msk [vmem:[#allocation3 + $0x50] sm:$0xff] %vm712_vm4, %v675_v23  ;;  %v677_v24 = vpop.permute.xlu0 %676  ;;  %v1288_v23 = vpack.c.bf16 %v1267_v14, %v1266_v13  ;;  %v1395_v13 = vld [vmem:[#allocation2 + $0x10a] sm:$0xff]  ;;  %v1396_v14 = vld [vmem:[#allocation2 + $0x112] sm:$0xff] }
  0xe9   : > { %1081 = vrot.lane.b32.xlu1 %v1034_v21, %s7028_s21  ;;  %719 = vst.msk [vmem:[#allocation3 + $0x60] sm:$0xff] %vm712_vm4, %v677_v24  ;;  %v1270_v24 = vld [vmem:[#allocation2 + $0x139] sm:$0xff] }
  0xea   : > { %1181 = vrot.lane.b32.xlu0 %v7308_v50, %s7029_s22 }
  0xeb   : > { %v679_v25 = vpop.permute.xlu1 %678 }
  0xec   : > { %720 = vst.msk [vmem:[#allocation3 + $0x70] sm:$0xff] %vm712_vm4, %v679_v25  ;;  %v681_v26 = vpop.permute.xlu0 %680  ;;  %v1271_v25 = vld [vmem:[#allocation2 + $0x141] sm:$0xff] }
  0xed   : > { %1183 = vrot.lane.b32.xlu1 %v7305_v45, %s7029_s22  ;;  %721 = vst.msk [vmem:[#allocation3 + $0x80] sm:$0xff] %vm712_vm4, %v681_v26 }
  0xee   : > { %1185 = vrot.lane.b32.xlu0 %v7315_v56, %s7029_s22 }
  0xef   : > { %v683_v27 = vpop.permute.xlu1 %682 }
  0xf0   : > { %722 = vst.msk [vmem:[#allocation3 + $0x90] sm:$0xff] %vm712_vm4, %v683_v27  ;;  %v685_v29 = vpop.permute.xlu0 %684  ;;  %v1289_v27 = vpack.c.bf16 %v1269_v20, %v1268_v19  ;;  %v1397_v19 = vld [vmem:[#allocation2 + $0x122] sm:$0xff]  ;;  %v1398_v20 = vld [vmem:[#allocation2 + $0x12a] sm:$0xff] }
  0xf1   : > { %1187 = vrot.lane.b32.xlu1 %v7318_v62, %s7029_s22  ;;  %723 = vst.msk [vmem:[#allocation3 + $0xa0] sm:$0xff] %vm712_vm4, %v685_v29  ;;  %v1272_v29 = vld [vmem:[#allocation2 + $0x151] sm:$0xff] }
  0xf2   : > { %1189 = vrot.lane.b32.xlu0 %v7325_v3, %s7029_s22 }
  0xf3   : > { %v687_v50 = vpop.permute.xlu1 %686 }
  0xf4   : > { %724 = vst.msk [vmem:[#allocation3 + $0xb0] sm:$0xff] %vm712_vm4, %v687_v50  ;;  %v689_v45 = vpop.permute.xlu0 %688  ;;  %v1273_v50 = vld [vmem:[#allocation2 + $0x159] sm:$0xff] }
  0xf5   : > { %1191 = vrot.lane.b32.xlu1 %v7327_v7, %s7029_s22  ;;  %725 = vst.msk [vmem:[#allocation3 + $0xc0] sm:$0xff] %vm712_vm4, %v689_v45 }
  0xf6   : > { %1193 = vrot.lane.b32.xlu0 %v7334_v15, %s7029_s22 }
  0xf7   : > { %v691_v56 = vpop.permute.xlu1 %690 }
  0xf8   : > { %726 = vst.msk [vmem:[#allocation3 + $0xd0] sm:$0xff] %vm712_vm4, %v691_v56  ;;  %v693_v62 = vpop.permute.xlu0 %692  ;;  %v1290_v56 = vpack.c.bf16 %v1271_v25, %v1270_v24  ;;  %v1399_v24 = vld [vmem:[#allocation2 + $0x13a] sm:$0xff]  ;;  %v1400_v25 = vld [vmem:[#allocation2 + $0x142] sm:$0xff] }
  0xf9   : > { %1195 = vrot.lane.b32.xlu1 %v7336_v16, %s7029_s22  ;;  %727 = vst.msk [vmem:[#allocation3 + $0xe0] sm:$0xff] %vm712_vm4, %v693_v62  ;;  %v1274_v62 = vld [vmem:[#allocation2 + $0x169] sm:$0xff] }
  0xfa   : > { %1197 = vrot.lane.b32.xlu0 %v7343_v22, %s7029_s22  ;;  %v1147_v22 = vld [vmem:[#allocation2 + $0x180] sm:$0xff] }
  0xfb   : > { %v695_v3 = vpop.permute.xlu1 %694  ;;  %v1164_v34 = vpack.c.bf16 %v1148_v30, %v1147_v22  ;;  %v1277_v22 = vld [vmem:[#allocation2 + $0x189] sm:$0xff] }
  0xfc   : > { %728 = vst.msk [vmem:[#allocation3 + $0xf0] sm:$0xff] %vm712_vm4, %v695_v3  ;;  %v794_v7 = vpop.permute.xlu0 %793  ;;  %v1275_v3 = vld [vmem:[#allocation2 + $0x171] sm:$0xff] }
  0xfd   : > { %1199 = vrot.lane.b32.xlu1 %v7346_v28, %s7029_s22  ;;  %842 = vst.msk [vmem:[#allocation3] sm:$0xff] %vm841_vm5, %v794_v7 }
  0xfe   : > { %1201 = vrot.lane.b32.xlu0 %v7353_v33, %s7029_s22 }
  0xff   : > { %v796_v15 = vpop.permute.xlu1 %795 }
 0x100   : > { %843 = vst.msk [vmem:[#allocation3 + $0x10] sm:$0xff] %vm841_vm5, %v796_v15  ;;  %v798_v16 = vpop.permute.xlu0 %797  ;;  %v1291_v15 = vpack.c.bf16 %v1273_v50, %v1272_v29  ;;  %v1401_v29 = vld [vmem:[#allocation2 + $0x152] sm:$0xff]  ;;  %v1402_v50 = vld [vmem:[#allocation2 + $0x15a] sm:$0xff] }
 0x101   : > { %1203 = vrot.lane.b32.xlu1 %v7355_v37, %s7029_s22  ;;  %844 = vst.msk [vmem:[#allocation3 + $0x20] sm:$0xff] %vm841_vm5, %v798_v16  ;;  %v1248_v37 = vld [vmem:[#allocation2 + $0x31] sm:$0xff]  ;;  %v1276_v16 = vld [vmem:[#allocation2 + $0x181] sm:$0xff] }
 0x102   : > { %1205 = vrot.lane.b32.xlu0 %v7362_v46, %s7029_s22  ;;  %v1250_v46 = vld [vmem:[#allocation2 + $0x49] sm:$0xff]  ;;  %v1279_v41 = vpack.c.bf16 %v1249_v35, %v1248_v37  ;;  %v1377_v37 = vld [vmem:[#allocation2 + $0x32] sm:$0xff]  ;;  %v1378_v35 = vld [vmem:[#allocation2 + $0x3a] sm:$0xff] }
 0x103   : > { %v800_v28 = vpop.permute.xlu1 %799  ;;  %v1280_v44 = vpack.c.bf16 %v1251_v39, %v1250_v46  ;;  %v1379_v46 = vld [vmem:[#allocation2 + $0x4a] sm:$0xff]  ;;  %v1380_v39 = vld [vmem:[#allocation2 + $0x52] sm:$0xff] }
 0x104   : > { %845 = vst.msk [vmem:[#allocation3 + $0x30] sm:$0xff] %vm841_vm5, %v800_v28  ;;  %v802_v33 = vpop.permute.xlu0 %801  ;;  %v1292_v28 = vpack.c.bf16 %v1275_v3, %v1274_v62  ;;  %v1403_v62 = vld [vmem:[#allocation2 + $0x16a] sm:$0xff]  ;;  %v1404_v3 = vld [vmem:[#allocation2 + $0x172] sm:$0xff] }
 0x105   : > { %1207 = vrot.lane.b32.xlu1 %v7364_v47, %s7029_s22  ;;  %846 = vst.msk [vmem:[#allocation3 + $0x40] sm:$0xff] %vm841_vm5, %v802_v33  ;;  %v1252_v47 = vld [vmem:[#allocation2 + $0x61] sm:$0xff] }
 0x106   : > { %1209 = vrot.lane.b32.xlu0 %v7371_v54, %s7029_s22  ;;  %v1254_v54 = vld [vmem:[#allocation2 + $0x79] sm:$0xff]  ;;  %v1281_v51 = vpack.c.bf16 %v1253_v42, %v1252_v47  ;;  %v1381_v47 = vld [vmem:[#allocation2 + $0x62] sm:$0xff]  ;;  %v1382_v42 = vld [vmem:[#allocation2 + $0x6a] sm:$0xff] }
 0x107   : > { %v804_v36 = vpop.permute.xlu1 %803  ;;  %v1282_v57 = vpack.c.bf16 %v1255_v48, %v1254_v54  ;;  %v1383_v54 = vld [vmem:[#allocation2 + $0x7a] sm:$0xff]  ;;  %v1384_v48 = vld [vmem:[#allocation2 + $0x82] sm:$0xff] }
 0x108   : > { %847 = vst.msk [vmem:[#allocation3 + $0x50] sm:$0xff] %vm841_vm5, %v804_v36  ;;  %v806_v40 = vpop.permute.xlu0 %805 }
 0x109   : > { %1211 = vrot.lane.b32.xlu1 %v1164_v34, %s7029_s22  ;;  %848 = vst.msk [vmem:[#allocation3 + $0x60] sm:$0xff] %vm841_vm5, %v806_v40  ;;  %v1293_v34 = vpack.c.bf16 %v1277_v22, %v1276_v16  ;;  %v1405_v16 = vld [vmem:[#allocation2 + $0x182] sm:$0xff]  ;;  %v1406_v22 = vld [vmem:[#allocation2 + $0x18a] sm:$0xff] }
 0x10a   : > { %1310 = vrot.lane.b32.xlu0 %v1278_v38, %s7030_s23  ;;  %v1407_v38 = vpack.c.bf16 %v1376_v32, %v1375_v31  ;;  %v1504_v31 = vld [vmem:[#allocation2 + $0x1b] sm:$0xff]  ;;  %v1505_v32 = vld [vmem:[#allocation2 + $0x23] sm:$0xff] }
 0x10b   : > { %v808_v43 = vpop.permute.xlu1 %807 }
 0x10c   : > { %849 = vst.msk [vmem:[#allocation3 + $0x70] sm:$0xff] %vm841_vm5, %v808_v43  ;;  %v810_v49 = vpop.permute.xlu0 %809 }
 0x10d   : > { %1312 = vrot.lane.b32.xlu1 %v1279_v41, %s7030_s23  ;;  %850 = vst.msk [vmem:[#allocation3 + $0x80] sm:$0xff] %vm841_vm5, %v810_v49  ;;  %v1408_v41 = vpack.c.bf16 %v1378_v35, %v1377_v37  ;;  %v1506_v37 = vld [vmem:[#allocation2 + $0x33] sm:$0xff]  ;;  %v1507_v35 = vld [vmem:[#allocation2 + $0x3b] sm:$0xff] }
 0x10e   : > { %1314 = vrot.lane.b32.xlu0 %v1280_v44, %s7030_s23  ;;  %v1409_v44 = vpack.c.bf16 %v1380_v39, %v1379_v46  ;;  %v1508_v46 = vld [vmem:[#allocation2 + $0x4b] sm:$0xff]  ;;  %v1509_v39 = vld [vmem:[#allocation2 + $0x53] sm:$0xff] }
 0x10f   : > { %v812_v55 = vpop.permute.xlu1 %811 }
 0x110   : > { %851 = vst.msk [vmem:[#allocation3 + $0x90] sm:$0xff] %vm841_vm5, %v812_v55  ;;  %v814_v60 = vpop.permute.xlu0 %813 }
 0x111   : > { %1316 = vrot.lane.b32.xlu1 %v1281_v51, %s7030_s23  ;;  %852 = vst.msk [vmem:[#allocation3 + $0xa0] sm:$0xff] %vm841_vm5, %v814_v60  ;;  %v1410_v51 = vpack.c.bf16 %v1382_v42, %v1381_v47  ;;  %v1510_v47 = vld [vmem:[#allocation2 + $0x63] sm:$0xff]  ;;  %v1511_v42 = vld [vmem:[#allocation2 + $0x6b] sm:$0xff] }
 0x112   : > { %1318 = vrot.lane.b32.xlu0 %v1282_v57, %s7030_s23  ;;  %v1411_v57 = vpack.c.bf16 %v1384_v48, %v1383_v54  ;;  %v1512_v54 = vld [vmem:[#allocation2 + $0x7b] sm:$0xff]  ;;  %v1513_v48 = vld [vmem:[#allocation2 + $0x83] sm:$0xff] }
 0x113   : > { %v816_v1 = vpop.permute.xlu1 %815 }
 0x114   : > { %853 = vst.msk [vmem:[#allocation3 + $0xb0] sm:$0xff] %vm841_vm5, %v816_v1  ;;  %v818_v6 = vpop.permute.xlu0 %817 }
 0x115   : > { %1320 = vrot.lane.b32.xlu1 %v1283_v61, %s7030_s23  ;;  %854 = vst.msk [vmem:[#allocation3 + $0xc0] sm:$0xff] %vm841_vm5, %v818_v6  ;;  %v1412_v61 = vpack.c.bf16 %v1386_v53, %v1385_v52  ;;  %v1514_v52 = vld [vmem:[#allocation2 + $0x93] sm:$0xff]  ;;  %v1515_v53 = vld [vmem:[#allocation2 + $0x9b] sm:$0xff] }
 0x116   : > { %1322 = vrot.lane.b32.xlu0 %v1284_v2, %s7030_s23  ;;  %v1413_v2 = vpack.c.bf16 %v1388_v59, %v1387_v58  ;;  %v1516_v58 = vld [vmem:[#allocation2 + $0xab] sm:$0xff]  ;;  %v1517_v59 = vld [vmem:[#allocation2 + $0xb3] sm:$0xff] }
 0x117   : > { %v820_v11 = vpop.permute.xlu1 %819 }
 0x118   : > { %855 = vst.msk [vmem:[#allocation3 + $0xd0] sm:$0xff] %vm841_vm5, %v820_v11  ;;  %v822_v17 = vpop.permute.xlu0 %821 }
 0x119   : > { %1324 = vrot.lane.b32.xlu1 %v1285_v8, %s7030_s23  ;;  %856 = vst.msk [vmem:[#allocation3 + $0xe0] sm:$0xff] %vm841_vm5, %v822_v17  ;;  %v1414_v8 = vpack.c.bf16 %v1390_v0, %v1389_v63  ;;  %v1518_v63 = vld [vmem:[#allocation2 + $0xc3] sm:$0xff]  ;;  %v1519_v0 = vld [vmem:[#allocation2 + $0xcb] sm:$0xff] }
 0x11a   : > { %1326 = vrot.lane.b32.xlu0 %v1286_v12, %s7030_s23  ;;  %v1415_v12 = vpack.c.bf16 %v1392_v5, %v1391_v4  ;;  %v1520_v4 = vld [vmem:[#allocation2 + $0xdb] sm:$0xff]  ;;  %v1521_v5 = vld [vmem:[#allocation2 + $0xe3] sm:$0xff] }
 0x11b   : > { %v824_v21 = vpop.permute.xlu1 %823 }
 0x11c   : > { %857 = vst.msk [vmem:[#allocation3 + $0xf0] sm:$0xff] %vm841_vm5, %v824_v21  ;;  %v923_v26 = vpop.permute.xlu0 %922 }
 0x11d   : > { %1328 = vrot.lane.b32.xlu1 %v1287_v18, %s7030_s23  ;;  %971 = vst.msk [vmem:[#allocation3] sm:$0xff] %vm970_vm6, %v923_v26  ;;  %v1416_v18 = vpack.c.bf16 %v1394_v10, %v1393_v9  ;;  %v1522_v9 = vld [vmem:[#allocation2 + $0xf3] sm:$0xff]  ;;  %v1523_v10 = vld [vmem:[#allocation2 + $0xfb] sm:$0xff] }
 0x11e   : > { %1330 = vrot.lane.b32.xlu0 %v1288_v23, %s7030_s23  ;;  %v1417_v23 = vpack.c.bf16 %v1396_v14, %v1395_v13  ;;  %v1524_v13 = vld [vmem:[#allocation2 + $0x10b] sm:$0xff]  ;;  %v1525_v14 = vld [vmem:[#allocation2 + $0x113] sm:$0xff] }
 0x11f   : > { %v925_v45 = vpop.permute.xlu1 %924 }
 0x120   : > { %972 = vst.msk [vmem:[#allocation3 + $0x10] sm:$0xff] %vm970_vm6, %v925_v45  ;;  %v927_v7 = vpop.permute.xlu0 %926 }
 0x121   : > { %1332 = vrot.lane.b32.xlu1 %v1289_v27, %s7030_s23  ;;  %973 = vst.msk [vmem:[#allocation3 + $0x20] sm:$0xff] %vm970_vm6, %v927_v7  ;;  %v1418_v27 = vpack.c.bf16 %v1398_v20, %v1397_v19  ;;  %v1526_v19 = vld [vmem:[#allocation2 + $0x123] sm:$0xff]  ;;  %v1527_v20 = vld [vmem:[#allocation2 + $0x12b] sm:$0xff] }
 0x122   : > { %1334 = vrot.lane.b32.xlu0 %v1290_v56, %s7030_s23  ;;  %v1419_v56 = vpack.c.bf16 %v1400_v25, %v1399_v24  ;;  %v1528_v24 = vld [vmem:[#allocation2 + $0x13b] sm:$0xff]  ;;  %v1529_v25 = vld [vmem:[#allocation2 + $0x143] sm:$0xff] }
 0x123   : > { %v929_v30 = vpop.permute.xlu1 %928 }
 0x124   : > { %974 = vst.msk [vmem:[#allocation3 + $0x30] sm:$0xff] %vm970_vm6, %v929_v30  ;;  %v931_v33 = vpop.permute.xlu0 %930 }
 0x125   : > { %1336 = vrot.lane.b32.xlu1 %v1291_v15, %s7030_s23  ;;  %975 = vst.msk [vmem:[#allocation3 + $0x40] sm:$0xff] %vm970_vm6, %v931_v33  ;;  %v1420_v15 = vpack.c.bf16 %v1402_v50, %v1401_v29  ;;  %v1530_v29 = vld [vmem:[#allocation2 + $0x153] sm:$0xff]  ;;  %v1531_v50 = vld [vmem:[#allocation2 + $0x15b] sm:$0xff] }
 0x126   : > { %1338 = vrot.lane.b32.xlu0 %v1292_v28, %s7030_s23  ;;  %v1421_v28 = vpack.c.bf16 %v1404_v3, %v1403_v62  ;;  %v1548_v62 = vpack.c.bf16 %v1529_v25, %v1528_v24  ;;  %v174_v3 = vld [vmem:[%s7228_s15 + $0xe8] sm:$0xff] }
 0x127   : > { %v933_v36 = vpop.permute.xlu1 %932  ;;  %275 = vst.msk [vmem:[#allocation2 + $0x1a3] sm:$0xff] %vm177_vm0, %v174_v3 }
 0x128   : > { %976 = vst.msk [vmem:[#allocation3 + $0x50] sm:$0xff] %vm970_vm6, %v933_v36  ;;  %v935_v40 = vpop.permute.xlu0 %934 }
 0x129   : > { %1340 = vrot.lane.b32.xlu1 %v1293_v34, %s7030_s23  ;;  %977 = vst.msk [vmem:[#allocation3 + $0x60] sm:$0xff] %vm970_vm6, %v935_v40  ;;  %v1422_v34 = vpack.c.bf16 %v1406_v22, %v1405_v16  ;;  %v1549_v22 = vpack.c.bf16 %v1531_v50, %v1530_v29 }
 0x12a   : > { %1439 = vrot.lane.b32.xlu0 %v1407_v38, %s7031_s24  ;;  %v1536_v38 = vpack.c.bf16 %v1505_v32, %v1504_v31 }
 0x12b   : > { %v937_v43 = vpop.permute.xlu1 %936 }
 0x12c   : > { %978 = vst.msk [vmem:[#allocation3 + $0x70] sm:$0xff] %vm970_vm6, %v937_v43  ;;  %v939_v49 = vpop.permute.xlu0 %938 }
 0x12d   : > { %1441 = vrot.lane.b32.xlu1 %v1408_v41, %s7031_s24  ;;  %979 = vst.msk [vmem:[#allocation3 + $0x80] sm:$0xff] %vm970_vm6, %v939_v49  ;;  %v1537_v41 = vpack.c.bf16 %v1507_v35, %v1506_v37 }
 0x12e   : > { %1443 = vrot.lane.b32.xlu0 %v1409_v44, %s7031_s24  ;;  %v1538_v44 = vpack.c.bf16 %v1509_v39, %v1508_v46 }
 0x12f   : > { %v941_v55 = vpop.permute.xlu1 %940 }
 0x130   : > { %980 = vst.msk [vmem:[#allocation3 + $0x90] sm:$0xff] %vm970_vm6, %v941_v55  ;;  %v943_v60 = vpop.permute.xlu0 %942 }
 0x131   : > { %1445 = vrot.lane.b32.xlu1 %v1410_v51, %s7031_s24  ;;  %981 = vst.msk [vmem:[#allocation3 + $0xa0] sm:$0xff] %vm970_vm6, %v943_v60  ;;  %v1539_v51 = vpack.c.bf16 %v1511_v42, %v1510_v47 }
 0x132   : > { %1447 = vrot.lane.b32.xlu0 %v1411_v57, %s7031_s24  ;;  %v1540_v57 = vpack.c.bf16 %v1513_v48, %v1512_v54 }
 0x133   : > { %v945_v1 = vpop.permute.xlu1 %944 }
 0x134   : > { %982 = vst.msk [vmem:[#allocation3 + $0xb0] sm:$0xff] %vm970_vm6, %v945_v1  ;;  %v947_v6 = vpop.permute.xlu0 %946 }
 0x135   : > { %1449 = vrot.lane.b32.xlu1 %v1412_v61, %s7031_s24  ;;  %983 = vst.msk [vmem:[#allocation3 + $0xc0] sm:$0xff] %vm970_vm6, %v947_v6  ;;  %v1541_v61 = vpack.c.bf16 %v1515_v53, %v1514_v52 }
 0x136   : > { %1451 = vrot.lane.b32.xlu0 %v1413_v2, %s7031_s24  ;;  %v1542_v2 = vpack.c.bf16 %v1517_v59, %v1516_v58 }
 0x137   : > { %v949_v11 = vpop.permute.xlu1 %948 }
 0x138   : > { %984 = vst.msk [vmem:[#allocation3 + $0xd0] sm:$0xff] %vm970_vm6, %v949_v11  ;;  %v951_v17 = vpop.permute.xlu0 %950 }
 0x139   : > { %1453 = vrot.lane.b32.xlu1 %v1414_v8, %s7031_s24  ;;  %985 = vst.msk [vmem:[#allocation3 + $0xe0] sm:$0xff] %vm970_vm6, %v951_v17  ;;  %v1543_v8 = vpack.c.bf16 %v1519_v0, %v1518_v63 }
 0x13a   : > { %1455 = vrot.lane.b32.xlu0 %v1415_v12, %s7031_s24  ;;  %v1544_v12 = vpack.c.bf16 %v1521_v5, %v1520_v4 }
 0x13b   : > { %v953_v21 = vpop.permute.xlu1 %952 }
 0x13c   : > { %986 = vst.msk [vmem:[#allocation3 + $0xf0] sm:$0xff] %vm970_vm6, %v953_v21  ;;  %v1052_v26 = vpop.permute.xlu0 %1051 }
 0x13d   : > { %1457 = vrot.lane.b32.xlu1 %v1416_v18, %s7031_s24  ;;  %1100 = vst.msk [vmem:[#allocation3] sm:$0xff] %vm1099_vm7, %v1052_v26  ;;  %v1545_v18 = vpack.c.bf16 %v1523_v10, %v1522_v9 }
 0x13e   : > { %1459 = vrot.lane.b32.xlu0 %v1417_v23, %s7031_s24  ;;  %v1546_v23 = vpack.c.bf16 %v1525_v14, %v1524_v13 }
 0x13f   : > { %v1054_v45 = vpop.permute.xlu1 %1053 }
 0x140   : > { %1101 = vst.msk [vmem:[#allocation3 + $0x10] sm:$0xff] %vm1099_vm7, %v1054_v45  ;;  %v1056_v7 = vpop.permute.xlu0 %1055  ;;  %v173_v45 = vld [vmem:[%s7228_s15 + $0xe0] sm:$0xff] }
 0x141   : > { %1461 = vrot.lane.b32.xlu1 %v1418_v27, %s7031_s24  ;;  %1102 = vst.msk [vmem:[#allocation3 + $0x20] sm:$0xff] %vm1099_vm7, %v1056_v7  ;;  %v1547_v27 = vpack.c.bf16 %v1527_v20, %v1526_v19  ;;  %v1532_v7 = vld [vmem:[#allocation2 + $0x16b] sm:$0xff] }
 0x142   : > { %1463 = vrot.lane.b32.xlu0 %v1419_v56, %s7031_s24  ;;  %274 = vst.msk [vmem:[#allocation2 + $0x19b] sm:$0xff] %vm177_vm0, %v173_v45  ;;  %v1659_v45 = vld [vmem:[#allocation2 + $0x154] sm:$0xff] }
 0x143   : > { %v1058_v30 = vpop.permute.xlu1 %1057 }
 0x144   : > { %1103 = vst.msk [vmem:[#allocation3 + $0x30] sm:$0xff] %vm1099_vm7, %v1058_v30  ;;  %v1060_v33 = vpop.permute.xlu0 %1059  ;;  %v1534_v30 = vld [vmem:[#allocation2 + $0x183] sm:$0xff] }
 0x145   : > { %1465 = vrot.lane.b32.xlu1 %v1420_v15, %s7031_s24  ;;  %1104 = vst.msk [vmem:[#allocation3 + $0x40] sm:$0xff] %vm1099_vm7, %v1060_v33  ;;  %v1533_v15 = vld [vmem:[#allocation2 + $0x173] sm:$0xff]  ;;  %v1633_v33 = vld [vmem:[#allocation2 + $0x1c] sm:$0xff] }
 0x146   : > { %1467 = vrot.lane.b32.xlu0 %v1421_v28, %s7031_s24  ;;  %v1535_v28 = vld [vmem:[#allocation2 + $0x18b] sm:$0xff]  ;;  %v1550_v32 = vpack.c.bf16 %v1533_v15, %v1532_v7  ;;  %v1662_v15 = vld [vmem:[#allocation2 + $0x174] sm:$0xff] }
 0x147   : > { %v1062_v36 = vpop.permute.xlu1 %1061  ;;  %v1551_v35 = vpack.c.bf16 %v1535_v28, %v1534_v30  ;;  %v1661_v7 = vld [vmem:[#allocation2 + $0x16c] sm:$0xff]  ;;  %v1663_v30 = vld [vmem:[#allocation2 + $0x184] sm:$0xff] }
 0x148   : > { %1105 = vst.msk [vmem:[#allocation3 + $0x50] sm:$0xff] %vm1099_vm7, %v1062_v36  ;;  %v1064_v40 = vpop.permute.xlu0 %1063  ;;  %v1635_v36 = vld [vmem:[#allocation2 + $0x34] sm:$0xff]  ;;  %v1664_v28 = vld [vmem:[#allocation2 + $0x18c] sm:$0xff] }
 0x149   : > { %1469 = vrot.lane.b32.xlu1 %v1422_v34, %s7031_s24  ;;  %1106 = vst.msk [vmem:[#allocation3 + $0x60] sm:$0xff] %vm1099_vm7, %v1064_v40  ;;  %v1634_v34 = vld [vmem:[#allocation2 + $0x24] sm:$0xff]  ;;  %v1637_v40 = vld [vmem:[#allocation2 + $0x4c] sm:$0xff] }
 0x14a   : > { %1568 = vrot.lane.b32.xlu0 %v1536_v38, %s7032_s25  ;;  %v1636_v38 = vld [vmem:[#allocation2 + $0x3c] sm:$0xff]  ;;  %v1665_v39 = vpack.c.bf16 %v1634_v34, %v1633_v33  ;;  %v1763_v34 = vld [vmem:[#allocation2 + $0x25] sm:$0xff] }
 0x14b   : > { %v1066_v43 = vpop.permute.xlu1 %1065  ;;  %v1666_v42 = vpack.c.bf16 %v1636_v38, %v1635_v36  ;;  %v1762_v33 = vld [vmem:[#allocation2 + $0x1d] sm:$0xff]  ;;  %v1764_v36 = vld [vmem:[#allocation2 + $0x35] sm:$0xff] }
 0x14c   : > { %1107 = vst.msk [vmem:[#allocation3 + $0x70] sm:$0xff] %vm1099_vm7, %v1066_v43  ;;  %v1068_v49 = vpop.permute.xlu0 %1067  ;;  %v1639_v43 = vld [vmem:[#allocation2 + $0x64] sm:$0xff] }
 0x14d   : > { %1570 = vrot.lane.b32.xlu1 %v1537_v41, %s7032_s25  ;;  %1108 = vst.msk [vmem:[#allocation3 + $0x80] sm:$0xff] %vm1099_vm7, %v1068_v49  ;;  %v1638_v41 = vld [vmem:[#allocation2 + $0x54] sm:$0xff]  ;;  %v1641_v49 = vld [vmem:[#allocation2 + $0x7c] sm:$0xff] }
 0x14e   : > { %1572 = vrot.lane.b32.xlu0 %v1538_v44, %s7032_s25  ;;  %v1640_v44 = vld [vmem:[#allocation2 + $0x6c] sm:$0xff]  ;;  %v1667_v48 = vpack.c.bf16 %v1638_v41, %v1637_v40  ;;  %v1765_v38 = vld [vmem:[#allocation2 + $0x3d] sm:$0xff]  ;;  %v1767_v41 = vld [vmem:[#allocation2 + $0x55] sm:$0xff] }
 0x14f   : > { %v1070_v55 = vpop.permute.xlu1 %1069  ;;  %v1668_v53 = vpack.c.bf16 %v1640_v44, %v1639_v43  ;;  %v1766_v40 = vld [vmem:[#allocation2 + $0x4d] sm:$0xff]  ;;  %v1768_v43 = vld [vmem:[#allocation2 + $0x65] sm:$0xff] }
 0x150   : > { %1109 = vst.msk [vmem:[#allocation3 + $0x90] sm:$0xff] %vm1099_vm7, %v1070_v55  ;;  %v1072_v60 = vpop.permute.xlu0 %1071  ;;  %v1643_v55 = vld [vmem:[#allocation2 + $0x94] sm:$0xff] }
 0x151   : > { %1574 = vrot.lane.b32.xlu1 %v1539_v51, %s7032_s25  ;;  %1110 = vst.msk [vmem:[#allocation3 + $0xa0] sm:$0xff] %vm1099_vm7, %v1072_v60  ;;  %v1642_v51 = vld [vmem:[#allocation2 + $0x84] sm:$0xff]  ;;  %v1645_v60 = vld [vmem:[#allocation2 + $0xac] sm:$0xff] }
 0x152   : > { %1576 = vrot.lane.b32.xlu0 %v1540_v57, %s7032_s25  ;;  %v1644_v57 = vld [vmem:[#allocation2 + $0x9c] sm:$0xff]  ;;  %v1669_v59 = vpack.c.bf16 %v1642_v51, %v1641_v49  ;;  %v1769_v44 = vld [vmem:[#allocation2 + $0x6d] sm:$0xff]  ;;  %v1771_v51 = vld [vmem:[#allocation2 + $0x85] sm:$0xff] }
 0x153   : > { %v1074_v1 = vpop.permute.xlu1 %1073  ;;  %v1670_v0 = vpack.c.bf16 %v1644_v57, %v1643_v55  ;;  %v1770_v49 = vld [vmem:[#allocation2 + $0x7d] sm:$0xff]  ;;  %v1772_v55 = vld [vmem:[#allocation2 + $0x95] sm:$0xff] }
 0x154   : > { %1111 = vst.msk [vmem:[#allocation3 + $0xb0] sm:$0xff] %vm1099_vm7, %v1074_v1  ;;  %v1076_v6 = vpop.permute.xlu0 %1075  ;;  %v1647_v1 = vld [vmem:[#allocation2 + $0xc4] sm:$0xff] }
 0x155   : > { %1578 = vrot.lane.b32.xlu1 %v1541_v61, %s7032_s25  ;;  %1112 = vst.msk [vmem:[#allocation3 + $0xc0] sm:$0xff] %vm1099_vm7, %v1076_v6  ;;  %v1646_v61 = vld [vmem:[#allocation2 + $0xb4] sm:$0xff]  ;;  %v1649_v6 = vld [vmem:[#allocation2 + $0xdc] sm:$0xff] }
 0x156   : > { %1580 = vrot.lane.b32.xlu0 %v1542_v2, %s7032_s25  ;;  %v1648_v2 = vld [vmem:[#allocation2 + $0xcc] sm:$0xff]  ;;  %v1671_v5 = vpack.c.bf16 %v1646_v61, %v1645_v60  ;;  %v1773_v57 = vld [vmem:[#allocation2 + $0x9d] sm:$0xff]  ;;  %v1775_v61 = vld [vmem:[#allocation2 + $0xb5] sm:$0xff] }
 0x157   : > { %v1078_v11 = vpop.permute.xlu1 %1077  ;;  %v1672_v10 = vpack.c.bf16 %v1648_v2, %v1647_v1  ;;  %v1774_v60 = vld [vmem:[#allocation2 + $0xad] sm:$0xff]  ;;  %v1776_v1 = vld [vmem:[#allocation2 + $0xc5] sm:$0xff] }
 0x158   : > { %1113 = vst.msk [vmem:[#allocation3 + $0xd0] sm:$0xff] %vm1099_vm7, %v1078_v11  ;;  %v1080_v17 = vpop.permute.xlu0 %1079  ;;  %v1651_v11 = vld [vmem:[#allocation2 + $0xf4] sm:$0xff] }
 0x159   : > { %1582 = vrot.lane.b32.xlu1 %v1543_v8, %s7032_s25  ;;  %1114 = vst.msk [vmem:[#allocation3 + $0xe0] sm:$0xff] %vm1099_vm7, %v1080_v17  ;;  %v1650_v8 = vld [vmem:[#allocation2 + $0xe4] sm:$0xff]  ;;  %v1653_v17 = vld [vmem:[#allocation2 + $0x10c] sm:$0xff] }
 0x15a   : > { %1584 = vrot.lane.b32.xlu0 %v1544_v12, %s7032_s25  ;;  %v1652_v12 = vld [vmem:[#allocation2 + $0xfc] sm:$0xff]  ;;  %v1673_v14 = vpack.c.bf16 %v1650_v8, %v1649_v6  ;;  %v1777_v2 = vld [vmem:[#allocation2 + $0xcd] sm:$0xff]  ;;  %v1779_v8 = vld [vmem:[#allocation2 + $0xe5] sm:$0xff] }
 0x15b   : > { %v1082_v21 = vpop.permute.xlu1 %1081  ;;  %v1674_v20 = vpack.c.bf16 %v1652_v12, %v1651_v11  ;;  %v1778_v6 = vld [vmem:[#allocation2 + $0xdd] sm:$0xff]  ;;  %v1780_v11 = vld [vmem:[#allocation2 + $0xf5] sm:$0xff] }
 0x15c   : > { %1115 = vst.msk [vmem:[#allocation3 + $0xf0] sm:$0xff] %vm1099_vm7, %v1082_v21  ;;  %v1182_v26 = vpop.permute.xlu0 %1181  ;;  %v1655_v21 = vld [vmem:[#allocation2 + $0x124] sm:$0xff] }
 0x15d   : > { %1586 = vrot.lane.b32.xlu1 %v1545_v18, %s7032_s25  ;;  %1230 = vst.msk [vmem:[#allocation3] sm:$0xff] %vm1229_vm8, %v1182_v26  ;;  %v1654_v18 = vld [vmem:[#allocation2 + $0x114] sm:$0xff]  ;;  %v1657_v26 = vld [vmem:[#allocation2 + $0x13c] sm:$0xff] }
 0x15e   : > { %1588 = vrot.lane.b32.xlu0 %v1546_v23, %s7032_s25  ;;  %v1656_v23 = vld [vmem:[#allocation2 + $0x12c] sm:$0xff]  ;;  %v1675_v25 = vpack.c.bf16 %v1654_v18, %v1653_v17  ;;  %v1781_v12 = vld [vmem:[#allocation2 + $0xfd] sm:$0xff]  ;;  %v1783_v18 = vld [vmem:[#allocation2 + $0x115] sm:$0xff] }
 0x15f   : > { %v1184_v56 = vpop.permute.xlu1 %1183  ;;  %v1676_v50 = vpack.c.bf16 %v1656_v23, %v1655_v21  ;;  %v1782_v17 = vld [vmem:[#allocation2 + $0x10d] sm:$0xff]  ;;  %v1784_v21 = vld [vmem:[#allocation2 + $0x125] sm:$0xff] }
 0x160   : > { %1231 = vst.msk [vmem:[#allocation3 + $0x10] sm:$0xff] %vm1229_vm8, %v1184_v56  ;;  %v1186_v16 = vpop.permute.xlu0 %1185  ;;  %v1660_v56 = vld [vmem:[#allocation2 + $0x15c] sm:$0xff]  ;;  %v1785_v23 = vld [vmem:[#allocation2 + $0x12d] sm:$0xff] }
 0x161   : > { %1590 = vrot.lane.b32.xlu1 %v1547_v27, %s7032_s25  ;;  %1232 = vst.msk [vmem:[#allocation3 + $0x20] sm:$0xff] %vm1229_vm8, %v1186_v16  ;;  %v1658_v27 = vld [vmem:[#allocation2 + $0x144] sm:$0xff] }
 0x162   : > { %1592 = vrot.lane.b32.xlu0 %v1548_v62, %s7032_s25  ;;  %v1677_v3 = vpack.c.bf16 %v1658_v27, %v1657_v26  ;;  %v1786_v26 = vld [vmem:[#allocation2 + $0x13d] sm:$0xff]  ;;  %v1787_v27 = vld [vmem:[#allocation2 + $0x145] sm:$0xff] }
 0x163   : > { %v1188_v31 = vpop.permute.xlu1 %1187 }
 0x164   : > { %1233 = vst.msk [vmem:[#allocation3 + $0x30] sm:$0xff] %vm1229_vm8, %v1188_v31  ;;  %v1190_v37 = vpop.permute.xlu0 %1189 }
 0x165   : > { %1594 = vrot.lane.b32.xlu1 %v1549_v22, %s7032_s25  ;;  %1234 = vst.msk [vmem:[#allocation3 + $0x40] sm:$0xff] %vm1229_vm8, %v1190_v37  ;;  %v1678_v22 = vpack.c.bf16 %v1660_v56, %v1659_v45  ;;  %v1788_v45 = vld [vmem:[#allocation2 + $0x155] sm:$0xff]  ;;  %v1789_v56 = vld [vmem:[#allocation2 + $0x15d] sm:$0xff] }
 0x166   : > { %1596 = vrot.lane.b32.xlu0 %v1550_v32, %s7032_s25  ;;  %v1679_v32 = vpack.c.bf16 %v1662_v15, %v1661_v7  ;;  %v1790_v7 = vld [vmem:[#allocation2 + $0x16d] sm:$0xff]  ;;  %v1791_v15 = vld [vmem:[#allocation2 + $0x175] sm:$0xff] }
 0x167   : > { %v1192_v46 = vpop.permute.xlu1 %1191 }
 0x168   : > { %1235 = vst.msk [vmem:[#allocation3 + $0x50] sm:$0xff] %vm1229_vm8, %v1192_v46  ;;  %v1194_v47 = vpop.permute.xlu0 %1193 }
 0x169   : > { %1598 = vrot.lane.b32.xlu1 %v1551_v35, %s7032_s25  ;;  %1236 = vst.msk [vmem:[#allocation3 + $0x60] sm:$0xff] %vm1229_vm8, %v1194_v47  ;;  %v1680_v35 = vpack.c.bf16 %v1664_v28, %v1663_v30  ;;  %v1792_v30 = vld [vmem:[#allocation2 + $0x185] sm:$0xff]  ;;  %v1793_v28 = vld [vmem:[#allocation2 + $0x18d] sm:$0xff] }
 0x16a   : > { %1697 = vrot.lane.b32.xlu0 %v1665_v39, %s7033_s26  ;;  %v1794_v39 = vpack.c.bf16 %v1763_v34, %v1762_v33  ;;  %v1891_v33 = vld [vmem:[#allocation2 + $0x1e] sm:$0xff]  ;;  %v1892_v34 = vld [vmem:[#allocation2 + $0x26] sm:$0xff] }
 0x16b   : > { %v1196_v54 = vpop.permute.xlu1 %1195 }
 0x16c   : > { %1237 = vst.msk [vmem:[#allocation3 + $0x70] sm:$0xff] %vm1229_vm8, %v1196_v54  ;;  %v1198_v52 = vpop.permute.xlu0 %1197 }
 0x16d   : > { %1699 = vrot.lane.b32.xlu1 %v1666_v42, %s7033_s26  ;;  %1238 = vst.msk [vmem:[#allocation3 + $0x80] sm:$0xff] %vm1229_vm8, %v1198_v52  ;;  %v1795_v42 = vpack.c.bf16 %v1765_v38, %v1764_v36  ;;  %v1893_v36 = vld [vmem:[#allocation2 + $0x36] sm:$0xff]  ;;  %v1894_v38 = vld [vmem:[#allocation2 + $0x3e] sm:$0xff] }
 0x16e   : > { %1701 = vrot.lane.b32.xlu0 %v1667_v48, %s7033_s26  ;;  %v1796_v48 = vpack.c.bf16 %v1767_v41, %v1766_v40  ;;  %v1895_v40 = vld [vmem:[#allocation2 + $0x4e] sm:$0xff]  ;;  %v1896_v41 = vld [vmem:[#allocation2 + $0x56] sm:$0xff] }
 0x16f   : > { %v1200_v58 = vpop.permute.xlu1 %1199 }
 0x170   : > { %1239 = vst.msk [vmem:[#allocation3 + $0x90] sm:$0xff] %vm1229_vm8, %v1200_v58  ;;  %v1202_v63 = vpop.permute.xlu0 %1201 }
 0x171   : > { %1703 = vrot.lane.b32.xlu1 %v1668_v53, %s7033_s26  ;;  %1240 = vst.msk [vmem:[#allocation3 + $0xa0] sm:$0xff] %vm1229_vm8, %v1202_v63  ;;  %v1797_v53 = vpack.c.bf16 %v1769_v44, %v1768_v43  ;;  %v1897_v43 = vld [vmem:[#allocation2 + $0x66] sm:$0xff]  ;;  %v1898_v44 = vld [vmem:[#allocation2 + $0x6e] sm:$0xff] }
 0x172   : > { %1705 = vrot.lane.b32.xlu0 %v1669_v59, %s7033_s26  ;;  %v1798_v59 = vpack.c.bf16 %v1771_v51, %v1770_v49  ;;  %v1899_v49 = vld [vmem:[#allocation2 + $0x7e] sm:$0xff]  ;;  %v1900_v51 = vld [vmem:[#allocation2 + $0x86] sm:$0xff] }
 0x173   : > { %v1204_v4 = vpop.permute.xlu1 %1203 }
 0x174   : > { %1241 = vst.msk [vmem:[#allocation3 + $0xb0] sm:$0xff] %vm1229_vm8, %v1204_v4  ;;  %v1206_v9 = vpop.permute.xlu0 %1205 }
 0x175   : > { %1707 = vrot.lane.b32.xlu1 %v1670_v0, %s7033_s26  ;;  %1242 = vst.msk [vmem:[#allocation3 + $0xc0] sm:$0xff] %vm1229_vm8, %v1206_v9  ;;  %v1799_v0 = vpack.c.bf16 %v1773_v57, %v1772_v55  ;;  %v1901_v55 = vld [vmem:[#allocation2 + $0x96] sm:$0xff]  ;;  %v1902_v57 = vld [vmem:[#allocation2 + $0x9e] sm:$0xff] }
 0x176   : > { %1709 = vrot.lane.b32.xlu0 %v1671_v5, %s7033_s26  ;;  %v1800_v5 = vpack.c.bf16 %v1775_v61, %v1774_v60  ;;  %v1903_v60 = vld [vmem:[#allocation2 + $0xae] sm:$0xff]  ;;  %v1904_v61 = vld [vmem:[#allocation2 + $0xb6] sm:$0xff] }
 0x177   : > { %v1208_v13 = vpop.permute.xlu1 %1207 }
 0x178   : > { %1243 = vst.msk [vmem:[#allocation3 + $0xd0] sm:$0xff] %vm1229_vm8, %v1208_v13  ;;  %v1210_v19 = vpop.permute.xlu0 %1209 }
 0x179   : > { %1711 = vrot.lane.b32.xlu1 %v1672_v10, %s7033_s26  ;;  %1244 = vst.msk [vmem:[#allocation3 + $0xe0] sm:$0xff] %vm1229_vm8, %v1210_v19  ;;  %v1801_v10 = vpack.c.bf16 %v1777_v2, %v1776_v1  ;;  %v1905_v1 = vld [vmem:[#allocation2 + $0xc6] sm:$0xff]  ;;  %v1906_v2 = vld [vmem:[#allocation2 + $0xce] sm:$0xff] }
 0x17a   : > { %1713 = vrot.lane.b32.xlu0 %v1673_v14, %s7033_s26  ;;  %v1802_v14 = vpack.c.bf16 %v1779_v8, %v1778_v6  ;;  %v1907_v6 = vld [vmem:[#allocation2 + $0xde] sm:$0xff]  ;;  %v1908_v8 = vld [vmem:[#allocation2 + $0xe6] sm:$0xff] }
 0x17b   : > { %v1212_v24 = vpop.permute.xlu1 %1211 }
 0x17c   : > { %1245 = vst.msk [vmem:[#allocation3 + $0xf0] sm:$0xff] %vm1229_vm8, %v1212_v24  ;;  %v1311_v29 = vpop.permute.xlu0 %1310 }
 0x17d   : > { %1715 = vrot.lane.b32.xlu1 %v1674_v20, %s7033_s26  ;;  %1359 = vst.msk [vmem:[#allocation3] sm:$0xff] %vm1358_vm9, %v1311_v29  ;;  %v1803_v20 = vpack.c.bf16 %v1781_v12, %v1780_v11  ;;  %v1909_v11 = vld [vmem:[#allocation2 + $0xf6] sm:$0xff]  ;;  %v1910_v12 = vld [vmem:[#allocation2 + $0xfe] sm:$0xff] }
 0x17e   : > { %1717 = vrot.lane.b32.xlu0 %v1675_v25, %s7033_s26  ;;  %v1804_v25 = vpack.c.bf16 %v1783_v18, %v1782_v17  ;;  %v1911_v17 = vld [vmem:[#allocation2 + $0x10e] sm:$0xff]  ;;  %v1912_v18 = vld [vmem:[#allocation2 + $0x116] sm:$0xff] }
 0x17f   : > { %v1313_v62 = vpop.permute.xlu1 %1312 }
 0x180   : > { %1360 = vst.msk [vmem:[#allocation3 + $0x10] sm:$0xff] %vm1358_vm9, %v1313_v62  ;;  %v1315_v16 = vpop.permute.xlu0 %1314 }
 0x181   : > { %1719 = vrot.lane.b32.xlu1 %v1676_v50, %s7033_s26  ;;  %1361 = vst.msk [vmem:[#allocation3 + $0x20] sm:$0xff] %vm1358_vm9, %v1315_v16  ;;  %v1805_v50 = vpack.c.bf16 %v1785_v23, %v1784_v21  ;;  %v1913_v21 = vld [vmem:[#allocation2 + $0x126] sm:$0xff]  ;;  %v1914_v23 = vld [vmem:[#allocation2 + $0x12e] sm:$0xff] }
 0x182   : > { %1721 = vrot.lane.b32.xlu0 %v1677_v3, %s7033_s26  ;;  %v1806_v3 = vpack.c.bf16 %v1787_v27, %v1786_v26  ;;  %v1915_v26 = vld [vmem:[#allocation2 + $0x13e] sm:$0xff]  ;;  %v1916_v27 = vld [vmem:[#allocation2 + $0x146] sm:$0xff] }
 0x183   : > { %v1317_v31 = vpop.permute.xlu1 %1316 }
 0x184   : > { %1362 = vst.msk [vmem:[#allocation3 + $0x30] sm:$0xff] %vm1358_vm9, %v1317_v31  ;;  %v1319_v37 = vpop.permute.xlu0 %1318 }
 0x185   : > { %1723 = vrot.lane.b32.xlu1 %v1678_v22, %s7033_s26  ;;  %1363 = vst.msk [vmem:[#allocation3 + $0x40] sm:$0xff] %vm1358_vm9, %v1319_v37  ;;  %v1807_v22 = vpack.c.bf16 %v1789_v56, %v1788_v45  ;;  %v1917_v45 = vld [vmem:[#allocation2 + $0x156] sm:$0xff]  ;;  %v1918_v56 = vld [vmem:[#allocation2 + $0x15e] sm:$0xff] }
 0x186   : > { %1725 = vrot.lane.b32.xlu0 %v1679_v32, %s7033_s26  ;;  %v1808_v32 = vpack.c.bf16 %v1791_v15, %v1790_v7  ;;  %v1919_v7 = vld [vmem:[#allocation2 + $0x16e] sm:$0xff]  ;;  %v1920_v15 = vld [vmem:[#allocation2 + $0x176] sm:$0xff] }
 0x187   : > { %v1321_v46 = vpop.permute.xlu1 %1320 }
 0x188   : > { %1364 = vst.msk [vmem:[#allocation3 + $0x50] sm:$0xff] %vm1358_vm9, %v1321_v46  ;;  %v1323_v47 = vpop.permute.xlu0 %1322 }
 0x189   : > { %1727 = vrot.lane.b32.xlu1 %v1680_v35, %s7033_s26  ;;  %1365 = vst.msk [vmem:[#allocation3 + $0x60] sm:$0xff] %vm1358_vm9, %v1323_v47  ;;  %v1809_v35 = vpack.c.bf16 %v1793_v28, %v1792_v30  ;;  %v1921_v30 = vld [vmem:[#allocation2 + $0x186] sm:$0xff]  ;;  %v1922_v28 = vld [vmem:[#allocation2 + $0x18e] sm:$0xff] }
 0x18a   : > { %1826 = vrot.lane.b32.xlu0 %v1794_v39, %s7034_s27  ;;  %v1923_v39 = vpack.c.bf16 %v1892_v34, %v1891_v33  ;;  %v2021_v33 = vld [vmem:[#allocation2 + $0x30] sm:$0xff]  ;;  %v2022_v34 = vld [vmem:[#allocation2 + $0x38] sm:$0xff] }
 0x18b   : > { %v1325_v54 = vpop.permute.xlu1 %1324 }
 0x18c   : > { %1366 = vst.msk [vmem:[#allocation3 + $0x70] sm:$0xff] %vm1358_vm9, %v1325_v54  ;;  %v1327_v52 = vpop.permute.xlu0 %1326 }
 0x18d   : > { %1828 = vrot.lane.b32.xlu1 %v1795_v42, %s7034_s27  ;;  %1367 = vst.msk [vmem:[#allocation3 + $0x80] sm:$0xff] %vm1358_vm9, %v1327_v52  ;;  %v1924_v42 = vpack.c.bf16 %v1894_v38, %v1893_v36  ;;  %v2023_v36 = vld [vmem:[#allocation2 + $0x48] sm:$0xff]  ;;  %v2024_v38 = vld [vmem:[#allocation2 + $0x50] sm:$0xff] }
 0x18e   : > { %1830 = vrot.lane.b32.xlu0 %v1796_v48, %s7034_s27  ;;  %v1925_v48 = vpack.c.bf16 %v1896_v41, %v1895_v40  ;;  %v2025_v40 = vld [vmem:[#allocation2 + $0x60] sm:$0xff]  ;;  %v2026_v41 = vld [vmem:[#allocation2 + $0x68] sm:$0xff] }
 0x18f   : > { %v1329_v58 = vpop.permute.xlu1 %1328 }
 0x190   : > { %1368 = vst.msk [vmem:[#allocation3 + $0x90] sm:$0xff] %vm1358_vm9, %v1329_v58  ;;  %v1331_v63 = vpop.permute.xlu0 %1330 }
 0x191   : > { %1832 = vrot.lane.b32.xlu1 %v1797_v53, %s7034_s27  ;;  %1369 = vst.msk [vmem:[#allocation3 + $0xa0] sm:$0xff] %vm1358_vm9, %v1331_v63  ;;  %v1926_v53 = vpack.c.bf16 %v1898_v44, %v1897_v43  ;;  %v2027_v43 = vld [vmem:[#allocation2 + $0x78] sm:$0xff]  ;;  %v2028_v44 = vld [vmem:[#allocation2 + $0x80] sm:$0xff] }
 0x192   : > { %1834 = vrot.lane.b32.xlu0 %v1798_v59, %s7034_s27  ;;  %v1927_v59 = vpack.c.bf16 %v1900_v51, %v1899_v49  ;;  %v2029_v49 = vld [vmem:[#allocation2 + $0x90] sm:$0xff]  ;;  %v2030_v51 = vld [vmem:[#allocation2 + $0x98] sm:$0xff] }
 0x193   : > { %v1333_v4 = vpop.permute.xlu1 %1332 }
 0x194   : > { %1370 = vst.msk [vmem:[#allocation3 + $0xb0] sm:$0xff] %vm1358_vm9, %v1333_v4  ;;  %v1335_v9 = vpop.permute.xlu0 %1334 }
 0x195   : > { %1836 = vrot.lane.b32.xlu1 %v1799_v0, %s7034_s27  ;;  %1371 = vst.msk [vmem:[#allocation3 + $0xc0] sm:$0xff] %vm1358_vm9, %v1335_v9  ;;  %v1928_v0 = vpack.c.bf16 %v1902_v57, %v1901_v55  ;;  %v2031_v55 = vld [vmem:[#allocation2 + $0xa8] sm:$0xff]  ;;  %v2032_v57 = vld [vmem:[#allocation2 + $0xb0] sm:$0xff] }
 0x196   : > { %1838 = vrot.lane.b32.xlu0 %v1800_v5, %s7034_s27  ;;  %v1929_v5 = vpack.c.bf16 %v1904_v61, %v1903_v60  ;;  %v2033_v60 = vld [vmem:[#allocation2 + $0xc0] sm:$0xff]  ;;  %v2034_v61 = vld [vmem:[#allocation2 + $0xc8] sm:$0xff] }
 0x197   : > { %v1337_v13 = vpop.permute.xlu1 %1336 }
 0x198   : > { %1372 = vst.msk [vmem:[#allocation3 + $0xd0] sm:$0xff] %vm1358_vm9, %v1337_v13  ;;  %v1339_v19 = vpop.permute.xlu0 %1338 }
 0x199   : > { %1840 = vrot.lane.b32.xlu1 %v1801_v10, %s7034_s27  ;;  %1373 = vst.msk [vmem:[#allocation3 + $0xe0] sm:$0xff] %vm1358_vm9, %v1339_v19  ;;  %v1930_v10 = vpack.c.bf16 %v1906_v2, %v1905_v1  ;;  %v2035_v1 = vld [vmem:[#allocation2 + $0xd8] sm:$0xff]  ;;  %v2036_v2 = vld [vmem:[#allocation2 + $0xe0] sm:$0xff] }
 0x19a   : > { %1842 = vrot.lane.b32.xlu0 %v1802_v14, %s7034_s27  ;;  %v1931_v14 = vpack.c.bf16 %v1908_v8, %v1907_v6  ;;  %v2037_v6 = vld [vmem:[#allocation2 + $0xf0] sm:$0xff]  ;;  %v2038_v8 = vld [vmem:[#allocation2 + $0xf8] sm:$0xff] }
 0x19b   : > { %v1341_v24 = vpop.permute.xlu1 %1340 }
 0x19c   : > { %1374 = vst.msk [vmem:[#allocation3 + $0xf0] sm:$0xff] %vm1358_vm9, %v1341_v24  ;;  %v1440_v29 = vpop.permute.xlu0 %1439 }
 0x19d   : > { %1844 = vrot.lane.b32.xlu1 %v1803_v20, %s7034_s27  ;;  %1488 = vst.msk [vmem:[#allocation3] sm:$0xff] %vm1487_vm10, %v1440_v29  ;;  %v1932_v20 = vpack.c.bf16 %v1910_v12, %v1909_v11  ;;  %v2039_v11 = vld [vmem:[#allocation2 + $0x108] sm:$0xff]  ;;  %v2040_v12 = vld [vmem:[#allocation2 + $0x110] sm:$0xff] }
 0x19e   : > { %1846 = vrot.lane.b32.xlu0 %v1804_v25, %s7034_s27  ;;  %v1933_v25 = vpack.c.bf16 %v1912_v18, %v1911_v17  ;;  %v2041_v17 = vld [vmem:[#allocation2 + $0x120] sm:$0xff]  ;;  %v2042_v18 = vld [vmem:[#allocation2 + $0x128] sm:$0xff] }
 0x19f   : > { %v1442_v62 = vpop.permute.xlu1 %1441 }
 0x1a0   : > { %1489 = vst.msk [vmem:[#allocation3 + $0x10] sm:$0xff] %vm1487_vm10, %v1442_v62  ;;  %v1444_v16 = vpop.permute.xlu0 %1443 }
 0x1a1   : > { %1848 = vrot.lane.b32.xlu1 %v1805_v50, %s7034_s27  ;;  %1490 = vst.msk [vmem:[#allocation3 + $0x20] sm:$0xff] %vm1487_vm10, %v1444_v16  ;;  %v1934_v50 = vpack.c.bf16 %v1914_v23, %v1913_v21  ;;  %v2043_v21 = vld [vmem:[#allocation2 + $0x138] sm:$0xff]  ;;  %v2044_v23 = vld [vmem:[#allocation2 + $0x140] sm:$0xff] }
 0x1a2   : > { %1850 = vrot.lane.b32.xlu0 %v1806_v3, %s7034_s27  ;;  %v1935_v3 = vpack.c.bf16 %v1916_v27, %v1915_v26  ;;  %v2045_v26 = vld [vmem:[#allocation2 + $0x150] sm:$0xff]  ;;  %v2046_v27 = vld [vmem:[#allocation2 + $0x158] sm:$0xff] }
 0x1a3   : > { %v1446_v31 = vpop.permute.xlu1 %1445 }
 0x1a4   : > { %1491 = vst.msk [vmem:[#allocation3 + $0x30] sm:$0xff] %vm1487_vm10, %v1446_v31  ;;  %v1448_v37 = vpop.permute.xlu0 %1447 }
 0x1a5   : > { %1852 = vrot.lane.b32.xlu1 %v1807_v22, %s7034_s27  ;;  %1492 = vst.msk [vmem:[#allocation3 + $0x40] sm:$0xff] %vm1487_vm10, %v1448_v37  ;;  %v1936_v22 = vpack.c.bf16 %v1918_v56, %v1917_v45  ;;  %v2047_v45 = vld [vmem:[#allocation2 + $0x168] sm:$0xff]  ;;  %v2048_v56 = vld [vmem:[#allocation2 + $0x170] sm:$0xff] }
 0x1a6   : > { %1854 = vrot.lane.b32.xlu0 %v1808_v32, %s7034_s27  ;;  %v1937_v32 = vpack.c.bf16 %v1920_v15, %v1919_v7  ;;  %v2049_v7 = vld [vmem:[#allocation2 + $0x180] sm:$0xff]  ;;  %v2050_v15 = vld [vmem:[#allocation2 + $0x188] sm:$0xff] }
 0x1a7   : > { %v1450_v46 = vpop.permute.xlu1 %1449 }
 0x1a8   : > { %1493 = vst.msk [vmem:[#allocation3 + $0x50] sm:$0xff] %vm1487_vm10, %v1450_v46  ;;  %v1452_v47 = vpop.permute.xlu0 %1451 }
 0x1a9   : > { %1856 = vrot.lane.b32.xlu1 %v1809_v35, %s7034_s27  ;;  %1494 = vst.msk [vmem:[#allocation3 + $0x60] sm:$0xff] %vm1487_vm10, %v1452_v47  ;;  %v1938_v35 = vpack.c.bf16 %v1922_v28, %v1921_v30  ;;  %v2051_v30 = vld [vmem:[#allocation2 + $0x198] sm:$0xff]  ;;  %v2052_v28 = vld [vmem:[#allocation2 + $0x1a0] sm:$0xff] }
 0x1aa   : > { %1955 = vrot.lane.b32.xlu0 %v1923_v39, %s7035_s28  ;;  %v2053_v39 = vpack.c.bf16 %v2022_v34, %v2021_v33  ;;  %v2150_v33 = vld [vmem:[#allocation2 + $0x31] sm:$0xff]  ;;  %v2151_v34 = vld [vmem:[#allocation2 + $0x39] sm:$0xff] }
 0x1ab   : > { %v1454_v54 = vpop.permute.xlu1 %1453 }
 0x1ac   : > { %1495 = vst.msk [vmem:[#allocation3 + $0x70] sm:$0xff] %vm1487_vm10, %v1454_v54  ;;  %v1456_v52 = vpop.permute.xlu0 %1455 }
 0x1ad   : > { %1957 = vrot.lane.b32.xlu1 %v1924_v42, %s7035_s28  ;;  %1496 = vst.msk [vmem:[#allocation3 + $0x80] sm:$0xff] %vm1487_vm10, %v1456_v52  ;;  %v2054_v42 = vpack.c.bf16 %v2024_v38, %v2023_v36  ;;  %v2152_v36 = vld [vmem:[#allocation2 + $0x49] sm:$0xff]  ;;  %v2153_v38 = vld [vmem:[#allocation2 + $0x51] sm:$0xff] }
 0x1ae   : > { %1959 = vrot.lane.b32.xlu0 %v1925_v48, %s7035_s28  ;;  %v2055_v48 = vpack.c.bf16 %v2026_v41, %v2025_v40  ;;  %v2154_v40 = vld [vmem:[#allocation2 + $0x61] sm:$0xff]  ;;  %v2155_v41 = vld [vmem:[#allocation2 + $0x69] sm:$0xff] }
 0x1af   : > { %v1458_v58 = vpop.permute.xlu1 %1457 }
 0x1b0   : > { %1497 = vst.msk [vmem:[#allocation3 + $0x90] sm:$0xff] %vm1487_vm10, %v1458_v58  ;;  %v1460_v63 = vpop.permute.xlu0 %1459 }
 0x1b1   : > { %1961 = vrot.lane.b32.xlu1 %v1926_v53, %s7035_s28  ;;  %1498 = vst.msk [vmem:[#allocation3 + $0xa0] sm:$0xff] %vm1487_vm10, %v1460_v63  ;;  %v2056_v53 = vpack.c.bf16 %v2028_v44, %v2027_v43  ;;  %v2156_v43 = vld [vmem:[#allocation2 + $0x79] sm:$0xff]  ;;  %v2157_v44 = vld [vmem:[#allocation2 + $0x81] sm:$0xff] }
 0x1b2   : > { %1963 = vrot.lane.b32.xlu0 %v1927_v59, %s7035_s28  ;;  %v2057_v59 = vpack.c.bf16 %v2030_v51, %v2029_v49  ;;  %v2158_v49 = vld [vmem:[#allocation2 + $0x91] sm:$0xff]  ;;  %v2159_v51 = vld [vmem:[#allocation2 + $0x99] sm:$0xff] }
 0x1b3   : > { %v1462_v4 = vpop.permute.xlu1 %1461 }
 0x1b4   : > { %1499 = vst.msk [vmem:[#allocation3 + $0xb0] sm:$0xff] %vm1487_vm10, %v1462_v4  ;;  %v1464_v9 = vpop.permute.xlu0 %1463 }
 0x1b5   : > { %1965 = vrot.lane.b32.xlu1 %v1928_v0, %s7035_s28  ;;  %1500 = vst.msk [vmem:[#allocation3 + $0xc0] sm:$0xff] %vm1487_vm10, %v1464_v9  ;;  %v2058_v0 = vpack.c.bf16 %v2032_v57, %v2031_v55  ;;  %v2160_v55 = vld [vmem:[#allocation2 + $0xa9] sm:$0xff]  ;;  %v2161_v57 = vld [vmem:[#allocation2 + $0xb1] sm:$0xff] }
 0x1b6   : > { %1967 = vrot.lane.b32.xlu0 %v1929_v5, %s7035_s28  ;;  %v2059_v5 = vpack.c.bf16 %v2034_v61, %v2033_v60  ;;  %v2162_v60 = vld [vmem:[#allocation2 + $0xc1] sm:$0xff]  ;;  %v2163_v61 = vld [vmem:[#allocation2 + $0xc9] sm:$0xff] }
 0x1b7   : > { %v1466_v13 = vpop.permute.xlu1 %1465 }
 0x1b8   : > { %1501 = vst.msk [vmem:[#allocation3 + $0xd0] sm:$0xff] %vm1487_vm10, %v1466_v13  ;;  %v1468_v19 = vpop.permute.xlu0 %1467 }
 0x1b9   : > { %1969 = vrot.lane.b32.xlu1 %v1930_v10, %s7035_s28  ;;  %1502 = vst.msk [vmem:[#allocation3 + $0xe0] sm:$0xff] %vm1487_vm10, %v1468_v19  ;;  %v2060_v10 = vpack.c.bf16 %v2036_v2, %v2035_v1  ;;  %v2164_v1 = vld [vmem:[#allocation2 + $0xd9] sm:$0xff]  ;;  %v2165_v2 = vld [vmem:[#allocation2 + $0xe1] sm:$0xff] }
 0x1ba   : > { %1971 = vrot.lane.b32.xlu0 %v1931_v14, %s7035_s28  ;;  %v2061_v14 = vpack.c.bf16 %v2038_v8, %v2037_v6  ;;  %v2166_v6 = vld [vmem:[#allocation2 + $0xf1] sm:$0xff]  ;;  %v2167_v8 = vld [vmem:[#allocation2 + $0xf9] sm:$0xff] }
 0x1bb   : > { %v1470_v24 = vpop.permute.xlu1 %1469 }
 0x1bc   : > { %1503 = vst.msk [vmem:[#allocation3 + $0xf0] sm:$0xff] %vm1487_vm10, %v1470_v24  ;;  %v1569_v29 = vpop.permute.xlu0 %1568 }
 0x1bd   : > { %1973 = vrot.lane.b32.xlu1 %v1932_v20, %s7035_s28  ;;  %1617 = vst.msk [vmem:[#allocation3] sm:$0xff] %vm1616_vm11, %v1569_v29  ;;  %v2062_v20 = vpack.c.bf16 %v2040_v12, %v2039_v11  ;;  %v2168_v11 = vld [vmem:[#allocation2 + $0x109] sm:$0xff]  ;;  %v2169_v12 = vld [vmem:[#allocation2 + $0x111] sm:$0xff] }
 0x1be   : > { %1975 = vrot.lane.b32.xlu0 %v1933_v25, %s7035_s28  ;;  %v2063_v25 = vpack.c.bf16 %v2042_v18, %v2041_v17  ;;  %v2170_v17 = vld [vmem:[#allocation2 + $0x121] sm:$0xff]  ;;  %v2171_v18 = vld [vmem:[#allocation2 + $0x129] sm:$0xff] }
 0x1bf   : > { %v1571_v62 = vpop.permute.xlu1 %1570 }
 0x1c0   : > { %1618 = vst.msk [vmem:[#allocation3 + $0x10] sm:$0xff] %vm1616_vm11, %v1571_v62  ;;  %v1573_v16 = vpop.permute.xlu0 %1572 }
 0x1c1   : > { %1977 = vrot.lane.b32.xlu1 %v1934_v50, %s7035_s28  ;;  %1619 = vst.msk [vmem:[#allocation3 + $0x20] sm:$0xff] %vm1616_vm11, %v1573_v16  ;;  %v2064_v50 = vpack.c.bf16 %v2044_v23, %v2043_v21  ;;  %v2172_v21 = vld [vmem:[#allocation2 + $0x139] sm:$0xff]  ;;  %v2173_v23 = vld [vmem:[#allocation2 + $0x141] sm:$0xff] }
 0x1c2   : > { %1979 = vrot.lane.b32.xlu0 %v1935_v3, %s7035_s28  ;;  %v2065_v3 = vpack.c.bf16 %v2046_v27, %v2045_v26  ;;  %v2174_v26 = vld [vmem:[#allocation2 + $0x151] sm:$0xff]  ;;  %v2175_v27 = vld [vmem:[#allocation2 + $0x159] sm:$0xff] }
 0x1c3   : > { %v1575_v31 = vpop.permute.xlu1 %1574 }
 0x1c4   : > { %1620 = vst.msk [vmem:[#allocation3 + $0x30] sm:$0xff] %vm1616_vm11, %v1575_v31  ;;  %v1577_v37 = vpop.permute.xlu0 %1576 }
 0x1c5   : > { %1981 = vrot.lane.b32.xlu1 %v1936_v22, %s7035_s28  ;;  %1621 = vst.msk [vmem:[#allocation3 + $0x40] sm:$0xff] %vm1616_vm11, %v1577_v37  ;;  %v2066_v22 = vpack.c.bf16 %v2048_v56, %v2047_v45  ;;  %v2176_v45 = vld [vmem:[#allocation2 + $0x169] sm:$0xff]  ;;  %v2177_v56 = vld [vmem:[#allocation2 + $0x171] sm:$0xff] }
 0x1c6   : > { %1983 = vrot.lane.b32.xlu0 %v1937_v32, %s7035_s28  ;;  %v2067_v32 = vpack.c.bf16 %v2050_v15, %v2049_v7  ;;  %v2178_v7 = vld [vmem:[#allocation2 + $0x181] sm:$0xff]  ;;  %v2179_v15 = vld [vmem:[#allocation2 + $0x189] sm:$0xff] }
 0x1c7   : > { %v1579_v46 = vpop.permute.xlu1 %1578 }
 0x1c8   : > { %1622 = vst.msk [vmem:[#allocation3 + $0x50] sm:$0xff] %vm1616_vm11, %v1579_v46  ;;  %v1581_v47 = vpop.permute.xlu0 %1580 }
 0x1c9   : > { %1985 = vrot.lane.b32.xlu1 %v1938_v35, %s7035_s28  ;;  %1623 = vst.msk [vmem:[#allocation3 + $0x60] sm:$0xff] %vm1616_vm11, %v1581_v47  ;;  %v2068_v35 = vpack.c.bf16 %v2052_v28, %v2051_v30  ;;  %v2180_v30 = vld [vmem:[#allocation2 + $0x199] sm:$0xff]  ;;  %v2181_v28 = vld [vmem:[#allocation2 + $0x1a1] sm:$0xff] }
 0x1ca   : > { %2085 = vrot.lane.b32.xlu0 %v2053_v39, %s7036_s29  ;;  %v2182_v39 = vpack.c.bf16 %v2151_v34, %v2150_v33  ;;  %v2279_v33 = vld [vmem:[#allocation2 + $0x32] sm:$0xff]  ;;  %v2280_v34 = vld [vmem:[#allocation2 + $0x3a] sm:$0xff] }
 0x1cb   : > { %v1583_v54 = vpop.permute.xlu1 %1582 }
 0x1cc   : > { %1624 = vst.msk [vmem:[#allocation3 + $0x70] sm:$0xff] %vm1616_vm11, %v1583_v54  ;;  %v1585_v52 = vpop.permute.xlu0 %1584 }
 0x1cd   : > { %2087 = vrot.lane.b32.xlu1 %v2054_v42, %s7036_s29  ;;  %1625 = vst.msk [vmem:[#allocation3 + $0x80] sm:$0xff] %vm1616_vm11, %v1585_v52  ;;  %v2183_v42 = vpack.c.bf16 %v2153_v38, %v2152_v36  ;;  %v2281_v36 = vld [vmem:[#allocation2 + $0x4a] sm:$0xff]  ;;  %v2282_v38 = vld [vmem:[#allocation2 + $0x52] sm:$0xff] }
 0x1ce   : > { %2089 = vrot.lane.b32.xlu0 %v2055_v48, %s7036_s29  ;;  %v2184_v48 = vpack.c.bf16 %v2155_v41, %v2154_v40  ;;  %v2283_v40 = vld [vmem:[#allocation2 + $0x62] sm:$0xff]  ;;  %v2284_v41 = vld [vmem:[#allocation2 + $0x6a] sm:$0xff] }
 0x1cf   : > { %v1587_v58 = vpop.permute.xlu1 %1586 }
 0x1d0   : > { %1626 = vst.msk [vmem:[#allocation3 + $0x90] sm:$0xff] %vm1616_vm11, %v1587_v58  ;;  %v1589_v63 = vpop.permute.xlu0 %1588 }
 0x1d1   : > { %2091 = vrot.lane.b32.xlu1 %v2056_v53, %s7036_s29  ;;  %1627 = vst.msk [vmem:[#allocation3 + $0xa0] sm:$0xff] %vm1616_vm11, %v1589_v63  ;;  %v2185_v53 = vpack.c.bf16 %v2157_v44, %v2156_v43  ;;  %v2285_v43 = vld [vmem:[#allocation2 + $0x7a] sm:$0xff]  ;;  %v2286_v44 = vld [vmem:[#allocation2 + $0x82] sm:$0xff] }
 0x1d2   : > { %2093 = vrot.lane.b32.xlu0 %v2057_v59, %s7036_s29  ;;  %v2186_v59 = vpack.c.bf16 %v2159_v51, %v2158_v49  ;;  %v2287_v49 = vld [vmem:[#allocation2 + $0x92] sm:$0xff]  ;;  %v2288_v51 = vld [vmem:[#allocation2 + $0x9a] sm:$0xff] }
 0x1d3   : > { %v1591_v4 = vpop.permute.xlu1 %1590 }
 0x1d4   : > { %1628 = vst.msk [vmem:[#allocation3 + $0xb0] sm:$0xff] %vm1616_vm11, %v1591_v4  ;;  %v1593_v9 = vpop.permute.xlu0 %1592 }
 0x1d5   : > { %2095 = vrot.lane.b32.xlu1 %v2058_v0, %s7036_s29  ;;  %1629 = vst.msk [vmem:[#allocation3 + $0xc0] sm:$0xff] %vm1616_vm11, %v1593_v9  ;;  %v2187_v0 = vpack.c.bf16 %v2161_v57, %v2160_v55  ;;  %v2289_v55 = vld [vmem:[#allocation2 + $0xaa] sm:$0xff]  ;;  %v2290_v57 = vld [vmem:[#allocation2 + $0xb2] sm:$0xff] }
 0x1d6   : > { %2097 = vrot.lane.b32.xlu0 %v2059_v5, %s7036_s29  ;;  %v2188_v5 = vpack.c.bf16 %v2163_v61, %v2162_v60  ;;  %v2291_v60 = vld [vmem:[#allocation2 + $0xc2] sm:$0xff]  ;;  %v2292_v61 = vld [vmem:[#allocation2 + $0xca] sm:$0xff] }
 0x1d7   : > { %v1595_v13 = vpop.permute.xlu1 %1594 }
 0x1d8   : > { %1630 = vst.msk [vmem:[#allocation3 + $0xd0] sm:$0xff] %vm1616_vm11, %v1595_v13  ;;  %v1597_v19 = vpop.permute.xlu0 %1596 }
 0x1d9   : > { %2099 = vrot.lane.b32.xlu1 %v2060_v10, %s7036_s29  ;;  %1631 = vst.msk [vmem:[#allocation3 + $0xe0] sm:$0xff] %vm1616_vm11, %v1597_v19  ;;  %v2189_v10 = vpack.c.bf16 %v2165_v2, %v2164_v1  ;;  %v2293_v1 = vld [vmem:[#allocation2 + $0xda] sm:$0xff]  ;;  %v2294_v2 = vld [vmem:[#allocation2 + $0xe2] sm:$0xff] }
 0x1da   : > { %2101 = vrot.lane.b32.xlu0 %v2061_v14, %s7036_s29  ;;  %v2190_v14 = vpack.c.bf16 %v2167_v8, %v2166_v6  ;;  %v2295_v6 = vld [vmem:[#allocation2 + $0xf2] sm:$0xff]  ;;  %v2296_v8 = vld [vmem:[#allocation2 + $0xfa] sm:$0xff] }
 0x1db   : > { %v1599_v24 = vpop.permute.xlu1 %1598 }
 0x1dc   : > { %1632 = vst.msk [vmem:[#allocation3 + $0xf0] sm:$0xff] %vm1616_vm11, %v1599_v24  ;;  %v1698_v29 = vpop.permute.xlu0 %1697 }
 0x1dd   : > { %2103 = vrot.lane.b32.xlu1 %v2062_v20, %s7036_s29  ;;  %1746 = vst.msk [vmem:[#allocation3] sm:$0xff] %vm1745_vm12, %v1698_v29  ;;  %v2191_v20 = vpack.c.bf16 %v2169_v12, %v2168_v11  ;;  %v2297_v11 = vld [vmem:[#allocation2 + $0x10a] sm:$0xff]  ;;  %v2298_v12 = vld [vmem:[#allocation2 + $0x112] sm:$0xff] }
 0x1de   : > { %2105 = vrot.lane.b32.xlu0 %v2063_v25, %s7036_s29  ;;  %v2192_v25 = vpack.c.bf16 %v2171_v18, %v2170_v17  ;;  %v2299_v17 = vld [vmem:[#allocation2 + $0x122] sm:$0xff]  ;;  %v2300_v18 = vld [vmem:[#allocation2 + $0x12a] sm:$0xff] }
 0x1df   : > { %v1700_v62 = vpop.permute.xlu1 %1699 }
 0x1e0   : > { %1747 = vst.msk [vmem:[#allocation3 + $0x10] sm:$0xff] %vm1745_vm12, %v1700_v62  ;;  %v1702_v16 = vpop.permute.xlu0 %1701 }
 0x1e1   : > { %2107 = vrot.lane.b32.xlu1 %v2064_v50, %s7036_s29  ;;  %1748 = vst.msk [vmem:[#allocation3 + $0x20] sm:$0xff] %vm1745_vm12, %v1702_v16  ;;  %v2193_v50 = vpack.c.bf16 %v2173_v23, %v2172_v21  ;;  %v2301_v21 = vld [vmem:[#allocation2 + $0x13a] sm:$0xff]  ;;  %v2302_v23 = vld [vmem:[#allocation2 + $0x142] sm:$0xff] }
 0x1e2   : > { %2109 = vrot.lane.b32.xlu0 %v2065_v3, %s7036_s29  ;;  %v2194_v3 = vpack.c.bf16 %v2175_v27, %v2174_v26  ;;  %v2303_v26 = vld [vmem:[#allocation2 + $0x152] sm:$0xff]  ;;  %v2304_v27 = vld [vmem:[#allocation2 + $0x15a] sm:$0xff] }
 0x1e3   : > { %v1704_v31 = vpop.permute.xlu1 %1703 }
 0x1e4   : > { %1749 = vst.msk [vmem:[#allocation3 + $0x30] sm:$0xff] %vm1745_vm12, %v1704_v31  ;;  %v1706_v37 = vpop.permute.xlu0 %1705 }
 0x1e5   : > { %2111 = vrot.lane.b32.xlu1 %v2066_v22, %s7036_s29  ;;  %1750 = vst.msk [vmem:[#allocation3 + $0x40] sm:$0xff] %vm1745_vm12, %v1706_v37  ;;  %v2195_v22 = vpack.c.bf16 %v2177_v56, %v2176_v45  ;;  %v2305_v45 = vld [vmem:[#allocation2 + $0x16a] sm:$0xff]  ;;  %v2306_v56 = vld [vmem:[#allocation2 + $0x172] sm:$0xff] }
 0x1e6   : > { %2113 = vrot.lane.b32.xlu0 %v2067_v32, %s7036_s29  ;;  %v2196_v32 = vpack.c.bf16 %v2179_v15, %v2178_v7  ;;  %v2307_v7 = vld [vmem:[#allocation2 + $0x182] sm:$0xff]  ;;  %v2308_v15 = vld [vmem:[#allocation2 + $0x18a] sm:$0xff] }
 0x1e7   : > { %v1708_v46 = vpop.permute.xlu1 %1707 }
 0x1e8   : > { %1751 = vst.msk [vmem:[#allocation3 + $0x50] sm:$0xff] %vm1745_vm12, %v1708_v46  ;;  %v1710_v47 = vpop.permute.xlu0 %1709 }
 0x1e9   : > { %2115 = vrot.lane.b32.xlu1 %v2068_v35, %s7036_s29  ;;  %1752 = vst.msk [vmem:[#allocation3 + $0x60] sm:$0xff] %vm1745_vm12, %v1710_v47  ;;  %v2197_v35 = vpack.c.bf16 %v2181_v28, %v2180_v30  ;;  %v2309_v30 = vld [vmem:[#allocation2 + $0x19a] sm:$0xff]  ;;  %v2310_v28 = vld [vmem:[#allocation2 + $0x1a2] sm:$0xff] }
 0x1ea   : > { %2214 = vrot.lane.b32.xlu0 %v2182_v39, %s7037_s30  ;;  %v2311_v39 = vpack.c.bf16 %v2280_v34, %v2279_v33  ;;  %v2408_v33 = vld [vmem:[#allocation2 + $0x33] sm:$0xff]  ;;  %v2409_v34 = vld [vmem:[#allocation2 + $0x3b] sm:$0xff] }
 0x1eb   : > { %v1712_v54 = vpop.permute.xlu1 %1711 }
 0x1ec   : > { %1753 = vst.msk [vmem:[#allocation3 + $0x70] sm:$0xff] %vm1745_vm12, %v1712_v54  ;;  %v1714_v52 = vpop.permute.xlu0 %1713 }
 0x1ed   : > { %2216 = vrot.lane.b32.xlu1 %v2183_v42, %s7037_s30  ;;  %1754 = vst.msk [vmem:[#allocation3 + $0x80] sm:$0xff] %vm1745_vm12, %v1714_v52  ;;  %v2312_v42 = vpack.c.bf16 %v2282_v38, %v2281_v36  ;;  %v2410_v36 = vld [vmem:[#allocation2 + $0x4b] sm:$0xff]  ;;  %v2411_v38 = vld [vmem:[#allocation2 + $0x53] sm:$0xff] }
 0x1ee   : > { %2218 = vrot.lane.b32.xlu0 %v2184_v48, %s7037_s30  ;;  %v2313_v48 = vpack.c.bf16 %v2284_v41, %v2283_v40  ;;  %v2412_v40 = vld [vmem:[#allocation2 + $0x63] sm:$0xff]  ;;  %v2413_v41 = vld [vmem:[#allocation2 + $0x6b] sm:$0xff] }
 0x1ef   : > { %v1716_v58 = vpop.permute.xlu1 %1715 }
 0x1f0   : > { %1755 = vst.msk [vmem:[#allocation3 + $0x90] sm:$0xff] %vm1745_vm12, %v1716_v58  ;;  %v1718_v63 = vpop.permute.xlu0 %1717 }
 0x1f1   : > { %2220 = vrot.lane.b32.xlu1 %v2185_v53, %s7037_s30  ;;  %1756 = vst.msk [vmem:[#allocation3 + $0xa0] sm:$0xff] %vm1745_vm12, %v1718_v63  ;;  %v2314_v53 = vpack.c.bf16 %v2286_v44, %v2285_v43  ;;  %v2414_v43 = vld [vmem:[#allocation2 + $0x7b] sm:$0xff]  ;;  %v2415_v44 = vld [vmem:[#allocation2 + $0x83] sm:$0xff] }
 0x1f2   : > { %2222 = vrot.lane.b32.xlu0 %v2186_v59, %s7037_s30  ;;  %v2315_v59 = vpack.c.bf16 %v2288_v51, %v2287_v49  ;;  %v2416_v49 = vld [vmem:[#allocation2 + $0x93] sm:$0xff]  ;;  %v2417_v51 = vld [vmem:[#allocation2 + $0x9b] sm:$0xff] }
 0x1f3   : > { %v1720_v4 = vpop.permute.xlu1 %1719 }
 0x1f4   : > { %1757 = vst.msk [vmem:[#allocation3 + $0xb0] sm:$0xff] %vm1745_vm12, %v1720_v4  ;;  %v1722_v9 = vpop.permute.xlu0 %1721 }
 0x1f5   : > { %2224 = vrot.lane.b32.xlu1 %v2187_v0, %s7037_s30  ;;  %1758 = vst.msk [vmem:[#allocation3 + $0xc0] sm:$0xff] %vm1745_vm12, %v1722_v9  ;;  %v2316_v0 = vpack.c.bf16 %v2290_v57, %v2289_v55  ;;  %v2418_v55 = vld [vmem:[#allocation2 + $0xab] sm:$0xff]  ;;  %v2419_v57 = vld [vmem:[#allocation2 + $0xb3] sm:$0xff] }
 0x1f6   : > { %2226 = vrot.lane.b32.xlu0 %v2188_v5, %s7037_s30  ;;  %v2317_v5 = vpack.c.bf16 %v2292_v61, %v2291_v60  ;;  %v2420_v60 = vld [vmem:[#allocation2 + $0xc3] sm:$0xff]  ;;  %v2421_v61 = vld [vmem:[#allocation2 + $0xcb] sm:$0xff] }
 0x1f7   : > { %v1724_v13 = vpop.permute.xlu1 %1723 }
 0x1f8   : > { %1759 = vst.msk [vmem:[#allocation3 + $0xd0] sm:$0xff] %vm1745_vm12, %v1724_v13  ;;  %v1726_v19 = vpop.permute.xlu0 %1725 }
 0x1f9   : > { %2228 = vrot.lane.b32.xlu1 %v2189_v10, %s7037_s30  ;;  %1760 = vst.msk [vmem:[#allocation3 + $0xe0] sm:$0xff] %vm1745_vm12, %v1726_v19  ;;  %v2318_v10 = vpack.c.bf16 %v2294_v2, %v2293_v1  ;;  %v2422_v1 = vld [vmem:[#allocation2 + $0xdb] sm:$0xff]  ;;  %v2423_v2 = vld [vmem:[#allocation2 + $0xe3] sm:$0xff] }
 0x1fa   : > { %2230 = vrot.lane.b32.xlu0 %v2190_v14, %s7037_s30  ;;  %v2319_v14 = vpack.c.bf16 %v2296_v8, %v2295_v6  ;;  %v2424_v6 = vld [vmem:[#allocation2 + $0xf3] sm:$0xff]  ;;  %v2425_v8 = vld [vmem:[#allocation2 + $0xfb] sm:$0xff] }
 0x1fb   : > { %v1728_v24 = vpop.permute.xlu1 %1727 }
 0x1fc   : > { %1761 = vst.msk [vmem:[#allocation3 + $0xf0] sm:$0xff] %vm1745_vm12, %v1728_v24  ;;  %v1827_v29 = vpop.permute.xlu0 %1826 }
 0x1fd   : > { %2232 = vrot.lane.b32.xlu1 %v2191_v20, %s7037_s30  ;;  %1875 = vst.msk [vmem:[#allocation3] sm:$0xff] %vm1874_vm13, %v1827_v29  ;;  %v2320_v20 = vpack.c.bf16 %v2298_v12, %v2297_v11  ;;  %v2426_v11 = vld [vmem:[#allocation2 + $0x10b] sm:$0xff]  ;;  %v2427_v12 = vld [vmem:[#allocation2 + $0x113] sm:$0xff] }
 0x1fe   : > { %2234 = vrot.lane.b32.xlu0 %v2192_v25, %s7037_s30  ;;  %v2321_v25 = vpack.c.bf16 %v2300_v18, %v2299_v17  ;;  %v2428_v17 = vld [vmem:[#allocation2 + $0x123] sm:$0xff]  ;;  %v2429_v18 = vld [vmem:[#allocation2 + $0x12b] sm:$0xff] }
 0x1ff   : > { %v1829_v62 = vpop.permute.xlu1 %1828 }
 0x200   : > { %1876 = vst.msk [vmem:[#allocation3 + $0x10] sm:$0xff] %vm1874_vm13, %v1829_v62  ;;  %v1831_v16 = vpop.permute.xlu0 %1830 }
 0x201   : > { %2236 = vrot.lane.b32.xlu1 %v2193_v50, %s7037_s30  ;;  %1877 = vst.msk [vmem:[#allocation3 + $0x20] sm:$0xff] %vm1874_vm13, %v1831_v16  ;;  %v2322_v50 = vpack.c.bf16 %v2302_v23, %v2301_v21  ;;  %v2430_v21 = vld [vmem:[#allocation2 + $0x13b] sm:$0xff]  ;;  %v2431_v23 = vld [vmem:[#allocation2 + $0x143] sm:$0xff] }
 0x202   : > { %2238 = vrot.lane.b32.xlu0 %v2194_v3, %s7037_s30  ;;  %v2323_v3 = vpack.c.bf16 %v2304_v27, %v2303_v26  ;;  %v2432_v26 = vld [vmem:[#allocation2 + $0x153] sm:$0xff]  ;;  %v2433_v27 = vld [vmem:[#allocation2 + $0x15b] sm:$0xff] }
 0x203   : > { %v1833_v31 = vpop.permute.xlu1 %1832 }
 0x204   : > { %1878 = vst.msk [vmem:[#allocation3 + $0x30] sm:$0xff] %vm1874_vm13, %v1833_v31  ;;  %v1835_v37 = vpop.permute.xlu0 %1834 }
 0x205   : > { %2240 = vrot.lane.b32.xlu1 %v2195_v22, %s7037_s30  ;;  %1879 = vst.msk [vmem:[#allocation3 + $0x40] sm:$0xff] %vm1874_vm13, %v1835_v37  ;;  %v2324_v22 = vpack.c.bf16 %v2306_v56, %v2305_v45  ;;  %v2434_v45 = vld [vmem:[#allocation2 + $0x16b] sm:$0xff]  ;;  %v2435_v56 = vld [vmem:[#allocation2 + $0x173] sm:$0xff] }
 0x206   : > { %2242 = vrot.lane.b32.xlu0 %v2196_v32, %s7037_s30  ;;  %v2325_v32 = vpack.c.bf16 %v2308_v15, %v2307_v7  ;;  %v2452_v7 = vpack.c.bf16 %v2433_v27, %v2432_v26  ;;  %v176_v15 = vld [vmem:[%s7228_s15 + $0xf8] sm:$0xff] }
 0x207   : > { %v1837_v46 = vpop.permute.xlu1 %1836  ;;  %277 = vst.msk [vmem:[#allocation2 + $0x1bb] sm:$0xff] %vm177_vm0, %v176_v15 }
 0x208   : > { %1880 = vst.msk [vmem:[#allocation3 + $0x50] sm:$0xff] %vm1874_vm13, %v1837_v46  ;;  %v1839_v47 = vpop.permute.xlu0 %1838 }
 0x209   : > { %2244 = vrot.lane.b32.xlu1 %v2197_v35, %s7037_s30  ;;  %1881 = vst.msk [vmem:[#allocation3 + $0x60] sm:$0xff] %vm1874_vm13, %v1839_v47  ;;  %v2326_v35 = vpack.c.bf16 %v2310_v28, %v2309_v30  ;;  %v2453_v28 = vpack.c.bf16 %v2435_v56, %v2434_v45 }
 0x20a   : > { %2343 = vrot.lane.b32.xlu0 %v2311_v39, %s7038_s3  ;;  %v2440_v39 = vpack.c.bf16 %v2409_v34, %v2408_v33 }
 0x20b   : > { %v1841_v54 = vpop.permute.xlu1 %1840 }
 0x20c   : > { %1882 = vst.msk [vmem:[#allocation3 + $0x70] sm:$0xff] %vm1874_vm13, %v1841_v54  ;;  %v1843_v52 = vpop.permute.xlu0 %1842 }
 0x20d   : > { %2345 = vrot.lane.b32.xlu1 %v2312_v42, %s7038_s3  ;;  %1883 = vst.msk [vmem:[#allocation3 + $0x80] sm:$0xff] %vm1874_vm13, %v1843_v52  ;;  %v2441_v42 = vpack.c.bf16 %v2411_v38, %v2410_v36 }
 0x20e   : > { %2347 = vrot.lane.b32.xlu0 %v2313_v48, %s7038_s3  ;;  %v2442_v48 = vpack.c.bf16 %v2413_v41, %v2412_v40 }
 0x20f   : > { %v1845_v58 = vpop.permute.xlu1 %1844 }
 0x210   : > { %1884 = vst.msk [vmem:[#allocation3 + $0x90] sm:$0xff] %vm1874_vm13, %v1845_v58  ;;  %v1847_v63 = vpop.permute.xlu0 %1846 }
 0x211   : > { %2349 = vrot.lane.b32.xlu1 %v2314_v53, %s7038_s3  ;;  %1885 = vst.msk [vmem:[#allocation3 + $0xa0] sm:$0xff] %vm1874_vm13, %v1847_v63  ;;  %v2443_v53 = vpack.c.bf16 %v2415_v44, %v2414_v43 }
 0x212   : > { %2351 = vrot.lane.b32.xlu0 %v2315_v59, %s7038_s3  ;;  %v2444_v59 = vpack.c.bf16 %v2417_v51, %v2416_v49 }
 0x213   : > { %v1849_v4 = vpop.permute.xlu1 %1848 }
 0x214   : > { %1886 = vst.msk [vmem:[#allocation3 + $0xb0] sm:$0xff] %vm1874_vm13, %v1849_v4  ;;  %v1851_v9 = vpop.permute.xlu0 %1850 }
 0x215   : > { %2353 = vrot.lane.b32.xlu1 %v2316_v0, %s7038_s3  ;;  %1887 = vst.msk [vmem:[#allocation3 + $0xc0] sm:$0xff] %vm1874_vm13, %v1851_v9  ;;  %v2445_v0 = vpack.c.bf16 %v2419_v57, %v2418_v55 }
 0x216   : > { %2355 = vrot.lane.b32.xlu0 %v2317_v5, %s7038_s3  ;;  %v2446_v5 = vpack.c.bf16 %v2421_v61, %v2420_v60 }
 0x217   : > { %v1853_v13 = vpop.permute.xlu1 %1852 }
 0x218   : > { %1888 = vst.msk [vmem:[#allocation3 + $0xd0] sm:$0xff] %vm1874_vm13, %v1853_v13  ;;  %v1855_v19 = vpop.permute.xlu0 %1854 }
 0x219   : > { %2357 = vrot.lane.b32.xlu1 %v2318_v10, %s7038_s3  ;;  %1889 = vst.msk [vmem:[#allocation3 + $0xe0] sm:$0xff] %vm1874_vm13, %v1855_v19  ;;  %v2447_v10 = vpack.c.bf16 %v2423_v2, %v2422_v1 }
 0x21a   : > { %2359 = vrot.lane.b32.xlu0 %v2319_v14, %s7038_s3  ;;  %v2448_v14 = vpack.c.bf16 %v2425_v8, %v2424_v6 }
 0x21b   : > { %v1857_v24 = vpop.permute.xlu1 %1856 }
 0x21c   : > { %1890 = vst.msk [vmem:[#allocation3 + $0xf0] sm:$0xff] %vm1874_vm13, %v1857_v24  ;;  %v1956_v29 = vpop.permute.xlu0 %1955 }
 0x21d   : > { %2361 = vrot.lane.b32.xlu1 %v2320_v20, %s7038_s3  ;;  %2004 = vst.msk [vmem:[#allocation3] sm:$0xff] %vm2003_vm14, %v1956_v29  ;;  %v2449_v20 = vpack.c.bf16 %v2427_v12, %v2426_v11 }
 0x21e   : > { %2363 = vrot.lane.b32.xlu0 %v2321_v25, %s7038_s3  ;;  %v2450_v25 = vpack.c.bf16 %v2429_v18, %v2428_v17 }
 0x21f   : > { %v1958_v62 = vpop.permute.xlu1 %1957 }
 0x220   : > { %2005 = vst.msk [vmem:[#allocation3 + $0x10] sm:$0xff] %vm2003_vm14, %v1958_v62  ;;  %v1960_v16 = vpop.permute.xlu0 %1959  ;;  %v175_v62 = vld [vmem:[%s7228_s15 + $0xf0] sm:$0xff]  ;;  %s7047_s15 = smov 100  }
 0x221   : > { %2365 = vrot.lane.b32.xlu1 %v2322_v50, %s7038_s3  ;;  %2006 = vst.msk [vmem:[#allocation3 + $0x20] sm:$0xff] %vm2003_vm14, %v1960_v16  ;;  %v2451_v50 = vpack.c.bf16 %v2431_v23, %v2430_v21  ;;  %v2436_v16 = vld [vmem:[#allocation2 + $0x183] sm:$0xff] }
 0x222   : > { %2367 = vrot.lane.b32.xlu0 %v2323_v3, %s7038_s3  ;;  %276 = vst.msk [vmem:[#allocation2 + $0x1b3] sm:$0xff] %vm177_vm0, %v175_v62  ;;  %v2563_v62 = vld [vmem:[#allocation2 + $0x16c] sm:$0xff] }
 0x223   : > { %v1962_v31 = vpop.permute.xlu1 %1961 }
 0x224   : > { %2007 = vst.msk [vmem:[#allocation3 + $0x30] sm:$0xff] %vm2003_vm14, %v1962_v31  ;;  %v1964_v37 = vpop.permute.xlu0 %1963  ;;  %v2438_v31 = vld [vmem:[#allocation2 + $0x19b] sm:$0xff] }
 0x225   : > { %2369 = vrot.lane.b32.xlu1 %v2324_v22, %s7038_s3  ;;  %2008 = vst.msk [vmem:[#allocation3 + $0x40] sm:$0xff] %vm2003_vm14, %v1964_v37  ;;  %v2437_v22 = vld [vmem:[#allocation2 + $0x18b] sm:$0xff]  ;;  %v2537_v37 = vld [vmem:[#allocation2 + $0x34] sm:$0xff] }
 0x226   : > { %2371 = vrot.lane.b32.xlu0 %v2325_v32, %s7038_s3  ;;  %v2439_v32 = vld [vmem:[#allocation2 + $0x1a3] sm:$0xff]  ;;  %v2454_v34 = vpack.c.bf16 %v2437_v22, %v2436_v16  ;;  %v2566_v22 = vld [vmem:[#allocation2 + $0x18c] sm:$0xff] }
 0x227   : > { %v1966_v46 = vpop.permute.xlu1 %1965  ;;  %v2455_v38 = vpack.c.bf16 %v2439_v32, %v2438_v31  ;;  %v2565_v16 = vld [vmem:[#allocation2 + $0x184] sm:$0xff]  ;;  %v2567_v31 = vld [vmem:[#allocation2 + $0x19c] sm:$0xff] }
 0x228   : > { %2009 = vst.msk [vmem:[#allocation3 + $0x50] sm:$0xff] %vm2003_vm14, %v1966_v46  ;;  %v1968_v47 = vpop.permute.xlu0 %1967  ;;  %v2539_v46 = vld [vmem:[#allocation2 + $0x4c] sm:$0xff]  ;;  %v2568_v32 = vld [vmem:[#allocation2 + $0x1a4] sm:$0xff] }
 0x229   : > { %2373 = vrot.lane.b32.xlu1 %v2326_v35, %s7038_s3  ;;  %2010 = vst.msk [vmem:[#allocation3 + $0x60] sm:$0xff] %vm2003_vm14, %v1968_v47  ;;  %v2538_v35 = vld [vmem:[#allocation2 + $0x3c] sm:$0xff]  ;;  %v2541_v47 = vld [vmem:[#allocation2 + $0x64] sm:$0xff] }
 0x22a   : > { %2472 = vrot.lane.b32.xlu0 %v2440_v39, %s7039_s4  ;;  %v2540_v39 = vld [vmem:[#allocation2 + $0x54] sm:$0xff]  ;;  %v2569_v41 = vpack.c.bf16 %v2538_v35, %v2537_v37  ;;  %v2667_v35 = vld [vmem:[#allocation2 + $0x3d] sm:$0xff] }
 0x22b   : > { %v1970_v54 = vpop.permute.xlu1 %1969  ;;  %v2570_v44 = vpack.c.bf16 %v2540_v39, %v2539_v46  ;;  %v2666_v37 = vld [vmem:[#allocation2 + $0x35] sm:$0xff]  ;;  %v2668_v46 = vld [vmem:[#allocation2 + $0x4d] sm:$0xff] }
 0x22c   : > { %2011 = vst.msk [vmem:[#allocation3 + $0x70] sm:$0xff] %vm2003_vm14, %v1970_v54  ;;  %v1972_v52 = vpop.permute.xlu0 %1971  ;;  %v2543_v54 = vld [vmem:[#allocation2 + $0x7c] sm:$0xff] }
 0x22d   : > { %2474 = vrot.lane.b32.xlu1 %v2441_v42, %s7039_s4  ;;  %2012 = vst.msk [vmem:[#allocation3 + $0x80] sm:$0xff] %vm2003_vm14, %v1972_v52  ;;  %v2542_v42 = vld [vmem:[#allocation2 + $0x6c] sm:$0xff]  ;;  %v2545_v52 = vld [vmem:[#allocation2 + $0x94] sm:$0xff] }
 0x22e   : > { %2476 = vrot.lane.b32.xlu0 %v2442_v48, %s7039_s4  ;;  %v2544_v48 = vld [vmem:[#allocation2 + $0x84] sm:$0xff]  ;;  %v2571_v51 = vpack.c.bf16 %v2542_v42, %v2541_v47  ;;  %v2669_v39 = vld [vmem:[#allocation2 + $0x55] sm:$0xff]  ;;  %v2671_v42 = vld [vmem:[#allocation2 + $0x6d] sm:$0xff] }
 0x22f   : > { %v1974_v58 = vpop.permute.xlu1 %1973  ;;  %v2572_v57 = vpack.c.bf16 %v2544_v48, %v2543_v54  ;;  %v2670_v47 = vld [vmem:[#allocation2 + $0x65] sm:$0xff]  ;;  %v2672_v54 = vld [vmem:[#allocation2 + $0x7d] sm:$0xff] }
 0x230   : > { %2013 = vst.msk [vmem:[#allocation3 + $0x90] sm:$0xff] %vm2003_vm14, %v1974_v58  ;;  %v1976_v63 = vpop.permute.xlu0 %1975  ;;  %v2547_v58 = vld [vmem:[#allocation2 + $0xac] sm:$0xff] }
 0x231   : > { %2478 = vrot.lane.b32.xlu1 %v2443_v53, %s7039_s4  ;;  %2014 = vst.msk [vmem:[#allocation3 + $0xa0] sm:$0xff] %vm2003_vm14, %v1976_v63  ;;  %v2546_v53 = vld [vmem:[#allocation2 + $0x9c] sm:$0xff]  ;;  %v2549_v63 = vld [vmem:[#allocation2 + $0xc4] sm:$0xff] }
 0x232   : > { %2480 = vrot.lane.b32.xlu0 %v2444_v59, %s7039_s4  ;;  %v2548_v59 = vld [vmem:[#allocation2 + $0xb4] sm:$0xff]  ;;  %v2573_v61 = vpack.c.bf16 %v2546_v53, %v2545_v52  ;;  %v2673_v48 = vld [vmem:[#allocation2 + $0x85] sm:$0xff]  ;;  %v2675_v53 = vld [vmem:[#allocation2 + $0x9d] sm:$0xff] }
 0x233   : > { %v1978_v4 = vpop.permute.xlu1 %1977  ;;  %v2574_v2 = vpack.c.bf16 %v2548_v59, %v2547_v58  ;;  %v2674_v52 = vld [vmem:[#allocation2 + $0x95] sm:$0xff]  ;;  %v2676_v58 = vld [vmem:[#allocation2 + $0xad] sm:$0xff] }
 0x234   : > { %2015 = vst.msk [vmem:[#allocation3 + $0xb0] sm:$0xff] %vm2003_vm14, %v1978_v4  ;;  %v1980_v9 = vpop.permute.xlu0 %1979  ;;  %v2551_v4 = vld [vmem:[#allocation2 + $0xdc] sm:$0xff] }
 0x235   : > { %2482 = vrot.lane.b32.xlu1 %v2445_v0, %s7039_s4  ;;  %2016 = vst.msk [vmem:[#allocation3 + $0xc0] sm:$0xff] %vm2003_vm14, %v1980_v9  ;;  %v2550_v0 = vld [vmem:[#allocation2 + $0xcc] sm:$0xff]  ;;  %v2553_v9 = vld [vmem:[#allocation2 + $0xf4] sm:$0xff] }
 0x236   : > { %2484 = vrot.lane.b32.xlu0 %v2446_v5, %s7039_s4  ;;  %v2552_v5 = vld [vmem:[#allocation2 + $0xe4] sm:$0xff]  ;;  %v2575_v8 = vpack.c.bf16 %v2550_v0, %v2549_v63  ;;  %v2677_v59 = vld [vmem:[#allocation2 + $0xb5] sm:$0xff]  ;;  %v2679_v0 = vld [vmem:[#allocation2 + $0xcd] sm:$0xff] }
 0x237   : > { %v1982_v13 = vpop.permute.xlu1 %1981  ;;  %v2576_v12 = vpack.c.bf16 %v2552_v5, %v2551_v4  ;;  %v2678_v63 = vld [vmem:[#allocation2 + $0xc5] sm:$0xff]  ;;  %v2680_v4 = vld [vmem:[#allocation2 + $0xdd] sm:$0xff] }
 0x238   : > { %2017 = vst.msk [vmem:[#allocation3 + $0xd0] sm:$0xff] %vm2003_vm14, %v1982_v13  ;;  %v1984_v19 = vpop.permute.xlu0 %1983  ;;  %v2555_v13 = vld [vmem:[#allocation2 + $0x10c] sm:$0xff] }
 0x239   : > { %2486 = vrot.lane.b32.xlu1 %v2447_v10, %s7039_s4  ;;  %2018 = vst.msk [vmem:[#allocation3 + $0xe0] sm:$0xff] %vm2003_vm14, %v1984_v19  ;;  %v2554_v10 = vld [vmem:[#allocation2 + $0xfc] sm:$0xff]  ;;  %v2557_v19 = vld [vmem:[#allocation2 + $0x124] sm:$0xff] }
 0x23a   : > { %2488 = vrot.lane.b32.xlu0 %v2448_v14, %s7039_s4  ;;  %v2556_v14 = vld [vmem:[#allocation2 + $0x114] sm:$0xff]  ;;  %v2577_v18 = vpack.c.bf16 %v2554_v10, %v2553_v9  ;;  %v2681_v5 = vld [vmem:[#allocation2 + $0xe5] sm:$0xff]  ;;  %v2683_v10 = vld [vmem:[#allocation2 + $0xfd] sm:$0xff] }
 0x23b   : > { %v1986_v24 = vpop.permute.xlu1 %1985  ;;  %v2578_v23 = vpack.c.bf16 %v2556_v14, %v2555_v13  ;;  %v2682_v9 = vld [vmem:[#allocation2 + $0xf5] sm:$0xff]  ;;  %v2684_v13 = vld [vmem:[#allocation2 + $0x10d] sm:$0xff] }
 0x23c   : > { %2019 = vst.msk [vmem:[#allocation3 + $0xf0] sm:$0xff] %vm2003_vm14, %v1986_v24  ;;  %v2086_v29 = vpop.permute.xlu0 %2085  ;;  %v2559_v24 = vld [vmem:[#allocation2 + $0x13c] sm:$0xff] }
 0x23d   : > { %2490 = vrot.lane.b32.xlu1 %v2449_v20, %s7039_s4  ;;  %2134 = vst.msk [vmem:[#allocation3] sm:$0xff] %vm9153_vm15, %v2086_v29  ;;  %v2558_v20 = vld [vmem:[#allocation2 + $0x12c] sm:$0xff]  ;;  %v2561_v29 = vld [vmem:[#allocation2 + $0x154] sm:$0xff] }
 0x23e   : > { %2492 = vrot.lane.b32.xlu0 %v2450_v25, %s7039_s4  ;;  %v2560_v25 = vld [vmem:[#allocation2 + $0x144] sm:$0xff]  ;;  %v2579_v27 = vpack.c.bf16 %v2558_v20, %v2557_v19  ;;  %v2685_v14 = vld [vmem:[#allocation2 + $0x115] sm:$0xff]  ;;  %v2687_v20 = vld [vmem:[#allocation2 + $0x12d] sm:$0xff] }
 0x23f   : > { %v2088_v3 = vpop.permute.xlu1 %2087  ;;  %v2580_v56 = vpack.c.bf16 %v2560_v25, %v2559_v24  ;;  %v2686_v19 = vld [vmem:[#allocation2 + $0x125] sm:$0xff]  ;;  %v2688_v24 = vld [vmem:[#allocation2 + $0x13d] sm:$0xff] }
 0x240   : > { %2135 = vst.msk [vmem:[#allocation3 + $0x10] sm:$0xff] %vm9153_vm15, %v2088_v3  ;;  %v2090_v30 = vpop.permute.xlu0 %2089  ;;  %v2564_v3 = vld [vmem:[#allocation2 + $0x174] sm:$0xff]  ;;  %v2689_v25 = vld [vmem:[#allocation2 + $0x145] sm:$0xff] }
 0x241   : > { %2494 = vrot.lane.b32.xlu1 %v2451_v50, %s7039_s4  ;;  %2136 = vst.msk [vmem:[#allocation3 + $0x20] sm:$0xff] %vm9153_vm15, %v2090_v30  ;;  %v2562_v50 = vld [vmem:[#allocation2 + $0x15c] sm:$0xff] }
 0x242   : > { %2496 = vrot.lane.b32.xlu0 %v2452_v7, %s7039_s4  ;;  %v2581_v15 = vpack.c.bf16 %v2562_v50, %v2561_v29  ;;  %v2690_v29 = vld [vmem:[#allocation2 + $0x155] sm:$0xff]  ;;  %v2691_v50 = vld [vmem:[#allocation2 + $0x15d] sm:$0xff] }
 0x243   : > { %v2092_v33 = vpop.permute.xlu1 %2091 }
 0x244   : > { %2137 = vst.msk [vmem:[#allocation3 + $0x30] sm:$0xff] %vm9153_vm15, %v2092_v33  ;;  %v2094_v36 = vpop.permute.xlu0 %2093 }
 0x245   : > { %2498 = vrot.lane.b32.xlu1 %v2453_v28, %s7039_s4  ;;  %2138 = vst.msk [vmem:[#allocation3 + $0x40] sm:$0xff] %vm9153_vm15, %v2094_v36  ;;  %v2582_v28 = vpack.c.bf16 %v2564_v3, %v2563_v62  ;;  %v2692_v62 = vld [vmem:[#allocation2 + $0x16d] sm:$0xff]  ;;  %v2693_v3 = vld [vmem:[#allocation2 + $0x175] sm:$0xff] }
 0x246   : > { %2500 = vrot.lane.b32.xlu0 %v2454_v34, %s7039_s4  ;;  %v2583_v34 = vpack.c.bf16 %v2566_v22, %v2565_v16  ;;  %v2694_v16 = vld [vmem:[#allocation2 + $0x185] sm:$0xff]  ;;  %v2695_v22 = vld [vmem:[#allocation2 + $0x18d] sm:$0xff] }
 0x247   : > { %v2096_v40 = vpop.permute.xlu1 %2095 }
 0x248   : > { %2139 = vst.msk [vmem:[#allocation3 + $0x50] sm:$0xff] %vm9153_vm15, %v2096_v40  ;;  %v2098_v43 = vpop.permute.xlu0 %2097 }
 0x249   : > { %2502 = vrot.lane.b32.xlu1 %v2455_v38, %s7039_s4  ;;  %2140 = vst.msk [vmem:[#allocation3 + $0x60] sm:$0xff] %vm9153_vm15, %v2098_v43  ;;  %v2584_v38 = vpack.c.bf16 %v2568_v32, %v2567_v31  ;;  %v2696_v31 = vld [vmem:[#allocation2 + $0x19d] sm:$0xff]  ;;  %v2697_v32 = vld [vmem:[#allocation2 + $0x1a5] sm:$0xff]  ;;  %s7048_s4 = smov 104  }
 0x24a   : > { %2601 = vrot.lane.b32.xlu0 %v2569_v41, %s7040_s5  ;;  %v2698_v41 = vpack.c.bf16 %v2667_v35, %v2666_v37  ;;  %v2795_v37 = vld [vmem:[#allocation2 + $0x36] sm:$0xff]  ;;  %v2796_v35 = vld [vmem:[#allocation2 + $0x3e] sm:$0xff] }
 0x24b   : > { %v2100_v49 = vpop.permute.xlu1 %2099 }
 0x24c   : > { %2141 = vst.msk [vmem:[#allocation3 + $0x70] sm:$0xff] %vm9153_vm15, %v2100_v49  ;;  %v2102_v55 = vpop.permute.xlu0 %2101 }
 0x24d   : > { %2603 = vrot.lane.b32.xlu1 %v2570_v44, %s7040_s5  ;;  %2142 = vst.msk [vmem:[#allocation3 + $0x80] sm:$0xff] %vm9153_vm15, %v2102_v55  ;;  %v2699_v44 = vpack.c.bf16 %v2669_v39, %v2668_v46  ;;  %v2797_v46 = vld [vmem:[#allocation2 + $0x4e] sm:$0xff]  ;;  %v2798_v39 = vld [vmem:[#allocation2 + $0x56] sm:$0xff] }
 0x24e   : > { %2605 = vrot.lane.b32.xlu0 %v2571_v51, %s7040_s5  ;;  %v2700_v51 = vpack.c.bf16 %v2671_v42, %v2670_v47  ;;  %v2799_v47 = vld [vmem:[#allocation2 + $0x66] sm:$0xff]  ;;  %v2800_v42 = vld [vmem:[#allocation2 + $0x6e] sm:$0xff] }
 0x24f   : > { %v2104_v60 = vpop.permute.xlu1 %2103 }
 0x250   : > { %2143 = vst.msk [vmem:[#allocation3 + $0x90] sm:$0xff] %vm9153_vm15, %v2104_v60  ;;  %v2106_v1 = vpop.permute.xlu0 %2105 }
 0x251   : > { %2607 = vrot.lane.b32.xlu1 %v2572_v57, %s7040_s5  ;;  %2144 = vst.msk [vmem:[#allocation3 + $0xa0] sm:$0xff] %vm9153_vm15, %v2106_v1  ;;  %v2701_v57 = vpack.c.bf16 %v2673_v48, %v2672_v54  ;;  %v2801_v54 = vld [vmem:[#allocation2 + $0x7e] sm:$0xff]  ;;  %v2802_v48 = vld [vmem:[#allocation2 + $0x86] sm:$0xff] }
 0x252   : > { %2609 = vrot.lane.b32.xlu0 %v2573_v61, %s7040_s5  ;;  %v2702_v61 = vpack.c.bf16 %v2675_v53, %v2674_v52  ;;  %v2803_v52 = vld [vmem:[#allocation2 + $0x96] sm:$0xff]  ;;  %v2804_v53 = vld [vmem:[#allocation2 + $0x9e] sm:$0xff] }
 0x253   : > { %v2108_v6 = vpop.permute.xlu1 %2107 }
 0x254   : > { %2145 = vst.msk [vmem:[#allocation3 + $0xb0] sm:$0xff] %vm9153_vm15, %v2108_v6  ;;  %v2110_v11 = vpop.permute.xlu0 %2109 }
 0x255   : > { %2611 = vrot.lane.b32.xlu1 %v2574_v2, %s7040_s5  ;;  %2146 = vst.msk [vmem:[#allocation3 + $0xc0] sm:$0xff] %vm9153_vm15, %v2110_v11  ;;  %v2703_v2 = vpack.c.bf16 %v2677_v59, %v2676_v58  ;;  %v2805_v58 = vld [vmem:[#allocation2 + $0xae] sm:$0xff]  ;;  %v2806_v59 = vld [vmem:[#allocation2 + $0xb6] sm:$0xff] }
 0x256   : > { %2613 = vrot.lane.b32.xlu0 %v2575_v8, %s7040_s5  ;;  %v2704_v8 = vpack.c.bf16 %v2679_v0, %v2678_v63  ;;  %v2807_v63 = vld [vmem:[#allocation2 + $0xc6] sm:$0xff]  ;;  %v2808_v0 = vld [vmem:[#allocation2 + $0xce] sm:$0xff] }
 0x257   : > { %v2112_v17 = vpop.permute.xlu1 %2111 }
 0x258   : > { %2147 = vst.msk [vmem:[#allocation3 + $0xd0] sm:$0xff] %vm9153_vm15, %v2112_v17  ;;  %v2114_v21 = vpop.permute.xlu0 %2113 }
 0x259   : > { %2615 = vrot.lane.b32.xlu1 %v2576_v12, %s7040_s5  ;;  %2148 = vst.msk [vmem:[#allocation3 + $0xe0] sm:$0xff] %vm9153_vm15, %v2114_v21  ;;  %v2705_v12 = vpack.c.bf16 %v2681_v5, %v2680_v4  ;;  %v2809_v4 = vld [vmem:[#allocation2 + $0xde] sm:$0xff]  ;;  %v2810_v5 = vld [vmem:[#allocation2 + $0xe6] sm:$0xff] }
 0x25a   : > { %2617 = vrot.lane.b32.xlu0 %v2577_v18, %s7040_s5  ;;  %v2706_v18 = vpack.c.bf16 %v2683_v10, %v2682_v9  ;;  %v2811_v9 = vld [vmem:[#allocation2 + $0xf6] sm:$0xff]  ;;  %v2812_v10 = vld [vmem:[#allocation2 + $0xfe] sm:$0xff] }
 0x25b   : > { %v2116_v26 = vpop.permute.xlu1 %2115 }
 0x25c   : > { %2149 = vst.msk [vmem:[#allocation3 + $0xf0] sm:$0xff] %vm9153_vm15, %v2116_v26  ;;  %v2215_v45 = vpop.permute.xlu0 %2214  ;;  %vm9155_vm15 = vcmask 556544  }
 0x25d   : > { %2619 = vrot.lane.b32.xlu1 %v2578_v23, %s7040_s5  ;;  %2263 = vst.msk [vmem:[#allocation3] sm:$0xff] %vm9154_vm1, %v2215_v45  ;;  %v2707_v23 = vpack.c.bf16 %v2685_v14, %v2684_v13  ;;  %v2813_v13 = vld [vmem:[#allocation2 + $0x10e] sm:$0xff]  ;;  %v2814_v14 = vld [vmem:[#allocation2 + $0x116] sm:$0xff] }
 0x25e   : > { %2621 = vrot.lane.b32.xlu0 %v2579_v27, %s7040_s5  ;;  %v2708_v27 = vpack.c.bf16 %v2687_v20, %v2686_v19  ;;  %v2815_v19 = vld [vmem:[#allocation2 + $0x126] sm:$0xff]  ;;  %v2816_v20 = vld [vmem:[#allocation2 + $0x12e] sm:$0xff] }
 0x25f   : > { %v2217_v7 = vpop.permute.xlu1 %2216 }
 0x260   : > { %2264 = vst.msk [vmem:[#allocation3 + $0x10] sm:$0xff] %vm9154_vm1, %v2217_v7  ;;  %v2219_v30 = vpop.permute.xlu0 %2218 }
 0x261   : > { %2623 = vrot.lane.b32.xlu1 %v2580_v56, %s7040_s5  ;;  %2265 = vst.msk [vmem:[#allocation3 + $0x20] sm:$0xff] %vm9154_vm1, %v2219_v30  ;;  %v2709_v56 = vpack.c.bf16 %v2689_v25, %v2688_v24  ;;  %v2817_v24 = vld [vmem:[#allocation2 + $0x13e] sm:$0xff]  ;;  %v2818_v25 = vld [vmem:[#allocation2 + $0x146] sm:$0xff] }
 0x262   : > { %2625 = vrot.lane.b32.xlu0 %v2581_v15, %s7040_s5  ;;  %v2710_v15 = vpack.c.bf16 %v2691_v50, %v2690_v29  ;;  %v2819_v29 = vld [vmem:[#allocation2 + $0x156] sm:$0xff]  ;;  %v2820_v50 = vld [vmem:[#allocation2 + $0x15e] sm:$0xff] }
 0x263   : > { %v2221_v33 = vpop.permute.xlu1 %2220 }
 0x264   : > { %2266 = vst.msk [vmem:[#allocation3 + $0x30] sm:$0xff] %vm9154_vm1, %v2221_v33  ;;  %v2223_v36 = vpop.permute.xlu0 %2222 }
 0x265   : > { %2627 = vrot.lane.b32.xlu1 %v2582_v28, %s7040_s5  ;;  %2267 = vst.msk [vmem:[#allocation3 + $0x40] sm:$0xff] %vm9154_vm1, %v2223_v36  ;;  %v2711_v28 = vpack.c.bf16 %v2693_v3, %v2692_v62  ;;  %v2821_v62 = vld [vmem:[#allocation2 + $0x16e] sm:$0xff]  ;;  %v2822_v3 = vld [vmem:[#allocation2 + $0x176] sm:$0xff] }
 0x266   : > { %2629 = vrot.lane.b32.xlu0 %v2583_v34, %s7040_s5  ;;  %v2712_v34 = vpack.c.bf16 %v2695_v22, %v2694_v16  ;;  %v2823_v16 = vld [vmem:[#allocation2 + $0x186] sm:$0xff]  ;;  %v2824_v22 = vld [vmem:[#allocation2 + $0x18e] sm:$0xff] }
 0x267   : > { %v2225_v40 = vpop.permute.xlu1 %2224 }
 0x268   : > { %2268 = vst.msk [vmem:[#allocation3 + $0x50] sm:$0xff] %vm9154_vm1, %v2225_v40  ;;  %v2227_v43 = vpop.permute.xlu0 %2226 }
 0x269   : > { %2631 = vrot.lane.b32.xlu1 %v2584_v38, %s7040_s5  ;;  %2269 = vst.msk [vmem:[#allocation3 + $0x60] sm:$0xff] %vm9154_vm1, %v2227_v43  ;;  %v2713_v38 = vpack.c.bf16 %v2697_v32, %v2696_v31  ;;  %v2825_v31 = vld [vmem:[#allocation2 + $0x19e] sm:$0xff]  ;;  %v2826_v32 = vld [vmem:[#allocation2 + $0x1a6] sm:$0xff]  ;;  %s7049_s5 = smov 108  }
 0x26a   : > { %2730 = vrot.lane.b32.xlu0 %v2698_v41, %s7041_s6  ;;  %v2827_v41 = vpack.c.bf16 %v2796_v35, %v2795_v37  ;;  %v2924_v37 = vld [vmem:[#allocation2 + $0x48] sm:$0xff]  ;;  %v2925_v35 = vld [vmem:[#allocation2 + $0x50] sm:$0xff] }
 0x26b   : > { %v2229_v49 = vpop.permute.xlu1 %2228 }
 0x26c   : > { %2270 = vst.msk [vmem:[#allocation3 + $0x70] sm:$0xff] %vm9154_vm1, %v2229_v49  ;;  %v2231_v55 = vpop.permute.xlu0 %2230 }
 0x26d   : > { %2732 = vrot.lane.b32.xlu1 %v2699_v44, %s7041_s6  ;;  %2271 = vst.msk [vmem:[#allocation3 + $0x80] sm:$0xff] %vm9154_vm1, %v2231_v55  ;;  %v2828_v44 = vpack.c.bf16 %v2798_v39, %v2797_v46  ;;  %v2926_v46 = vld [vmem:[#allocation2 + $0x60] sm:$0xff]  ;;  %v2927_v39 = vld [vmem:[#allocation2 + $0x68] sm:$0xff] }
 0x26e   : > { %2734 = vrot.lane.b32.xlu0 %v2700_v51, %s7041_s6  ;;  %v2829_v51 = vpack.c.bf16 %v2800_v42, %v2799_v47  ;;  %v2928_v47 = vld [vmem:[#allocation2 + $0x78] sm:$0xff]  ;;  %v2929_v42 = vld [vmem:[#allocation2 + $0x80] sm:$0xff] }
 0x26f   : > { %v2233_v60 = vpop.permute.xlu1 %2232 }
 0x270   : > { %2272 = vst.msk [vmem:[#allocation3 + $0x90] sm:$0xff] %vm9154_vm1, %v2233_v60  ;;  %v2235_v1 = vpop.permute.xlu0 %2234 }
 0x271   : > { %2736 = vrot.lane.b32.xlu1 %v2701_v57, %s7041_s6  ;;  %2273 = vst.msk [vmem:[#allocation3 + $0xa0] sm:$0xff] %vm9154_vm1, %v2235_v1  ;;  %v2830_v57 = vpack.c.bf16 %v2802_v48, %v2801_v54  ;;  %v2930_v54 = vld [vmem:[#allocation2 + $0x90] sm:$0xff]  ;;  %v2931_v48 = vld [vmem:[#allocation2 + $0x98] sm:$0xff] }
 0x272   : > { %2738 = vrot.lane.b32.xlu0 %v2702_v61, %s7041_s6  ;;  %v2831_v61 = vpack.c.bf16 %v2804_v53, %v2803_v52  ;;  %v2932_v52 = vld [vmem:[#allocation2 + $0xa8] sm:$0xff]  ;;  %v2933_v53 = vld [vmem:[#allocation2 + $0xb0] sm:$0xff] }
 0x273   : > { %v2237_v6 = vpop.permute.xlu1 %2236 }
 0x274   : > { %2274 = vst.msk [vmem:[#allocation3 + $0xb0] sm:$0xff] %vm9154_vm1, %v2237_v6  ;;  %v2239_v11 = vpop.permute.xlu0 %2238 }
 0x275   : > { %2740 = vrot.lane.b32.xlu1 %v2703_v2, %s7041_s6  ;;  %2275 = vst.msk [vmem:[#allocation3 + $0xc0] sm:$0xff] %vm9154_vm1, %v2239_v11  ;;  %v2832_v2 = vpack.c.bf16 %v2806_v59, %v2805_v58  ;;  %v2934_v58 = vld [vmem:[#allocation2 + $0xc0] sm:$0xff]  ;;  %v2935_v59 = vld [vmem:[#allocation2 + $0xc8] sm:$0xff] }
 0x276   : > { %2742 = vrot.lane.b32.xlu0 %v2704_v8, %s7041_s6  ;;  %v2833_v8 = vpack.c.bf16 %v2808_v0, %v2807_v63  ;;  %v2936_v63 = vld [vmem:[#allocation2 + $0xd8] sm:$0xff]  ;;  %v2937_v0 = vld [vmem:[#allocation2 + $0xe0] sm:$0xff] }
 0x277   : > { %v2241_v17 = vpop.permute.xlu1 %2240 }
 0x278   : > { %2276 = vst.msk [vmem:[#allocation3 + $0xd0] sm:$0xff] %vm9154_vm1, %v2241_v17  ;;  %v2243_v21 = vpop.permute.xlu0 %2242 }
 0x279   : > { %2744 = vrot.lane.b32.xlu1 %v2705_v12, %s7041_s6  ;;  %2277 = vst.msk [vmem:[#allocation3 + $0xe0] sm:$0xff] %vm9154_vm1, %v2243_v21  ;;  %v2834_v12 = vpack.c.bf16 %v2810_v5, %v2809_v4  ;;  %v2938_v4 = vld [vmem:[#allocation2 + $0xf0] sm:$0xff]  ;;  %v2939_v5 = vld [vmem:[#allocation2 + $0xf8] sm:$0xff] }
 0x27a   : > { %2746 = vrot.lane.b32.xlu0 %v2706_v18, %s7041_s6  ;;  %v2835_v18 = vpack.c.bf16 %v2812_v10, %v2811_v9  ;;  %v2940_v9 = vld [vmem:[#allocation2 + $0x108] sm:$0xff]  ;;  %v2941_v10 = vld [vmem:[#allocation2 + $0x110] sm:$0xff] }
 0x27b   : > { %v2245_v26 = vpop.permute.xlu1 %2244 }
 0x27c   : > { %2278 = vst.msk [vmem:[#allocation3 + $0xf0] sm:$0xff] %vm9154_vm1, %v2245_v26  ;;  %v2344_v45 = vpop.permute.xlu0 %2343  ;;  %vm2520_vm1 = vcmask 589344  }
 0x27d   : > { %2748 = vrot.lane.b32.xlu1 %v2707_v23, %s7041_s6  ;;  %2392 = vst.msk [vmem:[#allocation3] sm:$0xff] %vm9155_vm15, %v2344_v45  ;;  %v2836_v23 = vpack.c.bf16 %v2814_v14, %v2813_v13  ;;  %v2942_v13 = vld [vmem:[#allocation2 + $0x120] sm:$0xff]  ;;  %v2943_v14 = vld [vmem:[#allocation2 + $0x128] sm:$0xff] }
 0x27e   : > { %2750 = vrot.lane.b32.xlu0 %v2708_v27, %s7041_s6  ;;  %v2837_v27 = vpack.c.bf16 %v2816_v20, %v2815_v19  ;;  %v2944_v19 = vld [vmem:[#allocation2 + $0x138] sm:$0xff]  ;;  %v2945_v20 = vld [vmem:[#allocation2 + $0x140] sm:$0xff] }
 0x27f   : > { %v2346_v7 = vpop.permute.xlu1 %2345 }
 0x280   : > { %2393 = vst.msk [vmem:[#allocation3 + $0x10] sm:$0xff] %vm9155_vm15, %v2346_v7  ;;  %v2348_v30 = vpop.permute.xlu0 %2347 }
 0x281   : > { %2752 = vrot.lane.b32.xlu1 %v2709_v56, %s7041_s6  ;;  %2394 = vst.msk [vmem:[#allocation3 + $0x20] sm:$0xff] %vm9155_vm15, %v2348_v30  ;;  %v2838_v56 = vpack.c.bf16 %v2818_v25, %v2817_v24  ;;  %v2946_v24 = vld [vmem:[#allocation2 + $0x150] sm:$0xff]  ;;  %v2947_v25 = vld [vmem:[#allocation2 + $0x158] sm:$0xff] }
 0x282   : > { %2754 = vrot.lane.b32.xlu0 %v2710_v15, %s7041_s6  ;;  %v2839_v15 = vpack.c.bf16 %v2820_v50, %v2819_v29  ;;  %v2948_v29 = vld [vmem:[#allocation2 + $0x168] sm:$0xff]  ;;  %v2949_v50 = vld [vmem:[#allocation2 + $0x170] sm:$0xff] }
 0x283   : > { %v2350_v33 = vpop.permute.xlu1 %2349 }
 0x284   : > { %2395 = vst.msk [vmem:[#allocation3 + $0x30] sm:$0xff] %vm9155_vm15, %v2350_v33  ;;  %v2352_v36 = vpop.permute.xlu0 %2351 }
 0x285   : > { %2756 = vrot.lane.b32.xlu1 %v2711_v28, %s7041_s6  ;;  %2396 = vst.msk [vmem:[#allocation3 + $0x40] sm:$0xff] %vm9155_vm15, %v2352_v36  ;;  %v2840_v28 = vpack.c.bf16 %v2822_v3, %v2821_v62  ;;  %v2950_v62 = vld [vmem:[#allocation2 + $0x180] sm:$0xff]  ;;  %v2951_v3 = vld [vmem:[#allocation2 + $0x188] sm:$0xff] }
 0x286   : > { %2758 = vrot.lane.b32.xlu0 %v2712_v34, %s7041_s6  ;;  %v2841_v34 = vpack.c.bf16 %v2824_v22, %v2823_v16  ;;  %v2952_v16 = vld [vmem:[#allocation2 + $0x198] sm:$0xff]  ;;  %v2953_v22 = vld [vmem:[#allocation2 + $0x1a0] sm:$0xff] }
 0x287   : > { %v2354_v40 = vpop.permute.xlu1 %2353 }
 0x288   : > { %2397 = vst.msk [vmem:[#allocation3 + $0x50] sm:$0xff] %vm9155_vm15, %v2354_v40  ;;  %v2356_v43 = vpop.permute.xlu0 %2355 }
 0x289   : > { %2760 = vrot.lane.b32.xlu1 %v2713_v38, %s7041_s6  ;;  %2398 = vst.msk [vmem:[#allocation3 + $0x60] sm:$0xff] %vm9155_vm15, %v2356_v43  ;;  %v2842_v38 = vpack.c.bf16 %v2826_v32, %v2825_v31  ;;  %v2954_v31 = vld [vmem:[#allocation2 + $0x1b0] sm:$0xff]  ;;  %v2955_v32 = vld [vmem:[#allocation2 + $0x1b8] sm:$0xff]  ;;  %s7050_s6 = smov 112  }
 0x28a   : > { %2859 = vrot.lane.b32.xlu0 %v2827_v41, %s7042_s7  ;;  %v2956_v41 = vpack.c.bf16 %v2925_v35, %v2924_v37  ;;  %v3053_v37 = vld [vmem:[#allocation2 + $0x49] sm:$0xff]  ;;  %v3054_v35 = vld [vmem:[#allocation2 + $0x51] sm:$0xff] }
 0x28b   : > { %v2358_v49 = vpop.permute.xlu1 %2357 }
 0x28c   : > { %2399 = vst.msk [vmem:[#allocation3 + $0x70] sm:$0xff] %vm9155_vm15, %v2358_v49  ;;  %v2360_v55 = vpop.permute.xlu0 %2359 }
 0x28d   : > { %2861 = vrot.lane.b32.xlu1 %v2828_v44, %s7042_s7  ;;  %2400 = vst.msk [vmem:[#allocation3 + $0x80] sm:$0xff] %vm9155_vm15, %v2360_v55  ;;  %v2957_v44 = vpack.c.bf16 %v2927_v39, %v2926_v46  ;;  %v3055_v46 = vld [vmem:[#allocation2 + $0x61] sm:$0xff]  ;;  %v3056_v39 = vld [vmem:[#allocation2 + $0x69] sm:$0xff] }
 0x28e   : > { %2863 = vrot.lane.b32.xlu0 %v2829_v51, %s7042_s7  ;;  %v2958_v51 = vpack.c.bf16 %v2929_v42, %v2928_v47  ;;  %v3057_v47 = vld [vmem:[#allocation2 + $0x79] sm:$0xff]  ;;  %v3058_v42 = vld [vmem:[#allocation2 + $0x81] sm:$0xff] }
 0x28f   : > { %v2362_v60 = vpop.permute.xlu1 %2361 }
 0x290   : > { %2401 = vst.msk [vmem:[#allocation3 + $0x90] sm:$0xff] %vm9155_vm15, %v2362_v60  ;;  %v2364_v1 = vpop.permute.xlu0 %2363 }
 0x291   : > { %2865 = vrot.lane.b32.xlu1 %v2830_v57, %s7042_s7  ;;  %2402 = vst.msk [vmem:[#allocation3 + $0xa0] sm:$0xff] %vm9155_vm15, %v2364_v1  ;;  %v2959_v57 = vpack.c.bf16 %v2931_v48, %v2930_v54  ;;  %v3059_v54 = vld [vmem:[#allocation2 + $0x91] sm:$0xff]  ;;  %v3060_v48 = vld [vmem:[#allocation2 + $0x99] sm:$0xff] }
 0x292   : > { %2867 = vrot.lane.b32.xlu0 %v2831_v61, %s7042_s7  ;;  %v2960_v61 = vpack.c.bf16 %v2933_v53, %v2932_v52  ;;  %v3061_v52 = vld [vmem:[#allocation2 + $0xa9] sm:$0xff]  ;;  %v3062_v53 = vld [vmem:[#allocation2 + $0xb1] sm:$0xff] }
 0x293   : > { %v2366_v6 = vpop.permute.xlu1 %2365 }
 0x294   : > { %2403 = vst.msk [vmem:[#allocation3 + $0xb0] sm:$0xff] %vm9155_vm15, %v2366_v6  ;;  %v2368_v11 = vpop.permute.xlu0 %2367 }
 0x295   : > { %2869 = vrot.lane.b32.xlu1 %v2832_v2, %s7042_s7  ;;  %2404 = vst.msk [vmem:[#allocation3 + $0xc0] sm:$0xff] %vm9155_vm15, %v2368_v11  ;;  %v2961_v2 = vpack.c.bf16 %v2935_v59, %v2934_v58  ;;  %v3063_v58 = vld [vmem:[#allocation2 + $0xc1] sm:$0xff]  ;;  %v3064_v59 = vld [vmem:[#allocation2 + $0xc9] sm:$0xff] }
 0x296   : > { %2871 = vrot.lane.b32.xlu0 %v2833_v8, %s7042_s7  ;;  %v2962_v8 = vpack.c.bf16 %v2937_v0, %v2936_v63  ;;  %v3065_v63 = vld [vmem:[#allocation2 + $0xd9] sm:$0xff]  ;;  %v3066_v0 = vld [vmem:[#allocation2 + $0xe1] sm:$0xff] }
 0x297   : > { %v2370_v17 = vpop.permute.xlu1 %2369 }
 0x298   : > { %2405 = vst.msk [vmem:[#allocation3 + $0xd0] sm:$0xff] %vm9155_vm15, %v2370_v17  ;;  %v2372_v21 = vpop.permute.xlu0 %2371 }
 0x299   : > { %2873 = vrot.lane.b32.xlu1 %v2834_v12, %s7042_s7  ;;  %2406 = vst.msk [vmem:[#allocation3 + $0xe0] sm:$0xff] %vm9155_vm15, %v2372_v21  ;;  %v2963_v12 = vpack.c.bf16 %v2939_v5, %v2938_v4  ;;  %v3067_v4 = vld [vmem:[#allocation2 + $0xf1] sm:$0xff]  ;;  %v3068_v5 = vld [vmem:[#allocation2 + $0xf9] sm:$0xff] }
 0x29a   : > { %2875 = vrot.lane.b32.xlu0 %v2835_v18, %s7042_s7  ;;  %v2964_v18 = vpack.c.bf16 %v2941_v10, %v2940_v9  ;;  %v3069_v9 = vld [vmem:[#allocation2 + $0x109] sm:$0xff]  ;;  %v3070_v10 = vld [vmem:[#allocation2 + $0x111] sm:$0xff] }
 0x29b   : > { %v2374_v26 = vpop.permute.xlu1 %2373 }
 0x29c   : > { %2407 = vst.msk [vmem:[#allocation3 + $0xf0] sm:$0xff] %vm9155_vm15, %v2374_v26  ;;  %v2473_v45 = vpop.permute.xlu0 %2472  ;;  %vm2649_vm15 = vcmask 622144  }
 0x29d   : > { %2877 = vrot.lane.b32.xlu1 %v2836_v23, %s7042_s7  ;;  %2521 = vst.msk [vmem:[#allocation3] sm:$0xff] %vm2520_vm1, %v2473_v45  ;;  %v2965_v23 = vpack.c.bf16 %v2943_v14, %v2942_v13  ;;  %v3071_v13 = vld [vmem:[#allocation2 + $0x121] sm:$0xff]  ;;  %v3072_v14 = vld [vmem:[#allocation2 + $0x129] sm:$0xff] }
 0x29e   : > { %2879 = vrot.lane.b32.xlu0 %v2837_v27, %s7042_s7  ;;  %v2966_v27 = vpack.c.bf16 %v2945_v20, %v2944_v19  ;;  %v3073_v19 = vld [vmem:[#allocation2 + $0x139] sm:$0xff]  ;;  %v3074_v20 = vld [vmem:[#allocation2 + $0x141] sm:$0xff] }
 0x29f   : > { %v2475_v7 = vpop.permute.xlu1 %2474 }
 0x2a0   : > { %2522 = vst.msk [vmem:[#allocation3 + $0x10] sm:$0xff] %vm2520_vm1, %v2475_v7  ;;  %v2477_v30 = vpop.permute.xlu0 %2476 }
 0x2a1   : > { %2881 = vrot.lane.b32.xlu1 %v2838_v56, %s7042_s7  ;;  %2523 = vst.msk [vmem:[#allocation3 + $0x20] sm:$0xff] %vm2520_vm1, %v2477_v30  ;;  %v2967_v56 = vpack.c.bf16 %v2947_v25, %v2946_v24  ;;  %v3075_v24 = vld [vmem:[#allocation2 + $0x151] sm:$0xff]  ;;  %v3076_v25 = vld [vmem:[#allocation2 + $0x159] sm:$0xff] }
 0x2a2   : > { %2883 = vrot.lane.b32.xlu0 %v2839_v15, %s7042_s7  ;;  %v2968_v15 = vpack.c.bf16 %v2949_v50, %v2948_v29  ;;  %v3077_v29 = vld [vmem:[#allocation2 + $0x169] sm:$0xff]  ;;  %v3078_v50 = vld [vmem:[#allocation2 + $0x171] sm:$0xff] }
 0x2a3   : > { %v2479_v33 = vpop.permute.xlu1 %2478 }
 0x2a4   : > { %2524 = vst.msk [vmem:[#allocation3 + $0x30] sm:$0xff] %vm2520_vm1, %v2479_v33  ;;  %v2481_v36 = vpop.permute.xlu0 %2480 }
 0x2a5   : > { %2885 = vrot.lane.b32.xlu1 %v2840_v28, %s7042_s7  ;;  %2525 = vst.msk [vmem:[#allocation3 + $0x40] sm:$0xff] %vm2520_vm1, %v2481_v36  ;;  %v2969_v28 = vpack.c.bf16 %v2951_v3, %v2950_v62  ;;  %v3079_v62 = vld [vmem:[#allocation2 + $0x181] sm:$0xff]  ;;  %v3080_v3 = vld [vmem:[#allocation2 + $0x189] sm:$0xff] }
 0x2a6   : > { %2887 = vrot.lane.b32.xlu0 %v2841_v34, %s7042_s7  ;;  %v2970_v34 = vpack.c.bf16 %v2953_v22, %v2952_v16  ;;  %v3081_v16 = vld [vmem:[#allocation2 + $0x199] sm:$0xff]  ;;  %v3082_v22 = vld [vmem:[#allocation2 + $0x1a1] sm:$0xff] }
 0x2a7   : > { %v2483_v40 = vpop.permute.xlu1 %2482 }
 0x2a8   : > { %2526 = vst.msk [vmem:[#allocation3 + $0x50] sm:$0xff] %vm2520_vm1, %v2483_v40  ;;  %v2485_v43 = vpop.permute.xlu0 %2484 }
 0x2a9   : > { %2889 = vrot.lane.b32.xlu1 %v2842_v38, %s7042_s7  ;;  %2527 = vst.msk [vmem:[#allocation3 + $0x60] sm:$0xff] %vm2520_vm1, %v2485_v43  ;;  %v2971_v38 = vpack.c.bf16 %v2955_v32, %v2954_v31  ;;  %v3083_v31 = vld [vmem:[#allocation2 + $0x1b1] sm:$0xff]  ;;  %v3084_v32 = vld [vmem:[#allocation2 + $0x1b9] sm:$0xff]  ;;  %s7051_s7 = smov 116  }
 0x2aa   : > { %2988 = vrot.lane.b32.xlu0 %v2956_v41, %s7043_s8  ;;  %v3085_v41 = vpack.c.bf16 %v3054_v35, %v3053_v37  ;;  %v3182_v37 = vld [vmem:[#allocation2 + $0x4a] sm:$0xff]  ;;  %v3183_v35 = vld [vmem:[#allocation2 + $0x52] sm:$0xff] }
 0x2ab   : > { %v2487_v49 = vpop.permute.xlu1 %2486 }
 0x2ac   : > { %2528 = vst.msk [vmem:[#allocation3 + $0x70] sm:$0xff] %vm2520_vm1, %v2487_v49  ;;  %v2489_v55 = vpop.permute.xlu0 %2488 }
 0x2ad   : > { %2990 = vrot.lane.b32.xlu1 %v2957_v44, %s7043_s8  ;;  %2529 = vst.msk [vmem:[#allocation3 + $0x80] sm:$0xff] %vm2520_vm1, %v2489_v55  ;;  %v3086_v44 = vpack.c.bf16 %v3056_v39, %v3055_v46  ;;  %v3184_v46 = vld [vmem:[#allocation2 + $0x62] sm:$0xff]  ;;  %v3185_v39 = vld [vmem:[#allocation2 + $0x6a] sm:$0xff] }
 0x2ae   : > { %2992 = vrot.lane.b32.xlu0 %v2958_v51, %s7043_s8  ;;  %v3087_v51 = vpack.c.bf16 %v3058_v42, %v3057_v47  ;;  %v3186_v47 = vld [vmem:[#allocation2 + $0x7a] sm:$0xff]  ;;  %v3187_v42 = vld [vmem:[#allocation2 + $0x82] sm:$0xff] }
 0x2af   : > { %v2491_v60 = vpop.permute.xlu1 %2490 }
 0x2b0   : > { %2530 = vst.msk [vmem:[#allocation3 + $0x90] sm:$0xff] %vm2520_vm1, %v2491_v60  ;;  %v2493_v1 = vpop.permute.xlu0 %2492 }
 0x2b1   : > { %2994 = vrot.lane.b32.xlu1 %v2959_v57, %s7043_s8  ;;  %2531 = vst.msk [vmem:[#allocation3 + $0xa0] sm:$0xff] %vm2520_vm1, %v2493_v1  ;;  %v3088_v57 = vpack.c.bf16 %v3060_v48, %v3059_v54  ;;  %v3188_v54 = vld [vmem:[#allocation2 + $0x92] sm:$0xff]  ;;  %v3189_v48 = vld [vmem:[#allocation2 + $0x9a] sm:$0xff] }
 0x2b2   : > { %2996 = vrot.lane.b32.xlu0 %v2960_v61, %s7043_s8  ;;  %v3089_v61 = vpack.c.bf16 %v3062_v53, %v3061_v52  ;;  %v3190_v52 = vld [vmem:[#allocation2 + $0xaa] sm:$0xff]  ;;  %v3191_v53 = vld [vmem:[#allocation2 + $0xb2] sm:$0xff] }
 0x2b3   : > { %v2495_v6 = vpop.permute.xlu1 %2494 }
 0x2b4   : > { %2532 = vst.msk [vmem:[#allocation3 + $0xb0] sm:$0xff] %vm2520_vm1, %v2495_v6  ;;  %v2497_v11 = vpop.permute.xlu0 %2496 }
 0x2b5   : > { %2998 = vrot.lane.b32.xlu1 %v2961_v2, %s7043_s8  ;;  %2533 = vst.msk [vmem:[#allocation3 + $0xc0] sm:$0xff] %vm2520_vm1, %v2497_v11  ;;  %v3090_v2 = vpack.c.bf16 %v3064_v59, %v3063_v58  ;;  %v3192_v58 = vld [vmem:[#allocation2 + $0xc2] sm:$0xff]  ;;  %v3193_v59 = vld [vmem:[#allocation2 + $0xca] sm:$0xff] }
 0x2b6   : > { %3000 = vrot.lane.b32.xlu0 %v2962_v8, %s7043_s8  ;;  %v3091_v8 = vpack.c.bf16 %v3066_v0, %v3065_v63  ;;  %v3194_v63 = vld [vmem:[#allocation2 + $0xda] sm:$0xff]  ;;  %v3195_v0 = vld [vmem:[#allocation2 + $0xe2] sm:$0xff] }
 0x2b7   : > { %v2499_v17 = vpop.permute.xlu1 %2498 }
 0x2b8   : > { %2534 = vst.msk [vmem:[#allocation3 + $0xd0] sm:$0xff] %vm2520_vm1, %v2499_v17  ;;  %v2501_v21 = vpop.permute.xlu0 %2500 }
 0x2b9   : > { %3002 = vrot.lane.b32.xlu1 %v2963_v12, %s7043_s8  ;;  %2535 = vst.msk [vmem:[#allocation3 + $0xe0] sm:$0xff] %vm2520_vm1, %v2501_v21  ;;  %v3092_v12 = vpack.c.bf16 %v3068_v5, %v3067_v4  ;;  %v3196_v4 = vld [vmem:[#allocation2 + $0xf2] sm:$0xff]  ;;  %v3197_v5 = vld [vmem:[#allocation2 + $0xfa] sm:$0xff] }
 0x2ba   : > { %3004 = vrot.lane.b32.xlu0 %v2964_v18, %s7043_s8  ;;  %v3093_v18 = vpack.c.bf16 %v3070_v10, %v3069_v9  ;;  %v3198_v9 = vld [vmem:[#allocation2 + $0x10a] sm:$0xff]  ;;  %v3199_v10 = vld [vmem:[#allocation2 + $0x112] sm:$0xff] }
 0x2bb   : > { %v2503_v26 = vpop.permute.xlu1 %2502 }
 0x2bc   : > { %2536 = vst.msk [vmem:[#allocation3 + $0xf0] sm:$0xff] %vm2520_vm1, %v2503_v26  ;;  %v2602_v45 = vpop.permute.xlu0 %2601  ;;  %vm2778_vm1 = vcmask 654944  }
 0x2bd   : > { %3006 = vrot.lane.b32.xlu1 %v2965_v23, %s7043_s8  ;;  %2650 = vst.msk [vmem:[#allocation3] sm:$0xff] %vm2649_vm15, %v2602_v45  ;;  %v3094_v23 = vpack.c.bf16 %v3072_v14, %v3071_v13  ;;  %v3200_v13 = vld [vmem:[#allocation2 + $0x122] sm:$0xff]  ;;  %v3201_v14 = vld [vmem:[#allocation2 + $0x12a] sm:$0xff] }
 0x2be   : > { %3008 = vrot.lane.b32.xlu0 %v2966_v27, %s7043_s8  ;;  %v3095_v27 = vpack.c.bf16 %v3074_v20, %v3073_v19  ;;  %v3202_v19 = vld [vmem:[#allocation2 + $0x13a] sm:$0xff]  ;;  %v3203_v20 = vld [vmem:[#allocation2 + $0x142] sm:$0xff] }
 0x2bf   : > { %v2604_v7 = vpop.permute.xlu1 %2603 }
 0x2c0   : > { %2651 = vst.msk [vmem:[#allocation3 + $0x10] sm:$0xff] %vm2649_vm15, %v2604_v7  ;;  %v2606_v30 = vpop.permute.xlu0 %2605 }
 0x2c1   : > { %3010 = vrot.lane.b32.xlu1 %v2967_v56, %s7043_s8  ;;  %2652 = vst.msk [vmem:[#allocation3 + $0x20] sm:$0xff] %vm2649_vm15, %v2606_v30  ;;  %v3096_v56 = vpack.c.bf16 %v3076_v25, %v3075_v24  ;;  %v3204_v24 = vld [vmem:[#allocation2 + $0x152] sm:$0xff]  ;;  %v3205_v25 = vld [vmem:[#allocation2 + $0x15a] sm:$0xff] }
 0x2c2   : > { %3012 = vrot.lane.b32.xlu0 %v2968_v15, %s7043_s8  ;;  %v3097_v15 = vpack.c.bf16 %v3078_v50, %v3077_v29  ;;  %v3206_v29 = vld [vmem:[#allocation2 + $0x16a] sm:$0xff]  ;;  %v3207_v50 = vld [vmem:[#allocation2 + $0x172] sm:$0xff] }
 0x2c3   : > { %v2608_v33 = vpop.permute.xlu1 %2607 }
 0x2c4   : > { %2653 = vst.msk [vmem:[#allocation3 + $0x30] sm:$0xff] %vm2649_vm15, %v2608_v33  ;;  %v2610_v36 = vpop.permute.xlu0 %2609 }
 0x2c5   : > { %3014 = vrot.lane.b32.xlu1 %v2969_v28, %s7043_s8  ;;  %2654 = vst.msk [vmem:[#allocation3 + $0x40] sm:$0xff] %vm2649_vm15, %v2610_v36  ;;  %v3098_v28 = vpack.c.bf16 %v3080_v3, %v3079_v62  ;;  %v3208_v62 = vld [vmem:[#allocation2 + $0x182] sm:$0xff]  ;;  %v3209_v3 = vld [vmem:[#allocation2 + $0x18a] sm:$0xff] }
 0x2c6   : > { %3016 = vrot.lane.b32.xlu0 %v2970_v34, %s7043_s8  ;;  %v3099_v34 = vpack.c.bf16 %v3082_v22, %v3081_v16  ;;  %v3210_v16 = vld [vmem:[#allocation2 + $0x19a] sm:$0xff]  ;;  %v3211_v22 = vld [vmem:[#allocation2 + $0x1a2] sm:$0xff] }
 0x2c7   : > { %v2612_v40 = vpop.permute.xlu1 %2611 }
 0x2c8   : > { %2655 = vst.msk [vmem:[#allocation3 + $0x50] sm:$0xff] %vm2649_vm15, %v2612_v40  ;;  %v2614_v43 = vpop.permute.xlu0 %2613 }
 0x2c9   : > { %3018 = vrot.lane.b32.xlu1 %v2971_v38, %s7043_s8  ;;  %2656 = vst.msk [vmem:[#allocation3 + $0x60] sm:$0xff] %vm2649_vm15, %v2614_v43  ;;  %v3100_v38 = vpack.c.bf16 %v3084_v32, %v3083_v31  ;;  %v3212_v31 = vld [vmem:[#allocation2 + $0x1b2] sm:$0xff]  ;;  %v3213_v32 = vld [vmem:[#allocation2 + $0x1ba] sm:$0xff]  ;;  %s7052_s8 = smov 120  }
 0x2ca   : > { %3117 = vrot.lane.b32.xlu0 %v3085_v41, %s7044_s11  ;;  %v3214_v41 = vpack.c.bf16 %v3183_v35, %v3182_v37  ;;  %v3311_v37 = vld [vmem:[#allocation2 + $0x4b] sm:$0xff]  ;;  %v3312_v35 = vld [vmem:[#allocation2 + $0x53] sm:$0xff] }
 0x2cb   : > { %v2616_v49 = vpop.permute.xlu1 %2615 }
 0x2cc   : > { %2657 = vst.msk [vmem:[#allocation3 + $0x70] sm:$0xff] %vm2649_vm15, %v2616_v49  ;;  %v2618_v55 = vpop.permute.xlu0 %2617 }
 0x2cd   : > { %3119 = vrot.lane.b32.xlu1 %v3086_v44, %s7044_s11  ;;  %2658 = vst.msk [vmem:[#allocation3 + $0x80] sm:$0xff] %vm2649_vm15, %v2618_v55  ;;  %v3215_v44 = vpack.c.bf16 %v3185_v39, %v3184_v46  ;;  %v3313_v46 = vld [vmem:[#allocation2 + $0x63] sm:$0xff]  ;;  %v3314_v39 = vld [vmem:[#allocation2 + $0x6b] sm:$0xff] }
 0x2ce   : > { %3121 = vrot.lane.b32.xlu0 %v3087_v51, %s7044_s11  ;;  %v3216_v51 = vpack.c.bf16 %v3187_v42, %v3186_v47  ;;  %v3315_v47 = vld [vmem:[#allocation2 + $0x7b] sm:$0xff]  ;;  %v3316_v42 = vld [vmem:[#allocation2 + $0x83] sm:$0xff] }
 0x2cf   : > { %v2620_v60 = vpop.permute.xlu1 %2619 }
 0x2d0   : > { %2659 = vst.msk [vmem:[#allocation3 + $0x90] sm:$0xff] %vm2649_vm15, %v2620_v60  ;;  %v2622_v1 = vpop.permute.xlu0 %2621 }
 0x2d1   : > { %3123 = vrot.lane.b32.xlu1 %v3088_v57, %s7044_s11  ;;  %2660 = vst.msk [vmem:[#allocation3 + $0xa0] sm:$0xff] %vm2649_vm15, %v2622_v1  ;;  %v3217_v57 = vpack.c.bf16 %v3189_v48, %v3188_v54  ;;  %v3317_v54 = vld [vmem:[#allocation2 + $0x93] sm:$0xff]  ;;  %v3318_v48 = vld [vmem:[#allocation2 + $0x9b] sm:$0xff] }
 0x2d2   : > { %3125 = vrot.lane.b32.xlu0 %v3089_v61, %s7044_s11  ;;  %v3218_v61 = vpack.c.bf16 %v3191_v53, %v3190_v52  ;;  %v3319_v52 = vld [vmem:[#allocation2 + $0xab] sm:$0xff]  ;;  %v3320_v53 = vld [vmem:[#allocation2 + $0xb3] sm:$0xff] }
 0x2d3   : > { %v2624_v6 = vpop.permute.xlu1 %2623 }
 0x2d4   : > { %2661 = vst.msk [vmem:[#allocation3 + $0xb0] sm:$0xff] %vm2649_vm15, %v2624_v6  ;;  %v2626_v11 = vpop.permute.xlu0 %2625 }
 0x2d5   : > { %3127 = vrot.lane.b32.xlu1 %v3090_v2, %s7044_s11  ;;  %2662 = vst.msk [vmem:[#allocation3 + $0xc0] sm:$0xff] %vm2649_vm15, %v2626_v11  ;;  %v3219_v2 = vpack.c.bf16 %v3193_v59, %v3192_v58  ;;  %v3321_v58 = vld [vmem:[#allocation2 + $0xc3] sm:$0xff]  ;;  %v3322_v59 = vld [vmem:[#allocation2 + $0xcb] sm:$0xff] }
 0x2d6   : > { %3129 = vrot.lane.b32.xlu0 %v3091_v8, %s7044_s11  ;;  %v3220_v8 = vpack.c.bf16 %v3195_v0, %v3194_v63  ;;  %v3323_v63 = vld [vmem:[#allocation2 + $0xdb] sm:$0xff]  ;;  %v3324_v0 = vld [vmem:[#allocation2 + $0xe3] sm:$0xff] }
 0x2d7   : > { %v2628_v17 = vpop.permute.xlu1 %2627 }
 0x2d8   : > { %2663 = vst.msk [vmem:[#allocation3 + $0xd0] sm:$0xff] %vm2649_vm15, %v2628_v17  ;;  %v2630_v21 = vpop.permute.xlu0 %2629 }
 0x2d9   : > { %3131 = vrot.lane.b32.xlu1 %v3092_v12, %s7044_s11  ;;  %2664 = vst.msk [vmem:[#allocation3 + $0xe0] sm:$0xff] %vm2649_vm15, %v2630_v21  ;;  %v3221_v12 = vpack.c.bf16 %v3197_v5, %v3196_v4  ;;  %v3325_v4 = vld [vmem:[#allocation2 + $0xf3] sm:$0xff]  ;;  %v3326_v5 = vld [vmem:[#allocation2 + $0xfb] sm:$0xff] }
 0x2da   : > { %3133 = vrot.lane.b32.xlu0 %v3093_v18, %s7044_s11  ;;  %v3222_v18 = vpack.c.bf16 %v3199_v10, %v3198_v9  ;;  %v3327_v9 = vld [vmem:[#allocation2 + $0x10b] sm:$0xff]  ;;  %v3328_v10 = vld [vmem:[#allocation2 + $0x113] sm:$0xff] }
 0x2db   : > { %v2632_v26 = vpop.permute.xlu1 %2631 }
 0x2dc   : > { %2665 = vst.msk [vmem:[#allocation3 + $0xf0] sm:$0xff] %vm2649_vm15, %v2632_v26  ;;  %v2731_v45 = vpop.permute.xlu0 %2730  ;;  %vm2907_vm15 = vcmask 687744  }
 0x2dd   : > { %3135 = vrot.lane.b32.xlu1 %v3094_v23, %s7044_s11  ;;  %2779 = vst.msk [vmem:[#allocation3] sm:$0xff] %vm2778_vm1, %v2731_v45  ;;  %v3223_v23 = vpack.c.bf16 %v3201_v14, %v3200_v13  ;;  %v3329_v13 = vld [vmem:[#allocation2 + $0x123] sm:$0xff]  ;;  %v3330_v14 = vld [vmem:[#allocation2 + $0x12b] sm:$0xff] }
 0x2de   : > { %3137 = vrot.lane.b32.xlu0 %v3095_v27, %s7044_s11  ;;  %v3224_v27 = vpack.c.bf16 %v3203_v20, %v3202_v19  ;;  %v3331_v19 = vld [vmem:[#allocation2 + $0x13b] sm:$0xff]  ;;  %v3332_v20 = vld [vmem:[#allocation2 + $0x143] sm:$0xff] }
 0x2df   : > { %v2733_v7 = vpop.permute.xlu1 %2732 }
 0x2e0   : > { %2780 = vst.msk [vmem:[#allocation3 + $0x10] sm:$0xff] %vm2778_vm1, %v2733_v7  ;;  %v2735_v30 = vpop.permute.xlu0 %2734 }
 0x2e1   : > { %3139 = vrot.lane.b32.xlu1 %v3096_v56, %s7044_s11  ;;  %2781 = vst.msk [vmem:[#allocation3 + $0x20] sm:$0xff] %vm2778_vm1, %v2735_v30  ;;  %v3225_v56 = vpack.c.bf16 %v3205_v25, %v3204_v24  ;;  %v3333_v24 = vld [vmem:[#allocation2 + $0x153] sm:$0xff]  ;;  %v3334_v25 = vld [vmem:[#allocation2 + $0x15b] sm:$0xff] }
 0x2e2   : > { %3141 = vrot.lane.b32.xlu0 %v3097_v15, %s7044_s11  ;;  %v3226_v15 = vpack.c.bf16 %v3207_v50, %v3206_v29  ;;  %v3335_v29 = vld [vmem:[#allocation2 + $0x16b] sm:$0xff]  ;;  %v3336_v50 = vld [vmem:[#allocation2 + $0x173] sm:$0xff] }
 0x2e3   : > { %v2737_v33 = vpop.permute.xlu1 %2736 }
 0x2e4   : > { %2782 = vst.msk [vmem:[#allocation3 + $0x30] sm:$0xff] %vm2778_vm1, %v2737_v33  ;;  %v2739_v36 = vpop.permute.xlu0 %2738 }
 0x2e5   : > { %3143 = vrot.lane.b32.xlu1 %v3098_v28, %s7044_s11  ;;  %2783 = vst.msk [vmem:[#allocation3 + $0x40] sm:$0xff] %vm2778_vm1, %v2739_v36  ;;  %v3227_v28 = vpack.c.bf16 %v3209_v3, %v3208_v62  ;;  %v3337_v62 = vld [vmem:[#allocation2 + $0x183] sm:$0xff]  ;;  %v3338_v3 = vld [vmem:[#allocation2 + $0x18b] sm:$0xff] }
 0x2e6   : > { %3145 = vrot.lane.b32.xlu0 %v3099_v34, %s7044_s11  ;;  %v3228_v34 = vpack.c.bf16 %v3211_v22, %v3210_v16  ;;  %v3339_v16 = vld [vmem:[#allocation2 + $0x19b] sm:$0xff]  ;;  %v3340_v22 = vld [vmem:[#allocation2 + $0x1a3] sm:$0xff] }
 0x2e7   : > { %v2741_v40 = vpop.permute.xlu1 %2740 }
 0x2e8   : > { %2784 = vst.msk [vmem:[#allocation3 + $0x50] sm:$0xff] %vm2778_vm1, %v2741_v40  ;;  %v2743_v43 = vpop.permute.xlu0 %2742 }
 0x2e9   : > { %3147 = vrot.lane.b32.xlu1 %v3100_v38, %s7044_s11  ;;  %2785 = vst.msk [vmem:[#allocation3 + $0x60] sm:$0xff] %vm2778_vm1, %v2743_v43  ;;  %v3229_v38 = vpack.c.bf16 %v3213_v32, %v3212_v31  ;;  %v3341_v31 = vld [vmem:[#allocation2 + $0x1b3] sm:$0xff]  ;;  %v3342_v32 = vld [vmem:[#allocation2 + $0x1bb] sm:$0xff]  ;;  %s7053_s11 = smov 124  }
 0x2ea   : > { %3246 = vrot.lane.b32.xlu0 %v3214_v41, %s7045_s13  ;;  %v3343_v41 = vpack.c.bf16 %v3312_v35, %v3311_v37  ;;  %v3440_v37 = vld [vmem:[#allocation2 + $0x4c] sm:$0xff]  ;;  %v3441_v35 = vld [vmem:[#allocation2 + $0x54] sm:$0xff] }
 0x2eb   : > { %v2745_v49 = vpop.permute.xlu1 %2744 }
 0x2ec   : > { %2786 = vst.msk [vmem:[#allocation3 + $0x70] sm:$0xff] %vm2778_vm1, %v2745_v49  ;;  %v2747_v55 = vpop.permute.xlu0 %2746 }
 0x2ed   : > { %3248 = vrot.lane.b32.xlu1 %v3215_v44, %s7045_s13  ;;  %2787 = vst.msk [vmem:[#allocation3 + $0x80] sm:$0xff] %vm2778_vm1, %v2747_v55  ;;  %v3344_v44 = vpack.c.bf16 %v3314_v39, %v3313_v46  ;;  %v3442_v46 = vld [vmem:[#allocation2 + $0x64] sm:$0xff]  ;;  %v3443_v39 = vld [vmem:[#allocation2 + $0x6c] sm:$0xff] }
 0x2ee   : > { %3250 = vrot.lane.b32.xlu0 %v3216_v51, %s7045_s13  ;;  %v3345_v51 = vpack.c.bf16 %v3316_v42, %v3315_v47  ;;  %v3444_v47 = vld [vmem:[#allocation2 + $0x7c] sm:$0xff]  ;;  %v3445_v42 = vld [vmem:[#allocation2 + $0x84] sm:$0xff] }
 0x2ef   : > { %v2749_v60 = vpop.permute.xlu1 %2748 }
 0x2f0   : > { %2788 = vst.msk [vmem:[#allocation3 + $0x90] sm:$0xff] %vm2778_vm1, %v2749_v60  ;;  %v2751_v1 = vpop.permute.xlu0 %2750 }
 0x2f1   : > { %3252 = vrot.lane.b32.xlu1 %v3217_v57, %s7045_s13  ;;  %2789 = vst.msk [vmem:[#allocation3 + $0xa0] sm:$0xff] %vm2778_vm1, %v2751_v1  ;;  %v3346_v57 = vpack.c.bf16 %v3318_v48, %v3317_v54  ;;  %v3446_v54 = vld [vmem:[#allocation2 + $0x94] sm:$0xff]  ;;  %v3447_v48 = vld [vmem:[#allocation2 + $0x9c] sm:$0xff] }
 0x2f2   : > { %3254 = vrot.lane.b32.xlu0 %v3218_v61, %s7045_s13  ;;  %v3347_v61 = vpack.c.bf16 %v3320_v53, %v3319_v52  ;;  %v3448_v52 = vld [vmem:[#allocation2 + $0xac] sm:$0xff]  ;;  %v3449_v53 = vld [vmem:[#allocation2 + $0xb4] sm:$0xff] }
 0x2f3   : > { %v2753_v6 = vpop.permute.xlu1 %2752 }
 0x2f4   : > { %2790 = vst.msk [vmem:[#allocation3 + $0xb0] sm:$0xff] %vm2778_vm1, %v2753_v6  ;;  %v2755_v11 = vpop.permute.xlu0 %2754 }
 0x2f5   : > { %3256 = vrot.lane.b32.xlu1 %v3219_v2, %s7045_s13  ;;  %2791 = vst.msk [vmem:[#allocation3 + $0xc0] sm:$0xff] %vm2778_vm1, %v2755_v11  ;;  %v3348_v2 = vpack.c.bf16 %v3322_v59, %v3321_v58  ;;  %v3450_v58 = vld [vmem:[#allocation2 + $0xc4] sm:$0xff]  ;;  %v3451_v59 = vld [vmem:[#allocation2 + $0xcc] sm:$0xff] }
 0x2f6   : > { %3258 = vrot.lane.b32.xlu0 %v3220_v8, %s7045_s13  ;;  %v3349_v8 = vpack.c.bf16 %v3324_v0, %v3323_v63  ;;  %v3452_v63 = vld [vmem:[#allocation2 + $0xdc] sm:$0xff]  ;;  %v3453_v0 = vld [vmem:[#allocation2 + $0xe4] sm:$0xff] }
 0x2f7   : > { %v2757_v17 = vpop.permute.xlu1 %2756 }
 0x2f8   : > { %2792 = vst.msk [vmem:[#allocation3 + $0xd0] sm:$0xff] %vm2778_vm1, %v2757_v17  ;;  %v2759_v21 = vpop.permute.xlu0 %2758 }
 0x2f9   : > { %3260 = vrot.lane.b32.xlu1 %v3221_v12, %s7045_s13  ;;  %2793 = vst.msk [vmem:[#allocation3 + $0xe0] sm:$0xff] %vm2778_vm1, %v2759_v21  ;;  %v3350_v12 = vpack.c.bf16 %v3326_v5, %v3325_v4  ;;  %v3454_v4 = vld [vmem:[#allocation2 + $0xf4] sm:$0xff]  ;;  %v3455_v5 = vld [vmem:[#allocation2 + $0xfc] sm:$0xff] }
 0x2fa   : > { %3262 = vrot.lane.b32.xlu0 %v3222_v18, %s7045_s13  ;;  %v3351_v18 = vpack.c.bf16 %v3328_v10, %v3327_v9  ;;  %v3456_v9 = vld [vmem:[#allocation2 + $0x10c] sm:$0xff]  ;;  %v3457_v10 = vld [vmem:[#allocation2 + $0x114] sm:$0xff] }
 0x2fb   : > { %v2761_v26 = vpop.permute.xlu1 %2760 }
 0x2fc   : > { %2794 = vst.msk [vmem:[#allocation3 + $0xf0] sm:$0xff] %vm2778_vm1, %v2761_v26  ;;  %v2860_v45 = vpop.permute.xlu0 %2859  ;;  %vm3036_vm1 = vcmask 720544  }
 0x2fd   : > { %3264 = vrot.lane.b32.xlu1 %v3223_v23, %s7045_s13  ;;  %2908 = vst.msk [vmem:[#allocation3] sm:$0xff] %vm2907_vm15, %v2860_v45  ;;  %v3352_v23 = vpack.c.bf16 %v3330_v14, %v3329_v13  ;;  %v3458_v13 = vld [vmem:[#allocation2 + $0x124] sm:$0xff]  ;;  %v3459_v14 = vld [vmem:[#allocation2 + $0x12c] sm:$0xff] }
 0x2fe   : > { %3266 = vrot.lane.b32.xlu0 %v3224_v27, %s7045_s13  ;;  %v3353_v27 = vpack.c.bf16 %v3332_v20, %v3331_v19  ;;  %v3460_v19 = vld [vmem:[#allocation2 + $0x13c] sm:$0xff]  ;;  %v3461_v20 = vld [vmem:[#allocation2 + $0x144] sm:$0xff] }
 0x2ff   : > { %v2862_v7 = vpop.permute.xlu1 %2861 }
 0x300   : > { %2909 = vst.msk [vmem:[#allocation3 + $0x10] sm:$0xff] %vm2907_vm15, %v2862_v7  ;;  %v2864_v30 = vpop.permute.xlu0 %2863 }
 0x301   : > { %3268 = vrot.lane.b32.xlu1 %v3225_v56, %s7045_s13  ;;  %2910 = vst.msk [vmem:[#allocation3 + $0x20] sm:$0xff] %vm2907_vm15, %v2864_v30  ;;  %v3354_v56 = vpack.c.bf16 %v3334_v25, %v3333_v24  ;;  %v3462_v24 = vld [vmem:[#allocation2 + $0x154] sm:$0xff]  ;;  %v3463_v25 = vld [vmem:[#allocation2 + $0x15c] sm:$0xff] }
 0x302   : > { %3270 = vrot.lane.b32.xlu0 %v3226_v15, %s7045_s13  ;;  %v3355_v15 = vpack.c.bf16 %v3336_v50, %v3335_v29  ;;  %v3464_v29 = vld [vmem:[#allocation2 + $0x16c] sm:$0xff]  ;;  %v3465_v50 = vld [vmem:[#allocation2 + $0x174] sm:$0xff] }
 0x303   : > { %v2866_v33 = vpop.permute.xlu1 %2865 }
 0x304   : > { %2911 = vst.msk [vmem:[#allocation3 + $0x30] sm:$0xff] %vm2907_vm15, %v2866_v33  ;;  %v2868_v36 = vpop.permute.xlu0 %2867 }
 0x305   : > { %3272 = vrot.lane.b32.xlu1 %v3227_v28, %s7045_s13  ;;  %2912 = vst.msk [vmem:[#allocation3 + $0x40] sm:$0xff] %vm2907_vm15, %v2868_v36  ;;  %v3356_v28 = vpack.c.bf16 %v3338_v3, %v3337_v62  ;;  %v3466_v62 = vld [vmem:[#allocation2 + $0x184] sm:$0xff]  ;;  %v3467_v3 = vld [vmem:[#allocation2 + $0x18c] sm:$0xff] }
 0x306   : > { %3274 = vrot.lane.b32.xlu0 %v3228_v34, %s7045_s13  ;;  %v3357_v34 = vpack.c.bf16 %v3340_v22, %v3339_v16  ;;  %v3468_v16 = vld [vmem:[#allocation2 + $0x19c] sm:$0xff]  ;;  %v3469_v22 = vld [vmem:[#allocation2 + $0x1a4] sm:$0xff] }
 0x307   : > { %v2870_v40 = vpop.permute.xlu1 %2869 }
 0x308   : > { %2913 = vst.msk [vmem:[#allocation3 + $0x50] sm:$0xff] %vm2907_vm15, %v2870_v40  ;;  %v2872_v43 = vpop.permute.xlu0 %2871 }
 0x309   : > { %3276 = vrot.lane.b32.xlu1 %v3229_v38, %s7045_s13  ;;  %2914 = vst.msk [vmem:[#allocation3 + $0x60] sm:$0xff] %vm2907_vm15, %v2872_v43  ;;  %v3358_v38 = vpack.c.bf16 %v3342_v32, %v3341_v31  ;;  %v3470_v31 = vld [vmem:[#allocation2 + $0x1b4] sm:$0xff]  ;;  %v3471_v32 = vld [vmem:[#allocation2 + $0x1bc] sm:$0xff] }
 0x30a   : > { %3375 = vrot.lane.b32.xlu0 %v3343_v41, %s7046_s14  ;;  %v3472_v41 = vpack.c.bf16 %v3441_v35, %v3440_v37  ;;  %v3569_v37 = vld [vmem:[#allocation2 + $0x4d] sm:$0xff]  ;;  %v3570_v35 = vld [vmem:[#allocation2 + $0x55] sm:$0xff] }
 0x30b   : > { %v2874_v49 = vpop.permute.xlu1 %2873 }
 0x30c   : > { %2915 = vst.msk [vmem:[#allocation3 + $0x70] sm:$0xff] %vm2907_vm15, %v2874_v49  ;;  %v2876_v55 = vpop.permute.xlu0 %2875 }
 0x30d   : > { %3377 = vrot.lane.b32.xlu1 %v3344_v44, %s7046_s14  ;;  %2916 = vst.msk [vmem:[#allocation3 + $0x80] sm:$0xff] %vm2907_vm15, %v2876_v55  ;;  %v3473_v44 = vpack.c.bf16 %v3443_v39, %v3442_v46  ;;  %v3571_v46 = vld [vmem:[#allocation2 + $0x65] sm:$0xff]  ;;  %v3572_v39 = vld [vmem:[#allocation2 + $0x6d] sm:$0xff] }
 0x30e   : > { %3379 = vrot.lane.b32.xlu0 %v3345_v51, %s7046_s14  ;;  %v3474_v51 = vpack.c.bf16 %v3445_v42, %v3444_v47  ;;  %v3573_v47 = vld [vmem:[#allocation2 + $0x7d] sm:$0xff]  ;;  %v3574_v42 = vld [vmem:[#allocation2 + $0x85] sm:$0xff] }
 0x30f   : > { %v2878_v60 = vpop.permute.xlu1 %2877 }
 0x310   : > { %2917 = vst.msk [vmem:[#allocation3 + $0x90] sm:$0xff] %vm2907_vm15, %v2878_v60  ;;  %v2880_v1 = vpop.permute.xlu0 %2879 }
 0x311   : > { %3381 = vrot.lane.b32.xlu1 %v3346_v57, %s7046_s14  ;;  %2918 = vst.msk [vmem:[#allocation3 + $0xa0] sm:$0xff] %vm2907_vm15, %v2880_v1  ;;  %v3475_v57 = vpack.c.bf16 %v3447_v48, %v3446_v54  ;;  %v3575_v54 = vld [vmem:[#allocation2 + $0x95] sm:$0xff]  ;;  %v3576_v48 = vld [vmem:[#allocation2 + $0x9d] sm:$0xff] }
 0x312   : > { %3383 = vrot.lane.b32.xlu0 %v3347_v61, %s7046_s14  ;;  %v3476_v61 = vpack.c.bf16 %v3449_v53, %v3448_v52  ;;  %v3577_v52 = vld [vmem:[#allocation2 + $0xad] sm:$0xff]  ;;  %v3578_v53 = vld [vmem:[#allocation2 + $0xb5] sm:$0xff] }
 0x313   : > { %v2882_v6 = vpop.permute.xlu1 %2881 }
 0x314   : > { %2919 = vst.msk [vmem:[#allocation3 + $0xb0] sm:$0xff] %vm2907_vm15, %v2882_v6  ;;  %v2884_v11 = vpop.permute.xlu0 %2883 }
 0x315   : > { %3385 = vrot.lane.b32.xlu1 %v3348_v2, %s7046_s14  ;;  %2920 = vst.msk [vmem:[#allocation3 + $0xc0] sm:$0xff] %vm2907_vm15, %v2884_v11  ;;  %v3477_v2 = vpack.c.bf16 %v3451_v59, %v3450_v58  ;;  %v3579_v58 = vld [vmem:[#allocation2 + $0xc5] sm:$0xff]  ;;  %v3580_v59 = vld [vmem:[#allocation2 + $0xcd] sm:$0xff] }
 0x316   : > { %3387 = vrot.lane.b32.xlu0 %v3349_v8, %s7046_s14  ;;  %v3478_v8 = vpack.c.bf16 %v3453_v0, %v3452_v63  ;;  %v3581_v63 = vld [vmem:[#allocation2 + $0xdd] sm:$0xff]  ;;  %v3582_v0 = vld [vmem:[#allocation2 + $0xe5] sm:$0xff] }
 0x317   : > { %v2886_v17 = vpop.permute.xlu1 %2885 }
 0x318   : > { %2921 = vst.msk [vmem:[#allocation3 + $0xd0] sm:$0xff] %vm2907_vm15, %v2886_v17  ;;  %v2888_v21 = vpop.permute.xlu0 %2887 }
 0x319   : > { %3389 = vrot.lane.b32.xlu1 %v3350_v12, %s7046_s14  ;;  %2922 = vst.msk [vmem:[#allocation3 + $0xe0] sm:$0xff] %vm2907_vm15, %v2888_v21  ;;  %v3479_v12 = vpack.c.bf16 %v3455_v5, %v3454_v4  ;;  %v3583_v4 = vld [vmem:[#allocation2 + $0xf5] sm:$0xff]  ;;  %v3584_v5 = vld [vmem:[#allocation2 + $0xfd] sm:$0xff] }
 0x31a   : > { %3391 = vrot.lane.b32.xlu0 %v3351_v18, %s7046_s14  ;;  %v3480_v18 = vpack.c.bf16 %v3457_v10, %v3456_v9  ;;  %v3585_v9 = vld [vmem:[#allocation2 + $0x10d] sm:$0xff]  ;;  %v3586_v10 = vld [vmem:[#allocation2 + $0x115] sm:$0xff] }
 0x31b   : > { %v2890_v26 = vpop.permute.xlu1 %2889 }
 0x31c   : > { %2923 = vst.msk [vmem:[#allocation3 + $0xf0] sm:$0xff] %vm2907_vm15, %v2890_v26  ;;  %v2989_v45 = vpop.permute.xlu0 %2988  ;;  %vm3165_vm15 = vcmask 753344  }
 0x31d   : > { %3393 = vrot.lane.b32.xlu1 %v3352_v23, %s7046_s14  ;;  %3037 = vst.msk [vmem:[#allocation3] sm:$0xff] %vm3036_vm1, %v2989_v45  ;;  %v3481_v23 = vpack.c.bf16 %v3459_v14, %v3458_v13  ;;  %v3587_v13 = vld [vmem:[#allocation2 + $0x125] sm:$0xff]  ;;  %v3588_v14 = vld [vmem:[#allocation2 + $0x12d] sm:$0xff] }
 0x31e   : > { %3395 = vrot.lane.b32.xlu0 %v3353_v27, %s7046_s14  ;;  %v3482_v27 = vpack.c.bf16 %v3461_v20, %v3460_v19  ;;  %v3589_v19 = vld [vmem:[#allocation2 + $0x13d] sm:$0xff]  ;;  %v3590_v20 = vld [vmem:[#allocation2 + $0x145] sm:$0xff] }
 0x31f   : > { %v2991_v7 = vpop.permute.xlu1 %2990 }
 0x320   : > { %3038 = vst.msk [vmem:[#allocation3 + $0x10] sm:$0xff] %vm3036_vm1, %v2991_v7  ;;  %v2993_v30 = vpop.permute.xlu0 %2992 }
 0x321   : > { %3397 = vrot.lane.b32.xlu1 %v3354_v56, %s7046_s14  ;;  %3039 = vst.msk [vmem:[#allocation3 + $0x20] sm:$0xff] %vm3036_vm1, %v2993_v30  ;;  %v3483_v56 = vpack.c.bf16 %v3463_v25, %v3462_v24  ;;  %v3591_v24 = vld [vmem:[#allocation2 + $0x155] sm:$0xff]  ;;  %v3592_v25 = vld [vmem:[#allocation2 + $0x15d] sm:$0xff] }
 0x322   : > { %3399 = vrot.lane.b32.xlu0 %v3355_v15, %s7046_s14  ;;  %v3484_v15 = vpack.c.bf16 %v3465_v50, %v3464_v29  ;;  %v3593_v29 = vld [vmem:[#allocation2 + $0x16d] sm:$0xff]  ;;  %v3594_v50 = vld [vmem:[#allocation2 + $0x175] sm:$0xff] }
 0x323   : > { %v2995_v33 = vpop.permute.xlu1 %2994 }
 0x324   : > { %3040 = vst.msk [vmem:[#allocation3 + $0x30] sm:$0xff] %vm3036_vm1, %v2995_v33  ;;  %v2997_v36 = vpop.permute.xlu0 %2996 }
 0x325   : > { %3401 = vrot.lane.b32.xlu1 %v3356_v28, %s7046_s14  ;;  %3041 = vst.msk [vmem:[#allocation3 + $0x40] sm:$0xff] %vm3036_vm1, %v2997_v36  ;;  %v3485_v28 = vpack.c.bf16 %v3467_v3, %v3466_v62  ;;  %v3595_v62 = vld [vmem:[#allocation2 + $0x185] sm:$0xff]  ;;  %v3596_v3 = vld [vmem:[#allocation2 + $0x18d] sm:$0xff] }
 0x326   : > { %3403 = vrot.lane.b32.xlu0 %v3357_v34, %s7046_s14  ;;  %v3486_v34 = vpack.c.bf16 %v3469_v22, %v3468_v16  ;;  %v3597_v16 = vld [vmem:[#allocation2 + $0x19d] sm:$0xff]  ;;  %v3598_v22 = vld [vmem:[#allocation2 + $0x1a5] sm:$0xff] }
 0x327   : > { %v2999_v40 = vpop.permute.xlu1 %2998 }
 0x328   : > { %3042 = vst.msk [vmem:[#allocation3 + $0x50] sm:$0xff] %vm3036_vm1, %v2999_v40  ;;  %v3001_v43 = vpop.permute.xlu0 %3000 }
 0x329   : > { %3405 = vrot.lane.b32.xlu1 %v3358_v38, %s7046_s14  ;;  %3043 = vst.msk [vmem:[#allocation3 + $0x60] sm:$0xff] %vm3036_vm1, %v3001_v43  ;;  %v3487_v38 = vpack.c.bf16 %v3471_v32, %v3470_v31  ;;  %v3599_v31 = vld [vmem:[#allocation2 + $0x1b5] sm:$0xff]  ;;  %v3600_v32 = vld [vmem:[#allocation2 + $0x1bd] sm:$0xff] }
 0x32a   : > { %3504 = vrot.lane.b32.xlu0 %v3472_v41, %s7047_s15  ;;  %v3601_v41 = vpack.c.bf16 %v3570_v35, %v3569_v37  ;;  %v3698_v37 = vld [vmem:[#allocation2 + $0x4e] sm:$0xff]  ;;  %v3699_v35 = vld [vmem:[#allocation2 + $0x56] sm:$0xff] }
 0x32b   : > { %v3003_v49 = vpop.permute.xlu1 %3002 }
 0x32c   : > { %3044 = vst.msk [vmem:[#allocation3 + $0x70] sm:$0xff] %vm3036_vm1, %v3003_v49  ;;  %v3005_v55 = vpop.permute.xlu0 %3004 }
 0x32d   : > { %3506 = vrot.lane.b32.xlu1 %v3473_v44, %s7047_s15  ;;  %3045 = vst.msk [vmem:[#allocation3 + $0x80] sm:$0xff] %vm3036_vm1, %v3005_v55  ;;  %v3602_v44 = vpack.c.bf16 %v3572_v39, %v3571_v46  ;;  %v3700_v46 = vld [vmem:[#allocation2 + $0x66] sm:$0xff]  ;;  %v3701_v39 = vld [vmem:[#allocation2 + $0x6e] sm:$0xff] }
 0x32e   : > { %3508 = vrot.lane.b32.xlu0 %v3474_v51, %s7047_s15  ;;  %v3603_v51 = vpack.c.bf16 %v3574_v42, %v3573_v47  ;;  %v3702_v47 = vld [vmem:[#allocation2 + $0x7e] sm:$0xff]  ;;  %v3703_v42 = vld [vmem:[#allocation2 + $0x86] sm:$0xff] }
 0x32f   : > { %v3007_v60 = vpop.permute.xlu1 %3006 }
 0x330   : > { %3046 = vst.msk [vmem:[#allocation3 + $0x90] sm:$0xff] %vm3036_vm1, %v3007_v60  ;;  %v3009_v1 = vpop.permute.xlu0 %3008 }
 0x331   : > { %3510 = vrot.lane.b32.xlu1 %v3475_v57, %s7047_s15  ;;  %3047 = vst.msk [vmem:[#allocation3 + $0xa0] sm:$0xff] %vm3036_vm1, %v3009_v1  ;;  %v3604_v57 = vpack.c.bf16 %v3576_v48, %v3575_v54  ;;  %v3704_v54 = vld [vmem:[#allocation2 + $0x96] sm:$0xff]  ;;  %v3705_v48 = vld [vmem:[#allocation2 + $0x9e] sm:$0xff] }
 0x332   : > { %3512 = vrot.lane.b32.xlu0 %v3476_v61, %s7047_s15  ;;  %v3605_v61 = vpack.c.bf16 %v3578_v53, %v3577_v52  ;;  %v3706_v52 = vld [vmem:[#allocation2 + $0xae] sm:$0xff]  ;;  %v3707_v53 = vld [vmem:[#allocation2 + $0xb6] sm:$0xff] }
 0x333   : > { %v3011_v6 = vpop.permute.xlu1 %3010 }
 0x334   : > { %3048 = vst.msk [vmem:[#allocation3 + $0xb0] sm:$0xff] %vm3036_vm1, %v3011_v6  ;;  %v3013_v11 = vpop.permute.xlu0 %3012 }
 0x335   : > { %3514 = vrot.lane.b32.xlu1 %v3477_v2, %s7047_s15  ;;  %3049 = vst.msk [vmem:[#allocation3 + $0xc0] sm:$0xff] %vm3036_vm1, %v3013_v11  ;;  %v3606_v2 = vpack.c.bf16 %v3580_v59, %v3579_v58  ;;  %v3708_v58 = vld [vmem:[#allocation2 + $0xc6] sm:$0xff]  ;;  %v3709_v59 = vld [vmem:[#allocation2 + $0xce] sm:$0xff] }
 0x336   : > { %3516 = vrot.lane.b32.xlu0 %v3478_v8, %s7047_s15  ;;  %v3607_v8 = vpack.c.bf16 %v3582_v0, %v3581_v63  ;;  %v3710_v63 = vld [vmem:[#allocation2 + $0xde] sm:$0xff]  ;;  %v3711_v0 = vld [vmem:[#allocation2 + $0xe6] sm:$0xff] }
 0x337   : > { %v3015_v17 = vpop.permute.xlu1 %3014 }
 0x338   : > { %3050 = vst.msk [vmem:[#allocation3 + $0xd0] sm:$0xff] %vm3036_vm1, %v3015_v17  ;;  %v3017_v21 = vpop.permute.xlu0 %3016 }
 0x339   : > { %3518 = vrot.lane.b32.xlu1 %v3479_v12, %s7047_s15  ;;  %3051 = vst.msk [vmem:[#allocation3 + $0xe0] sm:$0xff] %vm3036_vm1, %v3017_v21  ;;  %v3608_v12 = vpack.c.bf16 %v3584_v5, %v3583_v4  ;;  %v3712_v4 = vld [vmem:[#allocation2 + $0xf6] sm:$0xff]  ;;  %v3713_v5 = vld [vmem:[#allocation2 + $0xfe] sm:$0xff] }
 0x33a   : > { %3520 = vrot.lane.b32.xlu0 %v3480_v18, %s7047_s15  ;;  %v3609_v18 = vpack.c.bf16 %v3586_v10, %v3585_v9  ;;  %v3714_v9 = vld [vmem:[#allocation2 + $0x10e] sm:$0xff]  ;;  %v3715_v10 = vld [vmem:[#allocation2 + $0x116] sm:$0xff] }
 0x33b   : > { %v3019_v26 = vpop.permute.xlu1 %3018 }
 0x33c   : > { %3052 = vst.msk [vmem:[#allocation3 + $0xf0] sm:$0xff] %vm3036_vm1, %v3019_v26  ;;  %v3118_v45 = vpop.permute.xlu0 %3117  ;;  %vm3294_vm1 = vcmask 786144  }
 0x33d   : > { %3522 = vrot.lane.b32.xlu1 %v3481_v23, %s7047_s15  ;;  %3166 = vst.msk [vmem:[#allocation3] sm:$0xff] %vm3165_vm15, %v3118_v45  ;;  %v3610_v23 = vpack.c.bf16 %v3588_v14, %v3587_v13  ;;  %v3716_v13 = vld [vmem:[#allocation2 + $0x126] sm:$0xff]  ;;  %v3717_v14 = vld [vmem:[#allocation2 + $0x12e] sm:$0xff] }
 0x33e   : > { %3524 = vrot.lane.b32.xlu0 %v3482_v27, %s7047_s15  ;;  %v3611_v27 = vpack.c.bf16 %v3590_v20, %v3589_v19  ;;  %v3718_v19 = vld [vmem:[#allocation2 + $0x13e] sm:$0xff]  ;;  %v3719_v20 = vld [vmem:[#allocation2 + $0x146] sm:$0xff] }
 0x33f   : > { %v3120_v7 = vpop.permute.xlu1 %3119 }
 0x340   : > { %3167 = vst.msk [vmem:[#allocation3 + $0x10] sm:$0xff] %vm3165_vm15, %v3120_v7  ;;  %v3122_v30 = vpop.permute.xlu0 %3121 }
 0x341   : > { %3526 = vrot.lane.b32.xlu1 %v3483_v56, %s7047_s15  ;;  %3168 = vst.msk [vmem:[#allocation3 + $0x20] sm:$0xff] %vm3165_vm15, %v3122_v30  ;;  %v3612_v56 = vpack.c.bf16 %v3592_v25, %v3591_v24  ;;  %v3720_v24 = vld [vmem:[#allocation2 + $0x156] sm:$0xff]  ;;  %v3721_v25 = vld [vmem:[#allocation2 + $0x15e] sm:$0xff] }
 0x342   : > { %3528 = vrot.lane.b32.xlu0 %v3484_v15, %s7047_s15  ;;  %v3613_v15 = vpack.c.bf16 %v3594_v50, %v3593_v29  ;;  %v3722_v29 = vld [vmem:[#allocation2 + $0x16e] sm:$0xff]  ;;  %v3723_v50 = vld [vmem:[#allocation2 + $0x176] sm:$0xff] }
 0x343   : > { %v3124_v33 = vpop.permute.xlu1 %3123 }
 0x344   : > { %3169 = vst.msk [vmem:[#allocation3 + $0x30] sm:$0xff] %vm3165_vm15, %v3124_v33  ;;  %v3126_v36 = vpop.permute.xlu0 %3125 }
 0x345   : > { %3530 = vrot.lane.b32.xlu1 %v3485_v28, %s7047_s15  ;;  %3170 = vst.msk [vmem:[#allocation3 + $0x40] sm:$0xff] %vm3165_vm15, %v3126_v36  ;;  %v3614_v28 = vpack.c.bf16 %v3596_v3, %v3595_v62  ;;  %v3724_v62 = vld [vmem:[#allocation2 + $0x186] sm:$0xff]  ;;  %v3725_v3 = vld [vmem:[#allocation2 + $0x18e] sm:$0xff] }
 0x346   : > { %3532 = vrot.lane.b32.xlu0 %v3486_v34, %s7047_s15  ;;  %v3615_v34 = vpack.c.bf16 %v3598_v22, %v3597_v16  ;;  %v3726_v16 = vld [vmem:[#allocation2 + $0x19e] sm:$0xff]  ;;  %v3727_v22 = vld [vmem:[#allocation2 + $0x1a6] sm:$0xff] }
 0x347   : > { %v3128_v40 = vpop.permute.xlu1 %3127 }
 0x348   : > { %3171 = vst.msk [vmem:[#allocation3 + $0x50] sm:$0xff] %vm3165_vm15, %v3128_v40  ;;  %v3130_v43 = vpop.permute.xlu0 %3129 }
 0x349   : > { %3534 = vrot.lane.b32.xlu1 %v3487_v38, %s7047_s15  ;;  %3172 = vst.msk [vmem:[#allocation3 + $0x60] sm:$0xff] %vm3165_vm15, %v3130_v43  ;;  %v3616_v38 = vpack.c.bf16 %v3600_v32, %v3599_v31  ;;  %v3728_v31 = vld [vmem:[#allocation2 + $0x1b6] sm:$0xff]  ;;  %v3729_v32 = vld [vmem:[#allocation2 + $0x1be] sm:$0xff] }
 0x34a   : > { %3633 = vrot.lane.b32.xlu0 %v3601_v41, %s7048_s4  ;;  %v3730_v41 = vpack.c.bf16 %v3699_v35, %v3698_v37  ;;  %v3828_v37 = vld [vmem:[#allocation2 + $0x60] sm:$0xff]  ;;  %v3829_v35 = vld [vmem:[#allocation2 + $0x68] sm:$0xff] }
 0x34b   : > { %v3132_v49 = vpop.permute.xlu1 %3131 }
 0x34c   : > { %3173 = vst.msk [vmem:[#allocation3 + $0x70] sm:$0xff] %vm3165_vm15, %v3132_v49  ;;  %v3134_v55 = vpop.permute.xlu0 %3133 }
 0x34d   : > { %3635 = vrot.lane.b32.xlu1 %v3602_v44, %s7048_s4  ;;  %3174 = vst.msk [vmem:[#allocation3 + $0x80] sm:$0xff] %vm3165_vm15, %v3134_v55  ;;  %v3731_v44 = vpack.c.bf16 %v3701_v39, %v3700_v46  ;;  %v3830_v46 = vld [vmem:[#allocation2 + $0x78] sm:$0xff]  ;;  %v3831_v39 = vld [vmem:[#allocation2 + $0x80] sm:$0xff] }
 0x34e   : > { %3637 = vrot.lane.b32.xlu0 %v3603_v51, %s7048_s4  ;;  %v3732_v51 = vpack.c.bf16 %v3703_v42, %v3702_v47  ;;  %v3832_v47 = vld [vmem:[#allocation2 + $0x90] sm:$0xff]  ;;  %v3833_v42 = vld [vmem:[#allocation2 + $0x98] sm:$0xff] }
 0x34f   : > { %v3136_v60 = vpop.permute.xlu1 %3135 }
 0x350   : > { %3175 = vst.msk [vmem:[#allocation3 + $0x90] sm:$0xff] %vm3165_vm15, %v3136_v60  ;;  %v3138_v1 = vpop.permute.xlu0 %3137 }
 0x351   : > { %3639 = vrot.lane.b32.xlu1 %v3604_v57, %s7048_s4  ;;  %3176 = vst.msk [vmem:[#allocation3 + $0xa0] sm:$0xff] %vm3165_vm15, %v3138_v1  ;;  %v3733_v57 = vpack.c.bf16 %v3705_v48, %v3704_v54  ;;  %v3834_v54 = vld [vmem:[#allocation2 + $0xa8] sm:$0xff]  ;;  %v3835_v48 = vld [vmem:[#allocation2 + $0xb0] sm:$0xff] }
 0x352   : > { %3641 = vrot.lane.b32.xlu0 %v3605_v61, %s7048_s4  ;;  %v3734_v61 = vpack.c.bf16 %v3707_v53, %v3706_v52  ;;  %v3836_v52 = vld [vmem:[#allocation2 + $0xc0] sm:$0xff]  ;;  %v3837_v53 = vld [vmem:[#allocation2 + $0xc8] sm:$0xff] }
 0x353   : > { %v3140_v6 = vpop.permute.xlu1 %3139 }
 0x354   : > { %3177 = vst.msk [vmem:[#allocation3 + $0xb0] sm:$0xff] %vm3165_vm15, %v3140_v6  ;;  %v3142_v11 = vpop.permute.xlu0 %3141 }
 0x355   : > { %3643 = vrot.lane.b32.xlu1 %v3606_v2, %s7048_s4  ;;  %3178 = vst.msk [vmem:[#allocation3 + $0xc0] sm:$0xff] %vm3165_vm15, %v3142_v11  ;;  %v3735_v2 = vpack.c.bf16 %v3709_v59, %v3708_v58  ;;  %v3838_v58 = vld [vmem:[#allocation2 + $0xd8] sm:$0xff]  ;;  %v3839_v59 = vld [vmem:[#allocation2 + $0xe0] sm:$0xff] }
 0x356   : > { %3645 = vrot.lane.b32.xlu0 %v3607_v8, %s7048_s4  ;;  %v3736_v8 = vpack.c.bf16 %v3711_v0, %v3710_v63  ;;  %v3840_v63 = vld [vmem:[#allocation2 + $0xf0] sm:$0xff]  ;;  %v3841_v0 = vld [vmem:[#allocation2 + $0xf8] sm:$0xff] }
 0x357   : > { %v3144_v17 = vpop.permute.xlu1 %3143 }
 0x358   : > { %3179 = vst.msk [vmem:[#allocation3 + $0xd0] sm:$0xff] %vm3165_vm15, %v3144_v17  ;;  %v3146_v21 = vpop.permute.xlu0 %3145 }
 0x359   : > { %3647 = vrot.lane.b32.xlu1 %v3608_v12, %s7048_s4  ;;  %3180 = vst.msk [vmem:[#allocation3 + $0xe0] sm:$0xff] %vm3165_vm15, %v3146_v21  ;;  %v3737_v12 = vpack.c.bf16 %v3713_v5, %v3712_v4  ;;  %v3842_v4 = vld [vmem:[#allocation2 + $0x108] sm:$0xff]  ;;  %v3843_v5 = vld [vmem:[#allocation2 + $0x110] sm:$0xff] }
 0x35a   : > { %3649 = vrot.lane.b32.xlu0 %v3609_v18, %s7048_s4  ;;  %v3738_v18 = vpack.c.bf16 %v3715_v10, %v3714_v9  ;;  %v3844_v9 = vld [vmem:[#allocation2 + $0x120] sm:$0xff]  ;;  %v3845_v10 = vld [vmem:[#allocation2 + $0x128] sm:$0xff] }
 0x35b   : > { %v3148_v26 = vpop.permute.xlu1 %3147 }
 0x35c   : > { %3181 = vst.msk [vmem:[#allocation3 + $0xf0] sm:$0xff] %vm3165_vm15, %v3148_v26  ;;  %v3247_v45 = vpop.permute.xlu0 %3246  ;;  %vm3423_vm15 = vcmask 818944  }
 0x35d   : > { %3651 = vrot.lane.b32.xlu1 %v3610_v23, %s7048_s4  ;;  %3295 = vst.msk [vmem:[#allocation3] sm:$0xff] %vm3294_vm1, %v3247_v45  ;;  %v3739_v23 = vpack.c.bf16 %v3717_v14, %v3716_v13  ;;  %v3846_v13 = vld [vmem:[#allocation2 + $0x138] sm:$0xff]  ;;  %v3847_v14 = vld [vmem:[#allocation2 + $0x140] sm:$0xff] }
 0x35e   : > { %3653 = vrot.lane.b32.xlu0 %v3611_v27, %s7048_s4  ;;  %v3740_v27 = vpack.c.bf16 %v3719_v20, %v3718_v19  ;;  %v3848_v19 = vld [vmem:[#allocation2 + $0x150] sm:$0xff]  ;;  %v3849_v20 = vld [vmem:[#allocation2 + $0x158] sm:$0xff] }
 0x35f   : > { %v3249_v7 = vpop.permute.xlu1 %3248 }
 0x360   : > { %3296 = vst.msk [vmem:[#allocation3 + $0x10] sm:$0xff] %vm3294_vm1, %v3249_v7  ;;  %v3251_v30 = vpop.permute.xlu0 %3250 }
 0x361   : > { %3655 = vrot.lane.b32.xlu1 %v3612_v56, %s7048_s4  ;;  %3297 = vst.msk [vmem:[#allocation3 + $0x20] sm:$0xff] %vm3294_vm1, %v3251_v30  ;;  %v3741_v56 = vpack.c.bf16 %v3721_v25, %v3720_v24  ;;  %v3850_v24 = vld [vmem:[#allocation2 + $0x168] sm:$0xff]  ;;  %v3851_v25 = vld [vmem:[#allocation2 + $0x170] sm:$0xff] }
 0x362   : > { %3657 = vrot.lane.b32.xlu0 %v3613_v15, %s7048_s4  ;;  %v3742_v15 = vpack.c.bf16 %v3723_v50, %v3722_v29  ;;  %v3852_v29 = vld [vmem:[#allocation2 + $0x180] sm:$0xff]  ;;  %v3853_v50 = vld [vmem:[#allocation2 + $0x188] sm:$0xff] }
 0x363   : > { %v3253_v33 = vpop.permute.xlu1 %3252 }
 0x364   : > { %3298 = vst.msk [vmem:[#allocation3 + $0x30] sm:$0xff] %vm3294_vm1, %v3253_v33  ;;  %v3255_v36 = vpop.permute.xlu0 %3254 }
 0x365   : > { %3659 = vrot.lane.b32.xlu1 %v3614_v28, %s7048_s4  ;;  %3299 = vst.msk [vmem:[#allocation3 + $0x40] sm:$0xff] %vm3294_vm1, %v3255_v36  ;;  %v3743_v28 = vpack.c.bf16 %v3725_v3, %v3724_v62  ;;  %v3854_v62 = vld [vmem:[#allocation2 + $0x198] sm:$0xff]  ;;  %v3855_v3 = vld [vmem:[#allocation2 + $0x1a0] sm:$0xff] }
 0x366   : > { %3661 = vrot.lane.b32.xlu0 %v3615_v34, %s7048_s4  ;;  %v3744_v34 = vpack.c.bf16 %v3727_v22, %v3726_v16  ;;  %v3856_v16 = vld [vmem:[#allocation2 + $0x1b0] sm:$0xff]  ;;  %v3857_v22 = vld [vmem:[#allocation2 + $0x1b8] sm:$0xff] }
 0x367   : > { %v3257_v40 = vpop.permute.xlu1 %3256 }
 0x368   : > { %3300 = vst.msk [vmem:[#allocation3 + $0x50] sm:$0xff] %vm3294_vm1, %v3257_v40  ;;  %v3259_v43 = vpop.permute.xlu0 %3258 }
 0x369   : > { %3663 = vrot.lane.b32.xlu1 %v3616_v38, %s7048_s4  ;;  %3301 = vst.msk [vmem:[#allocation3 + $0x60] sm:$0xff] %vm3294_vm1, %v3259_v43  ;;  %v3745_v38 = vpack.c.bf16 %v3729_v32, %v3728_v31  ;;  %v3858_v31 = vld [vmem:[#allocation2 + $0x1c8] sm:$0xff]  ;;  %v3859_v32 = vld [vmem:[#allocation2 + $0x1d0] sm:$0xff] }
 0x36a   : > { %3762 = vrot.lane.b32.xlu0 %v3730_v41, %s7049_s5  ;;  %v3860_v41 = vpack.c.bf16 %v3829_v35, %v3828_v37  ;;  %v3957_v37 = vld [vmem:[#allocation2 + $0x61] sm:$0xff]  ;;  %v3958_v35 = vld [vmem:[#allocation2 + $0x69] sm:$0xff] }
 0x36b   : > { %v3261_v49 = vpop.permute.xlu1 %3260 }
 0x36c   : > { %3302 = vst.msk [vmem:[#allocation3 + $0x70] sm:$0xff] %vm3294_vm1, %v3261_v49  ;;  %v3263_v55 = vpop.permute.xlu0 %3262 }
 0x36d   : > { %3764 = vrot.lane.b32.xlu1 %v3731_v44, %s7049_s5  ;;  %3303 = vst.msk [vmem:[#allocation3 + $0x80] sm:$0xff] %vm3294_vm1, %v3263_v55  ;;  %v3861_v44 = vpack.c.bf16 %v3831_v39, %v3830_v46  ;;  %v3959_v46 = vld [vmem:[#allocation2 + $0x79] sm:$0xff]  ;;  %v3960_v39 = vld [vmem:[#allocation2 + $0x81] sm:$0xff] }
 0x36e   : > { %3766 = vrot.lane.b32.xlu0 %v3732_v51, %s7049_s5  ;;  %v3862_v51 = vpack.c.bf16 %v3833_v42, %v3832_v47  ;;  %v3961_v47 = vld [vmem:[#allocation2 + $0x91] sm:$0xff]  ;;  %v3962_v42 = vld [vmem:[#allocation2 + $0x99] sm:$0xff] }
 0x36f   : > { %v3265_v60 = vpop.permute.xlu1 %3264 }
 0x370   : > { %3304 = vst.msk [vmem:[#allocation3 + $0x90] sm:$0xff] %vm3294_vm1, %v3265_v60  ;;  %v3267_v1 = vpop.permute.xlu0 %3266 }
 0x371   : > { %3768 = vrot.lane.b32.xlu1 %v3733_v57, %s7049_s5  ;;  %3305 = vst.msk [vmem:[#allocation3 + $0xa0] sm:$0xff] %vm3294_vm1, %v3267_v1  ;;  %v3863_v57 = vpack.c.bf16 %v3835_v48, %v3834_v54  ;;  %v3963_v54 = vld [vmem:[#allocation2 + $0xa9] sm:$0xff]  ;;  %v3964_v48 = vld [vmem:[#allocation2 + $0xb1] sm:$0xff] }
 0x372   : > { %3770 = vrot.lane.b32.xlu0 %v3734_v61, %s7049_s5  ;;  %v3864_v61 = vpack.c.bf16 %v3837_v53, %v3836_v52  ;;  %v3965_v52 = vld [vmem:[#allocation2 + $0xc1] sm:$0xff]  ;;  %v3966_v53 = vld [vmem:[#allocation2 + $0xc9] sm:$0xff] }
 0x373   : > { %v3269_v6 = vpop.permute.xlu1 %3268 }
 0x374   : > { %3306 = vst.msk [vmem:[#allocation3 + $0xb0] sm:$0xff] %vm3294_vm1, %v3269_v6  ;;  %v3271_v11 = vpop.permute.xlu0 %3270 }
 0x375   : > { %3772 = vrot.lane.b32.xlu1 %v3735_v2, %s7049_s5  ;;  %3307 = vst.msk [vmem:[#allocation3 + $0xc0] sm:$0xff] %vm3294_vm1, %v3271_v11  ;;  %v3865_v2 = vpack.c.bf16 %v3839_v59, %v3838_v58  ;;  %v3967_v58 = vld [vmem:[#allocation2 + $0xd9] sm:$0xff]  ;;  %v3968_v59 = vld [vmem:[#allocation2 + $0xe1] sm:$0xff] }
 0x376   : > { %3774 = vrot.lane.b32.xlu0 %v3736_v8, %s7049_s5  ;;  %v3866_v8 = vpack.c.bf16 %v3841_v0, %v3840_v63  ;;  %v3969_v63 = vld [vmem:[#allocation2 + $0xf1] sm:$0xff]  ;;  %v3970_v0 = vld [vmem:[#allocation2 + $0xf9] sm:$0xff] }
 0x377   : > { %v3273_v17 = vpop.permute.xlu1 %3272 }
 0x378   : > { %3308 = vst.msk [vmem:[#allocation3 + $0xd0] sm:$0xff] %vm3294_vm1, %v3273_v17  ;;  %v3275_v21 = vpop.permute.xlu0 %3274 }
 0x379   : > { %3776 = vrot.lane.b32.xlu1 %v3737_v12, %s7049_s5  ;;  %3309 = vst.msk [vmem:[#allocation3 + $0xe0] sm:$0xff] %vm3294_vm1, %v3275_v21  ;;  %v3867_v12 = vpack.c.bf16 %v3843_v5, %v3842_v4  ;;  %v3971_v4 = vld [vmem:[#allocation2 + $0x109] sm:$0xff]  ;;  %v3972_v5 = vld [vmem:[#allocation2 + $0x111] sm:$0xff] }
 0x37a   : > { %3778 = vrot.lane.b32.xlu0 %v3738_v18, %s7049_s5  ;;  %v3868_v18 = vpack.c.bf16 %v3845_v10, %v3844_v9  ;;  %v3973_v9 = vld [vmem:[#allocation2 + $0x121] sm:$0xff]  ;;  %v3974_v10 = vld [vmem:[#allocation2 + $0x129] sm:$0xff] }
 0x37b   : > { %v3277_v26 = vpop.permute.xlu1 %3276 }
 0x37c   : > { %3310 = vst.msk [vmem:[#allocation3 + $0xf0] sm:$0xff] %vm3294_vm1, %v3277_v26  ;;  %v3376_v45 = vpop.permute.xlu0 %3375  ;;  %vm3552_vm1 = vcmask 851744  }
 0x37d   : > { %3780 = vrot.lane.b32.xlu1 %v3739_v23, %s7049_s5  ;;  %3424 = vst.msk [vmem:[#allocation3] sm:$0xff] %vm3423_vm15, %v3376_v45  ;;  %v3869_v23 = vpack.c.bf16 %v3847_v14, %v3846_v13  ;;  %v3975_v13 = vld [vmem:[#allocation2 + $0x139] sm:$0xff]  ;;  %v3976_v14 = vld [vmem:[#allocation2 + $0x141] sm:$0xff] }
 0x37e   : > { %3782 = vrot.lane.b32.xlu0 %v3740_v27, %s7049_s5  ;;  %v3870_v27 = vpack.c.bf16 %v3849_v20, %v3848_v19  ;;  %v3977_v19 = vld [vmem:[#allocation2 + $0x151] sm:$0xff]  ;;  %v3978_v20 = vld [vmem:[#allocation2 + $0x159] sm:$0xff] }
 0x37f   : > { %v3378_v7 = vpop.permute.xlu1 %3377 }
 0x380   : > { %3425 = vst.msk [vmem:[#allocation3 + $0x10] sm:$0xff] %vm3423_vm15, %v3378_v7  ;;  %v3380_v30 = vpop.permute.xlu0 %3379 }
 0x381   : > { %3784 = vrot.lane.b32.xlu1 %v3741_v56, %s7049_s5  ;;  %3426 = vst.msk [vmem:[#allocation3 + $0x20] sm:$0xff] %vm3423_vm15, %v3380_v30  ;;  %v3871_v56 = vpack.c.bf16 %v3851_v25, %v3850_v24  ;;  %v3979_v24 = vld [vmem:[#allocation2 + $0x169] sm:$0xff]  ;;  %v3980_v25 = vld [vmem:[#allocation2 + $0x171] sm:$0xff] }
 0x382   : > { %3786 = vrot.lane.b32.xlu0 %v3742_v15, %s7049_s5  ;;  %v3872_v15 = vpack.c.bf16 %v3853_v50, %v3852_v29  ;;  %v3981_v29 = vld [vmem:[#allocation2 + $0x181] sm:$0xff]  ;;  %v3982_v50 = vld [vmem:[#allocation2 + $0x189] sm:$0xff] }
 0x383   : > { %v3382_v33 = vpop.permute.xlu1 %3381 }
 0x384   : > { %3427 = vst.msk [vmem:[#allocation3 + $0x30] sm:$0xff] %vm3423_vm15, %v3382_v33  ;;  %v3384_v36 = vpop.permute.xlu0 %3383 }
 0x385   : > { %3788 = vrot.lane.b32.xlu1 %v3743_v28, %s7049_s5  ;;  %3428 = vst.msk [vmem:[#allocation3 + $0x40] sm:$0xff] %vm3423_vm15, %v3384_v36  ;;  %v3873_v28 = vpack.c.bf16 %v3855_v3, %v3854_v62  ;;  %v3983_v62 = vld [vmem:[#allocation2 + $0x199] sm:$0xff]  ;;  %v3984_v3 = vld [vmem:[#allocation2 + $0x1a1] sm:$0xff] }
 0x386   : > { %3790 = vrot.lane.b32.xlu0 %v3744_v34, %s7049_s5  ;;  %v3874_v34 = vpack.c.bf16 %v3857_v22, %v3856_v16  ;;  %v3985_v16 = vld [vmem:[#allocation2 + $0x1b1] sm:$0xff]  ;;  %v3986_v22 = vld [vmem:[#allocation2 + $0x1b9] sm:$0xff] }
 0x387   : > { %v3386_v40 = vpop.permute.xlu1 %3385 }
 0x388   : > { %3429 = vst.msk [vmem:[#allocation3 + $0x50] sm:$0xff] %vm3423_vm15, %v3386_v40  ;;  %v3388_v43 = vpop.permute.xlu0 %3387 }
 0x389   : > { %3792 = vrot.lane.b32.xlu1 %v3745_v38, %s7049_s5  ;;  %3430 = vst.msk [vmem:[#allocation3 + $0x60] sm:$0xff] %vm3423_vm15, %v3388_v43  ;;  %v3875_v38 = vpack.c.bf16 %v3859_v32, %v3858_v31  ;;  %v3987_v31 = vld [vmem:[#allocation2 + $0x1c9] sm:$0xff]  ;;  %v3988_v32 = vld [vmem:[#allocation2 + $0x1d1] sm:$0xff] }
 0x38a   : > { %3892 = vrot.lane.b32.xlu0 %v3860_v41, %s7050_s6  ;;  %v3989_v41 = vpack.c.bf16 %v3958_v35, %v3957_v37  ;;  %v4086_v37 = vld [vmem:[#allocation2 + $0x62] sm:$0xff]  ;;  %v4087_v35 = vld [vmem:[#allocation2 + $0x6a] sm:$0xff] }
 0x38b   : > { %v3390_v49 = vpop.permute.xlu1 %3389 }
 0x38c   : > { %3431 = vst.msk [vmem:[#allocation3 + $0x70] sm:$0xff] %vm3423_vm15, %v3390_v49  ;;  %v3392_v55 = vpop.permute.xlu0 %3391 }
 0x38d   : > { %3894 = vrot.lane.b32.xlu1 %v3861_v44, %s7050_s6  ;;  %3432 = vst.msk [vmem:[#allocation3 + $0x80] sm:$0xff] %vm3423_vm15, %v3392_v55  ;;  %v3990_v44 = vpack.c.bf16 %v3960_v39, %v3959_v46  ;;  %v4088_v46 = vld [vmem:[#allocation2 + $0x7a] sm:$0xff]  ;;  %v4089_v39 = vld [vmem:[#allocation2 + $0x82] sm:$0xff] }
 0x38e   : > { %3896 = vrot.lane.b32.xlu0 %v3862_v51, %s7050_s6  ;;  %v3991_v51 = vpack.c.bf16 %v3962_v42, %v3961_v47  ;;  %v4090_v47 = vld [vmem:[#allocation2 + $0x92] sm:$0xff]  ;;  %v4091_v42 = vld [vmem:[#allocation2 + $0x9a] sm:$0xff] }
 0x38f   : > { %v3394_v60 = vpop.permute.xlu1 %3393 }
 0x390   : > { %3433 = vst.msk [vmem:[#allocation3 + $0x90] sm:$0xff] %vm3423_vm15, %v3394_v60  ;;  %v3396_v1 = vpop.permute.xlu0 %3395 }
 0x391   : > { %3898 = vrot.lane.b32.xlu1 %v3863_v57, %s7050_s6  ;;  %3434 = vst.msk [vmem:[#allocation3 + $0xa0] sm:$0xff] %vm3423_vm15, %v3396_v1  ;;  %v3992_v57 = vpack.c.bf16 %v3964_v48, %v3963_v54  ;;  %v4092_v54 = vld [vmem:[#allocation2 + $0xaa] sm:$0xff]  ;;  %v4093_v48 = vld [vmem:[#allocation2 + $0xb2] sm:$0xff] }
 0x392   : > { %3900 = vrot.lane.b32.xlu0 %v3864_v61, %s7050_s6  ;;  %v3993_v61 = vpack.c.bf16 %v3966_v53, %v3965_v52  ;;  %v4094_v52 = vld [vmem:[#allocation2 + $0xc2] sm:$0xff]  ;;  %v4095_v53 = vld [vmem:[#allocation2 + $0xca] sm:$0xff] }
 0x393   : > { %v3398_v6 = vpop.permute.xlu1 %3397 }
 0x394   : > { %3435 = vst.msk [vmem:[#allocation3 + $0xb0] sm:$0xff] %vm3423_vm15, %v3398_v6  ;;  %v3400_v11 = vpop.permute.xlu0 %3399 }
 0x395   : > { %3902 = vrot.lane.b32.xlu1 %v3865_v2, %s7050_s6  ;;  %3436 = vst.msk [vmem:[#allocation3 + $0xc0] sm:$0xff] %vm3423_vm15, %v3400_v11  ;;  %v3994_v2 = vpack.c.bf16 %v3968_v59, %v3967_v58  ;;  %v4096_v58 = vld [vmem:[#allocation2 + $0xda] sm:$0xff]  ;;  %v4097_v59 = vld [vmem:[#allocation2 + $0xe2] sm:$0xff] }
 0x396   : > { %3904 = vrot.lane.b32.xlu0 %v3866_v8, %s7050_s6  ;;  %v3995_v8 = vpack.c.bf16 %v3970_v0, %v3969_v63  ;;  %v4098_v63 = vld [vmem:[#allocation2 + $0xf2] sm:$0xff]  ;;  %v4099_v0 = vld [vmem:[#allocation2 + $0xfa] sm:$0xff] }
 0x397   : > { %v3402_v17 = vpop.permute.xlu1 %3401 }
 0x398   : > { %3437 = vst.msk [vmem:[#allocation3 + $0xd0] sm:$0xff] %vm3423_vm15, %v3402_v17  ;;  %v3404_v21 = vpop.permute.xlu0 %3403 }
 0x399   : > { %3906 = vrot.lane.b32.xlu1 %v3867_v12, %s7050_s6  ;;  %3438 = vst.msk [vmem:[#allocation3 + $0xe0] sm:$0xff] %vm3423_vm15, %v3404_v21  ;;  %v3996_v12 = vpack.c.bf16 %v3972_v5, %v3971_v4  ;;  %v4100_v4 = vld [vmem:[#allocation2 + $0x10a] sm:$0xff]  ;;  %v4101_v5 = vld [vmem:[#allocation2 + $0x112] sm:$0xff] }
 0x39a   : > { %3908 = vrot.lane.b32.xlu0 %v3868_v18, %s7050_s6  ;;  %v3997_v18 = vpack.c.bf16 %v3974_v10, %v3973_v9  ;;  %v4102_v9 = vld [vmem:[#allocation2 + $0x122] sm:$0xff]  ;;  %v4103_v10 = vld [vmem:[#allocation2 + $0x12a] sm:$0xff] }
 0x39b   : > { %v3406_v26 = vpop.permute.xlu1 %3405 }
 0x39c   : > { %3439 = vst.msk [vmem:[#allocation3 + $0xf0] sm:$0xff] %vm3423_vm15, %v3406_v26  ;;  %v3505_v45 = vpop.permute.xlu0 %3504  ;;  %vm3681_vm15 = vcmask 884544  }
 0x39d   : > { %3910 = vrot.lane.b32.xlu1 %v3869_v23, %s7050_s6  ;;  %3553 = vst.msk [vmem:[#allocation3] sm:$0xff] %vm3552_vm1, %v3505_v45  ;;  %v3998_v23 = vpack.c.bf16 %v3976_v14, %v3975_v13  ;;  %v4104_v13 = vld [vmem:[#allocation2 + $0x13a] sm:$0xff]  ;;  %v4105_v14 = vld [vmem:[#allocation2 + $0x142] sm:$0xff] }
 0x39e   : > { %3912 = vrot.lane.b32.xlu0 %v3870_v27, %s7050_s6  ;;  %v3999_v27 = vpack.c.bf16 %v3978_v20, %v3977_v19  ;;  %v4106_v19 = vld [vmem:[#allocation2 + $0x152] sm:$0xff]  ;;  %v4107_v20 = vld [vmem:[#allocation2 + $0x15a] sm:$0xff] }
 0x39f   : > { %v3507_v7 = vpop.permute.xlu1 %3506 }
 0x3a0   : > { %3554 = vst.msk [vmem:[#allocation3 + $0x10] sm:$0xff] %vm3552_vm1, %v3507_v7  ;;  %v3509_v30 = vpop.permute.xlu0 %3508 }
 0x3a1   : > { %3914 = vrot.lane.b32.xlu1 %v3871_v56, %s7050_s6  ;;  %3555 = vst.msk [vmem:[#allocation3 + $0x20] sm:$0xff] %vm3552_vm1, %v3509_v30  ;;  %v4000_v56 = vpack.c.bf16 %v3980_v25, %v3979_v24  ;;  %v4108_v24 = vld [vmem:[#allocation2 + $0x16a] sm:$0xff]  ;;  %v4109_v25 = vld [vmem:[#allocation2 + $0x172] sm:$0xff] }
 0x3a2   : > { %3916 = vrot.lane.b32.xlu0 %v3872_v15, %s7050_s6  ;;  %v4001_v15 = vpack.c.bf16 %v3982_v50, %v3981_v29  ;;  %v4110_v29 = vld [vmem:[#allocation2 + $0x182] sm:$0xff]  ;;  %v4111_v50 = vld [vmem:[#allocation2 + $0x18a] sm:$0xff] }
 0x3a3   : > { %v3511_v33 = vpop.permute.xlu1 %3510 }
 0x3a4   : > { %3556 = vst.msk [vmem:[#allocation3 + $0x30] sm:$0xff] %vm3552_vm1, %v3511_v33  ;;  %v3513_v36 = vpop.permute.xlu0 %3512 }
 0x3a5   : > { %3918 = vrot.lane.b32.xlu1 %v3873_v28, %s7050_s6  ;;  %3557 = vst.msk [vmem:[#allocation3 + $0x40] sm:$0xff] %vm3552_vm1, %v3513_v36  ;;  %v4002_v28 = vpack.c.bf16 %v3984_v3, %v3983_v62  ;;  %v4112_v62 = vld [vmem:[#allocation2 + $0x19a] sm:$0xff]  ;;  %v4113_v3 = vld [vmem:[#allocation2 + $0x1a2] sm:$0xff] }
 0x3a6   : > { %3920 = vrot.lane.b32.xlu0 %v3874_v34, %s7050_s6  ;;  %v4003_v34 = vpack.c.bf16 %v3986_v22, %v3985_v16  ;;  %v4114_v16 = vld [vmem:[#allocation2 + $0x1b2] sm:$0xff]  ;;  %v4115_v22 = vld [vmem:[#allocation2 + $0x1ba] sm:$0xff] }
 0x3a7   : > { %v3515_v40 = vpop.permute.xlu1 %3514 }
 0x3a8   : > { %3558 = vst.msk [vmem:[#allocation3 + $0x50] sm:$0xff] %vm3552_vm1, %v3515_v40  ;;  %v3517_v43 = vpop.permute.xlu0 %3516 }
 0x3a9   : > { %3922 = vrot.lane.b32.xlu1 %v3875_v38, %s7050_s6  ;;  %3559 = vst.msk [vmem:[#allocation3 + $0x60] sm:$0xff] %vm3552_vm1, %v3517_v43  ;;  %v4004_v38 = vpack.c.bf16 %v3988_v32, %v3987_v31  ;;  %v4116_v31 = vld [vmem:[#allocation2 + $0x1ca] sm:$0xff]  ;;  %v4117_v32 = vld [vmem:[#allocation2 + $0x1d2] sm:$0xff] }
 0x3aa   : > { %4021 = vrot.lane.b32.xlu0 %v3989_v41, %s7051_s7  ;;  %v4118_v41 = vpack.c.bf16 %v4087_v35, %v4086_v37  ;;  %v4215_v37 = vld [vmem:[#allocation2 + $0x63] sm:$0xff]  ;;  %v4216_v35 = vld [vmem:[#allocation2 + $0x6b] sm:$0xff] }
 0x3ab   : > { %v3519_v49 = vpop.permute.xlu1 %3518 }
 0x3ac   : > { %3560 = vst.msk [vmem:[#allocation3 + $0x70] sm:$0xff] %vm3552_vm1, %v3519_v49  ;;  %v3521_v55 = vpop.permute.xlu0 %3520 }
 0x3ad   : > { %4023 = vrot.lane.b32.xlu1 %v3990_v44, %s7051_s7  ;;  %3561 = vst.msk [vmem:[#allocation3 + $0x80] sm:$0xff] %vm3552_vm1, %v3521_v55  ;;  %v4119_v44 = vpack.c.bf16 %v4089_v39, %v4088_v46  ;;  %v4217_v46 = vld [vmem:[#allocation2 + $0x7b] sm:$0xff]  ;;  %v4218_v39 = vld [vmem:[#allocation2 + $0x83] sm:$0xff] }
 0x3ae   : > { %4025 = vrot.lane.b32.xlu0 %v3991_v51, %s7051_s7  ;;  %v4120_v51 = vpack.c.bf16 %v4091_v42, %v4090_v47  ;;  %v4219_v47 = vld [vmem:[#allocation2 + $0x93] sm:$0xff]  ;;  %v4220_v42 = vld [vmem:[#allocation2 + $0x9b] sm:$0xff] }
 0x3af   : > { %v3523_v60 = vpop.permute.xlu1 %3522 }
 0x3b0   : > { %3562 = vst.msk [vmem:[#allocation3 + $0x90] sm:$0xff] %vm3552_vm1, %v3523_v60  ;;  %v3525_v1 = vpop.permute.xlu0 %3524 }
 0x3b1   : > { %4027 = vrot.lane.b32.xlu1 %v3992_v57, %s7051_s7  ;;  %3563 = vst.msk [vmem:[#allocation3 + $0xa0] sm:$0xff] %vm3552_vm1, %v3525_v1  ;;  %v4121_v57 = vpack.c.bf16 %v4093_v48, %v4092_v54  ;;  %v4221_v54 = vld [vmem:[#allocation2 + $0xab] sm:$0xff]  ;;  %v4222_v48 = vld [vmem:[#allocation2 + $0xb3] sm:$0xff] }
 0x3b2   : > { %4029 = vrot.lane.b32.xlu0 %v3993_v61, %s7051_s7  ;;  %v4122_v61 = vpack.c.bf16 %v4095_v53, %v4094_v52  ;;  %v4223_v52 = vld [vmem:[#allocation2 + $0xc3] sm:$0xff]  ;;  %v4224_v53 = vld [vmem:[#allocation2 + $0xcb] sm:$0xff] }
 0x3b3   : > { %v3527_v6 = vpop.permute.xlu1 %3526 }
 0x3b4   : > { %3564 = vst.msk [vmem:[#allocation3 + $0xb0] sm:$0xff] %vm3552_vm1, %v3527_v6  ;;  %v3529_v11 = vpop.permute.xlu0 %3528 }
 0x3b5   : > { %4031 = vrot.lane.b32.xlu1 %v3994_v2, %s7051_s7  ;;  %3565 = vst.msk [vmem:[#allocation3 + $0xc0] sm:$0xff] %vm3552_vm1, %v3529_v11  ;;  %v4123_v2 = vpack.c.bf16 %v4097_v59, %v4096_v58  ;;  %v4225_v58 = vld [vmem:[#allocation2 + $0xdb] sm:$0xff]  ;;  %v4226_v59 = vld [vmem:[#allocation2 + $0xe3] sm:$0xff] }
 0x3b6   : > { %4033 = vrot.lane.b32.xlu0 %v3995_v8, %s7051_s7  ;;  %v4124_v8 = vpack.c.bf16 %v4099_v0, %v4098_v63  ;;  %v4227_v63 = vld [vmem:[#allocation2 + $0xf3] sm:$0xff]  ;;  %v4228_v0 = vld [vmem:[#allocation2 + $0xfb] sm:$0xff] }
 0x3b7   : > { %v3531_v17 = vpop.permute.xlu1 %3530 }
 0x3b8   : > { %3566 = vst.msk [vmem:[#allocation3 + $0xd0] sm:$0xff] %vm3552_vm1, %v3531_v17  ;;  %v3533_v21 = vpop.permute.xlu0 %3532 }
 0x3b9   : > { %4035 = vrot.lane.b32.xlu1 %v3996_v12, %s7051_s7  ;;  %3567 = vst.msk [vmem:[#allocation3 + $0xe0] sm:$0xff] %vm3552_vm1, %v3533_v21  ;;  %v4125_v12 = vpack.c.bf16 %v4101_v5, %v4100_v4  ;;  %v4229_v4 = vld [vmem:[#allocation2 + $0x10b] sm:$0xff]  ;;  %v4230_v5 = vld [vmem:[#allocation2 + $0x113] sm:$0xff] }
 0x3ba   : > { %4037 = vrot.lane.b32.xlu0 %v3997_v18, %s7051_s7  ;;  %v4126_v18 = vpack.c.bf16 %v4103_v10, %v4102_v9  ;;  %v4231_v9 = vld [vmem:[#allocation2 + $0x123] sm:$0xff]  ;;  %v4232_v10 = vld [vmem:[#allocation2 + $0x12b] sm:$0xff] }
 0x3bb   : > { %v3535_v26 = vpop.permute.xlu1 %3534 }
 0x3bc   : > { %3568 = vst.msk [vmem:[#allocation3 + $0xf0] sm:$0xff] %vm3552_vm1, %v3535_v26  ;;  %v3634_v45 = vpop.permute.xlu0 %3633  ;;  %vm3810_vm1 = vcmask 917344  }
 0x3bd   : > { %4039 = vrot.lane.b32.xlu1 %v3998_v23, %s7051_s7  ;;  %3682 = vst.msk [vmem:[#allocation3] sm:$0xff] %vm3681_vm15, %v3634_v45  ;;  %v4127_v23 = vpack.c.bf16 %v4105_v14, %v4104_v13  ;;  %v4233_v13 = vld [vmem:[#allocation2 + $0x13b] sm:$0xff]  ;;  %v4234_v14 = vld [vmem:[#allocation2 + $0x143] sm:$0xff] }
 0x3be   : > { %4041 = vrot.lane.b32.xlu0 %v3999_v27, %s7051_s7  ;;  %v4128_v27 = vpack.c.bf16 %v4107_v20, %v4106_v19  ;;  %v4235_v19 = vld [vmem:[#allocation2 + $0x153] sm:$0xff]  ;;  %v4236_v20 = vld [vmem:[#allocation2 + $0x15b] sm:$0xff] }
 0x3bf   : > { %v3636_v7 = vpop.permute.xlu1 %3635 }
 0x3c0   : > { %3683 = vst.msk [vmem:[#allocation3 + $0x10] sm:$0xff] %vm3681_vm15, %v3636_v7  ;;  %v3638_v30 = vpop.permute.xlu0 %3637 }
 0x3c1   : > { %4043 = vrot.lane.b32.xlu1 %v4000_v56, %s7051_s7  ;;  %3684 = vst.msk [vmem:[#allocation3 + $0x20] sm:$0xff] %vm3681_vm15, %v3638_v30  ;;  %v4129_v56 = vpack.c.bf16 %v4109_v25, %v4108_v24  ;;  %v4237_v24 = vld [vmem:[#allocation2 + $0x16b] sm:$0xff]  ;;  %v4238_v25 = vld [vmem:[#allocation2 + $0x173] sm:$0xff] }
 0x3c2   : > { %4045 = vrot.lane.b32.xlu0 %v4001_v15, %s7051_s7  ;;  %v4130_v15 = vpack.c.bf16 %v4111_v50, %v4110_v29  ;;  %v4239_v29 = vld [vmem:[#allocation2 + $0x183] sm:$0xff]  ;;  %v4240_v50 = vld [vmem:[#allocation2 + $0x18b] sm:$0xff] }
 0x3c3   : > { %v3640_v33 = vpop.permute.xlu1 %3639 }
 0x3c4   : > { %3685 = vst.msk [vmem:[#allocation3 + $0x30] sm:$0xff] %vm3681_vm15, %v3640_v33  ;;  %v3642_v36 = vpop.permute.xlu0 %3641 }
 0x3c5   : > { %4047 = vrot.lane.b32.xlu1 %v4002_v28, %s7051_s7  ;;  %3686 = vst.msk [vmem:[#allocation3 + $0x40] sm:$0xff] %vm3681_vm15, %v3642_v36  ;;  %v4131_v28 = vpack.c.bf16 %v4113_v3, %v4112_v62  ;;  %v4258_v3 = vpack.c.bf16 %v4238_v25, %v4237_v24 }
 0x3c6   : > { %4049 = vrot.lane.b32.xlu0 %v4003_v34, %s7051_s7  ;;  %v4132_v34 = vpack.c.bf16 %v4115_v22, %v4114_v16  ;;  %v4347_v16 = vld [vmem:[#allocation2 + $0x84] sm:$0xff]  ;;  %v4241_v22 = vld [vmem:[#allocation2 + $0x19b] sm:$0xff] }
 0x3c7   : > { %v3644_v40 = vpop.permute.xlu1 %3643 }
 0x3c8   : > { %3687 = vst.msk [vmem:[#allocation3 + $0x50] sm:$0xff] %vm3681_vm15, %v3644_v40  ;;  %v3646_v43 = vpop.permute.xlu0 %3645 }
 0x3c9   : > { %4051 = vrot.lane.b32.xlu1 %v4004_v38, %s7051_s7  ;;  %3688 = vst.msk [vmem:[#allocation3 + $0x60] sm:$0xff] %vm3681_vm15, %v3646_v43  ;;  %v4133_v38 = vpack.c.bf16 %v4117_v32, %v4116_v31  ;;  %v4259_v32 = vpack.c.bf16 %v4240_v50, %v4239_v29  ;;  %v4363_v29 = vld [vmem:[#allocation2 + $0x144] sm:$0xff] }
 0x3ca   : > { %4150 = vrot.lane.b32.xlu0 %v4118_v41, %s7052_s8  ;;  %v4247_v41 = vpack.c.bf16 %v4216_v35, %v4215_v37  ;;  %v4348_v37 = vld [vmem:[#allocation2 + $0x94] sm:$0xff]  ;;  %v4349_v35 = vld [vmem:[#allocation2 + $0x9c] sm:$0xff] }
 0x3cb   : > { %v3648_v49 = vpop.permute.xlu1 %3647  ;;  %v4418_v50 = vld [vmem:[#allocation2 + $0xdd] sm:$0xff] }
 0x3cc   : > { %3689 = vst.msk [vmem:[#allocation3 + $0x70] sm:$0xff] %vm3681_vm15, %v3648_v49  ;;  %v3650_v55 = vpop.permute.xlu0 %3649 }
 0x3cd   : > { %4152 = vrot.lane.b32.xlu1 %v4119_v44, %s7052_s8  ;;  %3690 = vst.msk [vmem:[#allocation3 + $0x80] sm:$0xff] %vm3681_vm15, %v3650_v55  ;;  %v4248_v44 = vpack.c.bf16 %v4218_v39, %v4217_v46  ;;  %v8301_v46 = vpack.c.bf16 %v4349_v35, %v4348_v37  ;;  %v4350_v39 = vld [vmem:[#allocation2 + $0xac] sm:$0xff]  ;;  %v4423_v35 = vld [vmem:[#allocation2 + $0x115] sm:$0xff] }
 0x3ce   : > { %4154 = vrot.lane.b32.xlu0 %v4120_v51, %s7052_s8  ;;  %v4249_v51 = vpack.c.bf16 %v4220_v42, %v4219_v47  ;;  %v4246_v47 = vld [vmem:[#allocation2 + $0x1d3] sm:$0xff] }
 0x3cf   : > { %v3652_v60 = vpop.permute.xlu1 %3651  ;;  %4394 = vst.msk [vmem:[#allocation3 + $0x28] sm:$0xff] %vm177_vm0, %v8301_v46  ;;  %v4422_v37 = vld [vmem:[#allocation2 + $0x10d] sm:$0xff] }
 0x3d0   : > { %3691 = vst.msk [vmem:[#allocation3 + $0x90] sm:$0xff] %vm3681_vm15, %v3652_v60  ;;  %v3654_v1 = vpop.permute.xlu0 %3653 }
 0x3d1   : > { %4156 = vrot.lane.b32.xlu1 %v4121_v57, %s7052_s8  ;;  %3692 = vst.msk [vmem:[#allocation3 + $0xa0] sm:$0xff] %vm3681_vm15, %v3654_v1  ;;  %v4250_v57 = vpack.c.bf16 %v4222_v48, %v4221_v54  ;;  %v4408_v54 = vld [vmem:[#allocation2 + $0x65] sm:$0xff]  ;;  %v4409_v48 = vld [vmem:[#allocation2 + $0x6d] sm:$0xff] }
 0x3d2   : > { %4158 = vrot.lane.b32.xlu0 %v4122_v61, %s7052_s8  ;;  %v4251_v61 = vpack.c.bf16 %v4224_v53, %v4223_v52 }
 0x3d3   : > { %v3656_v6 = vpop.permute.xlu1 %3655 }
 0x3d4   : > { %3693 = vst.msk [vmem:[#allocation3 + $0xb0] sm:$0xff] %vm3681_vm15, %v3656_v6  ;;  %v3658_v11 = vpop.permute.xlu0 %3657 }
 0x3d5   : > { %4160 = vrot.lane.b32.xlu1 %v4123_v2, %s7052_s8  ;;  %3694 = vst.msk [vmem:[#allocation3 + $0xc0] sm:$0xff] %vm3681_vm15, %v3658_v11  ;;  %v4252_v2 = vpack.c.bf16 %v4226_v59, %v4225_v58  ;;  %v4355_v58 = vld [vmem:[#allocation2 + $0xe4] sm:$0xff] }
 0x3d6   : > { %4162 = vrot.lane.b32.xlu0 %v4124_v8, %s7052_s8  ;;  %v4253_v8 = vpack.c.bf16 %v4228_v0, %v4227_v63  ;;  %v4410_v59 = vld [vmem:[#allocation2 + $0x7d] sm:$0xff]  ;;  %v4440_v0 = vpack.c.bf16 %v4409_v48, %v4408_v54  ;;  %v4447_v54 = vpack.c.bf16 %v4423_v35, %v4422_v37 }
 0x3d7   : > { %v3660_v17 = vpop.permute.xlu1 %3659 }
 0x3d8   : > { %3695 = vst.msk [vmem:[#allocation3 + $0xd0] sm:$0xff] %vm3681_vm15, %v3660_v17  ;;  %v3662_v21 = vpop.permute.xlu0 %3661 }
 0x3d9   : > { %4164 = vrot.lane.b32.xlu1 %v4125_v12, %s7052_s8  ;;  %3696 = vst.msk [vmem:[#allocation3 + $0xe0] sm:$0xff] %vm3681_vm15, %v3662_v21  ;;  %v4254_v12 = vpack.c.bf16 %v4230_v5, %v4229_v4  ;;  %v4356_v4 = vld [vmem:[#allocation2 + $0xf4] sm:$0xff]  ;;  %v4357_v5 = vld [vmem:[#allocation2 + $0xfc] sm:$0xff] }
 0x3da   : > { %4166 = vrot.lane.b32.xlu0 %v4126_v18, %s7052_s8  ;;  %v4255_v18 = vpack.c.bf16 %v4232_v10, %v4231_v9  ;;  %v4382_v9 = vpack.c.bf16 %v4357_v5, %v4356_v4  ;;  %v4358_v10 = vld [vmem:[#allocation2 + $0x10c] sm:$0xff]  ;;  %v4375_v5 = vld [vmem:[#allocation2 + $0x1d4] sm:$0xff] }
 0x3db   : > { %v3664_v26 = vpop.permute.xlu1 %3663  ;;  %v4374_v4 = vld [vmem:[#allocation2 + $0x1cc] sm:$0xff] }
 0x3dc   : > { %3697 = vst.msk [vmem:[#allocation3 + $0xf0] sm:$0xff] %vm3681_vm15, %v3664_v26  ;;  %v3763_v45 = vpop.permute.xlu0 %3762  ;;  %vm3940_vm15 = vcmask 950144  }
 0x3dd   : > { %4168 = vrot.lane.b32.xlu1 %v4127_v23, %s7052_s8  ;;  %3811 = vst.msk [vmem:[#allocation3] sm:$0xff] %vm3810_vm1, %v3763_v45  ;;  %v4256_v23 = vpack.c.bf16 %v4234_v14, %v4233_v13  ;;  %v4344_v45 = vld [vmem:[#allocation2 + $0x64] sm:$0xff]  ;;  %v4415_v13 = vld [vmem:[#allocation2 + $0xb5] sm:$0xff] }
 0x3de   : > { %4170 = vrot.lane.b32.xlu0 %v4128_v27, %s7052_s8  ;;  %v4257_v27 = vpack.c.bf16 %v4236_v20, %v4235_v19  ;;  %v4416_v19 = vld [vmem:[#allocation2 + $0xc5] sm:$0xff]  ;;  %4398 = vst.msk [vmem:[#allocation3 + $0x68] sm:$0xff] %vm177_vm0, %v4382_v9  ;;  %v4417_v20 = vld [vmem:[#allocation2 + $0xcd] sm:$0xff]  ;;  %v4391_v9 = vpack.c.bf16 %v4375_v5, %v4374_v4 }
 0x3df   : > { %v3765_v7 = vpop.permute.xlu1 %3764 }
 0x3e0   : > { %3812 = vst.msk [vmem:[#allocation3 + $0x10] sm:$0xff] %vm3810_vm1, %v3765_v7  ;;  %v3767_v30 = vpop.permute.xlu0 %3766 }
 0x3e1   : > { %4172 = vrot.lane.b32.xlu1 %v4129_v56, %s7052_s8  ;;  %3813 = vst.msk [vmem:[#allocation3 + $0x20] sm:$0xff] %vm3810_vm1, %v3767_v30  ;;  %v4345_v56 = vld [vmem:[#allocation2 + $0x6c] sm:$0xff]  ;;  %v4242_v30 = vld [vmem:[#allocation2 + $0x1a3] sm:$0xff] }
 0x3e2   : > { %4174 = vrot.lane.b32.xlu0 %v4130_v15, %s7052_s8  ;;  %v4376_v7 = vpack.c.bf16 %v4345_v56, %v4344_v45  ;;  %v4346_v15 = vld [vmem:[#allocation2 + $0x7c] sm:$0xff]  ;;  %v4419_v45 = vld [vmem:[#allocation2 + $0xe5] sm:$0xff]  ;;  %4407 = vst.msk [vmem:[#allocation3 + $0xf8] sm:$0xff] %vm177_vm0, %v4391_v9 }
 0x3e3   : > { %v3769_v33 = vpop.permute.xlu1 %3768 }
 0x3e4   : > { %3814 = vst.msk [vmem:[#allocation3 + $0x30] sm:$0xff] %vm3810_vm1, %v3769_v33  ;;  %v3771_v36 = vpop.permute.xlu0 %3770  ;;  %v4243_v33 = vld [vmem:[#allocation2 + $0x1b3] sm:$0xff] }
 0x3e5   : > { %4176 = vrot.lane.b32.xlu1 %v4131_v28, %s7052_s8  ;;  %3815 = vst.msk [vmem:[#allocation3 + $0x40] sm:$0xff] %vm3810_vm1, %v3771_v36  ;;  %v8293_v28 = vpack.c.bf16 %v4347_v16, %v4346_v15  ;;  %v4421_v15 = vld [vmem:[#allocation2 + $0xfd] sm:$0xff]  ;;  %v4364_v16 = vld [vmem:[#allocation2 + $0x154] sm:$0xff] }
 0x3e6   : > { %4178 = vrot.lane.b32.xlu0 %v4132_v34, %s7052_s8  ;;  %4392 = vst.msk [vmem:[#allocation3 + $0x8] sm:$0xff] %vm177_vm0, %v4376_v7  ;;  %v4244_v34 = vld [vmem:[#allocation2 + $0x1bb] sm:$0xff] }
 0x3e7   : > { %v3773_v40 = vpop.permute.xlu1 %3772  ;;  %4393 = vst.msk [vmem:[#allocation3 + $0x18] sm:$0xff] %vm177_vm0, %v8293_v28  ;;  %v4420_v7 = vld [vmem:[#allocation2 + $0xf5] sm:$0xff] }
 0x3e8   : > { %3816 = vst.msk [vmem:[#allocation3 + $0x50] sm:$0xff] %vm3810_vm1, %v3773_v40  ;;  %v3775_v43 = vpop.permute.xlu0 %3774  ;;  %v4351_v40 = vld [vmem:[#allocation2 + $0xb4] sm:$0xff] }
 0x3e9   : > { %4180 = vrot.lane.b32.xlu1 %v4133_v38, %s7052_s8  ;;  %3817 = vst.msk [vmem:[#allocation3 + $0x60] sm:$0xff] %vm3810_vm1, %v3775_v43  ;;  %v4260_v38 = vpack.c.bf16 %v4242_v30, %v4241_v22  ;;  %v8304_v42 = vpack.c.bf16 %v4351_v40, %v4350_v39  ;;  %v4365_v22 = vld [vmem:[#allocation2 + $0x15c] sm:$0xff]  ;;  %v4446_v39 = vpack.c.bf16 %v4421_v15, %v4420_v7  ;;  %v4424_v40 = vld [vmem:[#allocation2 + $0x125] sm:$0xff] }
 0x3ea   : > { %4279 = vrot.lane.b32.xlu0 %v4247_v41, %s7053_s11  ;;  %v4245_v41 = vld [vmem:[#allocation2 + $0x1cb] sm:$0xff] }
 0x3eb   : > { %v3777_v49 = vpop.permute.xlu1 %3776  ;;  %4395 = vst.msk [vmem:[#allocation3 + $0x38] sm:$0xff] %vm177_vm0, %v8304_v42  ;;  %v4262_v53 = vpack.c.bf16 %v4246_v47, %v4245_v41  ;;  %v4425_v41 = vld [vmem:[#allocation2 + $0x12d] sm:$0xff]  ;;  %v4368_v47 = vld [vmem:[#allocation2 + $0x184] sm:$0xff] }
 0x3ec   : > { %3818 = vst.msk [vmem:[#allocation3 + $0x70] sm:$0xff] %vm3810_vm1, %v3777_v49  ;;  %v3779_v55 = vpop.permute.xlu0 %3778  ;;  %v4352_v49 = vld [vmem:[#allocation2 + $0xc4] sm:$0xff] }
 0x3ed   : > { %4281 = vrot.lane.b32.xlu1 %v4248_v44, %s7053_s11  ;;  %3819 = vst.msk [vmem:[#allocation3 + $0x80] sm:$0xff] %vm3810_vm1, %v3779_v55  ;;  %v4261_v44 = vpack.c.bf16 %v4244_v34, %v4243_v33  ;;  %v4366_v33 = vld [vmem:[#allocation2 + $0x16c] sm:$0xff]  ;;  %v4367_v34 = vld [vmem:[#allocation2 + $0x174] sm:$0xff] }
 0x3ee   : > { %4283 = vrot.lane.b32.xlu0 %v4249_v51, %s7053_s11  ;;  %v4353_v51 = vld [vmem:[#allocation2 + $0xcc] sm:$0xff] }
 0x3ef   : > { %v3781_v60 = vpop.permute.xlu1 %3780  ;;  %v4380_v55 = vpack.c.bf16 %v4353_v51, %v4352_v49  ;;  %v4370_v49 = vld [vmem:[#allocation2 + $0x19c] sm:$0xff]  ;;  %v4371_v51 = vld [vmem:[#allocation2 + $0x1a4] sm:$0xff] }
 0x3f0   : > { %3820 = vst.msk [vmem:[#allocation3 + $0x90] sm:$0xff] %vm3810_vm1, %v3781_v60  ;;  %v3783_v1 = vpop.permute.xlu0 %3782  ;;  %v4411_v60 = vld [vmem:[#allocation2 + $0x85] sm:$0xff] }
 0x3f1   : > { %4285 = vrot.lane.b32.xlu1 %v4250_v57, %s7053_s11  ;;  %3821 = vst.msk [vmem:[#allocation3 + $0xa0] sm:$0xff] %vm3810_vm1, %v3783_v1  ;;  %v4354_v57 = vld [vmem:[#allocation2 + $0xdc] sm:$0xff] }
 0x3f2   : > { %4287 = vrot.lane.b32.xlu0 %v4251_v61, %s7053_s11  ;;  %v4381_v61 = vpack.c.bf16 %v4355_v58, %v4354_v57  ;;  %v4412_v1 = vld [vmem:[#allocation2 + $0x95] sm:$0xff]  ;;  %4396 = vst.msk [vmem:[#allocation3 + $0x48] sm:$0xff] %vm177_vm0, %v4380_v55  ;;  %v4389_v55 = vpack.c.bf16 %v4371_v51, %v4370_v49  ;;  %v4448_v58 = vpack.c.bf16 %v4425_v41, %v4424_v40  ;;  %v4546_v49 = vld [vmem:[#allocation2 + $0xde] sm:$0xff]  ;;  %v4547_v51 = vld [vmem:[#allocation2 + $0xe6] sm:$0xff] }
 0x3f3   : > { %v3785_v6 = vpop.permute.xlu1 %3784 }
 0x3f4   : > { %3822 = vst.msk [vmem:[#allocation3 + $0xb0] sm:$0xff] %vm3810_vm1, %v3785_v6  ;;  %v3787_v11 = vpop.permute.xlu0 %3786 }
 0x3f5   : > { %4289 = vrot.lane.b32.xlu1 %v4252_v2, %s7053_s11  ;;  %3823 = vst.msk [vmem:[#allocation3 + $0xc0] sm:$0xff] %vm3810_vm1, %v3787_v11  ;;  %v4413_v2 = vld [vmem:[#allocation2 + $0x9d] sm:$0xff]  ;;  %v4359_v11 = vld [vmem:[#allocation2 + $0x114] sm:$0xff] }
 0x3f6   : > { %4291 = vrot.lane.b32.xlu0 %v4253_v8, %s7053_s11  ;;  %4397 = vst.msk [vmem:[#allocation3 + $0x58] sm:$0xff] %vm177_vm0, %v4381_v61  ;;  %v4441_v8 = vpack.c.bf16 %v4411_v60, %v4410_v59  ;;  %v4383_v14 = vpack.c.bf16 %v4359_v11, %v4358_v10  ;;  %v4428_v59 = vld [vmem:[#allocation2 + $0x155] sm:$0xff]  ;;  %v4429_v60 = vld [vmem:[#allocation2 + $0x15d] sm:$0xff]  ;;  %4405 = vst.msk [vmem:[#allocation3 + $0xd8] sm:$0xff] %vm177_vm0, %v4389_v55 }
 0x3f7   : > { %v3789_v17 = vpop.permute.xlu1 %3788  ;;  %v4372_v61 = vld [vmem:[#allocation2 + $0x1b4] sm:$0xff]  ;;  %v4450_v11 = vpack.c.bf16 %v4429_v60, %v4428_v59  ;;  %v4573_v59 = vpack.c.bf16 %v4547_v51, %v4546_v49  ;;  %v4671_v49 = vld [vmem:[#allocation2 + $0xc0] sm:$0xff]  ;;  %v4672_v51 = vld [vmem:[#allocation2 + $0xc8] sm:$0xff] }
 0x3f8   : > { %3824 = vst.msk [vmem:[#allocation3 + $0xd0] sm:$0xff] %vm3810_vm1, %v3789_v17  ;;  %v3791_v21 = vpop.permute.xlu0 %3790  ;;  %v4548_v55 = vld [vmem:[#allocation2 + $0xf6] sm:$0xff]  ;;  %v4550_v60 = vld [vmem:[#allocation2 + $0x10e] sm:$0xff] }
 0x3f9   : > { %4293 = vrot.lane.b32.xlu1 %v4254_v12, %s7053_s11  ;;  %3825 = vst.msk [vmem:[#allocation3 + $0xe0] sm:$0xff] %vm3810_vm1, %v3791_v21  ;;  %v4414_v12 = vld [vmem:[#allocation2 + $0xad] sm:$0xff]  ;;  %v4360_v21 = vld [vmem:[#allocation2 + $0x124] sm:$0xff] }
 0x3fa   : > { %4295 = vrot.lane.b32.xlu0 %v4255_v18, %s7053_s11  ;;  %v4442_v18 = vpack.c.bf16 %v4413_v2, %v4412_v1  ;;  %4399 = vst.msk [vmem:[#allocation3 + $0x78] sm:$0xff] %vm177_vm0, %v4383_v14  ;;  %v4443_v25 = vpack.c.bf16 %v4415_v13, %v4414_v12  ;;  %v4432_v12 = vld [vmem:[#allocation2 + $0x185] sm:$0xff]  ;;  %v4433_v13 = vld [vmem:[#allocation2 + $0x18d] sm:$0xff] }
 0x3fb   : > { %v3793_v26 = vpop.permute.xlu1 %3792 }
 0x3fc   : > { %3826 = vst.msk [vmem:[#allocation3 + $0xf0] sm:$0xff] %vm3810_vm1, %v3793_v26  ;;  %v3893_v62 = vpop.permute.xlu0 %3892  ;;  %vm4069_vm1 = vcmask 982944  }
 0x3fd   : > { %4297 = vrot.lane.b32.xlu1 %v4256_v23, %s7053_s11  ;;  %3941 = vst.msk [vmem:[#allocation3] sm:$0xff] %vm3940_vm15, %v3893_v62  ;;  %v4361_v23 = vld [vmem:[#allocation2 + $0x12c] sm:$0xff] }
 0x3fe   : > { %4299 = vrot.lane.b32.xlu0 %v4257_v27, %s7053_s11  ;;  %v4384_v26 = vpack.c.bf16 %v4361_v23, %v4360_v21  ;;  %v4362_v27 = vld [vmem:[#allocation2 + $0x13c] sm:$0xff]  ;;  %v4452_v21 = vpack.c.bf16 %v4433_v13, %v4432_v12 }
 0x3ff   : > { %v3895_v31 = vpop.permute.xlu1 %3894  ;;  %v8326_v56 = vpack.c.bf16 %v4363_v29, %v4362_v27  ;;  %v4436_v23 = vld [vmem:[#allocation2 + $0x1b5] sm:$0xff]  ;;  %v4438_v27 = vld [vmem:[#allocation2 + $0x1cd] sm:$0xff]  ;;  %v4557_v12 = vld [vmem:[#allocation2 + $0x15e] sm:$0xff] }
 0x400   : > { %3942 = vst.msk [vmem:[#allocation3 + $0x10] sm:$0xff] %vm3940_vm15, %v3895_v31  ;;  %v3897_v36 = vpop.permute.xlu0 %3896  ;;  %v4445_v31 = vpack.c.bf16 %v4419_v45, %v4418_v50  ;;  %v4439_v29 = vld [vmem:[#allocation2 + $0x1d5] sm:$0xff] }
 0x401   : > { %4301 = vrot.lane.b32.xlu1 %v4258_v3, %s7053_s11  ;;  %3943 = vst.msk [vmem:[#allocation3 + $0x20] sm:$0xff] %vm3940_vm15, %v3897_v36  ;;  %v4444_v3 = vpack.c.bf16 %v4417_v20, %v4416_v19  ;;  %v8337_v36 = vpack.c.bf16 %v4367_v34, %v4366_v33  ;;  %v4435_v19 = vld [vmem:[#allocation2 + $0x1a5] sm:$0xff]  ;;  %v4455_v15 = vpack.c.bf16 %v4439_v29, %v4438_v27  ;;  %v4540_v33 = vld [vmem:[#allocation2 + $0x96] sm:$0xff] }
 0x402   : > { %4303 = vrot.lane.b32.xlu0 %v4259_v32, %s7053_s11  ;;  %4400 = vst.msk [vmem:[#allocation3 + $0x88] sm:$0xff] %vm177_vm0, %v4384_v26  ;;  %4401 = vst.msk [vmem:[#allocation3 + $0x98] sm:$0xff] %vm177_vm0, %v8326_v56  ;;  %v8334_v32 = vpack.c.bf16 %v4365_v22, %v4364_v16  ;;  %v4538_v16 = vld [vmem:[#allocation2 + $0x7e] sm:$0xff]  ;;  %v4539_v22 = vld [vmem:[#allocation2 + $0x86] sm:$0xff] }
 0x403   : > { %v3899_v43 = vpop.permute.xlu1 %3898  ;;  %4403 = vst.msk [vmem:[#allocation3 + $0xb8] sm:$0xff] %vm177_vm0, %v8337_v36  ;;  %v4541_v34 = vld [vmem:[#allocation2 + $0x9e] sm:$0xff]  ;;  %v8373_v35 = vpack.c.bf16 %v4539_v22, %v4538_v16  ;;  %v4563_v27 = vld [vmem:[#allocation2 + $0x1a6] sm:$0xff]  ;;  %v4567_v16 = vld [vmem:[#allocation2 + $0x1d6] sm:$0xff] }
 0x404   : > { %3944 = vst.msk [vmem:[#allocation3 + $0x30] sm:$0xff] %vm3940_vm15, %v3899_v43  ;;  %v3901_v52 = vpop.permute.xlu0 %3900  ;;  %v4369_v43 = vld [vmem:[#allocation2 + $0x18c] sm:$0xff]  ;;  %v4570_v41 = vpack.c.bf16 %v4541_v34, %v4540_v33  ;;  %v4666_v33 = vld [vmem:[#allocation2 + $0x80] sm:$0xff] }
 0x405   : > { %4305 = vrot.lane.b32.xlu1 %v4260_v38, %s7053_s11  ;;  %3945 = vst.msk [vmem:[#allocation3 + $0x40] sm:$0xff] %vm3940_vm15, %v3901_v52  ;;  %v8346_v48 = vpack.c.bf16 %v4369_v43, %v4368_v47  ;;  %v4426_v52 = vld [vmem:[#allocation2 + $0x13d] sm:$0xff]  ;;  %v4544_v47 = vld [vmem:[#allocation2 + $0xc6] sm:$0xff]  ;;  %v4545_v43 = vld [vmem:[#allocation2 + $0xce] sm:$0xff] }
 0x406   : > { %4307 = vrot.lane.b32.xlu0 %v4261_v44, %s7053_s11  ;;  %4402 = vst.msk [vmem:[#allocation3 + $0xa8] sm:$0xff] %vm177_vm0, %v8334_v32 }
 0x407   : > { %v3903_v63 = vpop.permute.xlu1 %3902  ;;  %4404 = vst.msk [vmem:[#allocation3 + $0xc8] sm:$0xff] %vm177_vm0, %v8346_v48 }
 0x408   : > { %3946 = vst.msk [vmem:[#allocation3 + $0x50] sm:$0xff] %vm3940_vm15, %v3903_v63  ;;  %v3905_v6 = vpop.permute.xlu0 %3904  ;;  %v4373_v63 = vld [vmem:[#allocation2 + $0x1bc] sm:$0xff] }
 0x409   : > { %4309 = vrot.lane.b32.xlu1 %v4262_v53, %s7053_s11  ;;  %3947 = vst.msk [vmem:[#allocation3 + $0x60] sm:$0xff] %vm3940_vm15, %v3905_v6  ;;  %v4427_v53 = vld [vmem:[#allocation2 + $0x145] sm:$0xff]  ;;  %v4390_v2 = vpack.c.bf16 %v4373_v63, %v4372_v61  ;;  %v4430_v6 = vld [vmem:[#allocation2 + $0x16d] sm:$0xff]  ;;  %v4551_v61 = vld [vmem:[#allocation2 + $0x116] sm:$0xff] }
 0x40a   : > { %4472 = vrot.lane.b32.xlu0 %v4440_v0, %s7023_s16  ;;  %v4449_v1 = vpack.c.bf16 %v4427_v53, %v4426_v52  ;;  %v4572_v53 = vpack.c.bf16 %v4545_v43, %v4544_v47  ;;  %v4575_v5 = vpack.c.bf16 %v4551_v61, %v4550_v60  ;;  %v4669_v47 = vld [vmem:[#allocation2 + $0xa8] sm:$0xff]  ;;  %v4670_v43 = vld [vmem:[#allocation2 + $0xb0] sm:$0xff]  ;;  %v4676_v61 = vld [vmem:[#allocation2 + $0xf8] sm:$0xff] }
 0x40b   : > { %v3907_v17 = vpop.permute.xlu1 %3906  ;;  %4406 = vst.msk [vmem:[#allocation3 + $0xe8] sm:$0xff] %vm177_vm0, %v4390_v2  ;;  %v4553_v2 = vld [vmem:[#allocation2 + $0x12e] sm:$0xff]  ;;  %vm4198_vm0 = vcmask 1015744  }
 0x40c   : > { %3948 = vst.msk [vmem:[#allocation3 + $0x70] sm:$0xff] %vm3940_vm15, %v3907_v17  ;;  %v3909_v24 = vpop.permute.xlu0 %3908  ;;  %v4675_v60 = vld [vmem:[#allocation2 + $0xf0] sm:$0xff] }
 0x40d   : > { %4474 = vrot.lane.b32.xlu1 %v4441_v8, %s7023_s16  ;;  %3949 = vst.msk [vmem:[#allocation3 + $0x80] sm:$0xff] %vm3940_vm15, %v3909_v24  ;;  %v4431_v8 = vld [vmem:[#allocation2 + $0x175] sm:$0xff]  ;;  %v4437_v24 = vld [vmem:[#allocation2 + $0x1bd] sm:$0xff] }
 0x40e   : > { %4476 = vrot.lane.b32.xlu0 %v4442_v18, %s7023_s16  ;;  %v4451_v17 = vpack.c.bf16 %v4431_v8, %v4430_v6  ;;  %v4434_v18 = vld [vmem:[#allocation2 + $0x19d] sm:$0xff]  ;;  %v4454_v45 = vpack.c.bf16 %v4437_v24, %v4436_v23  ;;  %v4555_v8 = vld [vmem:[#allocation2 + $0x146] sm:$0xff]  ;;  %v4561_v23 = vld [vmem:[#allocation2 + $0x18e] sm:$0xff] }
 0x40f   : > { %v3911_v62 = vpop.permute.xlu1 %3910  ;;  %v4453_v26 = vpack.c.bf16 %v4435_v19, %v4434_v18  ;;  %v4554_v6 = vld [vmem:[#allocation2 + $0x13e] sm:$0xff]  ;;  %v4559_v18 = vld [vmem:[#allocation2 + $0x176] sm:$0xff] }
 0x410   : > { %3950 = vst.msk [vmem:[#allocation3 + $0x90] sm:$0xff] %vm3940_vm15, %v3911_v62  ;;  %v3913_v30 = vpop.permute.xlu0 %3912  ;;  %v4536_v62 = vld [vmem:[#allocation2 + $0x66] sm:$0xff] }
 0x411   : > { %4478 = vrot.lane.b32.xlu1 %v4443_v25, %s7023_s16  ;;  %3951 = vst.msk [vmem:[#allocation3 + $0xa0] sm:$0xff] %vm3940_vm15, %v3913_v30 }
 0x412   : > { %4480 = vrot.lane.b32.xlu0 %v4444_v3, %s7023_s16  ;;  %v4537_v3 = vld [vmem:[#allocation2 + $0x6e] sm:$0xff] }
 0x413   : > { %v3915_v38 = vpop.permute.xlu1 %3914 }
 0x414   : > { %3952 = vst.msk [vmem:[#allocation3 + $0xb0] sm:$0xff] %vm3940_vm15, %v3915_v38  ;;  %v3917_v44 = vpop.permute.xlu0 %3916  ;;  %v4542_v38 = vld [vmem:[#allocation2 + $0xae] sm:$0xff] }
 0x415   : > { %4482 = vrot.lane.b32.xlu1 %v4445_v31, %s7023_s16  ;;  %3953 = vst.msk [vmem:[#allocation3 + $0xc0] sm:$0xff] %vm3940_vm15, %v3917_v44  ;;  %v4568_v31 = vpack.c.bf16 %v4537_v3, %v4536_v62  ;;  %v4565_v62 = vld [vmem:[#allocation2 + $0x1be] sm:$0xff] }
 0x416   : > { %4484 = vrot.lane.b32.xlu0 %v4446_v39, %s7023_s16  ;;  %v4543_v39 = vld [vmem:[#allocation2 + $0xb6] sm:$0xff] }
 0x417   : > { %v3919_v57 = vpop.permute.xlu1 %3918 }
 0x418   : > { %3954 = vst.msk [vmem:[#allocation3 + $0xd0] sm:$0xff] %vm3940_vm15, %v3919_v57  ;;  %v3921_v0 = vpop.permute.xlu0 %3920  ;;  %v4549_v57 = vld [vmem:[#allocation2 + $0xfe] sm:$0xff] }
 0x419   : > { %4486 = vrot.lane.b32.xlu1 %v4447_v54, %s7023_s16  ;;  %3955 = vst.msk [vmem:[#allocation3 + $0xe0] sm:$0xff] %vm3940_vm15, %v3921_v0  ;;  %v4571_v54 = vpack.c.bf16 %v4543_v39, %v4542_v38  ;;  %v4574_v0 = vpack.c.bf16 %v4549_v57, %v4548_v55  ;;  %v4667_v38 = vld [vmem:[#allocation2 + $0x90] sm:$0xff]  ;;  %v4668_v39 = vld [vmem:[#allocation2 + $0x98] sm:$0xff]  ;;  %v4674_v57 = vld [vmem:[#allocation2 + $0xe0] sm:$0xff] }
 0x41a   : > { %4488 = vrot.lane.b32.xlu0 %v4448_v58, %s7023_s16  ;;  %v4673_v55 = vld [vmem:[#allocation2 + $0xd8] sm:$0xff] }
 0x41b   : > { %v3923_v10 = vpop.permute.xlu1 %3922 }
 0x41c   : > { %3956 = vst.msk [vmem:[#allocation3 + $0xf0] sm:$0xff] %vm3940_vm15, %v3923_v10  ;;  %v4022_v14 = vpop.permute.xlu0 %4021  ;;  %vm4327_vm15 = vcmask 1048544  }
 0x41d   : > { %4490 = vrot.lane.b32.xlu1 %v4449_v1, %s7023_s16  ;;  %4070 = vst.msk [vmem:[#allocation3] sm:$0xff] %vm4069_vm1, %v4022_v14  ;;  %v4552_v1 = vld [vmem:[#allocation2 + $0x126] sm:$0xff]  ;;  %v8392_v14 = vpack.c.bf16 %v4555_v8, %v4554_v6 }
 0x41e   : > { %4492 = vrot.lane.b32.xlu0 %v4450_v11, %s7023_s16  ;;  %v4576_v10 = vpack.c.bf16 %v4553_v2, %v4552_v1  ;;  %v4556_v11 = vld [vmem:[#allocation2 + $0x156] sm:$0xff]  ;;  %v4677_v1 = vld [vmem:[#allocation2 + $0x108] sm:$0xff]  ;;  %v4679_v6 = vld [vmem:[#allocation2 + $0x120] sm:$0xff] }
 0x41f   : > { %v4024_v20 = vpop.permute.xlu1 %4023  ;;  %v4678_v2 = vld [vmem:[#allocation2 + $0x110] sm:$0xff]  ;;  %v4680_v8 = vld [vmem:[#allocation2 + $0x128] sm:$0xff] }
 0x420   : > { %4071 = vst.msk [vmem:[#allocation3 + $0x10] sm:$0xff] %vm4069_vm1, %v4024_v20  ;;  %v4026_v25 = vpop.permute.xlu0 %4025  ;;  %v4578_v20 = vpack.c.bf16 %v4557_v12, %v4556_v11  ;;  %v4681_v11 = vld [vmem:[#allocation2 + $0x138] sm:$0xff]  ;;  %v4682_v12 = vld [vmem:[#allocation2 + $0x140] sm:$0xff] }
 0x421   : > { %4494 = vrot.lane.b32.xlu1 %v4451_v17, %s7023_s16  ;;  %4072 = vst.msk [vmem:[#allocation3 + $0x20] sm:$0xff] %vm4069_vm1, %v4026_v25  ;;  %v4558_v17 = vld [vmem:[#allocation2 + $0x16e] sm:$0xff] }
 0x422   : > { %4496 = vrot.lane.b32.xlu0 %v4452_v21, %s7023_s16  ;;  %v4560_v21 = vld [vmem:[#allocation2 + $0x186] sm:$0xff]  ;;  %v4579_v25 = vpack.c.bf16 %v4559_v18, %v4558_v17  ;;  %v4704_v17 = vpack.c.bf16 %v4680_v8, %v4679_v6  ;;  %v4683_v18 = vld [vmem:[#allocation2 + $0x150] sm:$0xff] }
 0x423   : > { %v4028_v50 = vpop.permute.xlu1 %4027 }
 0x424   : > { %4073 = vst.msk [vmem:[#allocation3 + $0x30] sm:$0xff] %vm4069_vm1, %v4028_v50  ;;  %v4030_v7 = vpop.permute.xlu0 %4029  ;;  %v4580_v50 = vpack.c.bf16 %v4561_v23, %v4560_v21  ;;  %v4705_v21 = vpack.c.bf16 %v4682_v12, %v4681_v11  ;;  %v4685_v23 = vld [vmem:[#allocation2 + $0x168] sm:$0xff] }
 0x425   : > { %4498 = vrot.lane.b32.xlu1 %v4453_v26, %s7023_s16  ;;  %4074 = vst.msk [vmem:[#allocation3 + $0x40] sm:$0xff] %vm4069_vm1, %v4030_v7  ;;  %v4562_v26 = vld [vmem:[#allocation2 + $0x19e] sm:$0xff] }
 0x426   : > { %4500 = vrot.lane.b32.xlu0 %v4454_v45, %s7023_s16  ;;  %v4564_v45 = vld [vmem:[#allocation2 + $0x1b6] sm:$0xff]  ;;  %v4581_v7 = vpack.c.bf16 %v4563_v27, %v4562_v26  ;;  %v4687_v27 = vld [vmem:[#allocation2 + $0x180] sm:$0xff] }
 0x427   : > { %v4032_v30 = vpop.permute.xlu1 %4031 }
 0x428   : > { %4075 = vst.msk [vmem:[#allocation3 + $0x50] sm:$0xff] %vm4069_vm1, %v4032_v30  ;;  %v4034_v37 = vpop.permute.xlu0 %4033  ;;  %v4582_v30 = vpack.c.bf16 %v4565_v62, %v4564_v45  ;;  %v4689_v62 = vld [vmem:[#allocation2 + $0x198] sm:$0xff] }
 0x429   : > { %4502 = vrot.lane.b32.xlu1 %v4455_v15, %s7023_s16  ;;  %4076 = vst.msk [vmem:[#allocation3 + $0x60] sm:$0xff] %vm4069_vm1, %v4034_v37  ;;  %v4566_v15 = vld [vmem:[#allocation2 + $0x1ce] sm:$0xff] }
 0x42a   : > { %4600 = vrot.lane.b32.xlu0 %v4568_v31, %s7024_s17  ;;  %v4665_v31 = vld [vmem:[#allocation2 + $0x78] sm:$0xff]  ;;  %v4583_v37 = vpack.c.bf16 %v4567_v16, %v4566_v15  ;;  %v4691_v16 = vld [vmem:[#allocation2 + $0x1b0] sm:$0xff] }
 0x42b   : > { %v4036_v40 = vpop.permute.xlu1 %4035 }
 0x42c   : > { %4077 = vst.msk [vmem:[#allocation3 + $0x70] sm:$0xff] %vm4069_vm1, %v4036_v40  ;;  %v4038_v44 = vpop.permute.xlu0 %4037 }
 0x42d   : > { %4602 = vrot.lane.b32.xlu1 %v8373_v35, %s7024_s17  ;;  %4078 = vst.msk [vmem:[#allocation3 + $0x80] sm:$0xff] %vm4069_vm1, %v4038_v44 }
 0x42e   : > { %4604 = vrot.lane.b32.xlu0 %v4570_v41, %s7024_s17  ;;  %v4697_v41 = vpack.c.bf16 %v4666_v33, %v4665_v31  ;;  %v4693_v33 = vld [vmem:[#allocation2 + $0x1c8] sm:$0xff] }
 0x42f   : > { %v4040_v52 = vpop.permute.xlu1 %4039 }
 0x430   : > { %4079 = vst.msk [vmem:[#allocation3 + $0x90] sm:$0xff] %vm4069_vm1, %v4040_v52  ;;  %v4042_v58 = vpop.permute.xlu0 %4041 }
 0x431   : > { %4606 = vrot.lane.b32.xlu1 %v4571_v54, %s7024_s17  ;;  %4080 = vst.msk [vmem:[#allocation3 + $0xa0] sm:$0xff] %vm4069_vm1, %v4042_v58  ;;  %v8411_v54 = vpack.c.bf16 %v4668_v39, %v4667_v38  ;;  %v4695_v39 = vld [vmem:[#allocation2 + $0x1e0] sm:$0xff] }
 0x432   : > { %4608 = vrot.lane.b32.xlu0 %v4572_v53, %s7024_s17  ;;  %v4699_v53 = vpack.c.bf16 %v4670_v43, %v4669_v47  ;;  %v4793_v43 = vld [vmem:[#allocation2 + $0x79] sm:$0xff] }
 0x433   : > { %v4044_v63 = vpop.permute.xlu1 %4043 }
 0x434   : > { %4081 = vst.msk [vmem:[#allocation3 + $0xb0] sm:$0xff] %vm4069_vm1, %v4044_v63  ;;  %v4046_v4 = vpop.permute.xlu0 %4045 }
 0x435   : > { %4610 = vrot.lane.b32.xlu1 %v4573_v59, %s7024_s17  ;;  %4082 = vst.msk [vmem:[#allocation3 + $0xc0] sm:$0xff] %vm4069_vm1, %v4046_v4  ;;  %v4700_v59 = vpack.c.bf16 %v4672_v51, %v4671_v49 }
 0x436   : > { %4612 = vrot.lane.b32.xlu0 %v4574_v0, %s7024_s17  ;;  %v4701_v0 = vpack.c.bf16 %v4674_v57, %v4673_v55 }
 0x437   : > { %v4048_v9 = vpop.permute.xlu1 %4047 }
 0x438   : > { %4083 = vst.msk [vmem:[#allocation3 + $0xd0] sm:$0xff] %vm4069_vm1, %v4048_v9  ;;  %v4050_v13 = vpop.permute.xlu0 %4049 }
 0x439   : > { %4614 = vrot.lane.b32.xlu1 %v4575_v5, %s7024_s17  ;;  %4084 = vst.msk [vmem:[#allocation3 + $0xe0] sm:$0xff] %vm4069_vm1, %v4050_v13  ;;  %v4702_v5 = vpack.c.bf16 %v4676_v61, %v4675_v60 }
 0x43a   : > { %4616 = vrot.lane.b32.xlu0 %v4576_v10, %s7024_s17  ;;  %v4703_v10 = vpack.c.bf16 %v4678_v2, %v4677_v1 }
 0x43b   : > { %v4052_v19 = vpop.permute.xlu1 %4051 }
 0x43c   : > { %4085 = vst.msk [vmem:[#allocation3 + $0xf0] sm:$0xff] %vm4069_vm1, %v4052_v19  ;;  %v4151_v24 = vpop.permute.xlu0 %4150  ;;  %v4684_v19 = vld [vmem:[#allocation2 + $0x158] sm:$0xff]  ;;  %vm9161_vm1 = vcmask 556544  }
 0x43d   : > { %4618 = vrot.lane.b32.xlu1 %v8392_v14, %s7024_s17  ;;  %4199 = vst.msk [vmem:[#allocation3] sm:$0xff] %vm4198_vm0, %v4151_v24  ;;  %v4686_v24 = vld [vmem:[#allocation2 + $0x170] sm:$0xff]  ;;  %v8430_v26 = vpack.c.bf16 %v4684_v19, %v4683_v18 }
 0x43e   : > { %4620 = vrot.lane.b32.xlu0 %v4578_v20, %s7024_s17  ;;  %v8434_v45 = vpack.c.bf16 %v4686_v24, %v4685_v23 }
 0x43f   : > { %v4153_v29 = vpop.permute.xlu1 %4152 }
 0x440   : > { %4200 = vst.msk [vmem:[#allocation3 + $0x10] sm:$0xff] %vm4198_vm0, %v4153_v29  ;;  %v4155_v3 = vpop.permute.xlu0 %4154  ;;  %v4688_v29 = vld [vmem:[#allocation2 + $0x188] sm:$0xff] }
 0x441   : > { %4622 = vrot.lane.b32.xlu1 %v4579_v25, %s7024_s17  ;;  %4201 = vst.msk [vmem:[#allocation3 + $0x20] sm:$0xff] %vm4198_vm0, %v4155_v3  ;;  %v4690_v3 = vld [vmem:[#allocation2 + $0x1a0] sm:$0xff]  ;;  %v4708_v15 = vpack.c.bf16 %v4688_v29, %v4687_v27 }
 0x442   : > { %4624 = vrot.lane.b32.xlu0 %v4580_v50, %s7024_s17  ;;  %v4709_v31 = vpack.c.bf16 %v4690_v3, %v4689_v62  ;;  %v4810_v27 = vld [vmem:[#allocation2 + $0x141] sm:$0xff]  ;;  %v4811_v62 = vld [vmem:[#allocation2 + $0x151] sm:$0xff]  ;;  %v4812_v3 = vld [vmem:[#allocation2 + $0x159] sm:$0xff] }
 0x443   : > { %v4157_v22 = vpop.permute.xlu1 %4156 }
 0x444   : > { %4202 = vst.msk [vmem:[#allocation3 + $0x30] sm:$0xff] %vm4198_vm0, %v4157_v22  ;;  %v4159_v34 = vpop.permute.xlu0 %4158  ;;  %v4692_v22 = vld [vmem:[#allocation2 + $0x1b8] sm:$0xff] }
 0x445   : > { %4626 = vrot.lane.b32.xlu1 %v4581_v7, %s7024_s17  ;;  %4203 = vst.msk [vmem:[#allocation3 + $0x40] sm:$0xff] %vm4198_vm0, %v4159_v34  ;;  %v4694_v34 = vld [vmem:[#allocation2 + $0x1d0] sm:$0xff]  ;;  %v4710_v38 = vpack.c.bf16 %v4692_v22, %v4691_v16 }
 0x446   : > { %4628 = vrot.lane.b32.xlu0 %v4582_v30, %s7024_s17  ;;  %v4711_v47 = vpack.c.bf16 %v4694_v34, %v4693_v33  ;;  %v4813_v16 = vld [vmem:[#allocation2 + $0x169] sm:$0xff]  ;;  %v4814_v22 = vld [vmem:[#allocation2 + $0x171] sm:$0xff]  ;;  %v4815_v33 = vld [vmem:[#allocation2 + $0x181] sm:$0xff] }
 0x447   : > { %v4161_v40 = vpop.permute.xlu1 %4160  ;;  %v4816_v34 = vld [vmem:[#allocation2 + $0x189] sm:$0xff] }
 0x448   : > { %4204 = vst.msk [vmem:[#allocation3 + $0x50] sm:$0xff] %vm4198_vm0, %v4161_v40  ;;  %v4163_v44 = vpop.permute.xlu0 %4162  ;;  %v4696_v40 = vld [vmem:[#allocation2 + $0x1e8] sm:$0xff] }
 0x449   : > { %4630 = vrot.lane.b32.xlu1 %v4583_v37, %s7024_s17  ;;  %4205 = vst.msk [vmem:[#allocation3 + $0x60] sm:$0xff] %vm4198_vm0, %v4163_v44  ;;  %v4794_v44 = vld [vmem:[#allocation2 + $0x81] sm:$0xff]  ;;  %v4712_v51 = vpack.c.bf16 %v4696_v40, %v4695_v39  ;;  %v4817_v39 = vld [vmem:[#allocation2 + $0x199] sm:$0xff] }
 0x44a   : > { %4729 = vrot.lane.b32.xlu0 %v4697_v41, %s7025_s18  ;;  %v4825_v57 = vpack.c.bf16 %v4794_v44, %v4793_v43  ;;  %v4818_v40 = vld [vmem:[#allocation2 + $0x1a1] sm:$0xff]  ;;  %v4819_v43 = vld [vmem:[#allocation2 + $0x1b1] sm:$0xff]  ;;  %v4820_v44 = vld [vmem:[#allocation2 + $0x1b9] sm:$0xff] }
 0x44b   : > { %v4165_v52 = vpop.permute.xlu1 %4164 }
 0x44c   : > { %4206 = vst.msk [vmem:[#allocation3 + $0x70] sm:$0xff] %vm4198_vm0, %v4165_v52  ;;  %v4167_v58 = vpop.permute.xlu0 %4166  ;;  %v4795_v52 = vld [vmem:[#allocation2 + $0x91] sm:$0xff] }
 0x44d   : > { %4731 = vrot.lane.b32.xlu1 %v8411_v54, %s7025_s18  ;;  %4207 = vst.msk [vmem:[#allocation3 + $0x80] sm:$0xff] %vm4198_vm0, %v4167_v58  ;;  %v4797_v58 = vld [vmem:[#allocation2 + $0xa9] sm:$0xff] }
 0x44e   : > { %4733 = vrot.lane.b32.xlu0 %v4699_v53, %s7025_s18  ;;  %v4796_v53 = vld [vmem:[#allocation2 + $0x99] sm:$0xff] }
 0x44f   : > { %v4169_v63 = vpop.permute.xlu1 %4168  ;;  %v8452_v61 = vpack.c.bf16 %v4796_v53, %v4795_v52  ;;  %v4821_v52 = vld [vmem:[#allocation2 + $0x1c9] sm:$0xff]  ;;  %v4822_v53 = vld [vmem:[#allocation2 + $0x1d1] sm:$0xff] }
 0x450   : > { %4208 = vst.msk [vmem:[#allocation3 + $0x90] sm:$0xff] %vm4198_vm0, %v4169_v63  ;;  %v4171_v4 = vpop.permute.xlu0 %4170  ;;  %v4799_v63 = vld [vmem:[#allocation2 + $0xc1] sm:$0xff] }
 0x451   : > { %4735 = vrot.lane.b32.xlu1 %v4700_v59, %s7025_s18  ;;  %4209 = vst.msk [vmem:[#allocation3 + $0xa0] sm:$0xff] %vm4198_vm0, %v4171_v4  ;;  %v4798_v59 = vld [vmem:[#allocation2 + $0xb1] sm:$0xff]  ;;  %v4801_v4 = vld [vmem:[#allocation2 + $0xd9] sm:$0xff] }
 0x452   : > { %4737 = vrot.lane.b32.xlu0 %v4701_v0, %s7025_s18  ;;  %v4800_v0 = vld [vmem:[#allocation2 + $0xc9] sm:$0xff]  ;;  %v8456_v2 = vpack.c.bf16 %v4798_v59, %v4797_v58  ;;  %v4823_v58 = vld [vmem:[#allocation2 + $0x1e1] sm:$0xff] }
 0x453   : > { %v4173_v9 = vpop.permute.xlu1 %4172  ;;  %v4828_v8 = vpack.c.bf16 %v4800_v0, %v4799_v63  ;;  %v4824_v59 = vld [vmem:[#allocation2 + $0x1e9] sm:$0xff]  ;;  %v4839_v63 = vpack.c.bf16 %v4822_v53, %v4821_v52  ;;  %v4921_v0 = vld [vmem:[#allocation2 + $0x7a] sm:$0xff] }
 0x454   : > { %4210 = vst.msk [vmem:[#allocation3 + $0xb0] sm:$0xff] %vm4198_vm0, %v4173_v9  ;;  %v4175_v13 = vpop.permute.xlu0 %4174  ;;  %v4803_v9 = vld [vmem:[#allocation2 + $0xf1] sm:$0xff] }
 0x455   : > { %4739 = vrot.lane.b32.xlu1 %v4702_v5, %s7025_s18  ;;  %4211 = vst.msk [vmem:[#allocation3 + $0xc0] sm:$0xff] %vm4198_vm0, %v4175_v13  ;;  %v4802_v5 = vld [vmem:[#allocation2 + $0xe1] sm:$0xff]  ;;  %v4805_v13 = vld [vmem:[#allocation2 + $0x109] sm:$0xff] }
 0x456   : > { %4741 = vrot.lane.b32.xlu0 %v4703_v10, %s7025_s18  ;;  %v4804_v10 = vld [vmem:[#allocation2 + $0xf9] sm:$0xff]  ;;  %v4829_v12 = vpack.c.bf16 %v4802_v5, %v4801_v4  ;;  %v4840_v5 = vpack.c.bf16 %v4824_v59, %v4823_v58  ;;  %v4941_v53 = vld [vmem:[#allocation2 + $0x16a] sm:$0xff]  ;;  %v4943_v59 = vld [vmem:[#allocation2 + $0x182] sm:$0xff] }
 0x457   : > { %v4177_v20 = vpop.permute.xlu1 %4176  ;;  %v4830_v19 = vpack.c.bf16 %v4804_v10, %v4803_v9 }
 0x458   : > { %4212 = vst.msk [vmem:[#allocation3 + $0xd0] sm:$0xff] %vm4198_vm0, %v4177_v20  ;;  %v4179_v25 = vpop.permute.xlu0 %4178  ;;  %v4807_v20 = vld [vmem:[#allocation2 + $0x121] sm:$0xff] }
 0x459   : > { %4743 = vrot.lane.b32.xlu1 %v4704_v17, %s7025_s18  ;;  %4213 = vst.msk [vmem:[#allocation3 + $0xe0] sm:$0xff] %vm4198_vm0, %v4179_v25  ;;  %v4806_v17 = vld [vmem:[#allocation2 + $0x111] sm:$0xff]  ;;  %v4809_v25 = vld [vmem:[#allocation2 + $0x139] sm:$0xff] }
 0x45a   : > { %4745 = vrot.lane.b32.xlu0 %v4705_v21, %s7025_s18  ;;  %v4808_v21 = vld [vmem:[#allocation2 + $0x129] sm:$0xff]  ;;  %v4831_v24 = vpack.c.bf16 %v4806_v17, %v4805_v13 }
 0x45b   : > { %v4181_v50 = vpop.permute.xlu1 %4180 }
 0x45c   : > { %4214 = vst.msk [vmem:[#allocation3 + $0xf0] sm:$0xff] %vm4198_vm0, %v4181_v50  ;;  %v4280_v7 = vpop.permute.xlu0 %4279  ;;  %v4832_v50 = vpack.c.bf16 %v4808_v21, %v4807_v20  ;;  %vm9162_vm0 = vmmov %vm9161_vm1 }
 0x45d   : > { %4747 = vrot.lane.b32.xlu1 %v8430_v26, %s7025_s18  ;;  %4328 = vst.msk [vmem:[#allocation3] sm:$0xff] %vm4327_vm15, %v4280_v7 }
 0x45e   : > { %4749 = vrot.lane.b32.xlu0 %v8434_v45, %s7025_s18 }
 0x45f   : > { %v4282_v30 = vpop.permute.xlu1 %4281 }
 0x460   : > { %4329 = vst.msk [vmem:[#allocation3 + $0x10] sm:$0xff] %vm4327_vm15, %v4282_v30  ;;  %v4284_v37 = vpop.permute.xlu0 %4283 }
 0x461   : > { %4751 = vrot.lane.b32.xlu1 %v4708_v15, %s7025_s18  ;;  %4330 = vst.msk [vmem:[#allocation3 + $0x20] sm:$0xff] %vm4327_vm15, %v4284_v37  ;;  %v4833_v15 = vpack.c.bf16 %v4810_v27, %v4809_v25 }
 0x462   : > { %4753 = vrot.lane.b32.xlu0 %v4709_v31, %s7025_s18  ;;  %v8474_v31 = vpack.c.bf16 %v4812_v3, %v4811_v62 }
 0x463   : > { %v4286_v41 = vpop.permute.xlu1 %4285 }
 0x464   : > { %4331 = vst.msk [vmem:[#allocation3 + $0x30] sm:$0xff] %vm4327_vm15, %v4286_v41  ;;  %v4288_v49 = vpop.permute.xlu0 %4287 }
 0x465   : > { %4755 = vrot.lane.b32.xlu1 %v4710_v38, %s7025_s18  ;;  %4332 = vst.msk [vmem:[#allocation3 + $0x40] sm:$0xff] %vm4327_vm15, %v4288_v49  ;;  %v8478_v38 = vpack.c.bf16 %v4814_v22, %v4813_v16 }
 0x466   : > { %4757 = vrot.lane.b32.xlu0 %v4711_v47, %s7025_s18  ;;  %v8483_v47 = vpack.c.bf16 %v4816_v34, %v4815_v33  ;;  %v4936_v33 = vld [vmem:[#allocation2 + $0x12a] sm:$0xff] }
 0x467   : > { %v4290_v55 = vpop.permute.xlu1 %4289 }
 0x468   : > { %4333 = vst.msk [vmem:[#allocation3 + $0x50] sm:$0xff] %vm4327_vm15, %v4290_v55  ;;  %v4292_v60 = vpop.permute.xlu0 %4291 }
 0x469   : > { %4759 = vrot.lane.b32.xlu1 %v4712_v51, %s7025_s18  ;;  %4334 = vst.msk [vmem:[#allocation3 + $0x60] sm:$0xff] %vm4327_vm15, %v4292_v60  ;;  %v4837_v51 = vpack.c.bf16 %v4818_v40, %v4817_v39  ;;  %v4937_v39 = vld [vmem:[#allocation2 + $0x13a] sm:$0xff]  ;;  %v4938_v40 = vld [vmem:[#allocation2 + $0x142] sm:$0xff] }
 0x46a   : > { %4857 = vrot.lane.b32.xlu0 %v4825_v57, %s7026_s19  ;;  %v4838_v57 = vpack.c.bf16 %v4820_v44, %v4819_v43  ;;  %v4939_v44 = vld [vmem:[#allocation2 + $0x152] sm:$0xff]  ;;  %v4961_v52 = vpack.c.bf16 %v4938_v40, %v4937_v39  ;;  %v7054_v40 = vmov 0  }
 0x46b   : > { %v4294_v1 = vpop.permute.xlu1 %4293  ;;  %6643 = vmatprep.subr.bf16.mxu0 %v7054_v40  ;;  %6934 = vmatprep.subr.bf16.mxu1 %v7054_v40 }
 0x46c   : > { %4335 = vst.msk [vmem:[#allocation3 + $0x70] sm:$0xff] %vm4327_vm15, %v4294_v1  ;;  %v4296_v6 = vpop.permute.xlu0 %4295  ;;  %v4922_v1 = vld [vmem:[#allocation2 + $0x82] sm:$0xff] }
 0x46d   : > { %4859 = vrot.lane.b32.xlu1 %v8452_v61, %s7026_s19  ;;  %4336 = vst.msk [vmem:[#allocation3 + $0x80] sm:$0xff] %vm4327_vm15, %v4296_v6  ;;  %v4923_v6 = vld [vmem:[#allocation2 + $0x92] sm:$0xff]  ;;  %v4953_v10 = vpack.c.bf16 %v4922_v1, %v4921_v0  ;;  %v4945_v1 = vld [vmem:[#allocation2 + $0x19a] sm:$0xff] }
 0x46e   : > { %4861 = vrot.lane.b32.xlu0 %v8456_v2, %s7026_s19 }
 0x46f   : > { %v4298_v11 = vpop.permute.xlu1 %4297 }
 0x470   : > { %4337 = vst.msk [vmem:[#allocation3 + $0x90] sm:$0xff] %vm4327_vm15, %v4298_v11  ;;  %v4300_v18 = vpop.permute.xlu0 %4299  ;;  %v4925_v11 = vld [vmem:[#allocation2 + $0xaa] sm:$0xff] }
 0x471   : > { %4863 = vrot.lane.b32.xlu1 %v4828_v8, %s7026_s19  ;;  %4338 = vst.msk [vmem:[#allocation3 + $0xa0] sm:$0xff] %vm4327_vm15, %v4300_v18  ;;  %v4924_v8 = vld [vmem:[#allocation2 + $0x9a] sm:$0xff]  ;;  %v4927_v18 = vld [vmem:[#allocation2 + $0xc2] sm:$0xff] }
 0x472   : > { %4865 = vrot.lane.b32.xlu0 %v4829_v12, %s7026_s19  ;;  %v4926_v12 = vld [vmem:[#allocation2 + $0xb2] sm:$0xff]  ;;  %v8499_v17 = vpack.c.bf16 %v4924_v8, %v4923_v6 }
 0x473   : > { %v4302_v23 = vpop.permute.xlu1 %4301  ;;  %v8503_v21 = vpack.c.bf16 %v4926_v12, %v4925_v11  ;;  %v4947_v8 = vld [vmem:[#allocation2 + $0x1b2] sm:$0xff]  ;;  %v4949_v12 = vld [vmem:[#allocation2 + $0x1ca] sm:$0xff] }
 0x474   : > { %4339 = vst.msk [vmem:[#allocation3 + $0xb0] sm:$0xff] %vm4327_vm15, %v4302_v23  ;;  %v4304_v29 = vpop.permute.xlu0 %4303  ;;  %v4929_v23 = vld [vmem:[#allocation2 + $0xda] sm:$0xff] }
 0x475   : > { %4867 = vrot.lane.b32.xlu1 %v4830_v19, %s7026_s19  ;;  %4340 = vst.msk [vmem:[#allocation3 + $0xc0] sm:$0xff] %vm4327_vm15, %v4304_v29  ;;  %v4928_v19 = vld [vmem:[#allocation2 + $0xca] sm:$0xff]  ;;  %v4931_v29 = vld [vmem:[#allocation2 + $0xf2] sm:$0xff] }
 0x476   : > { %4869 = vrot.lane.b32.xlu0 %v4831_v24, %s7026_s19  ;;  %v4930_v24 = vld [vmem:[#allocation2 + $0xe2] sm:$0xff]  ;;  %v8508_v27 = vpack.c.bf16 %v4928_v19, %v4927_v18 }
 0x477   : > { %v4306_v7 = vpop.permute.xlu1 %4305  ;;  %v4957_v3 = vpack.c.bf16 %v4930_v24, %v4929_v23  ;;  %v4952_v23 = vld [vmem:[#allocation2 + $0x1ea] sm:$0xff] }
 0x478   : > { %4341 = vst.msk [vmem:[#allocation3 + $0xd0] sm:$0xff] %vm4327_vm15, %v4306_v7  ;;  %v4308_v30 = vpop.permute.xlu0 %4307  ;;  %v4933_v7 = vld [vmem:[#allocation2 + $0x10a] sm:$0xff] }
 0x479   : > { %4871 = vrot.lane.b32.xlu1 %v4832_v50, %s7026_s19  ;;  %4342 = vst.msk [vmem:[#allocation3 + $0xe0] sm:$0xff] %vm4327_vm15, %v4308_v30  ;;  %v4932_v50 = vld [vmem:[#allocation2 + $0xfa] sm:$0xff]  ;;  %v4935_v30 = vld [vmem:[#allocation2 + $0x122] sm:$0xff] }
 0x47a   : > { %4873 = vrot.lane.b32.xlu0 %v4833_v15, %s7026_s19  ;;  %v4934_v15 = vld [vmem:[#allocation2 + $0x112] sm:$0xff]  ;;  %v4958_v22 = vpack.c.bf16 %v4932_v50, %v4931_v29  ;;  %v4960_v43 = vpack.c.bf16 %v4936_v33, %v4935_v30  ;;  %v5049_v29 = vld [vmem:[#allocation2 + $0x7b] sm:$0xff]  ;;  %v5050_v50 = vld [vmem:[#allocation2 + $0x83] sm:$0xff] }
 0x47b   : > { %v4310_v37 = vpop.permute.xlu1 %4309  ;;  %v5053_v30 = vld [vmem:[#allocation2 + $0xab] sm:$0xff]  ;;  %v5054_v33 = vld [vmem:[#allocation2 + $0xb3] sm:$0xff] }
 0x47c   : > { %4343 = vst.msk [vmem:[#allocation3 + $0xf0] sm:$0xff] %vm4327_vm15, %v4310_v37  ;;  %v4473_v41 = vpop.permute.xlu0 %4472  ;;  %v4959_v37 = vpack.c.bf16 %v4934_v15, %v4933_v7  ;;  %v5051_v7 = vld [vmem:[#allocation2 + $0x93] sm:$0xff]  ;;  %v5052_v15 = vld [vmem:[#allocation2 + $0x9b] sm:$0xff]  ;;  %vm6590_vm15 = vcmask 556032  }
 0x47d   : > { %4875 = vrot.lane.b32.xlu1 %v8474_v31, %s7026_s19  ;;  %4520 = vst.msk [vmem:[#allocation3 + $0x8] sm:$0xff] %vm454_vm2, %v4473_v41  ;;  %v8552_v39 = vpack.c.bf16 %v5052_v15, %v5051_v7  ;;  %v7011_v7 = vld [vmem:[%s9151_s1 + $0x50] sm:$0xff]  }
 0x47e   : > { %4877 = vrot.lane.b32.xlu0 %v8478_v38, %s7026_s19 }
 0x47f   : > { %v4475_v49 = vpop.permute.xlu1 %4474 }
 0x480   : > { %4521 = vst.msk [vmem:[#allocation3 + $0x18] sm:$0xff] %vm454_vm2, %v4475_v49  ;;  %v4477_v55 = vpop.permute.xlu0 %4476  ;;  %v4940_v49 = vld [vmem:[#allocation2 + $0x15a] sm:$0xff] }
 0x481   : > { %4879 = vrot.lane.b32.xlu1 %v8483_v47, %s7026_s19  ;;  %4522 = vst.msk [vmem:[#allocation3 + $0x28] sm:$0xff] %vm454_vm2, %v4477_v55  ;;  %v4942_v55 = vld [vmem:[#allocation2 + $0x172] sm:$0xff]  ;;  %v8524_v58 = vpack.c.bf16 %v4940_v49, %v4939_v44  ;;  %v8558_v49 = vpack.c.bf16 %v5054_v33, %v5053_v30 }
 0x482   : > { %4881 = vrot.lane.b32.xlu0 %v4837_v51, %s7026_s19  ;;  %v8528_v0 = vpack.c.bf16 %v4942_v55, %v4941_v53  ;;  %v6218_v33 = vld [vmem:[#allocation2 + $0x155] sm:$0xff] }
 0x483   : > { %v4479_v60 = vpop.permute.xlu1 %4478 }
 0x484   : > { %4523 = vst.msk [vmem:[#allocation3 + $0x38] sm:$0xff] %vm454_vm2, %v4479_v60  ;;  %v4481_v4 = vpop.permute.xlu0 %4480  ;;  %v4944_v60 = vld [vmem:[#allocation2 + $0x18a] sm:$0xff] }
 0x485   : > { %4883 = vrot.lane.b32.xlu1 %v4838_v57, %s7026_s19  ;;  %4524 = vst.msk [vmem:[#allocation3 + $0x48] sm:$0xff] %vm454_vm2, %v4481_v4  ;;  %v4946_v4 = vld [vmem:[#allocation2 + $0x1a2] sm:$0xff]  ;;  %v8533_v6 = vpack.c.bf16 %v4944_v60, %v4943_v59  ;;  %v7003_v60 = vld [vmem:[%s9151_s1 + $0x10] sm:$0xff]  }
 0x486   : > { %4885 = vrot.lane.b32.xlu0 %v4839_v63, %s7026_s19  ;;  %v4965_v11 = vpack.c.bf16 %v4946_v4, %v4945_v1  ;;  %v5306_v59 = vld [vmem:[#allocation2 + $0x85] sm:$0xff]  ;;  %v5321_v1 = vld [vmem:[#allocation2 + $0x13d] sm:$0xff] }
 0x487   : > { %v4483_v9 = vpop.permute.xlu1 %4482  ;;  %v5322_v4 = vld [vmem:[#allocation2 + $0x145] sm:$0xff] }
 0x488   : > { %4525 = vst.msk [vmem:[#allocation3 + $0x58] sm:$0xff] %vm454_vm2, %v4483_v9  ;;  %v4485_v13 = vpop.permute.xlu0 %4484  ;;  %v4948_v9 = vld [vmem:[#allocation2 + $0x1ba] sm:$0xff] }
 0x489   : > { %4887 = vrot.lane.b32.xlu1 %v4840_v5, %s7026_s19  ;;  %4526 = vst.msk [vmem:[#allocation3 + $0x68] sm:$0xff] %vm454_vm2, %v4485_v13  ;;  %v4950_v13 = vld [vmem:[#allocation2 + $0x1d2] sm:$0xff]  ;;  %v4966_v19 = vpack.c.bf16 %v4948_v9, %v4947_v8 }
 0x48a   : > { %4985 = vrot.lane.b32.xlu0 %v4953_v10, %s7027_s20  ;;  %v7004_v9 = vld [vmem:[%s9151_s1 + $0x18] sm:$0xff]  }
 0x48b   : > { %v4487_v20 = vpop.permute.xlu1 %4486 }
 0x48c   : > { %4527 = vst.msk [vmem:[#allocation3 + $0x78] sm:$0xff] %vm454_vm2, %v4487_v20  ;;  %v4489_v25 = vpop.permute.xlu0 %4488  ;;  %v4951_v20 = vld [vmem:[#allocation2 + $0x1e2] sm:$0xff] }
 0x48d   : > { %4987 = vrot.lane.b32.xlu1 %v8499_v17, %s7027_s20  ;;  %4528 = vst.msk [vmem:[#allocation3 + $0x88] sm:$0xff] %vm454_vm2, %v4489_v25  ;;  %v4967_v25 = vpack.c.bf16 %v4950_v13, %v4949_v12  ;;  %v7005_v12 = vld [vmem:[%s9151_s1 + $0x20] sm:$0xff]  }
 0x48e   : > { %4989 = vrot.lane.b32.xlu0 %v8503_v21, %s7027_s20 }
 0x48f   : > { %v4491_v62 = vpop.permute.xlu1 %4490 }
 0x490   : > { %4529 = vst.msk [vmem:[#allocation3 + $0x98] sm:$0xff] %vm454_vm2, %v4491_v62  ;;  %v4493_v16 = vpop.permute.xlu0 %4492 }
 0x491   : > { %4991 = vrot.lane.b32.xlu1 %v8508_v27, %s7027_s20  ;;  %4530 = vst.msk [vmem:[#allocation3 + $0xa8] sm:$0xff] %vm454_vm2, %v4493_v16 }
 0x492   : > { %4993 = vrot.lane.b32.xlu0 %v4957_v3, %s7027_s20  ;;  %v4968_v3 = vpack.c.bf16 %v4952_v23, %v4951_v20  ;;  %v7007_v20 = vld [vmem:[%s9151_s1 + $0x30] sm:$0xff]  }
 0x493   : > { %v4495_v34 = vpop.permute.xlu1 %4494 }
 0x494   : > { %4531 = vst.msk [vmem:[#allocation3 + $0xb8] sm:$0xff] %vm454_vm2, %v4495_v34  ;;  %v4497_v41 = vpop.permute.xlu0 %4496  ;;  %v7001_v34 = vld [vmem:[%s9151_s1] sm:$0xff]  }
 0x495   : > { %4995 = vrot.lane.b32.xlu1 %v4958_v22, %s7027_s20  ;;  %4532 = vst.msk [vmem:[#allocation3 + $0xc8] sm:$0xff] %vm454_vm2, %v4497_v41  ;;  %v5081_v22 = vpack.c.bf16 %v5050_v50, %v5049_v29  ;;  %v5065_v41 = vld [vmem:[#allocation2 + $0x13b] sm:$0xff]  ;;  %6644 = vmatpush1.bf16.msra.mxu0 %v7001_v34 }
 0x496   : > { %4997 = vrot.lane.b32.xlu0 %v4959_v37, %s7027_s20  ;;  %6947 = vmatpush1.bf16.msra.mxu1 %v7001_v34  ;;  %v7009_v29 = vld [vmem:[%s9151_s1 + $0x40] sm:$0xff]  }
 0x497   : > { %v4499_v51 = vpop.permute.xlu1 %4498  ;;  %6645 = vmatprep.subr.bf16.mxu0 %v7054_v40  ;;  %6935 = vmatprep.subr.bf16.mxu1 %v7054_v40  ;;  %v6219_v34 = vld [vmem:[#allocation2 + $0x15d] sm:$0xff] }
 0x498   : > { %4533 = vst.msk [vmem:[#allocation3 + $0xd8] sm:$0xff] %vm454_vm2, %v4499_v51  ;;  %v4501_v57 = vpop.permute.xlu0 %4500  ;;  %v7002_v51 = vld [vmem:[%s9151_s1 + $0x8] sm:$0xff]  }
 0x499   : > { %4999 = vrot.lane.b32.xlu1 %v4960_v43, %s7027_s20  ;;  %4534 = vst.msk [vmem:[#allocation3 + $0xe8] sm:$0xff] %vm454_vm2, %v4501_v57  ;;  %v5066_v43 = vld [vmem:[#allocation2 + $0x143] sm:$0xff]  ;;  %6646 = vmatpush1.bf16.msra.mxu0 %v7002_v51 }
 0x49a   : > { %5001 = vrot.lane.b32.xlu0 %v4961_v52, %s7027_s20  ;;  %v5089_v53 = vpack.c.bf16 %v5066_v43, %v5065_v41  ;;  %6948 = vmatpush1.bf16.msra.mxu1 %v7002_v51  ;;  %v5305_v57 = vld [vmem:[#allocation2 + $0x7d] sm:$0xff] }
 0x49b   : > { %v4503_v63 = vpop.permute.xlu1 %4502  ;;  %6647 = vmatprep.subr.bf16.mxu0 %v7054_v40  ;;  %6936 = vmatprep.subr.bf16.mxu1 %v7054_v40  ;;  %v5337_v8 = vpack.c.bf16 %v5306_v59, %v5305_v57  ;;  %v7013_v51 = vld [vmem:[%s9151_s1 + $0x60] ss:$0 sps:$4 sm:$0x33]   ;;  %v6346_v57 = vld [vmem:[#allocation2 + $0x156] sm:$0xff] }
 0x49c   : > { %4535 = vst.msk [vmem:[#allocation3 + $0xf8] sm:$0xff] %vm454_vm2, %v4503_v63  ;;  %v4601_v5 = vpop.permute.xlu0 %4600  ;;  %vm6639_vm2 = vcmask 1041408   ;;  %v6347_v59 = vld [vmem:[#allocation2 + $0x15e] sm:$0xff] }
 0x49d   : > { %5003 = vrot.lane.b32.xlu1 %v8524_v58, %s7027_s20  ;;  %4648 = vst.msk [vmem:[#allocation3 + $0x8] sm:$0xff] %vm583_vm3, %v4601_v5  ;;  %6648 = vmatpush1.bf16.msra.mxu0 %v7003_v60 }
 0x49e   : > { %5005 = vrot.lane.b32.xlu0 %v8528_v0, %s7027_s20  ;;  %6949 = vmatpush1.bf16.msra.mxu1 %v7003_v60 }
 0x49f   : > { %v4603_v10 = vpop.permute.xlu1 %4602  ;;  %6649 = vmatprep.subr.bf16.mxu0 %v7054_v40  ;;  %6937 = vmatprep.subr.bf16.mxu1 %v7054_v40 }
 0x4a0   : > { %4649 = vst.msk [vmem:[#allocation3 + $0x18] sm:$0xff] %vm583_vm3, %v4603_v10  ;;  %v4605_v18 = vpop.permute.xlu0 %4604 }
 0x4a1   : > { %5007 = vrot.lane.b32.xlu1 %v8533_v6, %s7027_s20  ;;  %4650 = vst.msk [vmem:[#allocation3 + $0x28] sm:$0xff] %vm583_vm3, %v4605_v18  ;;  %6650 = vmatpush1.bf16.msra.mxu0 %v7004_v9  ;;  %v7006_v18 = vld [vmem:[%s9151_s1 + $0x28] sm:$0xff]  }
 0x4a2   : > { %5009 = vrot.lane.b32.xlu0 %v4965_v11, %s7027_s20  ;;  %v5345_v11 = vpack.c.bf16 %v5322_v4, %v5321_v1  ;;  %6950 = vmatpush1.bf16.msra.mxu1 %v7004_v9  ;;  %v6370_v1 = vpack.c.bf16 %v6347_v59, %v6346_v57  ;;  %v5950_v59 = vld [vmem:[#allocation2 + $0xc3] sm:$0xff] }
 0x4a3   : > { %v4607_v24 = vpop.permute.xlu1 %4606  ;;  %6651 = vmatprep.subr.bf16.mxu0 %v7054_v40  ;;  %6938 = vmatprep.subr.bf16.mxu1 %v7054_v40 }
 0x4a4   : > { %4651 = vst.msk [vmem:[#allocation3 + $0x38] sm:$0xff] %vm583_vm3, %v4607_v24  ;;  %v4609_v62 = vpop.permute.xlu0 %4608 }
 0x4a5   : > { %5011 = vrot.lane.b32.xlu1 %v4966_v19, %s7027_s20  ;;  %4652 = vst.msk [vmem:[#allocation3 + $0x48] sm:$0xff] %vm583_vm3, %v4609_v62  ;;  %6652 = vmatpush1.bf16.msra.mxu0 %v7005_v12  ;;  %v7010_v62 = vld [vmem:[%s9151_s1 + $0x48] sm:$0xff]  }
 0x4a6   : > { %5013 = vrot.lane.b32.xlu0 %v4967_v25, %s7027_s20  ;;  %6951 = vmatpush1.bf16.msra.mxu1 %v7005_v12 }
 0x4a7   : > { %v4611_v16 = vpop.permute.xlu1 %4610  ;;  %6653 = vmatprep.subr.bf16.mxu0 %v7054_v40  ;;  %6939 = vmatprep.subr.bf16.mxu1 %v7054_v40 }
 0x4a8   : > { %4653 = vst.msk [vmem:[#allocation3 + $0x58] sm:$0xff] %vm583_vm3, %v4611_v16  ;;  %v4613_v37 = vpop.permute.xlu0 %4612  ;;  %v6202_v16 = vld [vmem:[#allocation2 + $0x95] sm:$0xff] }
 0x4a9   : > { %5015 = vrot.lane.b32.xlu1 %v4968_v3, %s7027_s20  ;;  %4654 = vst.msk [vmem:[#allocation3 + $0x68] sm:$0xff] %vm583_vm3, %v4613_v37  ;;  %6654 = vmatpush1.bf16.msra.mxu0 %v7006_v18  ;;  %v7012_v37 = vld [vmem:[%s9151_s1 + $0x58] sm:$0xff]  }
 0x4aa   : > { %5113 = vrot.lane.b32.xlu0 %v5081_v22, %s7028_s21  ;;  %6952 = vmatpush1.bf16.msra.mxu1 %v7006_v18  ;;  %v6203_v22 = vld [vmem:[#allocation2 + $0x9d] sm:$0xff] }
 0x4ab   : > { %v4615_v44 = vpop.permute.xlu1 %4614  ;;  %6655 = vmatprep.subr.bf16.mxu0 %v7054_v40  ;;  %6940 = vmatprep.subr.bf16.mxu1 %v7054_v40  ;;  %v6234_v41 = vpack.c.bf16 %v6203_v22, %v6202_v16 }
 0x4ac   : > { %4655 = vst.msk [vmem:[#allocation3 + $0x78] sm:$0xff] %vm583_vm3, %v4615_v44  ;;  %v4617_v52 = vpop.permute.xlu0 %4616  ;;  %v6242_v44 = vpack.c.bf16 %v6219_v34, %v6218_v33  ;;  %v5567_v33 = vld [vmem:[#allocation2 + $0xc8] sm:$0xff] }
 0x4ad   : > { %5115 = vrot.lane.b32.xlu1 %v8552_v39, %s7028_s21  ;;  %4656 = vst.msk [vmem:[#allocation3 + $0x88] sm:$0xff] %vm583_vm3, %v4617_v52  ;;  %6656 = vmatpush1.bf16.msra.mxu0 %v7007_v20  ;;  %v6641_v52 = vsel %vm6639_vm2, %v7013_v51, 0  ;;  %v5695_v51 = vld [vmem:[#allocation2 + $0xc9] sm:$0xff] }
 0x4ae   : > { %5117 = vrot.lane.b32.xlu0 %v8558_v49, %s7028_s21  ;;  %6953 = vmatpush1.bf16.msra.mxu1 %v7007_v20 }
 0x4af   : > { %v4619_v55 = vpop.permute.xlu1 %4618  ;;  %6657 = vmatprep.subr.bf16.mxu0 %v7054_v40  ;;  %6941 = vmatprep.subr.bf16.mxu1 %v7054_v40 }
 0x4b0   : > { %4657 = vst.msk [vmem:[#allocation3 + $0x98] sm:$0xff] %vm583_vm3, %v4619_v55  ;;  %v4621_v63 = vpop.permute.xlu0 %4620 }
 0x4b1   : > { %5129 = vrot.lane.b32.xlu1 %v5089_v53, %s7028_s21  ;;  %4658 = vst.msk [vmem:[#allocation3 + $0xa8] sm:$0xff] %vm583_vm3, %v4621_v63  ;;  %v6331_v53 = vld [vmem:[#allocation2 + $0x9e] sm:$0xff] }
 0x4b2   : > { %5241 = vrot.lane.b32.xlu0 %v8293_v28, %s7029_s22 }
 0x4b3   : > { %v4623_v5 = vpop.permute.xlu1 %4622 }
 0x4b4   : > { %4659 = vst.msk [vmem:[#allocation3 + $0xb8] sm:$0xff] %vm583_vm3, %v4623_v5  ;;  %v4625_v10 = vpop.permute.xlu0 %4624  ;;  %v5564_v5 = vld [vmem:[#allocation2 + $0xa8] sm:$0xff] }
 0x4b5   : > { %5257 = vrot.lane.b32.xlu1 %v8326_v56, %s7029_s22  ;;  %4660 = vst.msk [vmem:[#allocation3 + $0xc8] sm:$0xff] %vm583_vm3, %v4625_v10 }
 0x4b6   : > { %5369 = vrot.lane.b32.xlu0 %v5337_v8, %s7030_s23  ;;  %v5565_v8 = vld [vmem:[#allocation2 + $0xb0] sm:$0xff] }
 0x4b7   : > { %v4627_v28 = vpop.permute.xlu1 %4626 }
 0x4b8   : > { %4661 = vst.msk [vmem:[#allocation3 + $0xd8] sm:$0xff] %vm583_vm3, %v4627_v28  ;;  %v4629_v13 = vpop.permute.xlu0 %4628 }
 0x4b9   : > { %5385 = vrot.lane.b32.xlu1 %v5345_v11, %s7030_s23  ;;  %4662 = vst.msk [vmem:[#allocation3 + $0xe8] sm:$0xff] %vm583_vm3, %v4629_v13  ;;  %v5595_v11 = vpack.c.bf16 %v5565_v8, %v5564_v5 }
 0x4ba   : > { %5497 = vrot.lane.b32.xlu0 %v8373_v35, %s7031_s24 }
 0x4bb   : > { %v4631_v56 = vpop.permute.xlu1 %4630 }
 0x4bc   : > { %4663 = vst.msk [vmem:[#allocation3 + $0xf8] sm:$0xff] %vm583_vm3, %v4631_v56  ;;  %v4730_v19 = vpop.permute.xlu0 %4729  ;;  %vm9157_vm3 = vcmask 490944  }
 0x4bd   : > { %5513 = vrot.lane.b32.xlu1 %v8392_v14, %s7031_s24  ;;  %4777 = vst.msk [vmem:[#allocation3 + $0x8] sm:$0xff] %vm712_vm4, %v4730_v19  ;;  %v5964_v19 = vld [vmem:[#allocation2 + $0x16b] sm:$0xff]  ;;  %vm9163_vm2 = vmmov %vm9157_vm3 }
 0x4be   : > { %5626 = vrot.lane.b32.xlu0 %v8411_v54, %s7032_s25  ;;  %v7008_v54 = vld [vmem:[%s9151_s1 + $0x38] sm:$0xff]  }
 0x4bf   : > { %v4732_v35 = vpop.permute.xlu1 %4731  ;;  %6658 = vmatpush1.bf16.msra.mxu0 %v7008_v54  ;;  %6954 = vmatpush1.bf16.msra.mxu1 %v7008_v54 }
 0x4c0   : > { %4778 = vst.msk [vmem:[#allocation3 + $0x18] sm:$0xff] %vm712_vm4, %v4732_v35  ;;  %v4734_v23 = vpop.permute.xlu0 %4733  ;;  %6659 = vmatprep.subr.bf16.mxu0 %v7054_v40  ;;  %6942 = vmatprep.subr.bf16.mxu1 %v7054_v40  ;;  %v5965_v35 = vld [vmem:[#allocation2 + $0x173] sm:$0xff] }
 0x4c1   : > { %5642 = vrot.lane.b32.xlu1 %v8430_v26, %s7032_s25  ;;  %4779 = vst.msk [vmem:[#allocation3 + $0x28] sm:$0xff] %vm712_vm4, %v4734_v23  ;;  %v5962_v26 = vld [vmem:[#allocation2 + $0x153] sm:$0xff] }
 0x4c2   : > { %5754 = vrot.lane.b32.xlu0 %v8452_v61, %s7033_s26  ;;  %v5963_v61 = vld [vmem:[#allocation2 + $0x15b] sm:$0xff] }
 0x4c3   : > { %v4736_v14 = vpop.permute.xlu1 %4735  ;;  %v5986_v50 = vpack.c.bf16 %v5963_v61, %v5962_v26  ;;  %6660 = vmatpush1.bf16.msra.mxu0 %v7009_v29  ;;  %6955 = vmatpush1.bf16.msra.mxu1 %v7009_v29  ;;  %v6221_v26 = vld [vmem:[#allocation2 + $0x175] sm:$0xff] }
 0x4c4   : > { %4780 = vst.msk [vmem:[#allocation3 + $0x38] sm:$0xff] %vm712_vm4, %v4736_v14  ;;  %v4738_v24 = vpop.permute.xlu0 %4737  ;;  %6661 = vmatprep.subr.bf16.mxu0 %v7054_v40  ;;  %6943 = vmatprep.subr.bf16.mxu1 %v7054_v40  ;;  %v6204_v14 = vld [vmem:[#allocation2 + $0xad] sm:$0xff] }
 0x4c5   : > { %5770 = vrot.lane.b32.xlu1 %v8474_v31, %s7033_s26  ;;  %4781 = vst.msk [vmem:[#allocation3 + $0x48] sm:$0xff] %vm712_vm4, %v4738_v24  ;;  %v6220_v24 = vld [vmem:[#allocation2 + $0x16d] sm:$0xff] }
 0x4c6   : > { %5882 = vrot.lane.b32.xlu0 %v8499_v17, %s7034_s27 }
 0x4c7   : > { %v4740_v25 = vpop.permute.xlu1 %4739  ;;  %6662 = vmatpush1.bf16.msra.mxu0 %v7010_v62  ;;  %6956 = vmatpush1.bf16.msra.mxu1 %v7010_v62  ;;  %v6333_v62 = vld [vmem:[#allocation2 + $0xb6] sm:$0xff] }
 0x4c8   : > { %4782 = vst.msk [vmem:[#allocation3 + $0x58] sm:$0xff] %vm712_vm4, %v4740_v25  ;;  %v4742_v31 = vpop.permute.xlu0 %4741  ;;  %6663 = vmatprep.subr.bf16.mxu0 %v7054_v40  ;;  %6944 = vmatprep.subr.bf16.mxu1 %v7054_v40 }
 0x4c9   : > { %5898 = vrot.lane.b32.xlu1 %v8524_v58, %s7034_s27  ;;  %4783 = vst.msk [vmem:[#allocation3 + $0x68] sm:$0xff] %vm712_vm4, %v4742_v31  ;;  %v6243_v31 = vpack.c.bf16 %v6221_v26, %v6220_v24  ;;  %v6351_v24 = vld [vmem:[#allocation2 + $0x18e] sm:$0xff] }
 0x4ca   : > { %6010 = vrot.lane.b32.xlu0 %v8552_v39, %s7035_s28 }
 0x4cb   : > { %v4744_v17 = vpop.permute.xlu1 %4743  ;;  %6664 = vmatpush1.bf16.msra.mxu0 %v7011_v7  ;;  %6957 = vmatpush1.bf16.msra.mxu1 %v7011_v7 }
 0x4cc   : > { %4784 = vst.msk [vmem:[#allocation3 + $0x78] sm:$0xff] %vm712_vm4, %v4744_v17  ;;  %v4746_v58 = vpop.permute.xlu0 %4745  ;;  %6665 = vmatprep.subr.bf16.mxu0 %v7054_v40  ;;  %6945 = vmatprep.subr.bf16.mxu1 %v7054_v40  ;;  %v6332_v17 = vld [vmem:[#allocation2 + $0xae] sm:$0xff] }
 0x4cd   : > { %6026 = vrot.lane.b32.xlu1 %v5986_v50, %s7035_s28  ;;  %4785 = vst.msk [vmem:[#allocation3 + $0x88] sm:$0xff] %vm712_vm4, %v4746_v58  ;;  %v6363_v7 = vpack.c.bf16 %v6333_v62, %v6332_v17  ;;  %v5584_v62 = vld [vmem:[#allocation2 + $0x198] sm:$0xff] }
 0x4ce   : > { %5131 = vrot.lane.b32.xlu0 %v5986_v50, %s7028_s21 }
 0x4cf   : > { %v4748_v3 = vpop.permute.xlu1 %4747  ;;  %6666 = vmatpush1.bf16.msra.mxu0 %v7012_v37  ;;  %6958 = vmatpush1.bf16.msra.mxu1 %v7012_v37  ;;  %v5582_v37 = vld [vmem:[#allocation2 + $0x180] sm:$0xff] }
 0x4d0   : > { %4786 = vst.msk [vmem:[#allocation3 + $0x98] sm:$0xff] %vm712_vm4, %v4748_v3  ;;  %v4750_v15 = vpop.permute.xlu0 %4749  ;;  %6667 = vmatprep.subr.bf16.mxu0 %v7054_v40  ;;  %6946 = vmatprep.subr.bf16.mxu1 %v7054_v40  ;;  %v6349_v3 = vld [vmem:[#allocation2 + $0x176] sm:$0xff] }
 0x4d1   : > { %6138 = vrot.lane.b32.xlu1 %v8301_v46, %s7036_s29  ;;  %4787 = vst.msk [vmem:[#allocation3 + $0xa8] sm:$0xff] %vm712_vm4, %v4750_v15 }
 0x4d2   : > { %6154 = vrot.lane.b32.xlu0 %v8334_v32, %s7036_s29 }
 0x4d3   : > { %v4752_v30 = vpop.permute.xlu1 %4751  ;;  %6668 = vmatpush1.bf16.msra.mxu0 %v6641_v52  ;;  %6959 = vmatpush1.bf16.msra.mxu1 %v6641_v52 }
 0x4d4   : > { %4788 = vst.msk [vmem:[#allocation3 + $0xb8] sm:$0xff] %vm712_vm4, %v4752_v30  ;;  %v4754_v39 = vpop.permute.xlu0 %4753  ;;  %v5566_v30 = vld [vmem:[#allocation2 + $0xc0] sm:$0xff] }
 0x4d5   : > { %5243 = vrot.lane.b32.xlu1 %v8301_v46, %s7029_s22  ;;  %4789 = vst.msk [vmem:[#allocation3 + $0xc8] sm:$0xff] %vm712_vm4, %v4754_v39  ;;  %v5583_v39 = vld [vmem:[#allocation2 + $0x188] sm:$0xff] }
 0x4d6   : > { %5259 = vrot.lane.b32.xlu0 %v8334_v32, %s7029_s22  ;;  %v6330_v32 = vld [vmem:[#allocation2 + $0x96] sm:$0xff]  ;;  %v5604_v52 = vpack.c.bf16 %v5583_v39, %v5582_v37  ;;  %v5825_v39 = vld [vmem:[#allocation2 + $0xe2] sm:$0xff] }
 0x4d7   : > { %v4756_v43 = vpop.permute.xlu1 %4755  ;;  %v6362_v40 = vpack.c.bf16 %v6331_v53, %v6330_v32  ;;  %v5824_v37 = vld [vmem:[#allocation2 + $0xda] sm:$0xff] }
 0x4d8   : > { %4790 = vst.msk [vmem:[#allocation3 + $0xd8] sm:$0xff] %vm712_vm4, %v4756_v43  ;;  %v4758_v46 = vpop.permute.xlu0 %4757  ;;  %v5596_v43 = vpack.c.bf16 %v5567_v33, %v5566_v30  ;;  %v5713_v30 = vld [vmem:[#allocation2 + $0x1a1] sm:$0xff] }
 0x4d9   : > { %6266 = vrot.lane.b32.xlu1 %v6234_v41, %s7037_s30  ;;  %4791 = vst.msk [vmem:[#allocation3 + $0xe8] sm:$0xff] %vm712_vm4, %v4758_v46 }
 0x4da   : > { %6282 = vrot.lane.b32.xlu0 %v6242_v44, %s7037_s30 }
 0x4db   : > { %v4760_v55 = vpop.permute.xlu1 %4759 }
 0x4dc   : > { %4792 = vst.msk [vmem:[#allocation3 + $0xf8] sm:$0xff] %vm712_vm4, %v4760_v55  ;;  %v4858_v60 = vpop.permute.xlu0 %4857  ;;  %vm9158_vm4 = vmmov %vm9157_vm3 }
 0x4dd   : > { %5371 = vrot.lane.b32.xlu1 %v6234_v41, %s7030_s23  ;;  %4905 = vst.msk [vmem:[#allocation3 + $0x8] sm:$0xff] %vm841_vm5, %v4858_v60  ;;  %v5951_v60 = vld [vmem:[#allocation2 + $0xcb] sm:$0xff] }
 0x4de   : > { %5387 = vrot.lane.b32.xlu0 %v6242_v44, %s7030_s23  ;;  %v5694_v44 = vld [vmem:[#allocation2 + $0xc1] sm:$0xff]  ;;  %v5980_v5 = vpack.c.bf16 %v5951_v60, %v5950_v59 }
 0x4df   : > { %v4860_v63 = vpop.permute.xlu1 %4859  ;;  %v5724_v53 = vpack.c.bf16 %v5695_v51, %v5694_v44  ;;  %v5840_v44 = vld [vmem:[#allocation2 + $0x19a] sm:$0xff]  ;;  %v5841_v51 = vld [vmem:[#allocation2 + $0x1a2] sm:$0xff] }
 0x4e0   : > { %4906 = vst.msk [vmem:[#allocation3 + $0x18] sm:$0xff] %vm841_vm5, %v4860_v63  ;;  %v4862_v4 = vpop.permute.xlu0 %4861  ;;  %v5966_v63 = vld [vmem:[#allocation2 + $0x183] sm:$0xff]  ;;  %v5968_v59 = vld [vmem:[#allocation2 + $0x19b] sm:$0xff] }
 0x4e1   : > { %6394 = vrot.lane.b32.xlu1 %v6362_v40, %s7038_s3  ;;  %4907 = vst.msk [vmem:[#allocation3 + $0x28] sm:$0xff] %vm841_vm5, %v4862_v4  ;;  %v5969_v60 = vld [vmem:[#allocation2 + $0x1a3] sm:$0xff] }
 0x4e2   : > { %6410 = vrot.lane.b32.xlu0 %v6370_v1, %s7038_s3 }
 0x4e3   : > { %v4864_v9 = vpop.permute.xlu1 %4863 }
 0x4e4   : > { %4908 = vst.msk [vmem:[#allocation3 + $0x38] sm:$0xff] %vm841_vm5, %v4864_v9  ;;  %v4866_v10 = vpop.permute.xlu0 %4865 }
 0x4e5   : > { %5499 = vrot.lane.b32.xlu1 %v6362_v40, %s7031_s24  ;;  %4909 = vst.msk [vmem:[#allocation3 + $0x48] sm:$0xff] %vm841_vm5, %v4866_v10  ;;  %v6078_v10 = vld [vmem:[#allocation2 + $0xc4] sm:$0xff] }
 0x4e6   : > { %5515 = vrot.lane.b32.xlu0 %v6370_v1, %s7031_s24  ;;  %v5967_v1 = vld [vmem:[#allocation2 + $0x18b] sm:$0xff] }
 0x4e7   : > { %v4868_v28 = vpop.permute.xlu1 %4867  ;;  %v5988_v9 = vpack.c.bf16 %v5967_v1, %v5966_v63 }
 0x4e8   : > { %4910 = vst.msk [vmem:[#allocation3 + $0x58] sm:$0xff] %vm841_vm5, %v4868_v28  ;;  %v4870_v12 = vpop.permute.xlu0 %4869 }
 0x4e9   : > { %5628 = vrot.lane.b32.xlu1 %v5595_v11, %s7032_s25  ;;  %4911 = vst.msk [vmem:[#allocation3 + $0x68] sm:$0xff] %vm841_vm5, %v4870_v12  ;;  %v6079_v11 = vld [vmem:[#allocation2 + $0xcc] sm:$0xff] }
 0x4ea   : > { %5644 = vrot.lane.b32.xlu0 %v8434_v45, %s7032_s25  ;;  %v6108_v12 = vpack.c.bf16 %v6079_v11, %v6078_v10  ;;  %v6096_v10 = vld [vmem:[#allocation2 + $0x19c] sm:$0xff]  ;;  %v6097_v11 = vld [vmem:[#allocation2 + $0x1a4] sm:$0xff] }
 0x4eb   : > { %v4872_v13 = vpop.permute.xlu1 %4871 }
 0x4ec   : > { %4912 = vst.msk [vmem:[#allocation3 + $0x78] sm:$0xff] %vm841_vm5, %v4872_v13  ;;  %v4874_v56 = vpop.permute.xlu0 %4873 }
 0x4ed   : > { %5756 = vrot.lane.b32.xlu1 %v8456_v2, %s7033_s26  ;;  %4913 = vst.msk [vmem:[#allocation3 + $0x88] sm:$0xff] %vm841_vm5, %v4874_v56  ;;  %v5987_v2 = vpack.c.bf16 %v5965_v35, %v5964_v19  ;;  %v6206_v56 = vld [vmem:[#allocation2 + $0xc5] sm:$0xff] }
 0x4ee   : > { %5772 = vrot.lane.b32.xlu0 %v8478_v38, %s7033_s26  ;;  %v6222_v35 = vld [vmem:[#allocation2 + $0x185] sm:$0xff] }
 0x4ef   : > { %v4876_v18 = vpop.permute.xlu1 %4875 }
 0x4f0   : > { %4914 = vst.msk [vmem:[#allocation3 + $0x98] sm:$0xff] %vm841_vm5, %v4876_v18  ;;  %v4878_v20 = vpop.permute.xlu0 %4877  ;;  %v6207_v18 = vld [vmem:[#allocation2 + $0xcd] sm:$0xff] }
 0x4f1   : > { %5884 = vrot.lane.b32.xlu1 %v8503_v21, %s7034_s27  ;;  %4915 = vst.msk [vmem:[#allocation3 + $0xa8] sm:$0xff] %vm841_vm5, %v4878_v20  ;;  %v6223_v20 = vld [vmem:[#allocation2 + $0x18d] sm:$0xff] }
 0x4f2   : > { %5900 = vrot.lane.b32.xlu0 %v8528_v0, %s7034_s27 }
 0x4f3   : > { %v4880_v45 = vpop.permute.xlu1 %4879 }
 0x4f4   : > { %4916 = vst.msk [vmem:[#allocation3 + $0xb8] sm:$0xff] %vm841_vm5, %v4880_v45  ;;  %v4882_v23 = vpop.permute.xlu0 %4881 }
 0x4f5   : > { %6012 = vrot.lane.b32.xlu1 %v8558_v49, %s7035_s28  ;;  %4917 = vst.msk [vmem:[#allocation3 + $0xc8] sm:$0xff] %vm841_vm5, %v4882_v23  ;;  %v6205_v49 = vld [vmem:[#allocation2 + $0xb5] sm:$0xff] }
 0x4f6   : > { %6028 = vrot.lane.b32.xlu0 %v5987_v2, %s7035_s28  ;;  %v6235_v25 = vpack.c.bf16 %v6205_v49, %v6204_v14  ;;  %v6335_v14 = vld [vmem:[#allocation2 + $0xce] sm:$0xff] }
 0x4f7   : > { %v4884_v38 = vpop.permute.xlu1 %4883 }
 0x4f8   : > { %4918 = vst.msk [vmem:[#allocation3 + $0xd8] sm:$0xff] %vm841_vm5, %v4884_v38  ;;  %v4886_v21 = vpop.permute.xlu0 %4885  ;;  %v6244_v38 = vpack.c.bf16 %v6223_v20, %v6222_v35  ;;  %v6224_v35 = vld [vmem:[#allocation2 + $0x19d] sm:$0xff]  ;;  %v6225_v20 = vld [vmem:[#allocation2 + $0x1a5] sm:$0xff] }
 0x4f9   : > { %5133 = vrot.lane.b32.xlu1 %v5987_v2, %s7028_s21  ;;  %4919 = vst.msk [vmem:[#allocation3 + $0xe8] sm:$0xff] %vm841_vm5, %v4886_v21  ;;  %v6236_v2 = vpack.c.bf16 %v6207_v18, %v6206_v56  ;;  %v6208_v56 = vld [vmem:[#allocation2 + $0xdd] sm:$0xff]  ;;  %v6209_v18 = vld [vmem:[#allocation2 + $0xe5] sm:$0xff] }
 0x4fa   : > { %6140 = vrot.lane.b32.xlu0 %v8304_v42, %s7036_s29 }
 0x4fb   : > { %v4888_v0 = vpop.permute.xlu1 %4887 }
 0x4fc   : > { %4920 = vst.msk [vmem:[#allocation3 + $0xf8] sm:$0xff] %vm841_vm5, %v4888_v0  ;;  %v4986_v54 = vpop.permute.xlu0 %4985  ;;  %v6334_v0 = vld [vmem:[#allocation2 + $0xc6] sm:$0xff]  ;;  %vm9159_vm5 = vcmask 523744  }
 0x4fd   : > { %6156 = vrot.lane.b32.xlu1 %v8337_v36, %s7036_s29  ;;  %5033 = vst.msk [vmem:[#allocation3 + $0x8] sm:$0xff] %vm970_vm6, %v4986_v54  ;;  %v6350_v54 = vld [vmem:[#allocation2 + $0x186] sm:$0xff]  ;;  %v6364_v26 = vpack.c.bf16 %v6335_v14, %v6334_v0  ;;  %v6458_v14 = vld [vmem:[#allocation3] sm:$0xff] }
 0x4fe   : > { %5245 = vrot.lane.b32.xlu0 %v8304_v42, %s7029_s22  ;;  %v6348_v42 = vld [vmem:[#allocation2 + $0x16e] sm:$0xff] }
 0x4ff   : > { %v4988_v61 = vpop.permute.xlu1 %4987  ;;  %v6371_v16 = vpack.c.bf16 %v6349_v3, %v6348_v42 }
 0x500   : > { %5034 = vst.msk [vmem:[#allocation3 + $0x18] sm:$0xff] %vm970_vm6, %v4988_v61  ;;  %v4990_v29 = vpop.permute.xlu0 %4989 }
 0x501   : > { %5261 = vrot.lane.b32.xlu1 %v8337_v36, %s7029_s22  ;;  %5035 = vst.msk [vmem:[#allocation3 + $0x28] sm:$0xff] %vm970_vm6, %v4990_v29 }
 0x502   : > { %6268 = vrot.lane.b32.xlu0 %v6235_v25, %s7037_s30 }
 0x503   : > { %v4992_v50 = vpop.permute.xlu1 %4991 }
 0x504   : > { %5036 = vst.msk [vmem:[#allocation3 + $0x38] sm:$0xff] %vm970_vm6, %v4992_v50  ;;  %v4994_v58 = vpop.permute.xlu0 %4993  ;;  %v5569_v50 = vld [vmem:[#allocation2 + $0xe0] sm:$0xff] }
 0x505   : > { %6284 = vrot.lane.b32.xlu1 %v6243_v31, %s7037_s30  ;;  %5037 = vst.msk [vmem:[#allocation3 + $0x48] sm:$0xff] %vm970_vm6, %v4994_v58  ;;  %v5585_v58 = vld [vmem:[#allocation2 + $0x1a0] sm:$0xff] }
 0x506   : > { %5373 = vrot.lane.b32.xlu0 %v6235_v25, %s7030_s23  ;;  %v6372_v25 = vpack.c.bf16 %v6351_v24, %v6350_v54  ;;  %v6337_v54 = vld [vmem:[#allocation2 + $0xe6] sm:$0xff] }
 0x507   : > { %v4996_v36 = vpop.permute.xlu1 %4995 }
 0x508   : > { %5038 = vst.msk [vmem:[#allocation3 + $0x58] sm:$0xff] %vm970_vm6, %v4996_v36  ;;  %v4998_v15 = vpop.permute.xlu0 %4997  ;;  %v5696_v36 = vld [vmem:[#allocation2 + $0xd9] sm:$0xff] }
 0x509   : > { %5389 = vrot.lane.b32.xlu1 %v6243_v31, %s7030_s23  ;;  %5039 = vst.msk [vmem:[#allocation3 + $0x68] sm:$0xff] %vm970_vm6, %v4998_v15  ;;  %v5568_v31 = vld [vmem:[#allocation2 + $0xd8] sm:$0xff] }
 0x50a   : > { %6396 = vrot.lane.b32.xlu0 %v6363_v7, %s7038_s3  ;;  %v5597_v3 = vpack.c.bf16 %v5569_v50, %v5568_v31 }
 0x50b   : > { %v5000_v22 = vpop.permute.xlu1 %4999 }
 0x50c   : > { %5040 = vst.msk [vmem:[#allocation3 + $0x78] sm:$0xff] %vm970_vm6, %v5000_v22  ;;  %v5002_v34 = vpop.permute.xlu0 %5001  ;;  %v5712_v22 = vld [vmem:[#allocation2 + $0x199] sm:$0xff] }
 0x50d   : > { %6412 = vrot.lane.b32.xlu1 %v6371_v16, %s7038_s3  ;;  %5041 = vst.msk [vmem:[#allocation3 + $0x88] sm:$0xff] %vm970_vm6, %v5002_v34 }
 0x50e   : > { %5501 = vrot.lane.b32.xlu0 %v6363_v7, %s7031_s24  ;;  %v5697_v7 = vld [vmem:[#allocation2 + $0xe1] sm:$0xff] }
 0x50f   : > { %v5004_v41 = vpop.permute.xlu1 %5003  ;;  %v5725_v34 = vpack.c.bf16 %v5697_v7, %v5696_v36  ;;  %v5586_v36 = vld [vmem:[#allocation2 + $0x1b0] sm:$0xff]  ;;  %v5587_v7 = vld [vmem:[#allocation2 + $0x1b8] sm:$0xff] }
 0x510   : > { %5042 = vst.msk [vmem:[#allocation3 + $0x98] sm:$0xff] %vm970_vm6, %v5004_v41  ;;  %v5006_v46 = vpop.permute.xlu0 %5005 }
 0x511   : > { %5517 = vrot.lane.b32.xlu1 %v6371_v16, %s7031_s24  ;;  %5043 = vst.msk [vmem:[#allocation3 + $0xa8] sm:$0xff] %vm970_vm6, %v5006_v46  ;;  %v5605_v16 = vpack.c.bf16 %v5585_v58, %v5584_v62  ;;  %v5570_v58 = vld [vmem:[#allocation2 + $0xf0] sm:$0xff] }
 0x512   : > { %5630 = vrot.lane.b32.xlu0 %v5596_v43, %s7032_s25  ;;  %v5733_v43 = vpack.c.bf16 %v5713_v30, %v5712_v22  ;;  %v5698_v22 = vld [vmem:[#allocation2 + $0xf1] sm:$0xff]  ;;  %v5699_v30 = vld [vmem:[#allocation2 + $0xf9] sm:$0xff] }
 0x513   : > { %v5008_v32 = vpop.permute.xlu1 %5007 }
 0x514   : > { %5044 = vst.msk [vmem:[#allocation3 + $0xb8] sm:$0xff] %vm970_vm6, %v5008_v32  ;;  %v5010_v55 = vpop.permute.xlu0 %5009  ;;  %v5952_v32 = vld [vmem:[#allocation2 + $0xdb] sm:$0xff] }
 0x515   : > { %5646 = vrot.lane.b32.xlu1 %v5604_v52, %s7032_s25  ;;  %5045 = vst.msk [vmem:[#allocation3 + $0xc8] sm:$0xff] %vm970_vm6, %v5010_v55  ;;  %v5853_v52 = vpack.c.bf16 %v5825_v39, %v5824_v37  ;;  %v5714_v37 = vld [vmem:[#allocation2 + $0x1b1] sm:$0xff]  ;;  %v5715_v39 = vld [vmem:[#allocation2 + $0x1b9] sm:$0xff] }
 0x516   : > { %5758 = vrot.lane.b32.xlu0 %v5724_v53, %s7033_s26  ;;  %v5953_v53 = vld [vmem:[#allocation2 + $0xe3] sm:$0xff] }
 0x517   : > { %v5012_v57 = vpop.permute.xlu1 %5011  ;;  %v5981_v63 = vpack.c.bf16 %v5953_v53, %v5952_v32  ;;  %v5842_v32 = vld [vmem:[#allocation2 + $0x1b2] sm:$0xff]  ;;  %v5843_v53 = vld [vmem:[#allocation2 + $0x1ba] sm:$0xff] }
 0x518   : > { %5046 = vst.msk [vmem:[#allocation3 + $0xd8] sm:$0xff] %vm970_vm6, %v5012_v57  ;;  %v5014_v40 = vpop.permute.xlu0 %5013  ;;  %v5861_v57 = vpack.c.bf16 %v5841_v51, %v5840_v44  ;;  %v5826_v44 = vld [vmem:[#allocation2 + $0xf2] sm:$0xff]  ;;  %v5827_v51 = vld [vmem:[#allocation2 + $0xfa] sm:$0xff] }
 0x519   : > { %5774 = vrot.lane.b32.xlu1 %v8483_v47, %s7033_s26  ;;  %5047 = vst.msk [vmem:[#allocation3 + $0xe8] sm:$0xff] %vm970_vm6, %v5014_v40 }
 0x51a   : > { %5886 = vrot.lane.b32.xlu0 %v8508_v27, %s7034_s27 }
 0x51b   : > { %v5016_v4 = vpop.permute.xlu1 %5015 }
 0x51c   : > { %5048 = vst.msk [vmem:[#allocation3 + $0xf8] sm:$0xff] %vm970_vm6, %v5016_v4  ;;  %v5114_v8 = vpop.permute.xlu0 %5113  ;;  %v5989_v4 = vpack.c.bf16 %v5969_v60, %v5968_v59  ;;  %vm9160_vm6 = vmmov %vm9159_vm5  ;;  %v5954_v59 = vld [vmem:[#allocation2 + $0xf3] sm:$0xff]  ;;  %v5955_v60 = vld [vmem:[#allocation2 + $0xfb] sm:$0xff] }
 0x51d   : > { %5902 = vrot.lane.b32.xlu1 %v8533_v6, %s7034_s27  ;;  %5161 = vst.msk [vmem:[#allocation3 + $0x8] sm:$0xff] %vm1099_vm7, %v5114_v8  ;;  %v6080_v8 = vld [vmem:[#allocation2 + $0xdc] sm:$0xff] }
 0x51e   : > { %6014 = vrot.lane.b32.xlu0 %v5980_v5, %s7035_s28 }
 0x51f   : > { %v5116_v47 = vpop.permute.xlu1 %5115 }
 0x520   : > { %5162 = vst.msk [vmem:[#allocation3 + $0x18] sm:$0xff] %vm1099_vm7, %v5116_v47  ;;  %v5118_v28 = vpop.permute.xlu0 %5117 }
 0x521   : > { %6030 = vrot.lane.b32.xlu1 %v5988_v9, %s7035_s28  ;;  %5163 = vst.msk [vmem:[#allocation3 + $0x28] sm:$0xff] %vm1099_vm7, %v5118_v28 }
 0x522   : > { %5119 = vrot.lane.b32.xlu0 %v5980_v5, %s7028_s21 }
 0x523   : > { %v5130_v27 = vpop.permute.xlu1 %5129 }
 0x524   : > { %5169 = vst.msk [vmem:[#allocation3 + $0x88] sm:$0xff] %vm1099_vm7, %v5130_v27  ;;  %v5242_v6 = vpop.permute.xlu0 %5241 }
 0x525   : > { %5135 = vrot.lane.b32.xlu1 %v5988_v9, %s7028_s21  ;;  %5289 = vst.msk [vmem:[#allocation3 + $0x8] sm:$0xff] %vm1229_vm8, %v5242_v6  ;;  %v6081_v9 = vld [vmem:[#allocation2 + $0xe4] sm:$0xff]  ;;  %v6117_v6 = vpack.c.bf16 %v6097_v11, %v6096_v10  ;;  %v6082_v11 = vld [vmem:[#allocation2 + $0xf4] sm:$0xff] }
 0x526   : > { %6142 = vrot.lane.b32.xlu0 %v6108_v12, %s7036_s29  ;;  %v6109_v27 = vpack.c.bf16 %v6081_v9, %v6080_v8  ;;  %v5982_v8 = vpack.c.bf16 %v5955_v60, %v5954_v59  ;;  %v5844_v59 = vld [vmem:[#allocation2 + $0x1ca] sm:$0xff]  ;;  %v5845_v60 = vld [vmem:[#allocation2 + $0x1d2] sm:$0xff] }
 0x527   : > { %v5258_v13 = vpop.permute.xlu1 %5257 }
 0x528   : > { %5297 = vst.msk [vmem:[#allocation3 + $0x88] sm:$0xff] %vm1229_vm8, %v5258_v13  ;;  %v5370_v19 = vpop.permute.xlu0 %5369 }
 0x529   : > { %6158 = vrot.lane.b32.xlu1 %v8346_v48, %s7036_s29  ;;  %5417 = vst.msk [vmem:[#allocation3 + $0x8] sm:$0xff] %vm1358_vm9, %v5370_v19 }
 0x52a   : > { %5247 = vrot.lane.b32.xlu0 %v6108_v12, %s7029_s22 }
 0x52b   : > { %v5386_v45 = vpop.permute.xlu1 %5385 }
 0x52c   : > { %5425 = vst.msk [vmem:[#allocation3 + $0x88] sm:$0xff] %vm1358_vm9, %v5386_v45  ;;  %v5498_v23 = vpop.permute.xlu0 %5497 }
 0x52d   : > { %5263 = vrot.lane.b32.xlu1 %v8346_v48, %s7029_s22  ;;  %5545 = vst.msk [vmem:[#allocation3 + $0x8] sm:$0xff] %vm1487_vm10, %v5498_v23 }
 0x52e   : > { %6270 = vrot.lane.b32.xlu0 %v6236_v2, %s7037_s30 }
 0x52f   : > { %v5514_v21 = vpop.permute.xlu1 %5513 }
 0x530   : > { %5553 = vst.msk [vmem:[#allocation3 + $0x88] sm:$0xff] %vm1487_vm10, %v5514_v21  ;;  %v5627_v49 = vpop.permute.xlu0 %5626 }
 0x531   : > { %6286 = vrot.lane.b32.xlu1 %v6244_v38, %s7037_s30  ;;  %5674 = vst.msk [vmem:[#allocation3 + $0x8] sm:$0xff] %vm1616_vm11, %v5627_v49  ;;  %v6336_v49 = vld [vmem:[#allocation2 + $0xde] sm:$0xff] }
 0x532   : > { %5375 = vrot.lane.b32.xlu0 %v6236_v2, %s7030_s23  ;;  %v6237_v2 = vpack.c.bf16 %v6209_v18, %v6208_v56  ;;  %v6365_v31 = vpack.c.bf16 %v6337_v54, %v6336_v49 }
 0x533   : > { %v5643_v48 = vpop.permute.xlu1 %5642 }
 0x534   : > { %5682 = vst.msk [vmem:[#allocation3 + $0x88] sm:$0xff] %vm1616_vm11, %v5643_v48  ;;  %v5755_v61 = vpop.permute.xlu0 %5754 }
 0x535   : > { %5391 = vrot.lane.b32.xlu1 %v6244_v38, %s7030_s23  ;;  %5802 = vst.msk [vmem:[#allocation3 + $0x8] sm:$0xff] %vm1745_vm12, %v5755_v61  ;;  %v6245_v38 = vpack.c.bf16 %v6225_v20, %v6224_v35  ;;  %v6352_v61 = vld [vmem:[#allocation2 + $0x19e] sm:$0xff]  ;;  %v6210_v20 = vld [vmem:[#allocation2 + $0xf5] sm:$0xff] }
 0x536   : > { %6398 = vrot.lane.b32.xlu0 %v6364_v26, %s7038_s3 }
 0x537   : > { %v5771_v29 = vpop.permute.xlu1 %5770 }
 0x538   : > { %5810 = vst.msk [vmem:[#allocation3 + $0x88] sm:$0xff] %vm1745_vm12, %v5771_v29  ;;  %v5883_v17 = vpop.permute.xlu0 %5882 }
 0x539   : > { %6414 = vrot.lane.b32.xlu1 %v6372_v25, %s7038_s3  ;;  %5930 = vst.msk [vmem:[#allocation3 + $0x8] sm:$0xff] %vm1874_vm13, %v5883_v17 }
 0x53a   : > { %5503 = vrot.lane.b32.xlu0 %v6364_v26, %s7031_s24  ;;  %v6474_v26 = vld [vmem:[#allocation3 + $0x80] sm:$0xff] }
 0x53b   : > { %v5899_v42 = vpop.permute.xlu1 %5898 }
 0x53c   : > { %5938 = vst.msk [vmem:[#allocation3 + $0x88] sm:$0xff] %vm1874_vm13, %v5899_v42  ;;  %v6011_v15 = vpop.permute.xlu0 %6010  ;;  %v5571_v42 = vld [vmem:[#allocation2 + $0xf8] sm:$0xff] }
 0x53d   : > { %5519 = vrot.lane.b32.xlu1 %v6372_v25, %s7031_s24  ;;  %6058 = vst.msk [vmem:[#allocation3 + $0x8] sm:$0xff] %vm2003_vm14, %v6011_v15  ;;  %v6353_v25 = vld [vmem:[#allocation2 + $0x1a6] sm:$0xff] }
 0x53e   : > { %5632 = vrot.lane.b32.xlu0 %v5597_v3, %s7032_s25  ;;  %v6373_v17 = vpack.c.bf16 %v6353_v25, %v6352_v61  ;;  %v6476_v61 = vld [vmem:[#allocation3 + $0x90] sm:$0xff]  ;;  %v6338_v25 = vld [vmem:[#allocation2 + $0xf6] sm:$0xff] }
 0x53f   : > { %v6027_v33 = vpop.permute.xlu1 %6026 }
 0x540   : > { %6066 = vst.msk [vmem:[#allocation3 + $0x88] sm:$0xff] %vm2003_vm14, %v6027_v33  ;;  %v5132_v41 = vpop.permute.xlu0 %5131 }
 0x541   : > { %5648 = vrot.lane.b32.xlu1 %v5605_v16, %s7032_s25  ;;  %5170 = vst.msk [vmem:[#allocation3 + $0x98] sm:$0xff] %vm1099_vm7, %v5132_v41  ;;  %v5598_v16 = vpack.c.bf16 %v5571_v42, %v5570_v58 }
 0x542   : > { %5760 = vrot.lane.b32.xlu0 %v5725_v34, %s7033_s26  ;;  %v5606_v34 = vpack.c.bf16 %v5587_v7, %v5586_v36  ;;  %v5572_v7 = vld [vmem:[#allocation2 + $0x108] sm:$0xff] }
 0x543   : > { %v6139_v46 = vpop.permute.xlu1 %6138 }
 0x544   : > { %6186 = vst.msk [vmem:[#allocation3 + $0x8] sm:$0xff] %vm9157_vm3, %v6139_v46  ;;  %v6155_v55 = vpop.permute.xlu0 %6154  ;;  %vm9164_vm3 = vmmov %vm9163_vm2 }
 0x545   : > { %5776 = vrot.lane.b32.xlu1 %v5733_v43, %s7033_s26  ;;  %6194 = vst.msk [vmem:[#allocation3 + $0x88] sm:$0xff] %vm9158_vm4, %v6155_v55  ;;  %v5726_v43 = vpack.c.bf16 %v5699_v30, %v5698_v22  ;;  %vm9165_vm4 = vmmov %vm9159_vm5  ;;  %v5588_v22 = vld [vmem:[#allocation2 + $0x1c8] sm:$0xff]  ;;  %v5589_v30 = vld [vmem:[#allocation2 + $0x1d0] sm:$0xff] }
 0x546   : > { %5888 = vrot.lane.b32.xlu0 %v5853_v52, %s7034_s27  ;;  %v5734_v52 = vpack.c.bf16 %v5715_v39, %v5714_v37  ;;  %v5700_v37 = vld [vmem:[#allocation2 + $0x109] sm:$0xff]  ;;  %v5701_v39 = vld [vmem:[#allocation2 + $0x111] sm:$0xff] }
 0x547   : > { %v5244_v40 = vpop.permute.xlu1 %5243 }
 0x548   : > { %5290 = vst.msk [vmem:[#allocation3 + $0x18] sm:$0xff] %vm1229_vm8, %v5244_v40  ;;  %v5260_v1 = vpop.permute.xlu0 %5259 }
 0x549   : > { %5904 = vrot.lane.b32.xlu1 %v5861_v57, %s7034_s27  ;;  %5298 = vst.msk [vmem:[#allocation3 + $0x98] sm:$0xff] %vm1229_vm8, %v5260_v1  ;;  %v5854_v57 = vpack.c.bf16 %v5827_v51, %v5826_v44  ;;  %v5970_v1 = vld [vmem:[#allocation2 + $0x1b3] sm:$0xff]  ;;  %v5716_v44 = vld [vmem:[#allocation2 + $0x1c9] sm:$0xff] }
 0x54a   : > { %6016 = vrot.lane.b32.xlu0 %v5981_v63, %s7035_s28  ;;  %v5717_v51 = vld [vmem:[#allocation2 + $0x1d1] sm:$0xff] }
 0x54b   : > { %v6267_v5 = vpop.permute.xlu1 %6266 }
 0x54c   : > { %6314 = vst.msk [vmem:[#allocation3 + $0x8] sm:$0xff] %vm9159_vm5, %v6267_v5  ;;  %v6283_v47 = vpop.permute.xlu0 %6282  ;;  %vm9166_vm5 = vmmov %vm9165_vm4 }
 0x54d   : > { %6032 = vrot.lane.b32.xlu1 %v5989_v4, %s7035_s28  ;;  %6322 = vst.msk [vmem:[#allocation3 + $0x88] sm:$0xff] %vm9160_vm6, %v6283_v47  ;;  %vm9167_vm6 = vmmov %vm9162_vm0 }
 0x54e   : > { %5121 = vrot.lane.b32.xlu0 %v5981_v63, %s7028_s21  ;;  %v5862_v63 = vpack.c.bf16 %v5843_v53, %v5842_v32  ;;  %v5828_v32 = vld [vmem:[#allocation2 + $0x10a] sm:$0xff]  ;;  %v5829_v53 = vld [vmem:[#allocation2 + $0x112] sm:$0xff] }
 0x54f   : > { %v5372_v28 = vpop.permute.xlu1 %5371 }
 0x550   : > { %5418 = vst.msk [vmem:[#allocation3 + $0x18] sm:$0xff] %vm1358_vm9, %v5372_v28  ;;  %v5388_v12 = vpop.permute.xlu0 %5387  ;;  %v6083_v28 = vld [vmem:[#allocation2 + $0xfc] sm:$0xff] }
 0x551   : > { %5137 = vrot.lane.b32.xlu1 %v5989_v4, %s7028_s21  ;;  %5426 = vst.msk [vmem:[#allocation3 + $0x98] sm:$0xff] %vm1358_vm9, %v5388_v12  ;;  %v5971_v4 = vld [vmem:[#allocation2 + $0x1bb] sm:$0xff]  ;;  %v6110_v56 = vpack.c.bf16 %v6083_v28, %v6082_v11 }
 0x552   : > { %6144 = vrot.lane.b32.xlu0 %v6109_v27, %s7036_s29  ;;  %v5990_v47 = vpack.c.bf16 %v5971_v4, %v5970_v1  ;;  %v6098_v12 = vld [vmem:[#allocation2 + $0x1b4] sm:$0xff]  ;;  %v5956_v1 = vld [vmem:[#allocation2 + $0x10b] sm:$0xff] }
 0x553   : > { %v6395_v13 = vpop.permute.xlu1 %6394  ;;  %v5957_v4 = vld [vmem:[#allocation2 + $0x113] sm:$0xff] }
 0x554   : > { %6442 = vst.msk [vmem:[#allocation3 + $0x8] sm:$0xff] %vm9161_vm1, %v6395_v13  ;;  %v6411_v19 = vpop.permute.xlu0 %6410  ;;  %vm9168_vm1 = vmmov %vm9162_vm0  ;;  %v5983_v11 = vpack.c.bf16 %v5957_v4, %v5956_v1  ;;  %v5846_v1 = vld [vmem:[#allocation2 + $0x1e2] sm:$0xff]  ;;  %v5847_v4 = vld [vmem:[#allocation2 + $0x1ea] sm:$0xff] }
 0x555   : > { %6160 = vrot.lane.b32.xlu1 %v6117_v6, %s7036_s29  ;;  %6450 = vst.msk [vmem:[#allocation3 + $0x88] sm:$0xff] %vm9162_vm0, %v6411_v19  ;;  %vm9169_vm0 = vmmov %vm9163_vm2 }
 0x556   : > { %5249 = vrot.lane.b32.xlu0 %v6109_v27, %s7029_s22 }
 0x557   : > { %v5500_v45 = vpop.permute.xlu1 %5499 }
 0x558   : > { %5546 = vst.msk [vmem:[#allocation3 + $0x18] sm:$0xff] %vm1487_vm10, %v5500_v45  ;;  %v5516_v23 = vpop.permute.xlu0 %5515  ;;  %v6211_v45 = vld [vmem:[#allocation2 + $0xfd] sm:$0xff] }
 0x559   : > { %5265 = vrot.lane.b32.xlu1 %v6117_v6, %s7029_s22  ;;  %5554 = vst.msk [vmem:[#allocation3 + $0x98] sm:$0xff] %vm1487_vm10, %v5516_v23  ;;  %v6099_v6 = vld [vmem:[#allocation2 + $0x1bc] sm:$0xff] }
 0x55a   : > { %6272 = vrot.lane.b32.xlu0 %v6237_v2, %s7037_s30  ;;  %v6118_v19 = vpack.c.bf16 %v6099_v6, %v6098_v12  ;;  %v6226_v23 = vld [vmem:[#allocation2 + $0x1b5] sm:$0xff]  ;;  %v6084_v6 = vld [vmem:[#allocation2 + $0x10c] sm:$0xff] }
 0x55b   : > { %v5629_v21 = vpop.permute.xlu1 %5628  ;;  %v6459_v0 = vld [vmem:[#allocation3 + $0x8] sm:$0xff] }
 0x55c   : > { %5675 = vst.msk [vmem:[#allocation3 + $0x18] sm:$0xff] %vm1616_vm11, %v5629_v21  ;;  %6914 = vmatprep.mubr.msk.bf16.mxu0 %vm6590_vm15, %v6459_v0  ;;  %v5645_v24 = vpop.permute.xlu0 %5644  ;;  %v6475_v48 = vld [vmem:[#allocation3 + $0x88] sm:$0xff]  ;;  %v6238_v0 = vpack.c.bf16 %v6211_v45, %v6210_v20 }
 0x55d   : > { %6288 = vrot.lane.b32.xlu1 %v6245_v38, %s7037_s30  ;;  %6676 = vmatmul.mubr.bf16.vlgmr.msra.gmra.mrb[0].mxu0 %v6458_v14  ;;  %5683 = vst.msk [vmem:[#allocation3 + $0x98] sm:$0xff] %vm1616_vm11, %v5645_v24  ;;  %v6460_v24 = vld [vmem:[#allocation3 + $0x10] sm:$0xff] }
 0x55e   : > { %6922 = vmatprep.mubr.msk.bf16.mxu1 %vm6590_vm15, %v6475_v48  ;;  %5377 = vrot.lane.b32.xlu0 %v6237_v2, %s7030_s23 }
 0x55f   : > { %6740 = vmatmul.mubr.bf16.vlgmr.msra.gmra.mrb[0].mxu1 %v6474_v26  ;;  %v5757_v29 = vpop.permute.xlu1 %5756 }
 0x560   : > { %5803 = vst.msk [vmem:[#allocation3 + $0x18] sm:$0xff] %vm1745_vm12, %v5757_v29  ;;  %v5773_v50 = vpop.permute.xlu0 %5772  ;;  %v6339_v29 = vld [vmem:[#allocation2 + $0xfe] sm:$0xff] }
 0x561   : > { %5393 = vrot.lane.b32.xlu1 %v6245_v38, %s7030_s23  ;;  %5811 = vst.msk [vmem:[#allocation3 + $0x98] sm:$0xff] %vm1745_vm12, %v5773_v50  ;;  %v6227_v38 = vld [vmem:[#allocation2 + $0x1bd] sm:$0xff]  ;;  %v6366_v58 = vpack.c.bf16 %v6339_v29, %v6338_v25  ;;  %v6462_v25 = vld [vmem:[#allocation3 + $0x20] sm:$0xff] }
 0x562   : > { %6400 = vrot.lane.b32.xlu0 %v6365_v31, %s7038_s3  ;;  %v6246_v54 = vpack.c.bf16 %v6227_v38, %v6226_v23  ;;  %v6354_v50 = vld [vmem:[#allocation2 + $0x1b6] sm:$0xff]  ;;  %v6212_v38 = vld [vmem:[#allocation2 + $0x10d] sm:$0xff] }
 0x563   : > { %v5885_v62 = vpop.permute.xlu1 %5884 }
 0x564   : > { %5931 = vst.msk [vmem:[#allocation3 + $0x18] sm:$0xff] %vm1874_vm13, %v5885_v62  ;;  %v5901_v3 = vpop.permute.xlu0 %5900 }
 0x565   : > { %6416 = vrot.lane.b32.xlu1 %v6373_v17, %s7038_s3  ;;  %5939 = vst.msk [vmem:[#allocation3 + $0x98] sm:$0xff] %vm1874_vm13, %v5901_v3 }
 0x566   : > { %5505 = vrot.lane.b32.xlu0 %v6365_v31, %s7031_s24 }
 0x567   : > { %v6013_v15 = vpop.permute.xlu1 %6012 }
 0x568   : > { %6059 = vst.msk [vmem:[#allocation3 + $0x18] sm:$0xff] %vm2003_vm14, %v6013_v15  ;;  %v6029_v33 = vpop.permute.xlu0 %6028  ;;  %v5573_v15 = vld [vmem:[#allocation2 + $0x110] sm:$0xff] }
 0x569   : > { %5521 = vrot.lane.b32.xlu1 %v6373_v17, %s7031_s24  ;;  %6067 = vst.msk [vmem:[#allocation3 + $0x98] sm:$0xff] %vm2003_vm14, %v6029_v33  ;;  %v6355_v17 = vld [vmem:[#allocation2 + $0x1be] sm:$0xff] }
 0x56a   : > { %5634 = vrot.lane.b32.xlu0 %v5598_v16, %s7032_s25  ;;  %v6374_v3 = vpack.c.bf16 %v6355_v17, %v6354_v50  ;;  %v6478_v50 = vld [vmem:[#allocation3 + $0xa0] sm:$0xff] }
 0x56b   : > { %v5134_v41 = vpop.permute.xlu1 %5133  ;;  %v6340_v17 = vld [vmem:[#allocation2 + $0x10e] sm:$0xff] }
 0x56c   : > { %5171 = vst.msk [vmem:[#allocation3 + $0xa8] sm:$0xff] %vm1099_vm7, %v5134_v41  ;;  %v6141_v46 = vpop.permute.xlu0 %6140 }
 0x56d   : > { %5650 = vrot.lane.b32.xlu1 %v5606_v34, %s7032_s25  ;;  %6187 = vst.msk [vmem:[#allocation3 + $0x18] sm:$0xff] %vm9163_vm2, %v6141_v46  ;;  %v5599_v34 = vpack.c.bf16 %v5573_v15, %v5572_v7  ;;  %vm9170_vm2 = vmmov %vm9169_vm0 }
 0x56e   : > { %5762 = vrot.lane.b32.xlu0 %v5726_v43, %s7033_s26  ;;  %v5607_v43 = vpack.c.bf16 %v5589_v30, %v5588_v22  ;;  %v5574_v30 = vld [vmem:[#allocation2 + $0x120] sm:$0xff] }
 0x56f   : > { %v6157_v55 = vpop.permute.xlu1 %6156 }
 0x570   : > { %6195 = vst.msk [vmem:[#allocation3 + $0x98] sm:$0xff] %vm9164_vm3, %v6157_v55  ;;  %v5246_v40 = vpop.permute.xlu0 %5245  ;;  %vm9171_vm3 = vmmov %vm9165_vm4 }
 0x571   : > { %5778 = vrot.lane.b32.xlu1 %v5734_v52, %s7033_s26  ;;  %5291 = vst.msk [vmem:[#allocation3 + $0x28] sm:$0xff] %vm1229_vm8, %v5246_v40  ;;  %v5727_v52 = vpack.c.bf16 %v5701_v39, %v5700_v37  ;;  %v5590_v37 = vld [vmem:[#allocation2 + $0x1e0] sm:$0xff]  ;;  %v5591_v39 = vld [vmem:[#allocation2 + $0x1e8] sm:$0xff] }
 0x572   : > { %5890 = vrot.lane.b32.xlu0 %v5854_v57, %s7034_s27  ;;  %v5735_v57 = vpack.c.bf16 %v5717_v51, %v5716_v44  ;;  %v5702_v44 = vld [vmem:[#allocation2 + $0x121] sm:$0xff]  ;;  %v5703_v51 = vld [vmem:[#allocation2 + $0x129] sm:$0xff] }
 0x573   : > { %v5262_v5 = vpop.permute.xlu1 %5261 }
 0x574   : > { %5299 = vst.msk [vmem:[#allocation3 + $0xa8] sm:$0xff] %vm1229_vm8, %v5262_v5  ;;  %v6269_v9 = vpop.permute.xlu0 %6268 }
 0x575   : > { %5906 = vrot.lane.b32.xlu1 %v5862_v63, %s7034_s27  ;;  %6315 = vst.msk [vmem:[#allocation3 + $0x18] sm:$0xff] %vm9165_vm4, %v6269_v9  ;;  %v5855_v63 = vpack.c.bf16 %v5829_v53, %v5828_v32  ;;  %v5972_v9 = vld [vmem:[#allocation2 + $0x1cb] sm:$0xff]  ;;  %vm9172_vm4 = vmmov %vm9171_vm3  ;;  %v5718_v32 = vld [vmem:[#allocation2 + $0x1e1] sm:$0xff] }
 0x576   : > { %6018 = vrot.lane.b32.xlu0 %v5982_v8, %s7035_s28  ;;  %v5719_v53 = vld [vmem:[#allocation2 + $0x1e9] sm:$0xff] }
 0x577   : > { %v6285_v10 = vpop.permute.xlu1 %6284 }
 0x578   : > { %6323 = vst.msk [vmem:[#allocation3 + $0x98] sm:$0xff] %vm9166_vm5, %v6285_v10  ;;  %v5374_v27 = vpop.permute.xlu0 %5373  ;;  %vm9173_vm5 = vmmov %vm9168_vm1 }
 0x579   : > { %6034 = vrot.lane.b32.xlu1 %v5990_v47, %s7035_s28  ;;  %5419 = vst.msk [vmem:[#allocation3 + $0x28] sm:$0xff] %vm1358_vm9, %v5374_v27 }
 0x57a   : > { %5123 = vrot.lane.b32.xlu0 %v5982_v8, %s7028_s21  ;;  %v5863_v8 = vpack.c.bf16 %v5845_v60, %v5844_v59  ;;  %v5830_v59 = vld [vmem:[#allocation2 + $0x122] sm:$0xff]  ;;  %v5831_v60 = vld [vmem:[#allocation2 + $0x12a] sm:$0xff] }
 0x57b   : > { %v5390_v13 = vpop.permute.xlu1 %5389 }
 0x57c   : > { %5427 = vst.msk [vmem:[#allocation3 + $0xa8] sm:$0xff] %vm1358_vm9, %v5390_v13  ;;  %v6397_v18 = vpop.permute.xlu0 %6396  ;;  %v6085_v13 = vld [vmem:[#allocation2 + $0x114] sm:$0xff] }
 0x57d   : > { %5139 = vrot.lane.b32.xlu1 %v5990_v47, %s7028_s21  ;;  %6443 = vst.msk [vmem:[#allocation3 + $0x18] sm:$0xff] %vm9167_vm6, %v6397_v18  ;;  %v5973_v47 = vld [vmem:[#allocation2 + $0x1d3] sm:$0xff]  ;;  %v6111_v20 = vpack.c.bf16 %v6085_v13, %v6084_v6  ;;  %vm9174_vm6 = vmmov %vm9168_vm1 }
 0x57e   : > { %6146 = vrot.lane.b32.xlu0 %v6110_v56, %s7036_s29  ;;  %v5991_v27 = vpack.c.bf16 %v5973_v47, %v5972_v9  ;;  %v6100_v18 = vld [vmem:[#allocation2 + $0x1cc] sm:$0xff]  ;;  %v5958_v9 = vld [vmem:[#allocation2 + $0x123] sm:$0xff] }
 0x57f   : > { %v6413_v35 = vpop.permute.xlu1 %6412  ;;  %v5959_v47 = vld [vmem:[#allocation2 + $0x12b] sm:$0xff] }
 0x580   : > { %6451 = vst.msk [vmem:[#allocation3 + $0x98] sm:$0xff] %vm9168_vm1, %v6413_v35  ;;  %v5502_v2 = vpop.permute.xlu0 %5501  ;;  %vm9175_vm1 = vmmov %vm9169_vm0  ;;  %v5984_v6 = vpack.c.bf16 %v5959_v47, %v5958_v9  ;;  %v5848_v9 = vld [vmem:[#allocation2 + $0x1fa] sm:$0xff]  ;;  %v5849_v47 = vld [vmem:[#allocation2 + $0x202] sm:$0xff] }
 0x581   : > { %6162 = vrot.lane.b32.xlu1 %v6118_v19, %s7036_s29  ;;  %5547 = vst.msk [vmem:[#allocation3 + $0x28] sm:$0xff] %vm1487_vm10, %v5502_v2 }
 0x582   : > { %5251 = vrot.lane.b32.xlu0 %v6110_v56, %s7029_s22 }
 0x583   : > { %v5518_v21 = vpop.permute.xlu1 %5517 }
 0x584   : > { %5555 = vst.msk [vmem:[#allocation3 + $0xa8] sm:$0xff] %vm1487_vm10, %v5518_v21  ;;  %v5631_v14 = vpop.permute.xlu0 %5630  ;;  %v6461_v49 = vld [vmem:[#allocation3 + $0x18] sm:$0xff]  ;;  %v6213_v21 = vld [vmem:[#allocation2 + $0x115] sm:$0xff] }
 0x585   : > { %5267 = vrot.lane.b32.xlu1 %v6118_v19, %s7029_s22  ;;  %5676 = vst.msk [vmem:[#allocation3 + $0x28] sm:$0xff] %vm1616_vm11, %v5631_v14  ;;  %6915 = vmatprep.mubr.msk.bf16.mxu0 %vm6590_vm15, %v6461_v49  ;;  %v6101_v19 = vld [vmem:[#allocation2 + $0x1d4] sm:$0xff] }
 0x586   : > { %6274 = vrot.lane.b32.xlu0 %v6238_v0, %s7037_s30  ;;  %6684 = vmatmul.mubr.bf16.gmra.mrb[4].mxu0 %v6460_v24  ;;  %v6119_v2 = vpack.c.bf16 %v6101_v19, %v6100_v18  ;;  %v6228_v14 = vld [vmem:[#allocation2 + $0x1cd] sm:$0xff]  ;;  %v6229_v49 = vld [vmem:[#allocation2 + $0x1d5] sm:$0xff]  ;;  %v6239_v24 = vpack.c.bf16 %v6213_v21, %v6212_v38  ;;  %v6086_v19 = vld [vmem:[#allocation2 + $0x124] sm:$0xff] }
 0x587   : > { %v5647_v48 = vpop.permute.xlu1 %5646  ;;  %v6477_v26 = vld [vmem:[#allocation3 + $0x98] sm:$0xff] }
 0x588   : > { %5684 = vst.msk [vmem:[#allocation3 + $0xa8] sm:$0xff] %vm1616_vm11, %v5647_v48  ;;  %6923 = vmatprep.mubr.msk.bf16.mxu1 %vm6590_vm15, %v6477_v26  ;;  %v5759_v31 = vpop.permute.xlu0 %5758 }
 0x589   : > { %6290 = vrot.lane.b32.xlu1 %v6246_v54, %s7037_s30  ;;  %6748 = vmatmul.mubr.bf16.gmra.mrb[4].mxu1 %v6476_v61  ;;  %5804 = vst.msk [vmem:[#allocation3 + $0x28] sm:$0xff] %vm1745_vm12, %v5759_v31  ;;  %v6247_v61 = vpack.c.bf16 %v6229_v49, %v6228_v14  ;;  %v6214_v49 = vld [vmem:[#allocation2 + $0x125] sm:$0xff] }
 0x58a   : > { %5379 = vrot.lane.b32.xlu0 %v6238_v0, %s7030_s23 }
 0x58b   : > { %v5775_v62 = vpop.permute.xlu1 %5774 }
 0x58c   : > { %5812 = vst.msk [vmem:[#allocation3 + $0xa8] sm:$0xff] %vm1745_vm12, %v5775_v62  ;;  %v5887_v42 = vpop.permute.xlu0 %5886  ;;  %v6341_v62 = vld [vmem:[#allocation2 + $0x116] sm:$0xff] }
 0x58d   : > { %5395 = vrot.lane.b32.xlu1 %v6246_v54, %s7030_s23  ;;  %5932 = vst.msk [vmem:[#allocation3 + $0x28] sm:$0xff] %vm1874_vm13, %v5887_v42  ;;  %v6356_v42 = vld [vmem:[#allocation2 + $0x1ce] sm:$0xff]  ;;  %v6367_v7 = vpack.c.bf16 %v6341_v62, %v6340_v17  ;;  %v6464_v17 = vld [vmem:[#allocation3 + $0x30] sm:$0xff] }
 0x58e   : > { %6402 = vrot.lane.b32.xlu0 %v6366_v58, %s7038_s3 }
 0x58f   : > { %v5903_v36 = vpop.permute.xlu1 %5902 }
 0x590   : > { %5940 = vst.msk [vmem:[#allocation3 + $0xa8] sm:$0xff] %vm1874_vm13, %v5903_v36  ;;  %v6015_v16 = vpop.permute.xlu0 %6014 }
 0x591   : > { %6418 = vrot.lane.b32.xlu1 %v6374_v3, %s7038_s3  ;;  %6060 = vst.msk [vmem:[#allocation3 + $0x28] sm:$0xff] %vm2003_vm14, %v6015_v16 }
 0x592   : > { %5507 = vrot.lane.b32.xlu0 %v6366_v58, %s7031_s24 }
 0x593   : > { %v6031_v33 = vpop.permute.xlu1 %6030 }
 0x594   : > { %6068 = vst.msk [vmem:[#allocation3 + $0xa8] sm:$0xff] %vm2003_vm14, %v6031_v33  ;;  %v5120_v41 = vpop.permute.xlu0 %5119  ;;  %v5575_v33 = vld [vmem:[#allocation2 + $0x128] sm:$0xff] }
 0x595   : > { %5523 = vrot.lane.b32.xlu1 %v6374_v3, %s7031_s24  ;;  %5164 = vst.msk [vmem:[#allocation3 + $0x38] sm:$0xff] %vm1099_vm7, %v5120_v41  ;;  %v6357_v3 = vld [vmem:[#allocation2 + $0x1d6] sm:$0xff] }
 0x596   : > { %5636 = vrot.lane.b32.xlu0 %v5599_v34, %s7032_s25  ;;  %v6375_v16 = vpack.c.bf16 %v6357_v3, %v6356_v42  ;;  %v6480_v42 = vld [vmem:[#allocation3 + $0xb0] sm:$0xff] }
 0x597   : > { %v5136_v46 = vpop.permute.xlu1 %5135  ;;  %v6342_v3 = vld [vmem:[#allocation2 + $0x126] sm:$0xff] }
 0x598   : > { %5172 = vst.msk [vmem:[#allocation3 + $0xb8] sm:$0xff] %vm1099_vm7, %v5136_v46  ;;  %v6143_v55 = vpop.permute.xlu0 %6142 }
 0x599   : > { %5652 = vrot.lane.b32.xlu1 %v5607_v43, %s7032_s25  ;;  %6188 = vst.msk [vmem:[#allocation3 + $0x28] sm:$0xff] %vm9169_vm0, %v6143_v55  ;;  %v5600_v43 = vpack.c.bf16 %v5575_v33, %v5574_v30 }
 0x59a   : > { %5764 = vrot.lane.b32.xlu0 %v5727_v52, %s7033_s26  ;;  %v5608_v52 = vpack.c.bf16 %v5591_v39, %v5590_v37  ;;  %v5576_v39 = vld [vmem:[#allocation2 + $0x138] sm:$0xff] }
 0x59b   : > { %v6159_v40 = vpop.permute.xlu1 %6158 }
 0x59c   : > { %6196 = vst.msk [vmem:[#allocation3 + $0xa8] sm:$0xff] %vm9170_vm2, %v6159_v40  ;;  %v5248_v5 = vpop.permute.xlu0 %5247  ;;  %vm9176_vm2 = vmmov %vm9171_vm3 }
 0x59d   : > { %5780 = vrot.lane.b32.xlu1 %v5735_v57, %s7033_s26  ;;  %5292 = vst.msk [vmem:[#allocation3 + $0x38] sm:$0xff] %vm1229_vm8, %v5248_v5  ;;  %v5728_v57 = vpack.c.bf16 %v5703_v51, %v5702_v44  ;;  %v5592_v44 = vld [vmem:[#allocation2 + $0x1f8] sm:$0xff]  ;;  %v5593_v51 = vld [vmem:[#allocation2 + $0x200] sm:$0xff] }
 0x59e   : > { %5892 = vrot.lane.b32.xlu0 %v5855_v63, %s7034_s27  ;;  %v5736_v63 = vpack.c.bf16 %v5719_v53, %v5718_v32  ;;  %v5704_v32 = vld [vmem:[#allocation2 + $0x139] sm:$0xff]  ;;  %v5705_v53 = vld [vmem:[#allocation2 + $0x141] sm:$0xff] }
 0x59f   : > { %v5264_v10 = vpop.permute.xlu1 %5263 }
 0x5a0   : > { %5300 = vst.msk [vmem:[#allocation3 + $0xb8] sm:$0xff] %vm1229_vm8, %v5264_v10  ;;  %v6271_v28 = vpop.permute.xlu0 %6270 }
 0x5a1   : > { %5908 = vrot.lane.b32.xlu1 %v5863_v8, %s7034_s27  ;;  %6316 = vst.msk [vmem:[#allocation3 + $0x28] sm:$0xff] %vm9171_vm3, %v6271_v28  ;;  %v5856_v8 = vpack.c.bf16 %v5831_v60, %v5830_v59  ;;  %v5974_v28 = vld [vmem:[#allocation2 + $0x1e3] sm:$0xff]  ;;  %vm9177_vm3 = vmmov %vm9176_vm2  ;;  %v5720_v59 = vld [vmem:[#allocation2 + $0x1f9] sm:$0xff] }
 0x5a2   : > { %6020 = vrot.lane.b32.xlu0 %v5983_v11, %s7035_s28  ;;  %v5721_v60 = vld [vmem:[#allocation2 + $0x201] sm:$0xff] }
 0x5a3   : > { %v6287_v12 = vpop.permute.xlu1 %6286 }
 0x5a4   : > { %6324 = vst.msk [vmem:[#allocation3 + $0xa8] sm:$0xff] %vm9172_vm4, %v6287_v12  ;;  %v5376_v56 = vpop.permute.xlu0 %5375  ;;  %vm9178_vm4 = vmmov %vm9173_vm5 }
 0x5a5   : > { %6036 = vrot.lane.b32.xlu1 %v5991_v27, %s7035_s28  ;;  %5420 = vst.msk [vmem:[#allocation3 + $0x38] sm:$0xff] %vm1358_vm9, %v5376_v56 }
 0x5a6   : > { %5125 = vrot.lane.b32.xlu0 %v5983_v11, %s7028_s21  ;;  %v5864_v11 = vpack.c.bf16 %v5847_v4, %v5846_v1  ;;  %v5832_v1 = vld [vmem:[#allocation2 + $0x13a] sm:$0xff]  ;;  %v5833_v4 = vld [vmem:[#allocation2 + $0x142] sm:$0xff] }
 0x5a7   : > { %v5392_v35 = vpop.permute.xlu1 %5391 }
 0x5a8   : > { %5428 = vst.msk [vmem:[#allocation3 + $0xb8] sm:$0xff] %vm1358_vm9, %v5392_v35  ;;  %v6399_v45 = vpop.permute.xlu0 %6398  ;;  %v6087_v35 = vld [vmem:[#allocation2 + $0x12c] sm:$0xff] }
 0x5a9   : > { %5141 = vrot.lane.b32.xlu1 %v5991_v27, %s7028_s21  ;;  %6444 = vst.msk [vmem:[#allocation3 + $0x28] sm:$0xff] %vm9173_vm5, %v6399_v45  ;;  %v5975_v27 = vld [vmem:[#allocation2 + $0x1eb] sm:$0xff]  ;;  %v6112_v38 = vpack.c.bf16 %v6087_v35, %v6086_v19  ;;  %vm9179_vm5 = vmmov %vm9178_vm4  ;;  %v6088_v35 = vld [vmem:[#allocation2 + $0x13c] sm:$0xff] }
 0x5aa   : > { %6148 = vrot.lane.b32.xlu0 %v6111_v20, %s7036_s29  ;;  %v5992_v56 = vpack.c.bf16 %v5975_v27, %v5974_v28  ;;  %v6102_v45 = vld [vmem:[#allocation2 + $0x1e4] sm:$0xff]  ;;  %v5960_v28 = vld [vmem:[#allocation2 + $0x13b] sm:$0xff] }
 0x5ab   : > { %v6415_v23 = vpop.permute.xlu1 %6414  ;;  %v5961_v27 = vld [vmem:[#allocation2 + $0x143] sm:$0xff] }
 0x5ac   : > { %6452 = vst.msk [vmem:[#allocation3 + $0xa8] sm:$0xff] %vm9174_vm6, %v6415_v23  ;;  %v5504_v0 = vpop.permute.xlu0 %5503  ;;  %vm9180_vm6 = vmmov %vm9169_vm0  ;;  %v5985_v19 = vpack.c.bf16 %v5961_v27, %v5960_v28 }
 0x5ad   : > { %6164 = vrot.lane.b32.xlu1 %v6119_v2, %s7036_s29  ;;  %5548 = vst.msk [vmem:[#allocation3 + $0x38] sm:$0xff] %vm1487_vm10, %v5504_v0 }
 0x5ae   : > { %5253 = vrot.lane.b32.xlu0 %v6111_v20, %s7029_s22 }
 0x5af   : > { %v5520_v54 = vpop.permute.xlu1 %5519 }
 0x5b0   : > { %5556 = vst.msk [vmem:[#allocation3 + $0xb8] sm:$0xff] %vm1487_vm10, %v5520_v54  ;;  %v5633_v48 = vpop.permute.xlu0 %5632  ;;  %v6463_v26 = vld [vmem:[#allocation3 + $0x28] sm:$0xff]  ;;  %v6215_v54 = vld [vmem:[#allocation2 + $0x12d] sm:$0xff] }
 0x5b1   : > { %5269 = vrot.lane.b32.xlu1 %v6119_v2, %s7029_s22  ;;  %5677 = vst.msk [vmem:[#allocation3 + $0x38] sm:$0xff] %vm1616_vm11, %v5633_v48  ;;  %6916 = vmatprep.mubr.msk.bf16.mxu0 %vm6590_vm15, %v6463_v26  ;;  %v6103_v2 = vld [vmem:[#allocation2 + $0x1ec] sm:$0xff] }
 0x5b2   : > { %6276 = vrot.lane.b32.xlu0 %v6239_v24, %s7037_s30  ;;  %6692 = vmatmul.mubr.bf16.gmra.mrb[8].mxu0 %v6462_v25  ;;  %v6120_v0 = vpack.c.bf16 %v6103_v2, %v6102_v45  ;;  %v6230_v48 = vld [vmem:[#allocation2 + $0x1e5] sm:$0xff]  ;;  %v6231_v26 = vld [vmem:[#allocation2 + $0x1ed] sm:$0xff]  ;;  %v6240_v25 = vpack.c.bf16 %v6215_v54, %v6214_v49 }
 0x5b3   : > { %v5649_v29 = vpop.permute.xlu1 %5648  ;;  %v6479_v31 = vld [vmem:[#allocation3 + $0xa8] sm:$0xff]  ;;  %v6217_v49 = vld [vmem:[#allocation2 + $0x145] sm:$0xff] }
 0x5b4   : > { %5685 = vst.msk [vmem:[#allocation3 + $0xb8] sm:$0xff] %vm1616_vm11, %v5649_v29  ;;  %6924 = vmatprep.mubr.msk.bf16.mxu1 %vm6590_vm15, %v6479_v31  ;;  %v5761_v58 = vpop.permute.xlu0 %5760 }
 0x5b5   : > { %6292 = vrot.lane.b32.xlu1 %v6247_v61, %s7037_s30  ;;  %6756 = vmatmul.mubr.bf16.gmra.mrb[8].mxu1 %v6478_v50  ;;  %5805 = vst.msk [vmem:[#allocation3 + $0x38] sm:$0xff] %vm1745_vm12, %v5761_v58  ;;  %v6248_v50 = vpack.c.bf16 %v6231_v26, %v6230_v48  ;;  %v6232_v48 = vld [vmem:[#allocation2 + $0x1fd] sm:$0xff]  ;;  %v6233_v26 = vld [vmem:[#allocation2 + $0x205] sm:$0xff] }
 0x5b6   : > { %5381 = vrot.lane.b32.xlu0 %v6239_v24, %s7030_s23 }
 0x5b7   : > { %v5777_v36 = vpop.permute.xlu1 %5776 }
 0x5b8   : > { %5813 = vst.msk [vmem:[#allocation3 + $0xb8] sm:$0xff] %vm1745_vm12, %v5777_v36  ;;  %v5889_v15 = vpop.permute.xlu0 %5888  ;;  %v6343_v36 = vld [vmem:[#allocation2 + $0x12e] sm:$0xff] }
 0x5b9   : > { %5397 = vrot.lane.b32.xlu1 %v6247_v61, %s7030_s23  ;;  %5933 = vst.msk [vmem:[#allocation3 + $0x38] sm:$0xff] %vm1874_vm13, %v5889_v15  ;;  %v6358_v15 = vld [vmem:[#allocation2 + $0x1e6] sm:$0xff]  ;;  %v6368_v30 = vpack.c.bf16 %v6343_v36, %v6342_v3 }
 0x5ba   : > { %6404 = vrot.lane.b32.xlu0 %v6367_v7, %s7038_s3 }
 0x5bb   : > { %v5905_v22 = vpop.permute.xlu1 %5904 }
 0x5bc   : > { %5941 = vst.msk [vmem:[#allocation3 + $0xb8] sm:$0xff] %vm1874_vm13, %v5905_v22  ;;  %v6017_v34 = vpop.permute.xlu0 %6016 }
 0x5bd   : > { %6420 = vrot.lane.b32.xlu1 %v6375_v16, %s7038_s3  ;;  %6061 = vst.msk [vmem:[#allocation3 + $0x38] sm:$0xff] %vm2003_vm14, %v6017_v34 }
 0x5be   : > { %5509 = vrot.lane.b32.xlu0 %v6367_v7, %s7031_s24 }
 0x5bf   : > { %v6033_v41 = vpop.permute.xlu1 %6032 }
 0x5c0   : > { %6069 = vst.msk [vmem:[#allocation3 + $0xb8] sm:$0xff] %vm2003_vm14, %v6033_v41  ;;  %v5122_v46 = vpop.permute.xlu0 %5121  ;;  %v5577_v41 = vld [vmem:[#allocation2 + $0x140] sm:$0xff] }
 0x5c1   : > { %5525 = vrot.lane.b32.xlu1 %v6375_v16, %s7031_s24  ;;  %5165 = vst.msk [vmem:[#allocation3 + $0x48] sm:$0xff] %vm1099_vm7, %v5122_v46  ;;  %v6359_v16 = vld [vmem:[#allocation2 + $0x1ee] sm:$0xff] }
 0x5c2   : > { %5638 = vrot.lane.b32.xlu0 %v5600_v43, %s7032_s25  ;;  %v6376_v34 = vpack.c.bf16 %v6359_v16, %v6358_v15 }
 0x5c3   : > { %v5138_v55 = vpop.permute.xlu1 %5137 }
 0x5c4   : > { %5173 = vst.msk [vmem:[#allocation3 + $0xc8] sm:$0xff] %vm1099_vm7, %v5138_v55  ;;  %v6145_v40 = vpop.permute.xlu0 %6144 }
 0x5c5   : > { %5654 = vrot.lane.b32.xlu1 %v5608_v52, %s7032_s25  ;;  %6189 = vst.msk [vmem:[#allocation3 + $0x38] sm:$0xff] %vm9175_vm1, %v6145_v40  ;;  %v5601_v52 = vpack.c.bf16 %v5577_v41, %v5576_v39  ;;  %vm9181_vm1 = vmmov %vm9169_vm0 }
 0x5c6   : > { %5766 = vrot.lane.b32.xlu0 %v5728_v57, %s7033_s26  ;;  %v5609_v57 = vpack.c.bf16 %v5593_v51, %v5592_v44 }
 0x5c7   : > { %v6161_v5 = vpop.permute.xlu1 %6160 }
 0x5c8   : > { %6197 = vst.msk [vmem:[#allocation3 + $0xb8] sm:$0xff] %vm9169_vm0, %v6161_v5  ;;  %v5250_v10 = vpop.permute.xlu0 %5249  ;;  %vm9182_vm0 = vmmov %vm9176_vm2 }
 0x5c9   : > { %5782 = vrot.lane.b32.xlu1 %v5736_v63, %s7033_s26  ;;  %5293 = vst.msk [vmem:[#allocation3 + $0x48] sm:$0xff] %vm1229_vm8, %v5250_v10  ;;  %v5729_v63 = vpack.c.bf16 %v5705_v53, %v5704_v32 }
 0x5ca   : > { %5894 = vrot.lane.b32.xlu0 %v5856_v8, %s7034_s27  ;;  %v5737_v8 = vpack.c.bf16 %v5721_v60, %v5720_v59 }
 0x5cb   : > { %v5266_v12 = vpop.permute.xlu1 %5265 }
 0x5cc   : > { %5301 = vst.msk [vmem:[#allocation3 + $0xc8] sm:$0xff] %vm1229_vm8, %v5266_v12  ;;  %v6273_v13 = vpop.permute.xlu0 %6272 }
 0x5cd   : > { %5910 = vrot.lane.b32.xlu1 %v5864_v11, %s7034_s27  ;;  %6317 = vst.msk [vmem:[#allocation3 + $0x38] sm:$0xff] %vm9176_vm2, %v6273_v13  ;;  %v5857_v11 = vpack.c.bf16 %v5833_v4, %v5832_v1  ;;  %v5976_v13 = vld [vmem:[#allocation2 + $0x1fb] sm:$0xff]  ;;  %vm9183_vm2 = vmmov %vm9182_vm0 }
 0x5ce   : > { %6022 = vrot.lane.b32.xlu0 %v5984_v6, %s7035_s28 }
 0x5cf   : > { %v6289_v18 = vpop.permute.xlu1 %6288 }
 0x5d0   : > { %6325 = vst.msk [vmem:[#allocation3 + $0xb8] sm:$0xff] %vm9177_vm3, %v6289_v18  ;;  %v5378_v20 = vpop.permute.xlu0 %5377  ;;  %vm9184_vm3 = vmmov %vm9178_vm4 }
 0x5d1   : > { %6038 = vrot.lane.b32.xlu1 %v5992_v56, %s7035_s28  ;;  %5421 = vst.msk [vmem:[#allocation3 + $0x48] sm:$0xff] %vm1358_vm9, %v5378_v20  ;;  %v6089_v20 = vld [vmem:[#allocation2 + $0x144] sm:$0xff] }
 0x5d2   : > { %5127 = vrot.lane.b32.xlu0 %v5984_v6, %s7028_s21  ;;  %v5865_v6 = vpack.c.bf16 %v5849_v47, %v5848_v9 }
 0x5d3   : > { %v5394_v23 = vpop.permute.xlu1 %5393 }
 0x5d4   : > { %5429 = vst.msk [vmem:[#allocation3 + $0xc8] sm:$0xff] %vm1358_vm9, %v5394_v23  ;;  %v6401_v21 = vpop.permute.xlu0 %6400  ;;  %v6104_v23 = vld [vmem:[#allocation2 + $0x1fc] sm:$0xff] }
 0x5d5   : > { %5143 = vrot.lane.b32.xlu1 %v5992_v56, %s7028_s21  ;;  %6445 = vst.msk [vmem:[#allocation3 + $0x38] sm:$0xff] %vm9178_vm4, %v6401_v21  ;;  %v5977_v56 = vld [vmem:[#allocation2 + $0x203] sm:$0xff]  ;;  %vm9185_vm4 = vmmov %vm9184_vm3 }
 0x5d6   : > { %6150 = vrot.lane.b32.xlu0 %v6112_v38, %s7036_s29  ;;  %v5993_v2 = vpack.c.bf16 %v5977_v56, %v5976_v13 }
 0x5d7   : > { %v6417_v14 = vpop.permute.xlu1 %6416 }
 0x5d8   : > { %6453 = vst.msk [vmem:[#allocation3 + $0xb8] sm:$0xff] %vm9179_vm5, %v6417_v14  ;;  %v5506_v24 = vpop.permute.xlu0 %5505  ;;  %v6216_v14 = vld [vmem:[#allocation2 + $0x13d] sm:$0xff]  ;;  %vm9186_vm5 = vmmov %vm9181_vm1 }
 0x5d9   : > { %6166 = vrot.lane.b32.xlu1 %v6120_v0, %s7036_s29  ;;  %5549 = vst.msk [vmem:[#allocation3 + $0x48] sm:$0xff] %vm1487_vm10, %v5506_v24 }
 0x5da   : > { %5255 = vrot.lane.b32.xlu0 %v6112_v38, %s7029_s22  ;;  %v6105_v38 = vld [vmem:[#allocation2 + $0x204] sm:$0xff] }
 0x5db   : > { %v5522_v61 = vpop.permute.xlu1 %5521  ;;  %v6121_v24 = vpack.c.bf16 %v6105_v38, %v6104_v23 }
 0x5dc   : > { %5557 = vst.msk [vmem:[#allocation3 + $0xc8] sm:$0xff] %vm1487_vm10, %v5522_v61  ;;  %v5635_v29 = vpop.permute.xlu0 %5634  ;;  %v6465_v31 = vld [vmem:[#allocation3 + $0x38] sm:$0xff] }
 0x5dd   : > { %5271 = vrot.lane.b32.xlu1 %v6120_v0, %s7029_s22  ;;  %5678 = vst.msk [vmem:[#allocation3 + $0x48] sm:$0xff] %vm1616_vm11, %v5635_v29  ;;  %6917 = vmatprep.mubr.msk.bf16.mxu0 %vm6590_vm15, %v6465_v31  ;;  %v6113_v0 = vpack.c.bf16 %v6089_v20, %v6088_v35  ;;  %v6344_v29 = vld [vmem:[#allocation2 + $0x13e] sm:$0xff]  ;;  %v6345_v31 = vld [vmem:[#allocation2 + $0x146] sm:$0xff] }
 0x5de   : > { %6278 = vrot.lane.b32.xlu0 %v6240_v25, %s7037_s30  ;;  %6700 = vmatmul.mubr.bf16.gmra.mrb[12].mxu0 %v6464_v17  ;;  %v6249_v17 = vpack.c.bf16 %v6233_v26, %v6232_v48  ;;  %v6369_v3 = vpack.c.bf16 %v6345_v31, %v6344_v29 }
 0x5df   : > { %v5651_v62 = vpop.permute.xlu1 %5650  ;;  %v6481_v58 = vld [vmem:[#allocation3 + $0xb8] sm:$0xff] }
 0x5e0   : > { %5686 = vst.msk [vmem:[#allocation3 + $0xc8] sm:$0xff] %vm1616_vm11, %v5651_v62  ;;  %6925 = vmatprep.mubr.msk.bf16.mxu1 %vm6590_vm15, %v6481_v58  ;;  %v5763_v7 = vpop.permute.xlu0 %5762  ;;  %v6360_v62 = vld [vmem:[#allocation2 + $0x1fe] sm:$0xff]  ;;  %v6361_v58 = vld [vmem:[#allocation2 + $0x206] sm:$0xff] }
 0x5e1   : > { %6294 = vrot.lane.b32.xlu1 %v6248_v50, %s7037_s30  ;;  %6764 = vmatmul.mubr.bf16.gmra.mrb[12].mxu1 %v6480_v42  ;;  %5806 = vst.msk [vmem:[#allocation3 + $0x48] sm:$0xff] %vm1745_vm12, %v5763_v7  ;;  %v6377_v7 = vpack.c.bf16 %v6361_v58, %v6360_v62 }
 0x5e2   : > { %5383 = vrot.lane.b32.xlu0 %v6240_v25, %s7030_s23  ;;  %v6241_v25 = vpack.c.bf16 %v6217_v49, %v6216_v14 }
 0x5e3   : > { %v5779_v22 = vpop.permute.xlu1 %5778 }
 0x5e4   : > { %5814 = vst.msk [vmem:[#allocation3 + $0xc8] sm:$0xff] %vm1745_vm12, %v5779_v22  ;;  %v5891_v33 = vpop.permute.xlu0 %5890 }
 0x5e5   : > { %5399 = vrot.lane.b32.xlu1 %v6248_v50, %s7030_s23  ;;  %5934 = vst.msk [vmem:[#allocation3 + $0x48] sm:$0xff] %vm1874_vm13, %v5891_v33  ;;  %s9036_s23 = scalar_lea.vmem %s9152_s2, %s6932_s12 }
 0x5e6   : > { %6406 = vrot.lane.b32.xlu0 %v6368_v30, %s7038_s3 }
 0x5e7   : > { %v5907_v37 = vpop.permute.xlu1 %5906 }
 0x5e8   : > { %5942 = vst.msk [vmem:[#allocation3 + $0xc8] sm:$0xff] %vm1874_vm13, %v5907_v37  ;;  %v6019_v43 = vpop.permute.xlu0 %6018  ;;  %v6482_v37 = vld [vmem:[#allocation3 + $0xc0] sm:$0xff] }
 0x5e9   : > { %6422 = vrot.lane.b32.xlu1 %v6376_v34, %s7038_s3  ;;  %6062 = vst.msk [vmem:[#allocation3 + $0x48] sm:$0xff] %vm2003_vm14, %v6019_v43 }
 0x5ea   : > { %5511 = vrot.lane.b32.xlu0 %v6368_v30, %s7031_s24  ;;  %v6466_v30 = vld [vmem:[#allocation3 + $0x40] sm:$0xff] }
 0x5eb   : > { %v6035_v46 = vpop.permute.xlu1 %6034 }
 0x5ec   : > { %6070 = vst.msk [vmem:[#allocation3 + $0xc8] sm:$0xff] %vm2003_vm14, %v6035_v46  ;;  %v5124_v55 = vpop.permute.xlu0 %5123 }
 0x5ed   : > { %5527 = vrot.lane.b32.xlu1 %v6376_v34, %s7031_s24  ;;  %5166 = vst.msk [vmem:[#allocation3 + $0x58] sm:$0xff] %vm1099_vm7, %v5124_v55 }
 0x5ee   : > { %5640 = vrot.lane.b32.xlu0 %v5601_v52, %s7032_s25 }
 0x5ef   : > { %v5140_v40 = vpop.permute.xlu1 %5139 }
 0x5f0   : > { %5174 = vst.msk [vmem:[#allocation3 + $0xd8] sm:$0xff] %vm1099_vm7, %v5140_v40  ;;  %v6147_v5 = vpop.permute.xlu0 %6146 }
 0x5f1   : > { %5656 = vrot.lane.b32.xlu1 %v5609_v57, %s7032_s25  ;;  %6190 = vst.msk [vmem:[#allocation3 + $0x48] sm:$0xff] %vm9180_vm6, %v6147_v5  ;;  %vm9187_vm6 = vmmov %vm9181_vm1 }
 0x5f2   : > { %5768 = vrot.lane.b32.xlu0 %v5729_v63, %s7033_s26 }
 0x5f3   : > { %v6163_v10 = vpop.permute.xlu1 %6162 }
 0x5f4   : > { %6198 = vst.msk [vmem:[#allocation3 + $0xc8] sm:$0xff] %vm9181_vm1, %v6163_v10  ;;  %v5252_v12 = vpop.permute.xlu0 %5251  ;;  %vm9188_vm1 = vmmov %vm9182_vm0 }
 0x5f5   : > { %5784 = vrot.lane.b32.xlu1 %v5737_v8, %s7033_s26  ;;  %5294 = vst.msk [vmem:[#allocation3 + $0x58] sm:$0xff] %vm1229_vm8, %v5252_v12 }
 0x5f6   : > { %5896 = vrot.lane.b32.xlu0 %v5857_v11, %s7034_s27 }
 0x5f7   : > { %v5268_v18 = vpop.permute.xlu1 %5267 }
 0x5f8   : > { %5302 = vst.msk [vmem:[#allocation3 + $0xd8] sm:$0xff] %vm1229_vm8, %v5268_v18  ;;  %v6275_v45 = vpop.permute.xlu0 %6274 }
 0x5f9   : > { %5912 = vrot.lane.b32.xlu1 %v5865_v6, %s7034_s27  ;;  %6318 = vst.msk [vmem:[#allocation3 + $0x48] sm:$0xff] %vm9182_vm0, %v6275_v45  ;;  %v6484_v45 = vld [vmem:[#allocation3 + $0xd0] sm:$0xff] }
 0x5fa   : > { %6024 = vrot.lane.b32.xlu0 %v5985_v19, %s7035_s28  ;;  %v6468_v19 = vld [vmem:[#allocation3 + $0x50] sm:$0xff] }
 0x5fb   : > { %v6291_v21 = vpop.permute.xlu1 %6290 }
 0x5fc   : > { %6326 = vst.msk [vmem:[#allocation3 + $0xc8] sm:$0xff] %vm9183_vm2, %v6291_v21  ;;  %v5380_v54 = vpop.permute.xlu0 %5379  ;;  %vm9189_vm2 = vmmov %vm9184_vm3 }
 0x5fd   : > { %6040 = vrot.lane.b32.xlu1 %v5993_v2, %s7035_s28  ;;  %5422 = vst.msk [vmem:[#allocation3 + $0x58] sm:$0xff] %vm1358_vm9, %v5380_v54 }
 0x5fe   : > { %6152 = vrot.lane.b32.xlu0 %v6113_v0, %s7036_s29 }
 0x5ff   : > { %v5396_v61 = vpop.permute.xlu1 %5395 }
 0x600   : > { %5430 = vst.msk [vmem:[#allocation3 + $0xd8] sm:$0xff] %vm1358_vm9, %v5396_v61  ;;  %v6403_v50 = vpop.permute.xlu0 %6402 }
 0x601   : > { %6168 = vrot.lane.b32.xlu1 %v6121_v24, %s7036_s29  ;;  %6446 = vst.msk [vmem:[#allocation3 + $0x48] sm:$0xff] %vm9184_vm3, %v6403_v50  ;;  %vm6804_vm3 = vcmask 64512  }
 0x602   : > { %6280 = vrot.lane.b32.xlu0 %v6241_v25, %s7037_s30 }
 0x603   : > { %v6419_v42 = vpop.permute.xlu1 %6418 }
 0x604   : > { %6454 = vst.msk [vmem:[#allocation3 + $0xc8] sm:$0xff] %vm9185_vm4, %v6419_v42  ;;  %v5508_v36 = vpop.permute.xlu0 %5507  ;;  %vm9190_vm4 = vmmov %vm9189_vm2 }
 0x605   : > { %6296 = vrot.lane.b32.xlu1 %v6249_v17, %s7037_s30  ;;  %5550 = vst.msk [vmem:[#allocation3 + $0x58] sm:$0xff] %vm1487_vm10, %v5508_v36 }
 0x606   : > { %6408 = vrot.lane.b32.xlu0 %v6369_v3, %s7038_s3 }
 0x607   : > { %v5524_v15 = vpop.permute.xlu1 %5523 }
 0x608   : > { %5558 = vst.msk [vmem:[#allocation3 + $0xd8] sm:$0xff] %vm1487_vm10, %v5524_v15  ;;  %v5637_v16 = vpop.permute.xlu0 %5636  ;;  %v6467_v22 = vld [vmem:[#allocation3 + $0x48] sm:$0xff] }
 0x609   : > { %6424 = vrot.lane.b32.xlu1 %v6377_v7, %s7038_s3  ;;  %5679 = vst.msk [vmem:[#allocation3 + $0x58] sm:$0xff] %vm1616_vm11, %v5637_v16  ;;  %6918 = vmatprep.mubr.msk.bf16.mxu0 %vm6590_vm15, %v6467_v22 }
 0x60a   : > { %6708 = vmatmul.mubr.bf16.gmra.mrb[16].mxu0 %v6466_v30 }
 0x60b   : > { %v5653_v33 = vpop.permute.xlu1 %5652  ;;  %v6483_v34 = vld [vmem:[#allocation3 + $0xc8] sm:$0xff] }
 0x60c   : > { %5687 = vst.msk [vmem:[#allocation3 + $0xd8] sm:$0xff] %vm1616_vm11, %v5653_v33  ;;  %6926 = vmatprep.mubr.msk.bf16.mxu1 %vm6590_vm15, %v6483_v34  ;;  %v5765_v39 = vpop.permute.xlu0 %5764 }
 0x60d   : > { %6772 = vmatmul.mubr.bf16.gmra.mrb[16].mxu1 %v6482_v37  ;;  %5807 = vst.msk [vmem:[#allocation3 + $0x58] sm:$0xff] %vm1745_vm12, %v5765_v39  ;;  %v6470_v39 = vld [vmem:[#allocation3 + $0x60] sm:$0xff] }
 0x60f   : > { %v5781_v41 = vpop.permute.xlu1 %5780 }
 0x610   : > { %5815 = vst.msk [vmem:[#allocation3 + $0xd8] sm:$0xff] %vm1745_vm12, %v5781_v41  ;;  %v5893_v43 = vpop.permute.xlu0 %5892 }
 0x611   : > { %5935 = vst.msk [vmem:[#allocation3 + $0x58] sm:$0xff] %vm1874_vm13, %v5893_v43 }
 0x613   : > { %v5909_v44 = vpop.permute.xlu1 %5908 }
 0x614   : > { %5943 = vst.msk [vmem:[#allocation3 + $0xd8] sm:$0xff] %vm1874_vm13, %v5909_v44  ;;  %v6021_v51 = vpop.permute.xlu0 %6020 }
 0x615   : > { %6063 = vst.msk [vmem:[#allocation3 + $0x58] sm:$0xff] %vm2003_vm14, %v6021_v51  ;;  %v6486_v51 = vld [vmem:[#allocation3 + $0xe0] sm:$0xff] }
 0x617   : > { %v6037_v46 = vpop.permute.xlu1 %6036 }
 0x618   : > { %6071 = vst.msk [vmem:[#allocation3 + $0xd8] sm:$0xff] %vm2003_vm14, %v6037_v46  ;;  %v5126_v52 = vpop.permute.xlu0 %5125 }
 0x619   : > { %5167 = vst.msk [vmem:[#allocation3 + $0x68] sm:$0xff] %vm1099_vm7, %v5126_v52 }
 0x61b   : > { %v5142_v32 = vpop.permute.xlu1 %5141 }
 0x61c   : > { %5175 = vst.msk [vmem:[#allocation3 + $0xe8] sm:$0xff] %vm1099_vm7, %v5142_v32  ;;  %v6149_v53 = vpop.permute.xlu0 %6148 }
 0x61d   : > { %6191 = vst.msk [vmem:[#allocation3 + $0x58] sm:$0xff] %vm9186_vm5, %v6149_v53 }
 0x61f   : > { %v6165_v55 = vpop.permute.xlu1 %6164 }
 0x620   : > { %6199 = vst.msk [vmem:[#allocation3 + $0xd8] sm:$0xff] %vm9187_vm6, %v6165_v55  ;;  %v5254_v57 = vpop.permute.xlu0 %5253  ;;  %vm9191_vm6 = vmmov %vm9186_vm5 }
 0x621   : > { %5295 = vst.msk [vmem:[#allocation3 + $0x68] sm:$0xff] %vm1229_vm8, %v5254_v57 }
 0x623   : > { %v5270_v59 = vpop.permute.xlu1 %5269 }
 0x624   : > { %5303 = vst.msk [vmem:[#allocation3 + $0xe8] sm:$0xff] %vm1229_vm8, %v5270_v59  ;;  %v6277_v60 = vpop.permute.xlu0 %6276 }
 0x625   : > { %6319 = vst.msk [vmem:[#allocation3 + $0x58] sm:$0xff] %vm9188_vm1, %v6277_v60  ;;  %vm9192_vm1 = vmmov %vm9182_vm0 }
 0x627   : > { %v6293_v40 = vpop.permute.xlu1 %6292 }
 0x628   : > { %6327 = vst.msk [vmem:[#allocation3 + $0xd8] sm:$0xff] %vm9182_vm0, %v6293_v40  ;;  %v5382_v63 = vpop.permute.xlu0 %5381 }
 0x629   : > { %5423 = vst.msk [vmem:[#allocation3 + $0x68] sm:$0xff] %vm1358_vm9, %v5382_v63 }
 0x62b   : > { %v5398_v1 = vpop.permute.xlu1 %5397 }
 0x62c   : > { %5431 = vst.msk [vmem:[#allocation3 + $0xe8] sm:$0xff] %vm1358_vm9, %v5398_v1  ;;  %v6405_v4 = vpop.permute.xlu0 %6404 }
 0x62d   : > { %6447 = vst.msk [vmem:[#allocation3 + $0x58] sm:$0xff] %vm9189_vm2, %v6405_v4 }
 0x62f   : > { %v6421_v5 = vpop.permute.xlu1 %6420 }
 0x630   : > { %6455 = vst.msk [vmem:[#allocation3 + $0xd8] sm:$0xff] %vm9190_vm4, %v6421_v5  ;;  %v6677_v8 = vpop.f32.mrb[0].mxu0  ;;  %v5510_v9 = vpop.permute.xlu0 %5509  ;;  %v6472_v5 = vld [vmem:[#allocation3 + $0x70] sm:$0xff] }
 0x631   : > { %6805 = vst.msk [vmem:[%s9036_s23] sm:$0xff] %vm6804_vm3, %v6677_v8  ;;  %v6679_v47 = vpop.f32.mrb[1].mxu0 }
 0x632   : > { %5551 = vst.msk [vmem:[#allocation3 + $0x68] sm:$0xff] %vm1487_vm10, %v5510_v9  ;;  %v6680_v10 = vpop.f32.mrb[2].mxu0  ;;  %v6741_v11 = vpop.f32.mrb[0].mxu1  ;;  %v6488_v9 = vld [vmem:[#allocation3 + $0xf0] sm:$0xff] }
 0x633   : > { %6806 = vst.msk [vmem:[%s9036_s23 + $0x8] sm:$0xff] %vm6804_vm3, %v6680_v10  ;;  %6821 = vst.msk [vmem:[%s9036_s23 + $0x80] sm:$0xff] %vm6804_vm3, %v6741_v11  ;;  %v6682_v28 = vpop.f32.mrb[3].mxu0  ;;  %v6743_v27 = vpop.f32.mrb[1].mxu1 }
 0x634   : > { %v5526_v12 = vpop.permute.xlu1 %5525  ;;  %v6744_v6 = vpop.f32.mrb[2].mxu1  ;;  %v6469_v18 = vld [vmem:[#allocation3 + $0x58] sm:$0xff] }
 0x635   : > { %5559 = vst.msk [vmem:[#allocation3 + $0xe8] sm:$0xff] %vm1487_vm10, %v5526_v12  ;;  %v5639_v13 = vpop.permute.xlu0 %5638  ;;  %v6746_v56 = vpop.f32.mrb[3].mxu1  ;;  %6919 = vmatprep.mubr.msk.bf16.mxu0 %vm6590_vm15, %v6469_v18 }
 0x636   : > { %6822 = vst.msk [vmem:[%s9036_s23 + $0x88] sm:$0xff] %vm6804_vm3, %v6744_v6  ;;  %6716 = vmatmul.mubr.bf16.gmra.mrb[20].mxu0 %v6468_v19 }
 0x637   : > { %5680 = vst.msk [vmem:[#allocation3 + $0x68] sm:$0xff] %vm1616_vm11, %v5639_v13  ;;  %v6485_v35 = vld [vmem:[#allocation3 + $0xd8] sm:$0xff] }
 0x638   : > { %v5655_v20 = vpop.permute.xlu1 %5654  ;;  %6927 = vmatprep.mubr.msk.bf16.mxu1 %vm6590_vm15, %v6485_v35 }
 0x639   : > { %5688 = vst.msk [vmem:[#allocation3 + $0xe8] sm:$0xff] %vm1616_vm11, %v5655_v20  ;;  %v5767_v2 = vpop.permute.xlu0 %5766  ;;  %6780 = vmatmul.mubr.bf16.gmra.mrb[20].mxu1 %v6484_v45 }
 0x63a   : > { %5808 = vst.msk [vmem:[#allocation3 + $0x68] sm:$0xff] %vm1745_vm12, %v5767_v2 }
 0x63c   : > { %v5783_v23 = vpop.permute.xlu1 %5782 }
 0x63d   : > { %5816 = vst.msk [vmem:[#allocation3 + $0xe8] sm:$0xff] %vm1745_vm12, %v5783_v23  ;;  %v5895_v38 = vpop.permute.xlu0 %5894 }
 0x63e   : > { %5936 = vst.msk [vmem:[#allocation3 + $0x68] sm:$0xff] %vm1874_vm13, %v5895_v38 }
 0x640   : > { %v5911_v21 = vpop.permute.xlu1 %5910 }
 0x641   : > { %5944 = vst.msk [vmem:[#allocation3 + $0xe8] sm:$0xff] %vm1874_vm13, %v5911_v21  ;;  %v6023_v0 = vpop.permute.xlu0 %6022 }
 0x642   : > { %6064 = vst.msk [vmem:[#allocation3 + $0x68] sm:$0xff] %vm2003_vm14, %v6023_v0 }
 0x644   : > { %v6039_v14 = vpop.permute.xlu1 %6038 }
 0x645   : > { %6072 = vst.msk [vmem:[#allocation3 + $0xe8] sm:$0xff] %vm2003_vm14, %v6039_v14  ;;  %v5128_v49 = vpop.permute.xlu0 %5127 }
 0x646   : > { %5168 = vst.msk [vmem:[#allocation3 + $0x78] sm:$0xff] %vm1099_vm7, %v5128_v49 }
 0x648   : > { %v5144_v54 = vpop.permute.xlu1 %5143 }
 0x649   : > { %5176 = vst.msk [vmem:[#allocation3 + $0xf8] sm:$0xff] %vm1099_vm7, %v5144_v54  ;;  %v6151_v24 = vpop.permute.xlu0 %6150  ;;  %vm9193_vm7 = vmmov %vm9189_vm2 }
 0x64a   : > { %6192 = vst.msk [vmem:[#allocation3 + $0x68] sm:$0xff] %vm9186_vm5, %v6151_v24 }
 0x64c   : > { %v6167_v48 = vpop.permute.xlu1 %6166 }
 0x64d   : > { %6200 = vst.msk [vmem:[#allocation3 + $0xe8] sm:$0xff] %vm9191_vm6, %v6167_v48  ;;  %v5256_v26 = vpop.permute.xlu0 %5255 }
 0x64e   : > { %5296 = vst.msk [vmem:[#allocation3 + $0x78] sm:$0xff] %vm1229_vm8, %v5256_v26 }
 0x650   : > { %v5272_v61 = vpop.permute.xlu1 %5271 }
 0x651   : > { %5304 = vst.msk [vmem:[#allocation3 + $0xf8] sm:$0xff] %vm1229_vm8, %v5272_v61  ;;  %v6279_v25 = vpop.permute.xlu0 %6278  ;;  %vm9194_vm8 = vmmov %vm9189_vm2 }
 0x652   : > { %6320 = vst.msk [vmem:[#allocation3 + $0x68] sm:$0xff] %vm9192_vm1, %v6279_v25 }
 0x654   : > { %v6295_v29 = vpop.permute.xlu1 %6294 }
 0x655   : > { %6328 = vst.msk [vmem:[#allocation3 + $0xe8] sm:$0xff] %vm9182_vm0, %v6295_v29  ;;  %v5384_v31 = vpop.permute.xlu0 %5383 }
 0x656   : > { %5424 = vst.msk [vmem:[#allocation3 + $0x78] sm:$0xff] %vm1358_vm9, %v5384_v31 }
 0x658   : > { %v5400_v50 = vpop.permute.xlu1 %5399 }
 0x659   : > { %5432 = vst.msk [vmem:[#allocation3 + $0xf8] sm:$0xff] %vm1358_vm9, %v5400_v50  ;;  %v6407_v17 = vpop.permute.xlu0 %6406  ;;  %v6685_v62 = vpop.f32.mrb[4].mxu0  ;;  %vm9195_vm9 = vmmov %vm9186_vm5 }
 0x65a   : > { %6448 = vst.msk [vmem:[#allocation3 + $0x68] sm:$0xff] %vm9193_vm7, %v6407_v17  ;;  %v6687_v58 = vpop.f32.mrb[5].mxu0 }
 0x65b   : > { %6807 = vst.msk [vmem:[%s9036_s23 + $0x10] sm:$0xff] %vm6804_vm3, %v6685_v62  ;;  %v6688_v3 = vpop.f32.mrb[6].mxu0 }
 0x65c   : > { %v6423_v42 = vpop.permute.xlu1 %6422  ;;  %6808 = vst.msk [vmem:[%s9036_s23 + $0x18] sm:$0xff] %vm6804_vm3, %v6688_v3  ;;  %v6749_v36 = vpop.f32.mrb[4].mxu1 }
 0x65d   : > { %6456 = vst.msk [vmem:[#allocation3 + $0xe8] sm:$0xff] %vm9194_vm8, %v6423_v42  ;;  %v5512_v7 = vpop.permute.xlu0 %5511  ;;  %v6690_v15 = vpop.f32.mrb[7].mxu0 }
 0x65e   : > { %6823 = vst.msk [vmem:[%s9036_s23 + $0x90] sm:$0xff] %vm6804_vm3, %v6749_v36  ;;  %v6751_v16 = vpop.f32.mrb[5].mxu1 }
 0x65f   : > { %5552 = vst.msk [vmem:[#allocation3 + $0x78] sm:$0xff] %vm1487_vm10, %v5512_v7  ;;  %v6752_v22 = vpop.f32.mrb[6].mxu1 }
 0x660   : > { %6824 = vst.msk [vmem:[%s9036_s23 + $0x98] sm:$0xff] %vm6804_vm3, %v6752_v22  ;;  %v6754_v30 = vpop.f32.mrb[7].mxu1  ;;  %v5528_v33 = vpop.permute.xlu1 %5527 }
 0x661   : > { %5560 = vst.msk [vmem:[#allocation3 + $0xf8] sm:$0xff] %vm1487_vm10, %v5528_v33  ;;  %v5641_v34 = vpop.permute.xlu0 %5640  ;;  %v6471_v37 = vld [vmem:[#allocation3 + $0x68] sm:$0xff]  ;;  %vm9196_vm10 = vmmov %vm9186_vm5 }
 0x662   : > { %5681 = vst.msk [vmem:[#allocation3 + $0x78] sm:$0xff] %vm1616_vm11, %v5641_v34  ;;  %6920 = vmatprep.mubr.msk.bf16.mxu0 %vm6590_vm15, %v6471_v37 }
 0x663   : > { %6724 = vmatmul.mubr.bf16.gmra.mrb[24].mxu0 %v6470_v39 }
 0x664   : > { %v5657_v41 = vpop.permute.xlu1 %5656  ;;  %v6487_v43 = vld [vmem:[#allocation3 + $0xe8] sm:$0xff] }
 0x665   : > { %5689 = vst.msk [vmem:[#allocation3 + $0xf8] sm:$0xff] %vm1616_vm11, %v5657_v41  ;;  %6928 = vmatprep.mubr.msk.bf16.mxu1 %vm6590_vm15, %v6487_v43  ;;  %v5769_v44 = vpop.permute.xlu0 %5768  ;;  %vm9197_vm11 = vmmov %vm9182_vm0 }
 0x666   : > { %5809 = vst.msk [vmem:[#allocation3 + $0x78] sm:$0xff] %vm1745_vm12, %v5769_v44  ;;  %6788 = vmatmul.mubr.bf16.gmra.mrb[24].mxu1 %v6486_v51 }
 0x668   : > { %v5785_v46 = vpop.permute.xlu1 %5784 }
 0x669   : > { %5817 = vst.msk [vmem:[#allocation3 + $0xf8] sm:$0xff] %vm1745_vm12, %v5785_v46  ;;  %v5897_v52 = vpop.permute.xlu0 %5896  ;;  %vm9198_vm12 = vmmov %vm9182_vm0 }
 0x66a   : > { %5937 = vst.msk [vmem:[#allocation3 + $0x78] sm:$0xff] %vm1874_vm13, %v5897_v52 }
 0x66c   : > { %v5913_v32 = vpop.permute.xlu1 %5912 }
 0x66d   : > { %5945 = vst.msk [vmem:[#allocation3 + $0xf8] sm:$0xff] %vm1874_vm13, %v5913_v32  ;;  %v6025_v53 = vpop.permute.xlu0 %6024  ;;  %vm9199_vm13 = vmmov %vm9189_vm2 }
 0x66e   : > { %6065 = vst.msk [vmem:[#allocation3 + $0x78] sm:$0xff] %vm2003_vm14, %v6025_v53 }
 0x670   : > { %v6041_v55 = vpop.permute.xlu1 %6040 }
 0x671   : > { %6073 = vst.msk [vmem:[#allocation3 + $0xf8] sm:$0xff] %vm2003_vm14, %v6041_v55  ;;  %v6153_v57 = vpop.permute.xlu0 %6152 }
 0x672   : > { %6193 = vst.msk [vmem:[#allocation3 + $0x78] sm:$0xff] %vm9195_vm9, %v6153_v57 }
 0x674   : > { %v6169_v59 = vpop.permute.xlu1 %6168 }
 0x675   : > { %6201 = vst.msk [vmem:[#allocation3 + $0xf8] sm:$0xff] %vm9196_vm10, %v6169_v59  ;;  %v6281_v60 = vpop.permute.xlu0 %6280 }
 0x676   : > { %6321 = vst.msk [vmem:[#allocation3 + $0x78] sm:$0xff] %vm9197_vm11, %v6281_v60 }
 0x678   : > { %v6297_v40 = vpop.permute.xlu1 %6296 }
 0x679   : > { %6329 = vst.msk [vmem:[#allocation3 + $0xf8] sm:$0xff] %vm9198_vm12, %v6297_v40  ;;  %v6409_v63 = vpop.permute.xlu0 %6408 }
 0x67a   : > { %6449 = vst.msk [vmem:[#allocation3 + $0x78] sm:$0xff] %vm9199_vm13, %v6409_v63 }
 0x67c   : > { %v6425_v1 = vpop.permute.xlu1 %6424 }
 0x67d   : > { %6457 = vst.msk [vmem:[#allocation3 + $0xf8] sm:$0xff] %vm9189_vm2, %v6425_v1 }
 0x681   : > { %v6473_v4 = vld [vmem:[#allocation3 + $0x78] sm:$0xff] }
 0x682   : > { %6921 = vmatprep.mubr.msk.bf16.mxu0 %vm6590_vm15, %v6473_v4 }
 0x683   : > { %6732 = vmatmul.mubr.bf16.gmra.mrb[28].mxu0 %v6472_v5 }
 0x684   : > { %v6489_v8 = vld [vmem:[#allocation3 + $0xf8] sm:$0xff] }
 0x685   : > { %6929 = vmatprep.mubr.msk.bf16.mxu1 %vm6590_vm15, %v6489_v8  ;;  %v6693_v47 = vpop.f32.mrb[8].mxu0 }
 0x686   : > { %6796 = vmatmul.mubr.bf16.gmra.mrb[28].mxu1 %v6488_v9  ;;  %6809 = vst.msk [vmem:[%s9036_s23 + $0x20] sm:$0xff] %vm6804_vm3, %v6693_v47  ;;  %v6695_v10 = vpop.f32.mrb[9].mxu0 }
 0x687   : > { %v6696_v11 = vpop.f32.mrb[10].mxu0 }
 0x688   : > { %v6757_v28 = vpop.f32.mrb[8].mxu1  ;;  %6810 = vst.msk [vmem:[%s9036_s23 + $0x28] sm:$0xff] %vm6804_vm3, %v6696_v11  ;;  %v6698_v27 = vpop.f32.mrb[11].mxu0 }
 0x689   : > { %6825 = vst.msk [vmem:[%s9036_s23 + $0xa0] sm:$0xff] %vm6804_vm3, %v6757_v28  ;;  %v6759_v12 = vpop.f32.mrb[9].mxu1 }
 0x68a   : > { %v6760_v6 = vpop.f32.mrb[10].mxu1 }
 0x68b   : > { %6826 = vst.msk [vmem:[%s9036_s23 + $0xa8] sm:$0xff] %vm6804_vm3, %v6760_v6  ;;  %v6762_v13 = vpop.f32.mrb[11].mxu1 }
 0x6b1   : > { %v6701_v56 = vpop.f32.mrb[12].mxu0 }
 0x6b2   : > { %6811 = vst.msk [vmem:[%s9036_s23 + $0x30] sm:$0xff] %vm6804_vm3, %v6701_v56  ;;  %v6703_v18 = vpop.f32.mrb[13].mxu0 }
 0x6b3   : > { %v6704_v19 = vpop.f32.mrb[14].mxu0 }
 0x6b4   : > { %v6765_v35 = vpop.f32.mrb[12].mxu1  ;;  %6812 = vst.msk [vmem:[%s9036_s23 + $0x38] sm:$0xff] %vm6804_vm3, %v6704_v19  ;;  %v6706_v20 = vpop.f32.mrb[15].mxu0 }
 0x6b5   : > { %6827 = vst.msk [vmem:[%s9036_s23 + $0xb0] sm:$0xff] %vm6804_vm3, %v6765_v35  ;;  %v6767_v45 = vpop.f32.mrb[13].mxu1 }
 0x6b6   : > { %v6768_v2 = vpop.f32.mrb[14].mxu1 }
 0x6b7   : > { %6828 = vst.msk [vmem:[%s9036_s23 + $0xb8] sm:$0xff] %vm6804_vm3, %v6768_v2  ;;  %v6770_v23 = vpop.f32.mrb[15].mxu1 }
 0x6dd   : > { %v6709_v38 = vpop.f32.mrb[16].mxu0 }
 0x6de   : > { %6813 = vst.msk [vmem:[%s9036_s23 + $0x40] sm:$0xff] %vm6804_vm3, %v6709_v38  ;;  %v6711_v21 = vpop.f32.mrb[17].mxu0 }
 0x6df   : > { %v6712_v0 = vpop.f32.mrb[18].mxu0 }
 0x6e0   : > { %v6773_v14 = vpop.f32.mrb[16].mxu1  ;;  %6814 = vst.msk [vmem:[%s9036_s23 + $0x48] sm:$0xff] %vm6804_vm3, %v6712_v0  ;;  %v6714_v49 = vpop.f32.mrb[19].mxu0 }
 0x6e1   : > { %6829 = vst.msk [vmem:[%s9036_s23 + $0xc0] sm:$0xff] %vm6804_vm3, %v6773_v14  ;;  %v6775_v54 = vpop.f32.mrb[17].mxu1 }
 0x6e2   : > { %v6776_v24 = vpop.f32.mrb[18].mxu1 }
 0x6e3   : > { %6830 = vst.msk [vmem:[%s9036_s23 + $0xc8] sm:$0xff] %vm6804_vm3, %v6776_v24  ;;  %v6778_v48 = vpop.f32.mrb[19].mxu1 }
 0x709   : > { %v6717_v26 = vpop.f32.mrb[20].mxu0 }
 0x70a   : > { %6815 = vst.msk [vmem:[%s9036_s23 + $0x50] sm:$0xff] %vm6804_vm3, %v6717_v26  ;;  %v6719_v61 = vpop.f32.mrb[21].mxu0 }
 0x70b   : > { %v6720_v25 = vpop.f32.mrb[22].mxu0 }
 0x70c   : > { %v6781_v29 = vpop.f32.mrb[20].mxu1  ;;  %6816 = vst.msk [vmem:[%s9036_s23 + $0x58] sm:$0xff] %vm6804_vm3, %v6720_v25  ;;  %v6722_v31 = vpop.f32.mrb[23].mxu0 }
 0x70d   : > { %6831 = vst.msk [vmem:[%s9036_s23 + $0xd0] sm:$0xff] %vm6804_vm3, %v6781_v29  ;;  %v6783_v50 = vpop.f32.mrb[21].mxu1 }
 0x70e   : > { %v6784_v17 = vpop.f32.mrb[22].mxu1 }
 0x70f   : > { %6832 = vst.msk [vmem:[%s9036_s23 + $0xd8] sm:$0xff] %vm6804_vm3, %v6784_v17  ;;  %v6786_v62 = vpop.f32.mrb[23].mxu1 }
 0x736   : > { %v6725_v58 = vpop.f32.mrb[24].mxu0 }
 0x737   : > { %6817 = vst.msk [vmem:[%s9036_s23 + $0x60] sm:$0xff] %vm6804_vm3, %v6725_v58  ;;  %v6727_v42 = vpop.f32.mrb[25].mxu0 }
 0x738   : > { %v6728_v3 = vpop.f32.mrb[26].mxu0 }
 0x739   : > { %6818 = vst.msk [vmem:[%s9036_s23 + $0x68] sm:$0xff] %vm6804_vm3, %v6728_v3  ;;  %v6789_v36 = vpop.f32.mrb[24].mxu1  ;;  %v6730_v7 = vpop.f32.mrb[27].mxu0 }
 0x73a   : > { %6833 = vst.msk [vmem:[%s9036_s23 + $0xe0] sm:$0xff] %vm6804_vm3, %v6789_v36  ;;  %v6791_v15 = vpop.f32.mrb[25].mxu1 }
 0x73b   : > { %v6792_v16 = vpop.f32.mrb[26].mxu1 }
 0x73c   : > { %6834 = vst.msk [vmem:[%s9036_s23 + $0xe8] sm:$0xff] %vm6804_vm3, %v6792_v16  ;;  %v6794_v22 = vpop.f32.mrb[27].mxu1 }
 0x756   : > { %v6733_v30 = vpop.f32.mrb[28].mxu0 }
 0x757   : > { %6819 = vst.msk [vmem:[%s9036_s23 + $0x70] sm:$0xff] %vm6804_vm3, %v6733_v30  ;;  %v6735_v33 = vpop.f32.mrb[29].mxu0 }
 0x758   : > { %v6736_v34 = vpop.f32.mrb[30].mxu0 }
 0x759   : > { %6820 = vst.msk [vmem:[%s9036_s23 + $0x78] sm:$0xff] %vm6804_vm3, %v6736_v34  ;;  %v6797_v37 = vpop.f32.mrb[28].mxu1  ;;  %v6738_v39 = vpop.f32.mrb[31].mxu0 }
 0x75a   : > { %6835 = vst.msk [vmem:[%s9036_s23 + $0xf0] sm:$0xff] %vm6804_vm3, %v6797_v37  ;;  %v6799_v41 = vpop.f32.mrb[29].mxu1 }
 0x75b   : > { %v6800_v43 = vpop.f32.mrb[30].mxu1 }
 0x75c   : > { %6836 = vst.msk [vmem:[%s9036_s23 + $0xf8] sm:$0xff] %vm6804_vm3, %v6800_v43  ;;  %v6802_v44 = vpop.f32.mrb[31].mxu1 }
 0x75d PF: > { %s12_s9 = sadd.s32 1, %s7020_s9  }
 0x75e   : > { %p9_p4 = scmp.ge.s32.totalorder %s12_s9, 4  }
 0x760   :  { %11 = sbr.rel (!%p9_p4) target bundleno = 1 (0x1), region = 64 }

</bundles_post_ra>
